<compile_context>
chip_gen: v7x
topology: tpu7x:2x2x1
jax: 0.10.0
libtpu: 0.0.40
codegen_flags: <defaults>
</compile_context>

<pallas_src>
import functools

import jax
import jax.numpy as jnp
from jax.experimental import pallas as pl
from jax.experimental.pallas import tpu as pltpu

STREAM_DTYPE = jnp.bfloat16     # HBM streaming dtype for activations
ROW_OFF = 8                     # sublane-aligned interior row offset in padded scratch
LANE_OFF = 128                  # lane-aligned interior lane offset in padded scratch


def _ceil_to(x, m):
    return (x + m - 1) // m * m


def _pick_row_tile(m):
    # prefer the biggest row tile; the wrapper pads M up to a multiple of it
    for t in (512, 256, 128, 64, 32, 16, 8):
        if m >= t:
            return t
    return 8


def _pad_rows(a, m_pad):
    m = a.shape[0]
    return a if m == m_pad else jnp.pad(a, ((0, m_pad - m), (0, 0)))


def _pick_batch(n, h, w, c, hid, max_b=8, budget=16 * 1024 * 1024):
    # largest divisor of n (<= max_b) whose f32 scratch slabs fit the budget
    gap = (8 - h % 8) if h % 8 else 8
    stride = h + gap
    wc, wh = w * c, w * hid
    slc = _ceil_to(LANE_OFF + wc + c, 128)
    slh = _ceil_to(LANE_OFF + wh + hid, 128)
    best = 1
    for b in range(1, min(n, max_b) + 1):
        if n % b:
            continue
        r = b * stride
        sr = ROW_OFF + r + 8
        scratch = 2 * sr * slc * 4 + 2 * sr * slh * 4 + r * wc * 4
        if scratch <= budget:
            best = b
    return best


# ----------------------------------------------------------------------------
# In-kernel math helpers
# ----------------------------------------------------------------------------

def _sigmoid(y):
    # exact sigmoid (review correctness note): exp on EUP, exact reciprocal/divide
    return 1.0 / (1.0 + jnp.exp(-y))


def _silu(y):
    return y * _sigmoid(y)


def _tree_sum(vals):
    vals = list(vals)
    while len(vals) > 1:
        nxt = [vals[i] + vals[i + 1] for i in range(0, len(vals) - 1, 2)]
        if len(vals) % 2 == 1:
            nxt.append(vals[-1])
        vals = nxt
    return vals[0]


# ----------------------------------------------------------------------------
# Kernel 1: C2f cv1 (1x1 conv + BN + SiLU), both channel chunks fused into one
# lane-dense 2*W*c output (single 128-lane store, single wide MXU dot).
# ----------------------------------------------------------------------------

def conv1x1_fused_kernel(x_ref, w_ref, s_ref, b_ref, o_ref):
    y = jnp.dot(x_ref[...], w_ref[...], preferred_element_type=jnp.float32)
    o_ref[...] = _silu(y * s_ref[...] + b_ref[...]).astype(o_ref.dtype)


# ----------------------------------------------------------------------------
# Kernel 3: C2f cv2 (1x1 conv on the channel concat + BN + SiLU).  The concat is
# fused away: out = act(BN(sum_i branch_i @ W_i)).  The first branch is the full
# fused cv1 output (both chunks), so its dot already has K = 2*W*c (>=128 lanes).
# ----------------------------------------------------------------------------

def conv1x1_concat_kernel(*refs, n_in):
    x_refs = refs[:n_in]
    w_refs = refs[n_in:2 * n_in]
    s_ref, b_ref, o_ref = refs[2 * n_in:]
    parts = [jnp.dot(x_refs[i][...], w_refs[i][...],
                     preferred_element_type=jnp.float32) for i in range(n_in)]
    y = _tree_sum(parts) * s_ref[...] + b_ref[...]
    o_ref[...] = _silu(y).astype(o_ref.dtype)


# ----------------------------------------------------------------------------
# Kernel 2: fully fused Bottleneck + MEEM, B images per grid step.
#   y1 = SiLU(BN(conv3x3(x)));  y2 = SiLU(BN(conv3x3(y1)))
#   mid = sigmoid(BN(conv1x1(y2)))                          (MEEM in_conv)
#   repeat width-1 times:
#       mid  = sigmoid(BN(conv1x1(avgpool3x3(mid))))        (mid_conv)
#       edge = sigmoid(BN(conv1x1(mid - avgpool3x3(mid))))  (EdgeEnhancer)
#       branch = mid + edge
#   out = ReLU(BN(conv1x1(cat(branches))))  [ + x if residual ]
# Images are stacked in the padded f32 VMEM slabs at row stride STRIDE = H + GAP
# (gap rows stay zero), so 3x3 taps never bleed across images and all matmuls
# run on (B*STRIDE)-row slabs.  MXU operands are cast to bf16 at the dot sites.
# ----------------------------------------------------------------------------

def bottleneck_meem_kernel(x_ref, w1_ref, s1_ref, b1_ref, w2_ref, s2_ref, b2_ref,
                           wi_ref, si_ref, bi_ref,
                           wm_ref, sm_ref, bm_ref,
                           we_ref, se_ref, be_ref,
                           wo_ref, so_ref, bo_ref,
                           o_ref,
                           px_ref, py_ref, pa_ref, pb_ref, acc_ref,
                           *, B, H, W, C, HID, WIDTH, ADD, STRIDE):
    WC = W * C
    WH = W * HID
    R = B * STRIDE                        # interior row span (images + gap rows)
    BF = jnp.bfloat16

    # Zero only the 3x3-tap read window (borders + gap rows).  The per-image
    # interior stores below overwrite the image rows, so only the strips matter;
    # this is ~6x less store traffic than re-zeroing the whole padded slab and
    # is correct for any megacore partition of the "parallel" grid axis.
    def zero_window(pref, lanes, ch):
        pref[:, LANE_OFF - ch:LANE_OFF + lanes + ch] = jnp.zeros(
            (pref.shape[0], lanes + 2 * ch), jnp.float32)

    zero_window(px_ref, WC, C)
    zero_window(py_ref, WC, C)
    zero_window(pa_ref, WH, HID)
    zero_window(pb_ref, WH, HID)

    def store_interior(pref, val, lanes):
        # val is an (R, lanes) span value; only image rows are copied so the
        # zeroed gap rows / borders stay zero.
        for b in range(B):
            r = ROW_OFF + b * STRIDE
            pref[r:r + H, LANE_OFF:LANE_OFF + lanes] = \
                val[b * STRIDE:b * STRIDE + H]

    def taps(pref, lanes, ch):
        out = []
        for dh in range(3):
            for dw in range(3):
                r0 = ROW_OFF + dh - 1
                l0 = LANE_OFF + (dw - 1) * ch
                out.append(pref[r0:r0 + R, l0:l0 + lanes])
        return out

    def conv3x3(pref, w_taps_ref, lanes, ch):
        ts = taps(pref, lanes, ch)
        return _tree_sum([jnp.dot(ts[k].astype(BF), w_taps_ref[k],
                                  preferred_element_type=jnp.float32)
                          for k in range(9)])

    def pool3x3(pref, lanes, ch):
        # AvgPool2d(3, stride=1, padding=1, count_include_pad=True)
        return _tree_sum(taps(pref, lanes, ch)) * (1.0 / 9.0)

    # input images -> padded slab (per-image stores keep gap rows zero)
    for b in range(B):
        r = ROW_OFF + b * STRIDE
        px_ref[r:r + H, LANE_OFF:LANE_OFF + WC] = x_ref[b].astype(jnp.float32)

    # Bottleneck cv1 / cv2: 3x3 conv + folded BN + SiLU
    y = conv3x3(px_ref, w1_ref, WC, C)
    y = _silu(y * s1_ref[...] + b1_ref[...])
    store_interior(py_ref, y, WC)

    y = conv3x3(py_ref, w2_ref, WC, C)
    y = _silu(y * s2_ref[...] + b2_ref[...])

    # MEEM in_conv (1x1 + BN + sigmoid)
    mid = _sigmoid(jnp.dot(y.astype(BF), wi_ref[...],
                           preferred_element_type=jnp.float32)
                   * si_ref[...] + bi_ref[...])                 # (R, W*HID)

    # out_conv accumulated branch-by-branch in VMEM (fuses the channel concat)
    acc_ref[...] = jnp.dot(mid.astype(BF), wo_ref[0],
                           preferred_element_type=jnp.float32)

    cur, nxt = pa_ref, pb_ref
    for i in range(WIDTH - 1):
        store_interior(cur, mid, WH)
        pooled = pool3x3(cur, WH, HID)
        mid = _sigmoid(jnp.dot(pooled.astype(BF), wm_ref[i],
                               preferred_element_type=jnp.float32)
                       * sm_ref[i] + bm_ref[i])
        store_interior(nxt, mid, WH)
        edge = mid - pool3x3(nxt, WH, HID)
        edge = _sigmoid(jnp.dot(edge.astype(BF), we_ref[i],
                                preferred_element_type=jnp.float32)
                        * se_ref[i] + be_ref[i])
        acc_ref[...] += jnp.dot((mid + edge).astype(BF), wo_ref[i + 1],
                                preferred_element_type=jnp.float32)
        cur, nxt = nxt, cur

    out = jnp.maximum(acc_ref[...] * so_ref[...] + bo_ref[...], 0.0)   # ReLU
    for b in range(B):
        res = out[b * STRIDE:b * STRIDE + H]
        if ADD:
            res = res + x_ref[b].astype(jnp.float32)
        o_ref[b] = res.astype(o_ref.dtype)


# ----------------------------------------------------------------------------
# Pallas-call wrappers
# ----------------------------------------------------------------------------

def _bcast_spec(shape):
    n = len(shape)
    return pl.BlockSpec(shape, lambda *_: (0,) * n)


def c2f_cv1(x2, pp):
    M2, K = x2.shape
    Nout = pp["w"].shape[1]
    tile = _pick_row_tile(M2)
    M2p = _ceil_to(M2, tile)
    x2p = _pad_rows(x2, M2p)
    y = pl.pallas_call(
        conv1x1_fused_kernel,
        out_shape=jax.ShapeDtypeStruct((M2p, Nout), STREAM_DTYPE),
        grid=(M2p // tile,),
        in_specs=[pl.BlockSpec((tile, K), lambda i: (i, 0)),
                  _bcast_spec(pp["w"].shape), _bcast_spec(pp["s"].shape),
                  _bcast_spec(pp["b"].shape)],
        out_specs=pl.BlockSpec((tile, Nout), lambda i: (i, 0)),
        compiler_params=pltpu.CompilerParams(dimension_semantics=("parallel",)),
        cost_estimate=pl.CostEstimate(
            flops=int(2 * M2p * K * Nout),
            transcendentals=int(M2p * Nout),
            bytes_accessed=int((M2p * (K + Nout) + K * Nout) * 2 + 8 * Nout)),
    )(x2p, pp["w"], pp["s"], pp["b"])
    return y[:M2] if M2p != M2 else y


def c2f_cv2(ys, pp):
    n_in = len(ys)
    M2 = ys[0].shape[0]
    Nout = pp["w"][0].shape[1]
    tile = _pick_row_tile(M2)
    M2p = _ceil_to(M2, tile)
    ysp = [_pad_rows(y, M2p) for y in ys]
    k_tot = sum(int(y.shape[1]) for y in ys)
    in_specs = ([pl.BlockSpec((tile, int(y.shape[1])), lambda i: (i, 0))
                 for y in ysp]
                + [_bcast_spec(w.shape) for w in pp["w"]]
                + [_bcast_spec(pp["s"].shape), _bcast_spec(pp["b"].shape)])
    out = pl.pallas_call(
        functools.partial(conv1x1_concat_kernel, n_in=n_in),
        out_shape=jax.ShapeDtypeStruct((M2p, Nout), STREAM_DTYPE),
        grid=(M2p // tile,),
        in_specs=in_specs,
        out_specs=pl.BlockSpec((tile, Nout), lambda i: (i, 0)),
        compiler_params=pltpu.CompilerParams(dimension_semantics=("parallel",)),
        cost_estimate=pl.CostEstimate(
            flops=int(2 * M2p * k_tot * Nout),
            transcendentals=int(M2p * Nout),
            bytes_accessed=int((M2p * (k_tot + Nout) + k_tot * Nout) * 2
                               + 8 * Nout)),
    )(*ysp, *pp["w"], pp["s"], pp["b"])
    return out[:M2] if M2p != M2 else out


def bottleneck_fused(x3, pp):
    N, H, WC = x3.shape
    C, HID, WIDTH = pp["C"], pp["HID"], pp["WIDTH"]
    W = WC // C
    WH = W * HID
    B = _pick_batch(N, H, W, C, HID)
    GAP = (8 - H % 8) if H % 8 else 8
    STRIDE = H + GAP
    R = B * STRIDE
    SR = ROW_OFF + R + 8
    SLC = _ceil_to(LANE_OFF + WC + C, 128)
    SLH = _ceil_to(LANE_OFF + WH + HID, 128)

    kernel = functools.partial(bottleneck_meem_kernel, B=B, H=H, W=W, C=C,
                               HID=HID, WIDTH=WIDTH, ADD=pp["add"],
                               STRIDE=STRIDE)

    steps = N // B
    flops_step = 2 * R * (18 * WC * WC + WC * WH
                          + (WIDTH - 1) * (2 * WH * WH + WH * WC) + WH * WC)
    trans_step = R * (2 * WC + WH * (2 * WIDTH - 1))
    weight_bytes = (18 * WC * WC + WC * WH + 2 * (WIDTH - 1) * WH * WH
                    + WIDTH * WH * WC) * 2
    bytes_step = 4 * B * H * WC                       # bf16 in + out

    operands = (x3, pp["w1"], pp["s1"], pp["b1"], pp["w2"], pp["s2"], pp["b2"],
                pp["wi"], pp["si"], pp["bi"], pp["wm"], pp["sm"], pp["bm"],
                pp["we"], pp["se"], pp["be"], pp["wo"], pp["so"], pp["bo"])
    in_specs = [pl.BlockSpec((B, H, WC), lambda n: (n, 0, 0))]
    in_specs += [_bcast_spec(op.shape) for op in operands[1:]]

    out = pl.pallas_call(
        kernel,
        out_shape=jax.ShapeDtypeStruct((N, H, WC), STREAM_DTYPE),
        grid=(steps,),
        in_specs=in_specs,
        out_specs=pl.BlockSpec((B, H, WC), lambda n: (n, 0, 0)),
        scratch_shapes=[pltpu.VMEM((SR, SLC), jnp.float32),
                        pltpu.VMEM((SR, SLC), jnp.float32),
                        pltpu.VMEM((SR, SLH), jnp.float32),
                        pltpu.VMEM((SR, SLH), jnp.float32),
                        pltpu.VMEM((R, WC), jnp.float32)],
        compiler_params=pltpu.CompilerParams(
            dimension_semantics=("parallel",),
            # re-derive per generation when scaling tiles (<= ~56 MiB on v7x)
            vmem_limit_bytes=32 * 1024 * 1024),
        cost_estimate=pl.CostEstimate(
            flops=int(steps * flops_step),
            transcendentals=int(steps * trans_step),
            bytes_accessed=int(steps * bytes_step + weight_bytes)),
    )(*operands)
    return out


# ----------------------------------------------------------------------------
# Module forward (Pallas path)
# ----------------------------------------------------------------------------

def c2f_meem_forward(x_nhwc, PP):
    N, H, W, C1 = x_nhwc.shape
    M2 = N * H
    x2 = x_nhwc.reshape(M2, W * C1).astype(STREAM_DTYPE)
    y_full = c2f_cv1(x2, PP["cv1"])                 # (M2, 2*W*c): [chunk_a | chunk_b]
    Na = y_full.shape[1] // 2
    ys = [y_full]
    cur = y_full[:, Na:]                            # chunk_b (free slice in XLA)
    for mpp in PP["m"]:
        C = mpp["C"]
        z = bottleneck_fused(cur.reshape(N, H, W * C), mpp)
        cur = z.reshape(M2, W * C)
        ys.append(cur)
    out2 = c2f_cv2(ys, PP["cv2"])
    C2 = out2.shape[1] // W
    return out2.reshape(N, H, W, C2).astype(jnp.float32)


# ----------------------------------------------------------------------------
# Parameter preparation: block-diagonal (interleaved-lane) weights in bf16,
# folded-BN scale/bias tiled per lane (f32).
# ----------------------------------------------------------------------------

def prepare_params(P, W):
    eyeW = jnp.eye(W, dtype=jnp.float32)

    def bd1x1(T):
        return jnp.kron(eyeW, T)

    def t_of(w_oihw, kh=0, kw=0):
        return jnp.transpose(w_oihw[:, :, kh, kw], (1, 0))      # (Cin, Cout)

    def tile_vec(v):
        return jnp.tile(v, W)[None, :]

    def bd3x3(w_oihw):
        return jnp.stack([bd1x1(t_of(w_oihw, dh, dw))
                          for dh in range(3) for dw in range(3)], axis=0)

    def bf(x):
        return x.astype(jnp.bfloat16)

    # C2f cv1: single fused weight; output lanes are [chunk_a | chunk_b]
    T = t_of(P["cv1"]["w"])
    c = T.shape[1] // 2
    cv1 = {
        "w": bf(jnp.concatenate([bd1x1(T[:, :c]), bd1x1(T[:, c:])], axis=1)),
        "s": jnp.concatenate([tile_vec(P["cv1"]["scale"][:c]),
                              tile_vec(P["cv1"]["scale"][c:])], axis=1),
        "b": jnp.concatenate([tile_vec(P["cv1"]["bias"][:c]),
                              tile_vec(P["cv1"]["bias"][c:])], axis=1),
    }

    # C2f cv2: first input is the fused cv1 output (both chunks, K = 2*W*c),
    # then one weight chunk per bottleneck branch (concat fused away).
    T2 = t_of(P["cv2"]["w"])                                   # ((2+n)*c, c2)
    n_br = T2.shape[0] // c
    w_ab = jnp.concatenate([bd1x1(T2[0:c, :]), bd1x1(T2[c:2 * c, :])], axis=0)
    cv2 = {"w": [bf(w_ab)] + [bf(bd1x1(T2[j * c:(j + 1) * c, :]))
                              for j in range(2, n_br)],
           "s": tile_vec(P["cv2"]["scale"]), "b": tile_vec(P["cv2"]["bias"])}

    m_list = []
    for m in P["m"]:
        meem = m["meem"]
        hid = int(meem["in_conv"]["w"].shape[0])
        width = len(meem["mid_conv"]) + 1
        To = t_of(meem["out_conv"]["w"])                       # (width*hid, c)
        m_list.append({
            "C": int(m["cv1"]["w"].shape[0]),
            "HID": hid,
            "WIDTH": int(width),
            "add": bool(m["add"]),
            "w1": bf(bd3x3(m["cv1"]["w"])),
            "s1": tile_vec(m["cv1"]["scale"]), "b1": tile_vec(m["cv1"]["bias"]),
            "w2": bf(bd3x3(m["cv2"]["w"])),
            "s2": tile_vec(m["cv2"]["scale"]), "b2": tile_vec(m["cv2"]["bias"]),
            "wi": bf(bd1x1(t_of(meem["in_conv"]["w"]))),
            "si": tile_vec(meem["in_conv"]["scale"]),
            "bi": tile_vec(meem["in_conv"]["bias"]),
            "wm": bf(jnp.stack([bd1x1(t_of(p["w"])) for p in meem["mid_conv"]], 0)),
            "sm": jnp.stack([tile_vec(p["scale"]) for p in meem["mid_conv"]], 0),
            "bm": jnp.stack([tile_vec(p["bias"]) for p in meem["mid_conv"]], 0),
            "we": bf(jnp.stack([bd1x1(t_of(p["w"])) for p in meem["edge"]], 0)),
            "se": jnp.stack([tile_vec(p["scale"]) for p in meem["edge"]], 0),
            "be": jnp.stack([tile_vec(p["bias"]) for p in meem["edge"]], 0),
            "wo": bf(jnp.stack([bd1x1(To[i * hid:(i + 1) * hid, :])
                                for i in range(width)], 0)),
            "so": tile_vec(meem["out_conv"]["scale"]),
            "bo": tile_vec(meem["out_conv"]["bias"]),
        })
    return {"cv1": cv1, "cv2": cv2, "m": m_list}


# ----------------------------------------------------------------------------
# Pure-JAX reference (lax.conv based), used only for a correctness check.
# ----------------------------------------------------------------------------

def conv_bn_act_ref(x, p, act):
    k = p["w"].shape[2]
    w_hwio = jnp.transpose(p["w"], (2, 3, 1, 0))
    pad = k // 2
    y = jax.lax.conv_general_dilated(
        x, w_hwio, window_strides=(1, 1),
        padding=((pad, pad), (pad, pad)),
        dimension_numbers=("NHWC", "HWIO", "NHWC"))
    y = y * p["scale"] + p["bias"]
    if act == "silu":
        return jax.nn.silu(y)
    if act == "sigmoid":
        return jax.nn.sigmoid(y)
    return jax.nn.relu(y)


def avgpool3_ref(x):
    n, h, w, c = x.shape
    xp = jnp.pad(x, ((0, 0), (1, 1), (1, 1), (0, 0)))
    acc = jnp.zeros_like(x)
    for dh in range(3):
        for dw in range(3):
            acc = acc + xp[:, dh:dh + h, dw:dw + w, :]
    return acc / 9.0


def meem_ref(x, P):
    mid = conv_bn_act_ref(x, P["in_conv"], "sigmoid")
    out = mid
    for i in range(len(P["mid_conv"])):
        mid = conv_bn_act_ref(avgpool3_ref(mid), P["mid_conv"][i], "sigmoid")
        edge = conv_bn_act_ref(mid - avgpool3_ref(mid), P["edge"][i], "sigmoid")
        out = jnp.concatenate([out, mid + edge], axis=-1)
    return conv_bn_act_ref(out, P["out_conv"], "relu")


def bottleneck_ref(x, P):
    y = conv_bn_act_ref(conv_bn_act_ref(x, P["cv1"], "silu"), P["cv2"], "silu")
    y = meem_ref(y, P["meem"])
    return x + y if P["add"] else y


def c2f_meem_ref(x, P):
    t = conv_bn_act_ref(x, P["cv1"], "silu")
    c = t.shape[-1] // 2
    ys = [t[..., :c], t[..., c:]]
    for m in P["m"]:
        ys.append(bottleneck_ref(ys[-1], m))
    return conv_bn_act_ref(jnp.concatenate(ys, axis=-1), P["cv2"], "silu")


# ----------------------------------------------------------------------------
# Deterministic synthetic parameter init (BN folded eval-mode into scale/bias)
# ----------------------------------------------------------------------------

def _fold_bn(gamma, beta, mean, var, eps=1e-5):
    scale = gamma / jnp.sqrt(var + eps)
    return scale, beta - mean * scale


def init_conv_bn(key, cin, cout, k):
    kw, kg, kb, km, kv = jax.random.split(key, 5)
    w = jax.random.normal(kw, (cout, cin, k, k), jnp.float32) / jnp.sqrt(cin * k * k)
    gamma = 0.5 + jax.random.uniform(kg, (cout,), jnp.float32)
    beta = 0.1 * jax.random.normal(kb, (cout,), jnp.float32)
    mean = 0.1 * jax.random.normal(km, (cout,), jnp.float32)
    var = 0.5 + jax.random.uniform(kv, (cout,), jnp.float32)
    scale, bias = _fold_bn(gamma, beta, mean, var)
    return {"w": w, "scale": scale, "bias": bias}


def init_params(key, c1, c2, n=1, shortcut=False, e=0.5, width=4):
    c = int(c2 * e)
    hidden = c // 2
    it = iter(jax.random.split(key, 4 + n * (4 + 2 * (width - 1))))
    P = {
        "cv1": init_conv_bn(next(it), c1, 2 * c, 1),
        "cv2": init_conv_bn(next(it), (2 + n) * c, c2, 1),
        "m": [],
    }
    for _ in range(n):
        P["m"].append({
            "cv1": init_conv_bn(next(it), c, c, 3),
            "cv2": init_conv_bn(next(it), c, c, 3),
            "add": bool(shortcut),                      # shortcut and c1 == c2
            "meem": {
                "in_conv": init_conv_bn(next(it), c, hidden, 1),
                "mid_conv": [init_conv_bn(next(it), hidden, hidden, 1)
                             for _ in range(width - 1)],
                "edge": [init_conv_bn(next(it), hidden, hidden, 1)
                         for _ in range(width - 1)],
                "out_conv": init_conv_bn(next(it), hidden * width, c, 1),
            },
        })
    return P


if __name__ == "__main__":
    key = jax.random.PRNGKey(0)
    kx, kp = jax.random.split(key)

    N, C, H, W = 2, 8, 16, 16                           # NCHW, as in the PyTorch module
    x_nchw = jax.random.normal(kx, (N, C, H, W), jnp.float32)
    x = jnp.transpose(x_nchw, (0, 2, 3, 1))             # layout: NHWC

    params = init_params(kp, c1=C, c2=C, n=1, shortcut=False)
    prepared = prepare_params(params, W)

    fwd = jax.jit(lambda xx: c2f_meem_forward(xx, prepared))
    out = jax.block_until_ready(fwd(x))
    assert out.shape == (N, H, W, C)

    ref = c2f_meem_ref(x, params)
    # tolerance covers bf16 weights / bf16 MXU operands / bf16 activation
    # streaming; structural or layout bugs would show as O(0.1+) discrepancies.
    err = float(jnp.max(jnp.abs(out - ref)))
    assert bool(jnp.allclose(out, ref, atol=6e-2, rtol=6e-2)), err

    print("KERNEL_OK")
</pallas_src>

<mosaic_0001>
module attributes {stable_mosaic.version = 11 : i64} {
  func.func @conv1x1_fused_kernel(%arg0: i32, %arg1: memref<32x128xbf16, #tpu.memory_space<vmem>>, %arg2: memref<128x128xbf16, #tpu.memory_space<vmem>>, %arg3: memref<1x128xf32, #tpu.memory_space<vmem>>, %arg4: memref<1x128xf32, #tpu.memory_space<vmem>>, %arg5: memref<32x128xbf16, #tpu.memory_space<vmem>>) attributes {dimension_semantics = [#tpu.dimension_semantics<parallel>], iteration_bounds = array<i64: 1>, scalar_prefetch = 0 : i64, scratch_operands = 0 : i64, tpu.core_type = #tpu.core_type<tc>, window_params = [{transform_indices = @transform_0, window_bounds = array<i64: 32, 128>}, {pipeline_mode = #tpu.pipeline_mode<synchronous>, transform_indices = @transform_1, window_bounds = array<i64: 128, 128>}, {pipeline_mode = #tpu.pipeline_mode<synchronous>, transform_indices = @transform_2, window_bounds = array<i64: 1, 128>}, {pipeline_mode = #tpu.pipeline_mode<synchronous>, transform_indices = @transform_3, window_bounds = array<i64: 1, 128>}, {transform_indices = @transform_4, window_bounds = array<i64: 32, 128>}]} {
    %c0 = arith.constant 0 : index
    %c0_0 = arith.constant 0 : index
    %0 = vector.load %arg1[%c0, %c0_0] : memref<32x128xbf16, #tpu.memory_space<vmem>>, vector<32x128xbf16>
    %c0_1 = arith.constant 0 : index
    %c0_2 = arith.constant 0 : index
    %1 = vector.load %arg2[%c0_1, %c0_2] : memref<128x128xbf16, #tpu.memory_space<vmem>>, vector<128x128xbf16>
    %cst = arith.constant dense<0.000000e+00> : vector<32x128xf32>
    %2 = tpu.matmul %0, %1, %cst {dimension_numbers = #tpu.dot_dimension_numbers<[1], [0], [0], [1], [0, 0, 1, 1], [], []>} : vector<32x128xbf16>, vector<128x128xbf16>, vector<32x128xf32> -> vector<32x128xf32>
    %c0_3 = arith.constant 0 : index
    %c0_4 = arith.constant 0 : index
    %3 = vector.load %arg3[%c0_3, %c0_4] : memref<1x128xf32, #tpu.memory_space<vmem>>, vector<1x128xf32>
    %4 = vector.broadcast %3 : vector<1x128xf32> to vector<32x128xf32>
    %5 = arith.mulf %2, %4 : vector<32x128xf32>
    %c0_5 = arith.constant 0 : index
    %c0_6 = arith.constant 0 : index
    %6 = vector.load %arg4[%c0_5, %c0_6] : memref<1x128xf32, #tpu.memory_space<vmem>>, vector<1x128xf32>
    %7 = vector.broadcast %6 : vector<1x128xf32> to vector<32x128xf32>
    %8 = arith.addf %5, %7 : vector<32x128xf32>
    %cst_7 = arith.constant 0.000000e+00 : f32
    %9 = vector.broadcast %cst_7 : f32 to vector<32x128xf32>
    %10 = arith.subf %9, %8 : vector<32x128xf32>
    %11 = math.exp %10 : vector<32x128xf32>
    %cst_8 = arith.constant 1.000000e+00 : f32
    %12 = vector.broadcast %cst_8 : f32 to vector<32x128xf32>
    %13 = arith.addf %12, %11 : vector<32x128xf32>
    %cst_9 = arith.constant 1.000000e+00 : f32
    %14 = vector.broadcast %cst_9 : f32 to vector<32x128xf32>
    %15 = arith.divf %14, %13 : vector<32x128xf32>
    %16 = arith.mulf %8, %15 : vector<32x128xf32>
    %17 = arith.truncf %16 : vector<32x128xf32> to vector<32x128xbf16>
    %c0_10 = arith.constant 0 : index
    %c0_11 = arith.constant 0 : index
    %18 = vector.load %arg5[%c0_10, %c0_11] : memref<32x128xbf16, #tpu.memory_space<vmem>>, vector<32x128xbf16>
    tpu.vector_store %arg5[%c0_10, %c0_11], %17 {strides = array<i32>} : memref<32x128xbf16, #tpu.memory_space<vmem>>, vector<32x128xbf16>,
    return
  }
  func.func @transform_0(%arg0: i32) -> (i32, i32) {
    %c0_i32 = arith.constant 0 : i32
    %c0_i32_0 = arith.constant 0 : i32
    return %arg0, %c0_i32 : i32, i32
  }
  func.func @transform_1(%arg0: i32) -> (i32, i32) {
    %c0_i32 = arith.constant 0 : i32
    %c0_i32_0 = arith.constant 0 : i32
    %c0_i32_1 = arith.constant 0 : i32
    return %c0_i32, %c0_i32_0 : i32, i32
  }
  func.func @transform_2(%arg0: i32) -> (i32, i32) {
    %c0_i32 = arith.constant 0 : i32
    %c0_i32_0 = arith.constant 0 : i32
    %c0_i32_1 = arith.constant 0 : i32
    return %c0_i32, %c0_i32_0 : i32, i32
  }
  func.func @transform_3(%arg0: i32) -> (i32, i32) {
    %c0_i32 = arith.constant 0 : i32
    %c0_i32_0 = arith.constant 0 : i32
    %c0_i32_1 = arith.constant 0 : i32
    return %c0_i32, %c0_i32_0 : i32, i32
  }
  func.func @transform_4(%arg0: i32) -> (i32, i32) {
    %c0_i32 = arith.constant 0 : i32
    %c0_i32_0 = arith.constant 0 : i32
    return %arg0, %c0_i32 : i32, i32
  }
}

module attributes {stable_mosaic.version = 11 : i64} {
  func.func @conv1x1_concat_kernel(%arg0: i32, %arg1: memref<32x128xbf16, #tpu.memory_space<vmem>>, %arg2: memref<32x64xbf16, #tpu.memory_space<vmem>>, %arg3: memref<128x128xbf16, #tpu.memory_space<vmem>>, %arg4: memref<64x128xbf16, #tpu.memory_space<vmem>>, %arg5: memref<1x128xf32, #tpu.memory_space<vmem>>, %arg6: memref<1x128xf32, #tpu.memory_space<vmem>>, %arg7: memref<32x128xbf16, #tpu.memory_space<vmem>>) attributes {dimension_semantics = [#tpu.dimension_semantics<parallel>], iteration_bounds = array<i64: 1>, scalar_prefetch = 0 : i64, scratch_operands = 0 : i64, tpu.core_type = #tpu.core_type<tc>, window_params = [{transform_indices = @transform_0, window_bounds = array<i64: 32, 128>}, {transform_indices = @transform_1, window_bounds = array<i64: 32, 64>}, {pipeline_mode = #tpu.pipeline_mode<synchronous>, transform_indices = @transform_2, window_bounds = array<i64: 128, 128>}, {pipeline_mode = #tpu.pipeline_mode<synchronous>, transform_indices = @transform_3, window_bounds = array<i64: 64, 128>}, {pipeline_mode = #tpu.pipeline_mode<synchronous>, transform_indices = @transform_4, window_bounds = array<i64: 1, 128>}, {pipeline_mode = #tpu.pipeline_mode<synchronous>, transform_indices = @transform_5, window_bounds = array<i64: 1, 128>}, {transform_indices = @transform_6, window_bounds = array<i64: 32, 128>}]} {
    %c0 = arith.constant 0 : index
    %c0_0 = arith.constant 0 : index
    %0 = vector.load %arg1[%c0, %c0_0] : memref<32x128xbf16, #tpu.memory_space<vmem>>, vector<32x128xbf16>
    %c0_1 = arith.constant 0 : index
    %c0_2 = arith.constant 0 : index
    %1 = vector.load %arg3[%c0_1, %c0_2] : memref<128x128xbf16, #tpu.memory_space<vmem>>, vector<128x128xbf16>
    %cst = arith.constant dense<0.000000e+00> : vector<32x128xf32>
    %2 = tpu.matmul %0, %1, %cst {dimension_numbers = #tpu.dot_dimension_numbers<[1], [0], [0], [1], [0, 0, 1, 1], [], []>} : vector<32x128xbf16>, vector<128x128xbf16>, vector<32x128xf32> -> vector<32x128xf32>
    %c0_3 = arith.constant 0 : index
    %c0_4 = arith.constant 0 : index
    %3 = vector.load %arg2[%c0_3, %c0_4] : memref<32x64xbf16, #tpu.memory_space<vmem>>, vector<32x64xbf16>
    %c0_5 = arith.constant 0 : index
    %c0_6 = arith.constant 0 : index
    %4 = vector.load %arg4[%c0_5, %c0_6] : memref<64x128xbf16, #tpu.memory_space<vmem>>, vector<64x128xbf16>
    %cst_7 = arith.constant dense<0.000000e+00> : vector<32x128xf32>
    %5 = tpu.matmul %3, %4, %cst_7 {dimension_numbers = #tpu.dot_dimension_numbers<[1], [0], [0], [1], [0, 0, 1, 1], [], []>} : vector<32x64xbf16>, vector<64x128xbf16>, vector<32x128xf32> -> vector<32x128xf32>
    %6 = arith.addf %2, %5 : vector<32x128xf32>
    %c0_8 = arith.constant 0 : index
    %c0_9 = arith.constant 0 : index
    %7 = vector.load %arg5[%c0_8, %c0_9] : memref<1x128xf32, #tpu.memory_space<vmem>>, vector<1x128xf32>
    %8 = vector.broadcast %7 : vector<1x128xf32> to vector<32x128xf32>
    %9 = arith.mulf %6, %8 : vector<32x128xf32>
    %c0_10 = arith.constant 0 : index
    %c0_11 = arith.constant 0 : index
    %10 = vector.load %arg6[%c0_10, %c0_11] : memref<1x128xf32, #tpu.memory_space<vmem>>, vector<1x128xf32>
    %11 = vector.broadcast %10 : vector<1x128xf32> to vector<32x128xf32>
    %12 = arith.addf %9, %11 : vector<32x128xf32>
    %cst_12 = arith.constant 0.000000e+00 : f32
    %13 = vector.broadcast %cst_12 : f32 to vector<32x128xf32>
    %14 = arith.subf %13, %12 : vector<32x128xf32>
    %15 = math.exp %14 : vector<32x128xf32>
    %cst_13 = arith.constant 1.000000e+00 : f32
    %16 = vector.broadcast %cst_13 : f32 to vector<32x128xf32>
    %17 = arith.addf %16, %15 : vector<32x128xf32>
    %cst_14 = arith.constant 1.000000e+00 : f32
    %18 = vector.broadcast %cst_14 : f32 to vector<32x128xf32>
    %19 = arith.divf %18, %17 : vector<32x128xf32>
    %20 = arith.mulf %12, %19 : vector<32x128xf32>
    %21 = arith.truncf %20 : vector<32x128xf32> to vector<32x128xbf16>
    %c0_15 = arith.constant 0 : index
    %c0_16 = arith.constant 0 : index
    %22 = vector.load %arg7[%c0_15, %c0_16] : memref<32x128xbf16, #tpu.memory_space<vmem>>, vector<32x128xbf16>
    tpu.vector_store %arg7[%c0_15, %c0_16], %21 {strides = array<i32>} : memref<32x128xbf16, #tpu.memory_space<vmem>>, vector<32x128xbf16>,
    return
  }
  func.func @transform_0(%arg0: i32) -> (i32, i32) {
    %c0_i32 = arith.constant 0 : i32
    %c0_i32_0 = arith.constant 0 : i32
    return %arg0, %c0_i32 : i32, i32
  }
  func.func @transform_1(%arg0: i32) -> (i32, i32) {
    %c0_i32 = arith.constant 0 : i32
    %c0_i32_0 = arith.constant 0 : i32
    return %arg0, %c0_i32 : i32, i32
  }
  func.func @transform_2(%arg0: i32) -> (i32, i32) {
    %c0_i32 = arith.constant 0 : i32
    %c0_i32_0 = arith.constant 0 : i32
    %c0_i32_1 = arith.constant 0 : i32
    return %c0_i32, %c0_i32_0 : i32, i32
  }
  func.func @transform_3(%arg0: i32) -> (i32, i32) {
    %c0_i32 = arith.constant 0 : i32
    %c0_i32_0 = arith.constant 0 : i32
    %c0_i32_1 = arith.constant 0 : i32
    return %c0_i32, %c0_i32_0 : i32, i32
  }
  func.func @transform_4(%arg0: i32) -> (i32, i32) {
    %c0_i32 = arith.constant 0 : i32
    %c0_i32_0 = arith.constant 0 : i32
    %c0_i32_1 = arith.constant 0 : i32
    return %c0_i32, %c0_i32_0 : i32, i32
  }
  func.func @transform_5(%arg0: i32) -> (i32, i32) {
    %c0_i32 = arith.constant 0 : i32
    %c0_i32_0 = arith.constant 0 : i32
    %c0_i32_1 = arith.constant 0 : i32
    return %c0_i32, %c0_i32_0 : i32, i32
  }
  func.func @transform_6(%arg0: i32) -> (i32, i32) {
    %c0_i32 = arith.constant 0 : i32
    %c0_i32_0 = arith.constant 0 : i32
    return %arg0, %c0_i32 : i32, i32
  }
}

module attributes {stable_mosaic.version = 11 : i64} {
  func.func @bottleneck_meem_kernel(%arg0: i32, %arg1: memref<2x16x64xbf16, #tpu.memory_space<vmem>>, %arg2: memref<9x64x64xbf16, #tpu.memory_space<vmem>>, %arg3: memref<1x64xf32, #tpu.memory_space<vmem>>, %arg4: memref<1x64xf32, #tpu.memory_space<vmem>>, %arg5: memref<9x64x64xbf16, #tpu.memory_space<vmem>>, %arg6: memref<1x64xf32, #tpu.memory_space<vmem>>, %arg7: memref<1x64xf32, #tpu.memory_space<vmem>>, %arg8: memref<64x32xbf16, #tpu.memory_space<vmem>>, %arg9: memref<1x32xf32, #tpu.memory_space<vmem>>, %arg10: memref<1x32xf32, #tpu.memory_space<vmem>>, %arg11: memref<3x32x32xbf16, #tpu.memory_space<vmem>>, %arg12: memref<3x1x32xf32, #tpu.memory_space<vmem>>, %arg13: memref<3x1x32xf32, #tpu.memory_space<vmem>>, %arg14: memref<3x32x32xbf16, #tpu.memory_space<vmem>>, %arg15: memref<3x1x32xf32, #tpu.memory_space<vmem>>, %arg16: memref<3x1x32xf32, #tpu.memory_space<vmem>>, %arg17: memref<4x32x64xbf16, #tpu.memory_space<vmem>>, %arg18: memref<1x64xf32, #tpu.memory_space<vmem>>, %arg19: memref<1x64xf32, #tpu.memory_space<vmem>>, %arg20: memref<2x16x64xbf16, #tpu.memory_space<vmem>>, %arg21: memref<64x256xf32, #tpu.memory_space<vmem>>, %arg22: memref<64x256xf32, #tpu.memory_space<vmem>>, %arg23: memref<64x256xf32, #tpu.memory_space<vmem>>, %arg24: memref<64x256xf32, #tpu.memory_space<vmem>>, %arg25: memref<48x64xf32, #tpu.memory_space<vmem>>) attributes {dimension_semantics = [#tpu.dimension_semantics<parallel>], iteration_bounds = array<i64: 1>, scalar_prefetch = 0 : i64, scratch_operands = 5 : i64, tpu.core_type = #tpu.core_type<tc>, window_params = [{transform_indices = @transform_0, window_bounds = array<i64: 2, 16, 64>}, {pipeline_mode = #tpu.pipeline_mode<synchronous>, transform_indices = @transform_1, window_bounds = array<i64: 9, 64, 64>}, {pipeline_mode = #tpu.pipeline_mode<synchronous>, transform_indices = @transform_2, window_bounds = array<i64: 1, 64>}, {pipeline_mode = #tpu.pipeline_mode<synchronous>, transform_indices = @transform_3, window_bounds = array<i64: 1, 64>}, {pipeline_mode = #tpu.pipeline_mode<synchronous>, transform_indices = @transform_4, window_bounds = array<i64: 9, 64, 64>}, {pipeline_mode = #tpu.pipeline_mode<synchronous>, transform_indices = @transform_5, window_bounds = array<i64: 1, 64>}, {pipeline_mode = #tpu.pipeline_mode<synchronous>, transform_indices = @transform_6, window_bounds = array<i64: 1, 64>}, {pipeline_mode = #tpu.pipeline_mode<synchronous>, transform_indices = @transform_7, window_bounds = array<i64: 64, 32>}, {pipeline_mode = #tpu.pipeline_mode<synchronous>, transform_indices = @transform_8, window_bounds = array<i64: 1, 32>}, {pipeline_mode = #tpu.pipeline_mode<synchronous>, transform_indices = @transform_9, window_bounds = array<i64: 1, 32>}, {pipeline_mode = #tpu.pipeline_mode<synchronous>, transform_indices = @transform_10, window_bounds = array<i64: 3, 32, 32>}, {pipeline_mode = #tpu.pipeline_mode<synchronous>, transform_indices = @transform_11, window_bounds = array<i64: 3, 1, 32>}, {pipeline_mode = #tpu.pipeline_mode<synchronous>, transform_indices = @transform_12, window_bounds = array<i64: 3, 1, 32>}, {pipeline_mode = #tpu.pipeline_mode<synchronous>, transform_indices = @transform_13, window_bounds = array<i64: 3, 32, 32>}, {pipeline_mode = #tpu.pipeline_mode<synchronous>, transform_indices = @transform_14, window_bounds = array<i64: 3, 1, 32>}, {pipeline_mode = #tpu.pipeline_mode<synchronous>, transform_indices = @transform_15, window_bounds = array<i64: 3, 1, 32>}, {pipeline_mode = #tpu.pipeline_mode<synchronous>, transform_indices = @transform_16, window_bounds = array<i64: 4, 32, 64>}, {pipeline_mode = #tpu.pipeline_mode<synchronous>, transform_indices = @transform_17, window_bounds = array<i64: 1, 64>}, {pipeline_mode = #tpu.pipeline_mode<synchronous>, transform_indices = @transform_18, window_bounds = array<i64: 1, 64>}, {transform_indices = @transform_19, window_bounds = array<i64: 2, 16, 64>}]} {
    %cst = arith.constant 0.000000e+00 : f32
    %0 = vector.broadcast %cst : f32 to vector<64x72xf32>
    %c0 = arith.constant 0 : index
    %c124 = arith.constant 124 : index
    %1 = vector.load %arg21[%c0, %c124] : memref<64x256xf32, #tpu.memory_space<vmem>>, vector<64x72xf32>
    tpu.vector_store %arg21[%c0, %c124], %0 {strides = array<i32>} : memref<64x256xf32, #tpu.memory_space<vmem>>, vector<64x72xf32>,
    %cst_0 = arith.constant 0.000000e+00 : f32
    %2 = vector.broadcast %cst_0 : f32 to vector<64x72xf32>
    %c0_1 = arith.constant 0 : index
    %c124_2 = arith.constant 124 : index
    %3 = vector.load %arg22[%c0_1, %c124_2] : memref<64x256xf32, #tpu.memory_space<vmem>>, vector<64x72xf32>
    tpu.vector_store %arg22[%c0_1, %c124_2], %2 {strides = array<i32>} : memref<64x256xf32, #tpu.memory_space<vmem>>, vector<64x72xf32>,
    %cst_3 = arith.constant 0.000000e+00 : f32
    %4 = vector.broadcast %cst_3 : f32 to vector<64x36xf32>
    %c0_4 = arith.constant 0 : index
    %c126 = arith.constant 126 : index
    %5 = vector.load %arg23[%c0_4, %c126] : memref<64x256xf32, #tpu.memory_space<vmem>>, vector<64x36xf32>
    tpu.vector_store %arg23[%c0_4, %c126], %4 {strides = array<i32>} : memref<64x256xf32, #tpu.memory_space<vmem>>, vector<64x36xf32>,
    %cst_5 = arith.constant 0.000000e+00 : f32
    %6 = vector.broadcast %cst_5 : f32 to vector<64x36xf32>
    %c0_6 = arith.constant 0 : index
    %c126_7 = arith.constant 126 : index
    %7 = vector.load %arg24[%c0_6, %c126_7] : memref<64x256xf32, #tpu.memory_space<vmem>>, vector<64x36xf32>
    tpu.vector_store %arg24[%c0_6, %c126_7], %6 {strides = array<i32>} : memref<64x256xf32, #tpu.memory_space<vmem>>, vector<64x36xf32>,
    %c0_8 = arith.constant 0 : index
    %c0_9 = arith.constant 0 : index
    %c0_10 = arith.constant 0 : index
    %8 = vector.load %arg1[%c0_8, %c0_9, %c0_10] : memref<2x16x64xbf16, #tpu.memory_space<vmem>>, vector<1x16x64xbf16>
    %9 = vector.shape_cast %8 : vector<1x16x64xbf16> to vector<16x64xbf16>
    %10 = arith.extf %9 : vector<16x64xbf16> to vector<16x64xf32>
    %c8 = arith.constant 8 : index
    %c128 = arith.constant 128 : index
    %11 = vector.load %arg21[%c8, %c128] : memref<64x256xf32, #tpu.memory_space<vmem>>, vector<16x64xf32>
    tpu.vector_store %arg21[%c8, %c128], %10 {strides = array<i32>} : memref<64x256xf32, #tpu.memory_space<vmem>>, vector<16x64xf32>,
    %c1 = arith.constant 1 : index
    %c0_11 = arith.constant 0 : index
    %c0_12 = arith.constant 0 : index
    %12 = vector.load %arg1[%c1, %c0_11, %c0_12] : memref<2x16x64xbf16, #tpu.memory_space<vmem>>, vector<1x16x64xbf16>
    %13 = vector.shape_cast %12 : vector<1x16x64xbf16> to vector<16x64xbf16>
    %14 = arith.extf %13 : vector<16x64xbf16> to vector<16x64xf32>
    %c32 = arith.constant 32 : index
    %c128_13 = arith.constant 128 : index
    %15 = vector.load %arg21[%c32, %c128_13] : memref<64x256xf32, #tpu.memory_space<vmem>>, vector<16x64xf32>
    tpu.vector_store %arg21[%c32, %c128_13], %14 {strides = array<i32>} : memref<64x256xf32, #tpu.memory_space<vmem>>, vector<16x64xf32>,
    %c7 = arith.constant 7 : index
    %c124_14 = arith.constant 124 : index
    %16 = vector.load %arg21[%c7, %c124_14] : memref<64x256xf32, #tpu.memory_space<vmem>>, vector<48x64xf32>
    %c7_15 = arith.constant 7 : index
    %c128_16 = arith.constant 128 : index
    %17 = vector.load %arg21[%c7_15, %c128_16] : memref<64x256xf32, #tpu.memory_space<vmem>>, vector<48x64xf32>
    %c7_17 = arith.constant 7 : index
    %c132 = arith.constant 132 : index
    %18 = vector.load %arg21[%c7_17, %c132] : memref<64x256xf32, #tpu.memory_space<vmem>>, vector<48x64xf32>
    %c8_18 = arith.constant 8 : index
    %c124_19 = arith.constant 124 : index
    %19 = vector.load %arg21[%c8_18, %c124_19] : memref<64x256xf32, #tpu.memory_space<vmem>>, vector<48x64xf32>
    %c8_20 = arith.constant 8 : index
    %c128_21 = arith.constant 128 : index
    %20 = vector.load %arg21[%c8_20, %c128_21] : memref<64x256xf32, #tpu.memory_space<vmem>>, vector<48x64xf32>
    %c8_22 = arith.constant 8 : index
    %c132_23 = arith.constant 132 : index
    %21 = vector.load %arg21[%c8_22, %c132_23] : memref<64x256xf32, #tpu.memory_space<vmem>>, vector<48x64xf32>
    %c9 = arith.constant 9 : index
    %c124_24 = arith.constant 124 : index
    %22 = vector.load %arg21[%c9, %c124_24] : memref<64x256xf32, #tpu.memory_space<vmem>>, vector<48x64xf32>
    %c9_25 = arith.constant 9 : index
    %c128_26 = arith.constant 128 : index
    %23 = vector.load %arg21[%c9_25, %c128_26] : memref<64x256xf32, #tpu.memory_space<vmem>>, vector<48x64xf32>
    %c9_27 = arith.constant 9 : index
    %c132_28 = arith.constant 132 : index
    %24 = vector.load %arg21[%c9_27, %c132_28] : memref<64x256xf32, #tpu.memory_space<vmem>>, vector<48x64xf32>
    %25 = arith.truncf %16 : vector<48x64xf32> to vector<48x64xbf16>
    %c0_29 = arith.constant 0 : index
    %c0_30 = arith.constant 0 : index
    %c0_31 = arith.constant 0 : index
    %26 = vector.load %arg2[%c0_29, %c0_30, %c0_31] : memref<9x64x64xbf16, #tpu.memory_space<vmem>>, vector<1x64x64xbf16>
    %27 = vector.shape_cast %26 : vector<1x64x64xbf16> to vector<64x64xbf16>
    %cst_32 = arith.constant dense<0.000000e+00> : vector<48x64xf32>
    %28 = tpu.matmul %25, %27, %cst_32 {dimension_numbers = #tpu.dot_dimension_numbers<[1], [0], [0], [1], [0, 0, 1, 1], [], []>} : vector<48x64xbf16>, vector<64x64xbf16>, vector<48x64xf32> -> vector<48x64xf32>
    %29 = arith.truncf %17 : vector<48x64xf32> to vector<48x64xbf16>
    %c1_33 = arith.constant 1 : index
    %c0_34 = arith.constant 0 : index
    %c0_35 = arith.constant 0 : index
    %30 = vector.load %arg2[%c1_33, %c0_34, %c0_35] : memref<9x64x64xbf16, #tpu.memory_space<vmem>>, vector<1x64x64xbf16>
    %31 = vector.shape_cast %30 : vector<1x64x64xbf16> to vector<64x64xbf16>
    %cst_36 = arith.constant dense<0.000000e+00> : vector<48x64xf32>
    %32 = tpu.matmul %29, %31, %cst_36 {dimension_numbers = #tpu.dot_dimension_numbers<[1], [0], [0], [1], [0, 0, 1, 1], [], []>} : vector<48x64xbf16>, vector<64x64xbf16>, vector<48x64xf32> -> vector<48x64xf32>
    %33 = arith.truncf %18 : vector<48x64xf32> to vector<48x64xbf16>
    %c2 = arith.constant 2 : index
    %c0_37 = arith.constant 0 : index
    %c0_38 = arith.constant 0 : index
    %34 = vector.load %arg2[%c2, %c0_37, %c0_38] : memref<9x64x64xbf16, #tpu.memory_space<vmem>>, vector<1x64x64xbf16>
    %35 = vector.shape_cast %34 : vector<1x64x64xbf16> to vector<64x64xbf16>
    %cst_39 = arith.constant dense<0.000000e+00> : vector<48x64xf32>
    %36 = tpu.matmul %33, %35, %cst_39 {dimension_numbers = #tpu.dot_dimension_numbers<[1], [0], [0], [1], [0, 0, 1, 1], [], []>} : vector<48x64xbf16>, vector<64x64xbf16>, vector<48x64xf32> -> vector<48x64xf32>
    %37 = arith.truncf %19 : vector<48x64xf32> to vector<48x64xbf16>
    %c3 = arith.constant 3 : index
    %c0_40 = arith.constant 0 : index
    %c0_41 = arith.constant 0 : index
    %38 = vector.load %arg2[%c3, %c0_40, %c0_41] : memref<9x64x64xbf16, #tpu.memory_space<vmem>>, vector<1x64x64xbf16>
    %39 = vector.shape_cast %38 : vector<1x64x64xbf16> to vector<64x64xbf16>
    %cst_42 = arith.constant dense<0.000000e+00> : vector<48x64xf32>
    %40 = tpu.matmul %37, %39, %cst_42 {dimension_numbers = #tpu.dot_dimension_numbers<[1], [0], [0], [1], [0, 0, 1, 1], [], []>} : vector<48x64xbf16>, vector<64x64xbf16>, vector<48x64xf32> -> vector<48x64xf32>
    %41 = arith.truncf %20 : vector<48x64xf32> to vector<48x64xbf16>
    %c4 = arith.constant 4 : index
    %c0_43 = arith.constant 0 : index
    %c0_44 = arith.constant 0 : index
    %42 = vector.load %arg2[%c4, %c0_43, %c0_44] : memref<9x64x64xbf16, #tpu.memory_space<vmem>>, vector<1x64x64xbf16>
    %43 = vector.shape_cast %42 : vector<1x64x64xbf16> to vector<64x64xbf16>
    %cst_45 = arith.constant dense<0.000000e+00> : vector<48x64xf32>
    %44 = tpu.matmul %41, %43, %cst_45 {dimension_numbers = #tpu.dot_dimension_numbers<[1], [0], [0], [1], [0, 0, 1, 1], [], []>} : vector<48x64xbf16>, vector<64x64xbf16>, vector<48x64xf32> -> vector<48x64xf32>
    %45 = arith.truncf %21 : vector<48x64xf32> to vector<48x64xbf16>
    %c5 = arith.constant 5 : index
    %c0_46 = arith.constant 0 : index
    %c0_47 = arith.constant 0 : index
    %46 = vector.load %arg2[%c5, %c0_46, %c0_47] : memref<9x64x64xbf16, #tpu.memory_space<vmem>>, vector<1x64x64xbf16>
    %47 = vector.shape_cast %46 : vector<1x64x64xbf16> to vector<64x64xbf16>
    %cst_48 = arith.constant dense<0.000000e+00> : vector<48x64xf32>
    %48 = tpu.matmul %45, %47, %cst_48 {dimension_numbers = #tpu.dot_dimension_numbers<[1], [0], [0], [1], [0, 0, 1, 1], [], []>} : vector<48x64xbf16>, vector<64x64xbf16>, vector<48x64xf32> -> vector<48x64xf32>
    %49 = arith.truncf %22 : vector<48x64xf32> to vector<48x64xbf16>
    %c6 = arith.constant 6 : index
    %c0_49 = arith.constant 0 : index
    %c0_50 = arith.constant 0 : index
    %50 = vector.load %arg2[%c6, %c0_49, %c0_50] : memref<9x64x64xbf16, #tpu.memory_space<vmem>>, vector<1x64x64xbf16>
    %51 = vector.shape_cast %50 : vector<1x64x64xbf16> to vector<64x64xbf16>
    %cst_51 = arith.constant dense<0.000000e+00> : vector<48x64xf32>
    %52 = tpu.matmul %49, %51, %cst_51 {dimension_numbers = #tpu.dot_dimension_numbers<[1], [0], [0], [1], [0, 0, 1, 1], [], []>} : vector<48x64xbf16>, vector<64x64xbf16>, vector<48x64xf32> -> vector<48x64xf32>
    %53 = arith.truncf %23 : vector<48x64xf32> to vector<48x64xbf16>
    %c7_52 = arith.constant 7 : index
    %c0_53 = arith.constant 0 : index
    %c0_54 = arith.constant 0 : index
    %54 = vector.load %arg2[%c7_52, %c0_53, %c0_54] : memref<9x64x64xbf16, #tpu.memory_space<vmem>>, vector<1x64x64xbf16>
    %55 = vector.shape_cast %54 : vector<1x64x64xbf16> to vector<64x64xbf16>
    %cst_55 = arith.constant dense<0.000000e+00> : vector<48x64xf32>
    %56 = tpu.matmul %53, %55, %cst_55 {dimension_numbers = #tpu.dot_dimension_numbers<[1], [0], [0], [1], [0, 0, 1, 1], [], []>} : vector<48x64xbf16>, vector<64x64xbf16>, vector<48x64xf32> -> vector<48x64xf32>
    %57 = arith.truncf %24 : vector<48x64xf32> to vector<48x64xbf16>
    %c8_56 = arith.constant 8 : index
    %c0_57 = arith.constant 0 : index
    %c0_58 = arith.constant 0 : index
    %58 = vector.load %arg2[%c8_56, %c0_57, %c0_58] : memref<9x64x64xbf16, #tpu.memory_space<vmem>>, vector<1x64x64xbf16>
    %59 = vector.shape_cast %58 : vector<1x64x64xbf16> to vector<64x64xbf16>
    %cst_59 = arith.constant dense<0.000000e+00> : vector<48x64xf32>
    %60 = tpu.matmul %57, %59, %cst_59 {dimension_numbers = #tpu.dot_dimension_numbers<[1], [0], [0], [1], [0, 0, 1, 1], [], []>} : vector<48x64xbf16>, vector<64x64xbf16>, vector<48x64xf32> -> vector<48x64xf32>
    %61 = arith.addf %28, %32 : vector<48x64xf32>
    %62 = arith.addf %36, %40 : vector<48x64xf32>
    %63 = arith.addf %44, %48 : vector<48x64xf32>
    %64 = arith.addf %52, %56 : vector<48x64xf32>
    %65 = arith.addf %61, %62 : vector<48x64xf32>
    %66 = arith.addf %63, %64 : vector<48x64xf32>
    %67 = arith.addf %65, %66 : vector<48x64xf32>
    %68 = arith.addf %67, %60 : vector<48x64xf32>
    %c0_60 = arith.constant 0 : index
    %c0_61 = arith.constant 0 : index
    %69 = vector.load %arg3[%c0_60, %c0_61] : memref<1x64xf32, #tpu.memory_space<vmem>>, vector<1x64xf32>
    %70 = vector.broadcast %69 : vector<1x64xf32> to vector<48x64xf32>
    %71 = arith.mulf %68, %70 : vector<48x64xf32>
    %c0_62 = arith.constant 0 : index
    %c0_63 = arith.constant 0 : index
    %72 = vector.load %arg4[%c0_62, %c0_63] : memref<1x64xf32, #tpu.memory_space<vmem>>, vector<1x64xf32>
    %73 = vector.broadcast %72 : vector<1x64xf32> to vector<48x64xf32>
    %74 = arith.addf %71, %73 : vector<48x64xf32>
    %cst_64 = arith.constant 0.000000e+00 : f32
    %75 = vector.broadcast %cst_64 : f32 to vector<48x64xf32>
    %76 = arith.subf %75, %74 : vector<48x64xf32>
    %77 = math.exp %76 : vector<48x64xf32>
    %cst_65 = arith.constant 1.000000e+00 : f32
    %78 = vector.broadcast %cst_65 : f32 to vector<48x64xf32>
    %79 = arith.addf %78, %77 : vector<48x64xf32>
    %cst_66 = arith.constant 1.000000e+00 : f32
    %80 = vector.broadcast %cst_66 : f32 to vector<48x64xf32>
    %81 = arith.divf %80, %79 : vector<48x64xf32>
    %82 = arith.mulf %74, %81 : vector<48x64xf32>
    %83 = vector.extract_strided_slice %82 {offsets = [0, 0], sizes = [16, 64], strides = [1, 1]} : vector<48x64xf32> to vector<16x64xf32>
    %c8_67 = arith.constant 8 : index
    %c128_68 = arith.constant 128 : index
    %84 = vector.load %arg22[%c8_67, %c128_68] : memref<64x256xf32, #tpu.memory_space<vmem>>, vector<16x64xf32>
    tpu.vector_store %arg22[%c8_67, %c128_68], %83 {strides = array<i32>} : memref<64x256xf32, #tpu.memory_space<vmem>>, vector<16x64xf32>,
    %85 = vector.extract_strided_slice %82 {offsets = [24, 0], sizes = [16, 64], strides = [1, 1]} : vector<48x64xf32> to vector<16x64xf32>
    %c32_69 = arith.constant 32 : index
    %c128_70 = arith.constant 128 : index
    %86 = vector.load %arg22[%c32_69, %c128_70] : memref<64x256xf32, #tpu.memory_space<vmem>>, vector<16x64xf32>
    tpu.vector_store %arg22[%c32_69, %c128_70], %85 {strides = array<i32>} : memref<64x256xf32, #tpu.memory_space<vmem>>, vector<16x64xf32>,
    %c7_71 = arith.constant 7 : index
    %c124_72 = arith.constant 124 : index
    %87 = vector.load %arg22[%c7_71, %c124_72] : memref<64x256xf32, #tpu.memory_space<vmem>>, vector<48x64xf32>
    %c7_73 = arith.constant 7 : index
    %c128_74 = arith.constant 128 : index
    %88 = vector.load %arg22[%c7_73, %c128_74] : memref<64x256xf32, #tpu.memory_space<vmem>>, vector<48x64xf32>
    %c7_75 = arith.constant 7 : index
    %c132_76 = arith.constant 132 : index
    %89 = vector.load %arg22[%c7_75, %c132_76] : memref<64x256xf32, #tpu.memory_space<vmem>>, vector<48x64xf32>
    %c8_77 = arith.constant 8 : index
    %c124_78 = arith.constant 124 : index
    %90 = vector.load %arg22[%c8_77, %c124_78] : memref<64x256xf32, #tpu.memory_space<vmem>>, vector<48x64xf32>
    %c8_79 = arith.constant 8 : index
    %c128_80 = arith.constant 128 : index
    %91 = vector.load %arg22[%c8_79, %c128_80] : memref<64x256xf32, #tpu.memory_space<vmem>>, vector<48x64xf32>
    %c8_81 = arith.constant 8 : index
    %c132_82 = arith.constant 132 : index
    %92 = vector.load %arg22[%c8_81, %c132_82] : memref<64x256xf32, #tpu.memory_space<vmem>>, vector<48x64xf32>
    %c9_83 = arith.constant 9 : index
    %c124_84 = arith.constant 124 : index
    %93 = vector.load %arg22[%c9_83, %c124_84] : memref<64x256xf32, #tpu.memory_space<vmem>>, vector<48x64xf32>
    %c9_85 = arith.constant 9 : index
    %c128_86 = arith.constant 128 : index
    %94 = vector.load %arg22[%c9_85, %c128_86] : memref<64x256xf32, #tpu.memory_space<vmem>>, vector<48x64xf32>
    %c9_87 = arith.constant 9 : index
    %c132_88 = arith.constant 132 : index
    %95 = vector.load %arg22[%c9_87, %c132_88] : memref<64x256xf32, #tpu.memory_space<vmem>>, vector<48x64xf32>
    %96 = arith.truncf %87 : vector<48x64xf32> to vector<48x64xbf16>
    %c0_89 = arith.constant 0 : index
    %c0_90 = arith.constant 0 : index
    %c0_91 = arith.constant 0 : index
    %97 = vector.load %arg5[%c0_89, %c0_90, %c0_91] : memref<9x64x64xbf16, #tpu.memory_space<vmem>>, vector<1x64x64xbf16>
    %98 = vector.shape_cast %97 : vector<1x64x64xbf16> to vector<64x64xbf16>
    %cst_92 = arith.constant dense<0.000000e+00> : vector<48x64xf32>
    %99 = tpu.matmul %96, %98, %cst_92 {dimension_numbers = #tpu.dot_dimension_numbers<[1], [0], [0], [1], [0, 0, 1, 1], [], []>} : vector<48x64xbf16>, vector<64x64xbf16>, vector<48x64xf32> -> vector<48x64xf32>
    %100 = arith.truncf %88 : vector<48x64xf32> to vector<48x64xbf16>
    %c1_93 = arith.constant 1 : index
    %c0_94 = arith.constant 0 : index
    %c0_95 = arith.constant 0 : index
    %101 = vector.load %arg5[%c1_93, %c0_94, %c0_95] : memref<9x64x64xbf16, #tpu.memory_space<vmem>>, vector<1x64x64xbf16>
    %102 = vector.shape_cast %101 : vector<1x64x64xbf16> to vector<64x64xbf16>
    %cst_96 = arith.constant dense<0.000000e+00> : vector<48x64xf32>
    %103 = tpu.matmul %100, %102, %cst_96 {dimension_numbers = #tpu.dot_dimension_numbers<[1], [0], [0], [1], [0, 0, 1, 1], [], []>} : vector<48x64xbf16>, vector<64x64xbf16>, vector<48x64xf32> -> vector<48x64xf32>
    %104 = arith.truncf %89 : vector<48x64xf32> to vector<48x64xbf16>
    %c2_97 = arith.constant 2 : index
    %c0_98 = arith.constant 0 : index
    %c0_99 = arith.constant 0 : index
    %105 = vector.load %arg5[%c2_97, %c0_98, %c0_99] : memref<9x64x64xbf16, #tpu.memory_space<vmem>>, vector<1x64x64xbf16>
    %106 = vector.shape_cast %105 : vector<1x64x64xbf16> to vector<64x64xbf16>
    %cst_100 = arith.constant dense<0.000000e+00> : vector<48x64xf32>
    %107 = tpu.matmul %104, %106, %cst_100 {dimension_numbers = #tpu.dot_dimension_numbers<[1], [0], [0], [1], [0, 0, 1, 1], [], []>} : vector<48x64xbf16>, vector<64x64xbf16>, vector<48x64xf32> -> vector<48x64xf32>
    %108 = arith.truncf %90 : vector<48x64xf32> to vector<48x64xbf16>
    %c3_101 = arith.constant 3 : index
    %c0_102 = arith.constant 0 : index
    %c0_103 = arith.constant 0 : index
    %109 = vector.load %arg5[%c3_101, %c0_102, %c0_103] : memref<9x64x64xbf16, #tpu.memory_space<vmem>>, vector<1x64x64xbf16>
    %110 = vector.shape_cast %109 : vector<1x64x64xbf16> to vector<64x64xbf16>
    %cst_104 = arith.constant dense<0.000000e+00> : vector<48x64xf32>
    %111 = tpu.matmul %108, %110, %cst_104 {dimension_numbers = #tpu.dot_dimension_numbers<[1], [0], [0], [1], [0, 0, 1, 1], [], []>} : vector<48x64xbf16>, vector<64x64xbf16>, vector<48x64xf32> -> vector<48x64xf32>
    %112 = arith.truncf %91 : vector<48x64xf32> to vector<48x64xbf16>
    %c4_105 = arith.constant 4 : index
    %c0_106 = arith.constant 0 : index
    %c0_107 = arith.constant 0 : index
    %113 = vector.load %arg5[%c4_105, %c0_106, %c0_107] : memref<9x64x64xbf16, #tpu.memory_space<vmem>>, vector<1x64x64xbf16>
    %114 = vector.shape_cast %113 : vector<1x64x64xbf16> to vector<64x64xbf16>
    %cst_108 = arith.constant dense<0.000000e+00> : vector<48x64xf32>
    %115 = tpu.matmul %112, %114, %cst_108 {dimension_numbers = #tpu.dot_dimension_numbers<[1], [0], [0], [1], [0, 0, 1, 1], [], []>} : vector<48x64xbf16>, vector<64x64xbf16>, vector<48x64xf32> -> vector<48x64xf32>
    %116 = arith.truncf %92 : vector<48x64xf32> to vector<48x64xbf16>
    %c5_109 = arith.constant 5 : index
    %c0_110 = arith.constant 0 : index
    %c0_111 = arith.constant 0 : index
    %117 = vector.load %arg5[%c5_109, %c0_110, %c0_111] : memref<9x64x64xbf16, #tpu.memory_space<vmem>>, vector<1x64x64xbf16>
    %118 = vector.shape_cast %117 : vector<1x64x64xbf16> to vector<64x64xbf16>
    %cst_112 = arith.constant dense<0.000000e+00> : vector<48x64xf32>
    %119 = tpu.matmul %116, %118, %cst_112 {dimension_numbers = #tpu.dot_dimension_numbers<[1], [0], [0], [1], [0, 0, 1, 1], [], []>} : vector<48x64xbf16>, vector<64x64xbf16>, vector<48x64xf32> -> vector<48x64xf32>
    %120 = arith.truncf %93 : vector<48x64xf32> to vector<48x64xbf16>
    %c6_113 = arith.constant 6 : index
    %c0_114 = arith.constant 0 : index
    %c0_115 = arith.constant 0 : index
    %121 = vector.load %arg5[%c6_113, %c0_114, %c0_115] : memref<9x64x64xbf16, #tpu.memory_space<vmem>>, vector<1x64x64xbf16>
    %122 = vector.shape_cast %121 : vector<1x64x64xbf16> to vector<64x64xbf16>
    %cst_116 = arith.constant dense<0.000000e+00> : vector<48x64xf32>
    %123 = tpu.matmul %120, %122, %cst_116 {dimension_numbers = #tpu.dot_dimension_numbers<[1], [0], [0], [1], [0, 0, 1, 1], [], []>} : vector<48x64xbf16>, vector<64x64xbf16>, vector<48x64xf32> -> vector<48x64xf32>
    %124 = arith.truncf %94 : vector<48x64xf32> to vector<48x64xbf16>
    %c7_117 = arith.constant 7 : index
    %c0_118 = arith.constant 0 : index
    %c0_119 = arith.constant 0 : index
    %125 = vector.load %arg5[%c7_117, %c0_118, %c0_119] : memref<9x64x64xbf16, #tpu.memory_space<vmem>>, vector<1x64x64xbf16>
    %126 = vector.shape_cast %125 : vector<1x64x64xbf16> to vector<64x64xbf16>
    %cst_120 = arith.constant dense<0.000000e+00> : vector<48x64xf32>
    %127 = tpu.matmul %124, %126, %cst_120 {dimension_numbers = #tpu.dot_dimension_numbers<[1], [0], [0], [1], [0, 0, 1, 1], [], []>} : vector<48x64xbf16>, vector<64x64xbf16>, vector<48x64xf32> -> vector<48x64xf32>
    %128 = arith.truncf %95 : vector<48x64xf32> to vector<48x64xbf16>
    %c8_121 = arith.constant 8 : index
    %c0_122 = arith.constant 0 : index
    %c0_123 = arith.constant 0 : index
    %129 = vector.load %arg5[%c8_121, %c0_122, %c0_123] : memref<9x64x64xbf16, #tpu.memory_space<vmem>>, vector<1x64x64xbf16>
    %130 = vector.shape_cast %129 : vector<1x64x64xbf16> to vector<64x64xbf16>
    %cst_124 = arith.constant dense<0.000000e+00> : vector<48x64xf32>
    %131 = tpu.matmul %128, %130, %cst_124 {dimension_numbers = #tpu.dot_dimension_numbers<[1], [0], [0], [1], [0, 0, 1, 1], [], []>} : vector<48x64xbf16>, vector<64x64xbf16>, vector<48x64xf32> -> vector<48x64xf32>
    %132 = arith.addf %99, %103 : vector<48x64xf32>
    %133 = arith.addf %107, %111 : vector<48x64xf32>
    %134 = arith.addf %115, %119 : vector<48x64xf32>
    %135 = arith.addf %123, %127 : vector<48x64xf32>
    %136 = arith.addf %132, %133 : vector<48x64xf32>
    %137 = arith.addf %134, %135 : vector<48x64xf32>
    %138 = arith.addf %136, %137 : vector<48x64xf32>
    %139 = arith.addf %138, %131 : vector<48x64xf32>
    %c0_125 = arith.constant 0 : index
    %c0_126 = arith.constant 0 : index
    %140 = vector.load %arg6[%c0_125, %c0_126] : memref<1x64xf32, #tpu.memory_space<vmem>>, vector<1x64xf32>
    %141 = vector.broadcast %140 : vector<1x64xf32> to vector<48x64xf32>
    %142 = arith.mulf %139, %141 : vector<48x64xf32>
    %c0_127 = arith.constant 0 : index
    %c0_128 = arith.constant 0 : index
    %143 = vector.load %arg7[%c0_127, %c0_128] : memref<1x64xf32, #tpu.memory_space<vmem>>, vector<1x64xf32>
    %144 = vector.broadcast %143 : vector<1x64xf32> to vector<48x64xf32>
    %145 = arith.addf %142, %144 : vector<48x64xf32>
    %cst_129 = arith.constant 0.000000e+00 : f32
    %146 = vector.broadcast %cst_129 : f32 to vector<48x64xf32>
    %147 = arith.subf %146, %145 : vector<48x64xf32>
    %148 = math.exp %147 : vector<48x64xf32>
    %cst_130 = arith.constant 1.000000e+00 : f32
    %149 = vector.broadcast %cst_130 : f32 to vector<48x64xf32>
    %150 = arith.addf %149, %148 : vector<48x64xf32>
    %cst_131 = arith.constant 1.000000e+00 : f32
    %151 = vector.broadcast %cst_131 : f32 to vector<48x64xf32>
    %152 = arith.divf %151, %150 : vector<48x64xf32>
    %153 = arith.mulf %145, %152 : vector<48x64xf32>
    %154 = arith.truncf %153 : vector<48x64xf32> to vector<48x64xbf16>
    %c0_132 = arith.constant 0 : index
    %c0_133 = arith.constant 0 : index
    %155 = vector.load %arg8[%c0_132, %c0_133] : memref<64x32xbf16, #tpu.memory_space<vmem>>, vector<64x32xbf16>
    %cst_134 = arith.constant dense<0.000000e+00> : vector<48x32xf32>
    %156 = tpu.matmul %154, %155, %cst_134 {dimension_numbers = #tpu.dot_dimension_numbers<[1], [0], [0], [1], [0, 0, 1, 1], [], []>} : vector<48x64xbf16>, vector<64x32xbf16>, vector<48x32xf32> -> vector<48x32xf32>
    %c0_135 = arith.constant 0 : index
    %c0_136 = arith.constant 0 : index
    %157 = vector.load %arg9[%c0_135, %c0_136] : memref<1x32xf32, #tpu.memory_space<vmem>>, vector<1x32xf32>
    %158 = vector.broadcast %157 : vector<1x32xf32> to vector<48x32xf32>
    %159 = arith.mulf %156, %158 : vector<48x32xf32>
    %c0_137 = arith.constant 0 : index
    %c0_138 = arith.constant 0 : index
    %160 = vector.load %arg10[%c0_137, %c0_138] : memref<1x32xf32, #tpu.memory_space<vmem>>, vector<1x32xf32>
    %161 = vector.broadcast %160 : vector<1x32xf32> to vector<48x32xf32>
    %162 = arith.addf %159, %161 : vector<48x32xf32>
    %cst_139 = arith.constant 0.000000e+00 : f32
    %163 = vector.broadcast %cst_139 : f32 to vector<48x32xf32>
    %164 = arith.subf %163, %162 : vector<48x32xf32>
    %165 = math.exp %164 : vector<48x32xf32>
    %cst_140 = arith.constant 1.000000e+00 : f32
    %166 = vector.broadcast %cst_140 : f32 to vector<48x32xf32>
    %167 = arith.addf %166, %165 : vector<48x32xf32>
    %cst_141 = arith.constant 1.000000e+00 : f32
    %168 = vector.broadcast %cst_141 : f32 to vector<48x32xf32>
    %169 = arith.divf %168, %167 : vector<48x32xf32>
    %170 = arith.truncf %169 : vector<48x32xf32> to vector<48x32xbf16>
    %c0_142 = arith.constant 0 : index
    %c0_143 = arith.constant 0 : index
    %c0_144 = arith.constant 0 : index
    %171 = vector.load %arg17[%c0_142, %c0_143, %c0_144] : memref<4x32x64xbf16, #tpu.memory_space<vmem>>, vector<1x32x64xbf16>
    %172 = vector.shape_cast %171 : vector<1x32x64xbf16> to vector<32x64xbf16>
    %cst_145 = arith.constant dense<0.000000e+00> : vector<48x64xf32>
    %173 = tpu.matmul %170, %172, %cst_145 {dimension_numbers = #tpu.dot_dimension_numbers<[1], [0], [0], [1], [0, 0, 1, 1], [], []>} : vector<48x32xbf16>, vector<32x64xbf16>, vector<48x64xf32> -> vector<48x64xf32>
    %c0_146 = arith.constant 0 : index
    %c0_147 = arith.constant 0 : index
    %174 = vector.load %arg25[%c0_146, %c0_147] : memref<48x64xf32, #tpu.memory_space<vmem>>, vector<48x64xf32>
    tpu.vector_store %arg25[%c0_146, %c0_147], %173 {strides = array<i32>} : memref<48x64xf32, #tpu.memory_space<vmem>>, vector<48x64xf32>,
    %175 = vector.extract_strided_slice %169 {offsets = [0, 0], sizes = [16, 32], strides = [1, 1]} : vector<48x32xf32> to vector<16x32xf32>
    %c8_148 = arith.constant 8 : index
    %c128_149 = arith.constant 128 : index
    %176 = vector.load %arg23[%c8_148, %c128_149] : memref<64x256xf32, #tpu.memory_space<vmem>>, vector<16x32xf32>
    tpu.vector_store %arg23[%c8_148, %c128_149], %175 {strides = array<i32>} : memref<64x256xf32, #tpu.memory_space<vmem>>, vector<16x32xf32>,
    %177 = vector.extract_strided_slice %169 {offsets = [24, 0], sizes = [16, 32], strides = [1, 1]} : vector<48x32xf32> to vector<16x32xf32>
    %c32_150 = arith.constant 32 : index
    %c128_151 = arith.constant 128 : index
    %178 = vector.load %arg23[%c32_150, %c128_151] : memref<64x256xf32, #tpu.memory_space<vmem>>, vector<16x32xf32>
    tpu.vector_store %arg23[%c32_150, %c128_151], %177 {strides = array<i32>} : memref<64x256xf32, #tpu.memory_space<vmem>>, vector<16x32xf32>,
    %c7_152 = arith.constant 7 : index
    %c126_153 = arith.constant 126 : index
    %179 = vector.load %arg23[%c7_152, %c126_153] : memref<64x256xf32, #tpu.memory_space<vmem>>, vector<48x32xf32>
    %c7_154 = arith.constant 7 : index
    %c128_155 = arith.constant 128 : index
    %180 = vector.load %arg23[%c7_154, %c128_155] : memref<64x256xf32, #tpu.memory_space<vmem>>, vector<48x32xf32>
    %c7_156 = arith.constant 7 : index
    %c130 = arith.constant 130 : index
    %181 = vector.load %arg23[%c7_156, %c130] : memref<64x256xf32, #tpu.memory_space<vmem>>, vector<48x32xf32>
    %c8_157 = arith.constant 8 : index
    %c126_158 = arith.constant 126 : index
    %182 = vector.load %arg23[%c8_157, %c126_158] : memref<64x256xf32, #tpu.memory_space<vmem>>, vector<48x32xf32>
    %c8_159 = arith.constant 8 : index
    %c128_160 = arith.constant 128 : index
    %183 = vector.load %arg23[%c8_159, %c128_160] : memref<64x256xf32, #tpu.memory_space<vmem>>, vector<48x32xf32>
    %c8_161 = arith.constant 8 : index
    %c130_162 = arith.constant 130 : index
    %184 = vector.load %arg23[%c8_161, %c130_162] : memref<64x256xf32, #tpu.memory_space<vmem>>, vector<48x32xf32>
    %c9_163 = arith.constant 9 : index
    %c126_164 = arith.constant 126 : index
    %185 = vector.load %arg23[%c9_163, %c126_164] : memref<64x256xf32, #tpu.memory_space<vmem>>, vector<48x32xf32>
    %c9_165 = arith.constant 9 : index
    %c128_166 = arith.constant 128 : index
    %186 = vector.load %arg23[%c9_165, %c128_166] : memref<64x256xf32, #tpu.memory_space<vmem>>, vector<48x32xf32>
    %c9_167 = arith.constant 9 : index
    %c130_168 = arith.constant 130 : index
    %187 = vector.load %arg23[%c9_167, %c130_168] : memref<64x256xf32, #tpu.memory_space<vmem>>, vector<48x32xf32>
    %188 = arith.addf %179, %180 : vector<48x32xf32>
    %189 = arith.addf %181, %182 : vector<48x32xf32>
    %190 = arith.addf %183, %184 : vector<48x32xf32>
    %191 = arith.addf %185, %186 : vector<48x32xf32>
    %192 = arith.addf %188, %189 : vector<48x32xf32>
    %193 = arith.addf %190, %191 : vector<48x32xf32>
    %194 = arith.addf %192, %193 : vector<48x32xf32>
    %195 = arith.addf %194, %187 : vector<48x32xf32>
    %cst_169 = arith.constant 0.111111112 : f32
    %196 = vector.broadcast %cst_169 : f32 to vector<48x32xf32>
    %197 = arith.mulf %195, %196 : vector<48x32xf32>
    %198 = arith.truncf %197 : vector<48x32xf32> to vector<48x32xbf16>
    %c0_170 = arith.constant 0 : index
    %c0_171 = arith.constant 0 : index
    %c0_172 = arith.constant 0 : index
    %199 = vector.load %arg11[%c0_170, %c0_171, %c0_172] : memref<3x32x32xbf16, #tpu.memory_space<vmem>>, vector<1x32x32xbf16>
    %200 = vector.shape_cast %199 : vector<1x32x32xbf16> to vector<32x32xbf16>
    %cst_173 = arith.constant dense<0.000000e+00> : vector<48x32xf32>
    %201 = tpu.matmul %198, %200, %cst_173 {dimension_numbers = #tpu.dot_dimension_numbers<[1], [0], [0], [1], [0, 0, 1, 1], [], []>} : vector<48x32xbf16>, vector<32x32xbf16>, vector<48x32xf32> -> vector<48x32xf32>
    %c0_174 = arith.constant 0 : index
    %c0_175 = arith.constant 0 : index
    %c0_176 = arith.constant 0 : index
    %202 = vector.load %arg12[%c0_174, %c0_175, %c0_176] : memref<3x1x32xf32, #tpu.memory_space<vmem>>, vector<1x1x32xf32>
    %203 = vector.shape_cast %202 : vector<1x1x32xf32> to vector<1x32xf32>
    %204 = vector.broadcast %203 : vector<1x32xf32> to vector<48x32xf32>
    %205 = arith.mulf %201, %204 : vector<48x32xf32>
    %c0_177 = arith.constant 0 : index
    %c0_178 = arith.constant 0 : index
    %c0_179 = arith.constant 0 : index
    %206 = vector.load %arg13[%c0_177, %c0_178, %c0_179] : memref<3x1x32xf32, #tpu.memory_space<vmem>>, vector<1x1x32xf32>
    %207 = vector.shape_cast %206 : vector<1x1x32xf32> to vector<1x32xf32>
    %208 = vector.broadcast %207 : vector<1x32xf32> to vector<48x32xf32>
    %209 = arith.addf %205, %208 : vector<48x32xf32>
    %cst_180 = arith.constant 0.000000e+00 : f32
    %210 = vector.broadcast %cst_180 : f32 to vector<48x32xf32>
    %211 = arith.subf %210, %209 : vector<48x32xf32>
    %212 = math.exp %211 : vector<48x32xf32>
    %cst_181 = arith.constant 1.000000e+00 : f32
    %213 = vector.broadcast %cst_181 : f32 to vector<48x32xf32>
    %214 = arith.addf %213, %212 : vector<48x32xf32>
    %cst_182 = arith.constant 1.000000e+00 : f32
    %215 = vector.broadcast %cst_182 : f32 to vector<48x32xf32>
    %216 = arith.divf %215, %214 : vector<48x32xf32>
    %217 = vector.extract_strided_slice %216 {offsets = [0, 0], sizes = [16, 32], strides = [1, 1]} : vector<48x32xf32> to vector<16x32xf32>
    %c8_183 = arith.constant 8 : index
    %c128_184 = arith.constant 128 : index
    %218 = vector.load %arg24[%c8_183, %c128_184] : memref<64x256xf32, #tpu.memory_space<vmem>>, vector<16x32xf32>
    tpu.vector_store %arg24[%c8_183, %c128_184], %217 {strides = array<i32>} : memref<64x256xf32, #tpu.memory_space<vmem>>, vector<16x32xf32>,
    %219 = vector.extract_strided_slice %216 {offsets = [24, 0], sizes = [16, 32], strides = [1, 1]} : vector<48x32xf32> to vector<16x32xf32>
    %c32_185 = arith.constant 32 : index
    %c128_186 = arith.constant 128 : index
    %220 = vector.load %arg24[%c32_185, %c128_186] : memref<64x256xf32, #tpu.memory_space<vmem>>, vector<16x32xf32>
    tpu.vector_store %arg24[%c32_185, %c128_186], %219 {strides = array<i32>} : memref<64x256xf32, #tpu.memory_space<vmem>>, vector<16x32xf32>,
    %c7_187 = arith.constant 7 : index
    %c126_188 = arith.constant 126 : index
    %221 = vector.load %arg24[%c7_187, %c126_188] : memref<64x256xf32, #tpu.memory_space<vmem>>, vector<48x32xf32>
    %c7_189 = arith.constant 7 : index
    %c128_190 = arith.constant 128 : index
    %222 = vector.load %arg24[%c7_189, %c128_190] : memref<64x256xf32, #tpu.memory_space<vmem>>, vector<48x32xf32>
    %c7_191 = arith.constant 7 : index
    %c130_192 = arith.constant 130 : index
    %223 = vector.load %arg24[%c7_191, %c130_192] : memref<64x256xf32, #tpu.memory_space<vmem>>, vector<48x32xf32>
    %c8_193 = arith.constant 8 : index
    %c126_194 = arith.constant 126 : index
    %224 = vector.load %arg24[%c8_193, %c126_194] : memref<64x256xf32, #tpu.memory_space<vmem>>, vector<48x32xf32>
    %c8_195 = arith.constant 8 : index
    %c128_196 = arith.constant 128 : index
    %225 = vector.load %arg24[%c8_195, %c128_196] : memref<64x256xf32, #tpu.memory_space<vmem>>, vector<48x32xf32>
    %c8_197 = arith.constant 8 : index
    %c130_198 = arith.constant 130 : index
    %226 = vector.load %arg24[%c8_197, %c130_198] : memref<64x256xf32, #tpu.memory_space<vmem>>, vector<48x32xf32>
    %c9_199 = arith.constant 9 : index
    %c126_200 = arith.constant 126 : index
    %227 = vector.load %arg24[%c9_199, %c126_200] : memref<64x256xf32, #tpu.memory_space<vmem>>, vector<48x32xf32>
    %c9_201 = arith.constant 9 : index
    %c128_202 = arith.constant 128 : index
    %228 = vector.load %arg24[%c9_201, %c128_202] : memref<64x256xf32, #tpu.memory_space<vmem>>, vector<48x32xf32>
    %c9_203 = arith.constant 9 : index
    %c130_204 = arith.constant 130 : index
    %229 = vector.load %arg24[%c9_203, %c130_204] : memref<64x256xf32, #tpu.memory_space<vmem>>, vector<48x32xf32>
    %230 = arith.addf %221, %222 : vector<48x32xf32>
    %231 = arith.addf %223, %224 : vector<48x32xf32>
    %232 = arith.addf %225, %226 : vector<48x32xf32>
    %233 = arith.addf %227, %228 : vector<48x32xf32>
    %234 = arith.addf %230, %231 : vector<48x32xf32>
    %235 = arith.addf %232, %233 : vector<48x32xf32>
    %236 = arith.addf %234, %235 : vector<48x32xf32>
    %237 = arith.addf %236, %229 : vector<48x32xf32>
    %cst_205 = arith.constant 0.111111112 : f32
    %238 = vector.broadcast %cst_205 : f32 to vector<48x32xf32>
    %239 = arith.mulf %237, %238 : vector<48x32xf32>
    %240 = arith.subf %216, %239 : vector<48x32xf32>
    %241 = arith.truncf %240 : vector<48x32xf32> to vector<48x32xbf16>
    %c0_206 = arith.constant 0 : index
    %c0_207 = arith.constant 0 : index
    %c0_208 = arith.constant 0 : index
    %242 = vector.load %arg14[%c0_206, %c0_207, %c0_208] : memref<3x32x32xbf16, #tpu.memory_space<vmem>>, vector<1x32x32xbf16>
    %243 = vector.shape_cast %242 : vector<1x32x32xbf16> to vector<32x32xbf16>
    %cst_209 = arith.constant dense<0.000000e+00> : vector<48x32xf32>
    %244 = tpu.matmul %241, %243, %cst_209 {dimension_numbers = #tpu.dot_dimension_numbers<[1], [0], [0], [1], [0, 0, 1, 1], [], []>} : vector<48x32xbf16>, vector<32x32xbf16>, vector<48x32xf32> -> vector<48x32xf32>
    %c0_210 = arith.constant 0 : index
    %c0_211 = arith.constant 0 : index
    %c0_212 = arith.constant 0 : index
    %245 = vector.load %arg15[%c0_210, %c0_211, %c0_212] : memref<3x1x32xf32, #tpu.memory_space<vmem>>, vector<1x1x32xf32>
    %246 = vector.shape_cast %245 : vector<1x1x32xf32> to vector<1x32xf32>
    %247 = vector.broadcast %246 : vector<1x32xf32> to vector<48x32xf32>
    %248 = arith.mulf %244, %247 : vector<48x32xf32>
    %c0_213 = arith.constant 0 : index
    %c0_214 = arith.constant 0 : index
    %c0_215 = arith.constant 0 : index
    %249 = vector.load %arg16[%c0_213, %c0_214, %c0_215] : memref<3x1x32xf32, #tpu.memory_space<vmem>>, vector<1x1x32xf32>
    %250 = vector.shape_cast %249 : vector<1x1x32xf32> to vector<1x32xf32>
    %251 = vector.broadcast %250 : vector<1x32xf32> to vector<48x32xf32>
    %252 = arith.addf %248, %251 : vector<48x32xf32>
    %cst_216 = arith.constant 0.000000e+00 : f32
    %253 = vector.broadcast %cst_216 : f32 to vector<48x32xf32>
    %254 = arith.subf %253, %252 : vector<48x32xf32>
    %255 = math.exp %254 : vector<48x32xf32>
    %cst_217 = arith.constant 1.000000e+00 : f32
    %256 = vector.broadcast %cst_217 : f32 to vector<48x32xf32>
    %257 = arith.addf %256, %255 : vector<48x32xf32>
    %cst_218 = arith.constant 1.000000e+00 : f32
    %258 = vector.broadcast %cst_218 : f32 to vector<48x32xf32>
    %259 = arith.divf %258, %257 : vector<48x32xf32>
    %c0_219 = arith.constant 0 : index
    %c0_220 = arith.constant 0 : index
    %260 = vector.load %arg25[%c0_219, %c0_220] : memref<48x64xf32, #tpu.memory_space<vmem>>, vector<48x64xf32>
    %261 = arith.addf %216, %259 : vector<48x32xf32>
    %262 = arith.truncf %261 : vector<48x32xf32> to vector<48x32xbf16>
    %c1_221 = arith.constant 1 : index
    %c0_222 = arith.constant 0 : index
    %c0_223 = arith.constant 0 : index
    %263 = vector.load %arg17[%c1_221, %c0_222, %c0_223] : memref<4x32x64xbf16, #tpu.memory_space<vmem>>, vector<1x32x64xbf16>
    %264 = vector.shape_cast %263 : vector<1x32x64xbf16> to vector<32x64xbf16>
    %cst_224 = arith.constant dense<0.000000e+00> : vector<48x64xf32>
    %265 = tpu.matmul %262, %264, %cst_224 {dimension_numbers = #tpu.dot_dimension_numbers<[1], [0], [0], [1], [0, 0, 1, 1], [], []>} : vector<48x32xbf16>, vector<32x64xbf16>, vector<48x64xf32> -> vector<48x64xf32>
    %266 = arith.addf %260, %265 : vector<48x64xf32>
    %c0_225 = arith.constant 0 : index
    %c0_226 = arith.constant 0 : index
    %267 = vector.load %arg25[%c0_225, %c0_226] : memref<48x64xf32, #tpu.memory_space<vmem>>, vector<48x64xf32>
    tpu.vector_store %arg25[%c0_225, %c0_226], %266 {strides = array<i32>} : memref<48x64xf32, #tpu.memory_space<vmem>>, vector<48x64xf32>,
    %268 = vector.extract_strided_slice %216 {offsets = [0, 0], sizes = [16, 32], strides = [1, 1]} : vector<48x32xf32> to vector<16x32xf32>
    %c8_227 = arith.constant 8 : index
    %c128_228 = arith.constant 128 : index
    %269 = vector.load %arg24[%c8_227, %c128_228] : memref<64x256xf32, #tpu.memory_space<vmem>>, vector<16x32xf32>
    tpu.vector_store %arg24[%c8_227, %c128_228], %268 {strides = array<i32>} : memref<64x256xf32, #tpu.memory_space<vmem>>, vector<16x32xf32>,
    %270 = vector.extract_strided_slice %216 {offsets = [24, 0], sizes = [16, 32], strides = [1, 1]} : vector<48x32xf32> to vector<16x32xf32>
    %c32_229 = arith.constant 32 : index
    %c128_230 = arith.constant 128 : index
    %271 = vector.load %arg24[%c32_229, %c128_230] : memref<64x256xf32, #tpu.memory_space<vmem>>, vector<16x32xf32>
    tpu.vector_store %arg24[%c32_229, %c128_230], %270 {strides = array<i32>} : memref<64x256xf32, #tpu.memory_space<vmem>>, vector<16x32xf32>,
    %c7_231 = arith.constant 7 : index
    %c126_232 = arith.constant 126 : index
    %272 = vector.load %arg24[%c7_231, %c126_232] : memref<64x256xf32, #tpu.memory_space<vmem>>, vector<48x32xf32>
    %c7_233 = arith.constant 7 : index
    %c128_234 = arith.constant 128 : index
    %273 = vector.load %arg24[%c7_233, %c128_234] : memref<64x256xf32, #tpu.memory_space<vmem>>, vector<48x32xf32>
    %c7_235 = arith.constant 7 : index
    %c130_236 = arith.constant 130 : index
    %274 = vector.load %arg24[%c7_235, %c130_236] : memref<64x256xf32, #tpu.memory_space<vmem>>, vector<48x32xf32>
    %c8_237 = arith.constant 8 : index
    %c126_238 = arith.constant 126 : index
    %275 = vector.load %arg24[%c8_237, %c126_238] : memref<64x256xf32, #tpu.memory_space<vmem>>, vector<48x32xf32>
    %c8_239 = arith.constant 8 : index
    %c128_240 = arith.constant 128 : index
    %276 = vector.load %arg24[%c8_239, %c128_240] : memref<64x256xf32, #tpu.memory_space<vmem>>, vector<48x32xf32>
    %c8_241 = arith.constant 8 : index
    %c130_242 = arith.constant 130 : index
    %277 = vector.load %arg24[%c8_241, %c130_242] : memref<64x256xf32, #tpu.memory_space<vmem>>, vector<48x32xf32>
    %c9_243 = arith.constant 9 : index
    %c126_244 = arith.constant 126 : index
    %278 = vector.load %arg24[%c9_243, %c126_244] : memref<64x256xf32, #tpu.memory_space<vmem>>, vector<48x32xf32>
    %c9_245 = arith.constant 9 : index
    %c128_246 = arith.constant 128 : index
    %279 = vector.load %arg24[%c9_245, %c128_246] : memref<64x256xf32, #tpu.memory_space<vmem>>, vector<48x32xf32>
    %c9_247 = arith.constant 9 : index
    %c130_248 = arith.constant 130 : index
    %280 = vector.load %arg24[%c9_247, %c130_248] : memref<64x256xf32, #tpu.memory_space<vmem>>, vector<48x32xf32>
    %281 = arith.addf %272, %273 : vector<48x32xf32>
    %282 = arith.addf %274, %275 : vector<48x32xf32>
    %283 = arith.addf %276, %277 : vector<48x32xf32>
    %284 = arith.addf %278, %279 : vector<48x32xf32>
    %285 = arith.addf %281, %282 : vector<48x32xf32>
    %286 = arith.addf %283, %284 : vector<48x32xf32>
    %287 = arith.addf %285, %286 : vector<48x32xf32>
    %288 = arith.addf %287, %280 : vector<48x32xf32>
    %cst_249 = arith.constant 0.111111112 : f32
    %289 = vector.broadcast %cst_249 : f32 to vector<48x32xf32>
    %290 = arith.mulf %288, %289 : vector<48x32xf32>
    %291 = arith.truncf %290 : vector<48x32xf32> to vector<48x32xbf16>
    %c1_250 = arith.constant 1 : index
    %c0_251 = arith.constant 0 : index
    %c0_252 = arith.constant 0 : index
    %292 = vector.load %arg11[%c1_250, %c0_251, %c0_252] : memref<3x32x32xbf16, #tpu.memory_space<vmem>>, vector<1x32x32xbf16>
    %293 = vector.shape_cast %292 : vector<1x32x32xbf16> to vector<32x32xbf16>
    %cst_253 = arith.constant dense<0.000000e+00> : vector<48x32xf32>
    %294 = tpu.matmul %291, %293, %cst_253 {dimension_numbers = #tpu.dot_dimension_numbers<[1], [0], [0], [1], [0, 0, 1, 1], [], []>} : vector<48x32xbf16>, vector<32x32xbf16>, vector<48x32xf32> -> vector<48x32xf32>
    %c1_254 = arith.constant 1 : index
    %c0_255 = arith.constant 0 : index
    %c0_256 = arith.constant 0 : index
    %295 = vector.load %arg12[%c1_254, %c0_255, %c0_256] : memref<3x1x32xf32, #tpu.memory_space<vmem>>, vector<1x1x32xf32>
    %296 = vector.shape_cast %295 : vector<1x1x32xf32> to vector<1x32xf32>
    %297 = vector.broadcast %296 : vector<1x32xf32> to vector<48x32xf32>
    %298 = arith.mulf %294, %297 : vector<48x32xf32>
    %c1_257 = arith.constant 1 : index
    %c0_258 = arith.constant 0 : index
    %c0_259 = arith.constant 0 : index
    %299 = vector.load %arg13[%c1_257, %c0_258, %c0_259] : memref<3x1x32xf32, #tpu.memory_space<vmem>>, vector<1x1x32xf32>
    %300 = vector.shape_cast %299 : vector<1x1x32xf32> to vector<1x32xf32>
    %301 = vector.broadcast %300 : vector<1x32xf32> to vector<48x32xf32>
    %302 = arith.addf %298, %301 : vector<48x32xf32>
    %cst_260 = arith.constant 0.000000e+00 : f32
    %303 = vector.broadcast %cst_260 : f32 to vector<48x32xf32>
    %304 = arith.subf %303, %302 : vector<48x32xf32>
    %305 = math.exp %304 : vector<48x32xf32>
    %cst_261 = arith.constant 1.000000e+00 : f32
    %306 = vector.broadcast %cst_261 : f32 to vector<48x32xf32>
    %307 = arith.addf %306, %305 : vector<48x32xf32>
    %cst_262 = arith.constant 1.000000e+00 : f32
    %308 = vector.broadcast %cst_262 : f32 to vector<48x32xf32>
    %309 = arith.divf %308, %307 : vector<48x32xf32>
    %310 = vector.extract_strided_slice %309 {offsets = [0, 0], sizes = [16, 32], strides = [1, 1]} : vector<48x32xf32> to vector<16x32xf32>
    %c8_263 = arith.constant 8 : index
    %c128_264 = arith.constant 128 : index
    %311 = vector.load %arg23[%c8_263, %c128_264] : memref<64x256xf32, #tpu.memory_space<vmem>>, vector<16x32xf32>
    tpu.vector_store %arg23[%c8_263, %c128_264], %310 {strides = array<i32>} : memref<64x256xf32, #tpu.memory_space<vmem>>, vector<16x32xf32>,
    %312 = vector.extract_strided_slice %309 {offsets = [24, 0], sizes = [16, 32], strides = [1, 1]} : vector<48x32xf32> to vector<16x32xf32>
    %c32_265 = arith.constant 32 : index
    %c128_266 = arith.constant 128 : index
    %313 = vector.load %arg23[%c32_265, %c128_266] : memref<64x256xf32, #tpu.memory_space<vmem>>, vector<16x32xf32>
    tpu.vector_store %arg23[%c32_265, %c128_266], %312 {strides = array<i32>} : memref<64x256xf32, #tpu.memory_space<vmem>>, vector<16x32xf32>,
    %c7_267 = arith.constant 7 : index
    %c126_268 = arith.constant 126 : index
    %314 = vector.load %arg23[%c7_267, %c126_268] : memref<64x256xf32, #tpu.memory_space<vmem>>, vector<48x32xf32>
    %c7_269 = arith.constant 7 : index
    %c128_270 = arith.constant 128 : index
    %315 = vector.load %arg23[%c7_269, %c128_270] : memref<64x256xf32, #tpu.memory_space<vmem>>, vector<48x32xf32>
    %c7_271 = arith.constant 7 : index
    %c130_272 = arith.constant 130 : index
    %316 = vector.load %arg23[%c7_271, %c130_272] : memref<64x256xf32, #tpu.memory_space<vmem>>, vector<48x32xf32>
    %c8_273 = arith.constant 8 : index
    %c126_274 = arith.constant 126 : index
    %317 = vector.load %arg23[%c8_273, %c126_274] : memref<64x256xf32, #tpu.memory_space<vmem>>, vector<48x32xf32>
    %c8_275 = arith.constant 8 : index
    %c128_276 = arith.constant 128 : index
    %318 = vector.load %arg23[%c8_275, %c128_276] : memref<64x256xf32, #tpu.memory_space<vmem>>, vector<48x32xf32>
    %c8_277 = arith.constant 8 : index
    %c130_278 = arith.constant 130 : index
    %319 = vector.load %arg23[%c8_277, %c130_278] : memref<64x256xf32, #tpu.memory_space<vmem>>, vector<48x32xf32>
    %c9_279 = arith.constant 9 : index
    %c126_280 = arith.constant 126 : index
    %320 = vector.load %arg23[%c9_279, %c126_280] : memref<64x256xf32, #tpu.memory_space<vmem>>, vector<48x32xf32>
    %c9_281 = arith.constant 9 : index
    %c128_282 = arith.constant 128 : index
    %321 = vector.load %arg23[%c9_281, %c128_282] : memref<64x256xf32, #tpu.memory_space<vmem>>, vector<48x32xf32>
    %c9_283 = arith.constant 9 : index
    %c130_284 = arith.constant 130 : index
    %322 = vector.load %arg23[%c9_283, %c130_284] : memref<64x256xf32, #tpu.memory_space<vmem>>, vector<48x32xf32>
    %323 = arith.addf %314, %315 : vector<48x32xf32>
    %324 = arith.addf %316, %317 : vector<48x32xf32>
    %325 = arith.addf %318, %319 : vector<48x32xf32>
    %326 = arith.addf %320, %321 : vector<48x32xf32>
    %327 = arith.addf %323, %324 : vector<48x32xf32>
    %328 = arith.addf %325, %326 : vector<48x32xf32>
    %329 = arith.addf %327, %328 : vector<48x32xf32>
    %330 = arith.addf %329, %322 : vector<48x32xf32>
    %cst_285 = arith.constant 0.111111112 : f32
    %331 = vector.broadcast %cst_285 : f32 to vector<48x32xf32>
    %332 = arith.mulf %330, %331 : vector<48x32xf32>
    %333 = arith.subf %309, %332 : vector<48x32xf32>
    %334 = arith.truncf %333 : vector<48x32xf32> to vector<48x32xbf16>
    %c1_286 = arith.constant 1 : index
    %c0_287 = arith.constant 0 : index
    %c0_288 = arith.constant 0 : index
    %335 = vector.load %arg14[%c1_286, %c0_287, %c0_288] : memref<3x32x32xbf16, #tpu.memory_space<vmem>>, vector<1x32x32xbf16>
    %336 = vector.shape_cast %335 : vector<1x32x32xbf16> to vector<32x32xbf16>
    %cst_289 = arith.constant dense<0.000000e+00> : vector<48x32xf32>
    %337 = tpu.matmul %334, %336, %cst_289 {dimension_numbers = #tpu.dot_dimension_numbers<[1], [0], [0], [1], [0, 0, 1, 1], [], []>} : vector<48x32xbf16>, vector<32x32xbf16>, vector<48x32xf32> -> vector<48x32xf32>
    %c1_290 = arith.constant 1 : index
    %c0_291 = arith.constant 0 : index
    %c0_292 = arith.constant 0 : index
    %338 = vector.load %arg15[%c1_290, %c0_291, %c0_292] : memref<3x1x32xf32, #tpu.memory_space<vmem>>, vector<1x1x32xf32>
    %339 = vector.shape_cast %338 : vector<1x1x32xf32> to vector<1x32xf32>
    %340 = vector.broadcast %339 : vector<1x32xf32> to vector<48x32xf32>
    %341 = arith.mulf %337, %340 : vector<48x32xf32>
    %c1_293 = arith.constant 1 : index
    %c0_294 = arith.constant 0 : index
    %c0_295 = arith.constant 0 : index
    %342 = vector.load %arg16[%c1_293, %c0_294, %c0_295] : memref<3x1x32xf32, #tpu.memory_space<vmem>>, vector<1x1x32xf32>
    %343 = vector.shape_cast %342 : vector<1x1x32xf32> to vector<1x32xf32>
    %344 = vector.broadcast %343 : vector<1x32xf32> to vector<48x32xf32>
    %345 = arith.addf %341, %344 : vector<48x32xf32>
    %cst_296 = arith.constant 0.000000e+00 : f32
    %346 = vector.broadcast %cst_296 : f32 to vector<48x32xf32>
    %347 = arith.subf %346, %345 : vector<48x32xf32>
    %348 = math.exp %347 : vector<48x32xf32>
    %cst_297 = arith.constant 1.000000e+00 : f32
    %349 = vector.broadcast %cst_297 : f32 to vector<48x32xf32>
    %350 = arith.addf %349, %348 : vector<48x32xf32>
    %cst_298 = arith.constant 1.000000e+00 : f32
    %351 = vector.broadcast %cst_298 : f32 to vector<48x32xf32>
    %352 = arith.divf %351, %350 : vector<48x32xf32>
    %c0_299 = arith.constant 0 : index
    %c0_300 = arith.constant 0 : index
    %353 = vector.load %arg25[%c0_299, %c0_300] : memref<48x64xf32, #tpu.memory_space<vmem>>, vector<48x64xf32>
    %354 = arith.addf %309, %352 : vector<48x32xf32>
    %355 = arith.truncf %354 : vector<48x32xf32> to vector<48x32xbf16>
    %c2_301 = arith.constant 2 : index
    %c0_302 = arith.constant 0 : index
    %c0_303 = arith.constant 0 : index
    %356 = vector.load %arg17[%c2_301, %c0_302, %c0_303] : memref<4x32x64xbf16, #tpu.memory_space<vmem>>, vector<1x32x64xbf16>
    %357 = vector.shape_cast %356 : vector<1x32x64xbf16> to vector<32x64xbf16>
    %cst_304 = arith.constant dense<0.000000e+00> : vector<48x64xf32>
    %358 = tpu.matmul %355, %357, %cst_304 {dimension_numbers = #tpu.dot_dimension_numbers<[1], [0], [0], [1], [0, 0, 1, 1], [], []>} : vector<48x32xbf16>, vector<32x64xbf16>, vector<48x64xf32> -> vector<48x64xf32>
    %359 = arith.addf %353, %358 : vector<48x64xf32>
    %c0_305 = arith.constant 0 : index
    %c0_306 = arith.constant 0 : index
    %360 = vector.load %arg25[%c0_305, %c0_306] : memref<48x64xf32, #tpu.memory_space<vmem>>, vector<48x64xf32>
    tpu.vector_store %arg25[%c0_305, %c0_306], %359 {strides = array<i32>} : memref<48x64xf32, #tpu.memory_space<vmem>>, vector<48x64xf32>,
    %361 = vector.extract_strided_slice %309 {offsets = [0, 0], sizes = [16, 32], strides = [1, 1]} : vector<48x32xf32> to vector<16x32xf32>
    %c8_307 = arith.constant 8 : index
    %c128_308 = arith.constant 128 : index
    %362 = vector.load %arg23[%c8_307, %c128_308] : memref<64x256xf32, #tpu.memory_space<vmem>>, vector<16x32xf32>
    tpu.vector_store %arg23[%c8_307, %c128_308], %361 {strides = array<i32>} : memref<64x256xf32, #tpu.memory_space<vmem>>, vector<16x32xf32>,
    %363 = vector.extract_strided_slice %309 {offsets = [24, 0], sizes = [16, 32], strides = [1, 1]} : vector<48x32xf32> to vector<16x32xf32>
    %c32_309 = arith.constant 32 : index
    %c128_310 = arith.constant 128 : index
    %364 = vector.load %arg23[%c32_309, %c128_310] : memref<64x256xf32, #tpu.memory_space<vmem>>, vector<16x32xf32>
    tpu.vector_store %arg23[%c32_309, %c128_310], %363 {strides = array<i32>} : memref<64x256xf32, #tpu.memory_space<vmem>>, vector<16x32xf32>,
    %c7_311 = arith.constant 7 : index
    %c126_312 = arith.constant 126 : index
    %365 = vector.load %arg23[%c7_311, %c126_312] : memref<64x256xf32, #tpu.memory_space<vmem>>, vector<48x32xf32>
    %c7_313 = arith.constant 7 : index
    %c128_314 = arith.constant 128 : index
    %366 = vector.load %arg23[%c7_313, %c128_314] : memref<64x256xf32, #tpu.memory_space<vmem>>, vector<48x32xf32>
    %c7_315 = arith.constant 7 : index
    %c130_316 = arith.constant 130 : index
    %367 = vector.load %arg23[%c7_315, %c130_316] : memref<64x256xf32, #tpu.memory_space<vmem>>, vector<48x32xf32>
    %c8_317 = arith.constant 8 : index
    %c126_318 = arith.constant 126 : index
    %368 = vector.load %arg23[%c8_317, %c126_318] : memref<64x256xf32, #tpu.memory_space<vmem>>, vector<48x32xf32>
    %c8_319 = arith.constant 8 : index
    %c128_320 = arith.constant 128 : index
    %369 = vector.load %arg23[%c8_319, %c128_320] : memref<64x256xf32, #tpu.memory_space<vmem>>, vector<48x32xf32>
    %c8_321 = arith.constant 8 : index
    %c130_322 = arith.constant 130 : index
    %370 = vector.load %arg23[%c8_321, %c130_322] : memref<64x256xf32, #tpu.memory_space<vmem>>, vector<48x32xf32>
    %c9_323 = arith.constant 9 : index
    %c126_324 = arith.constant 126 : index
    %371 = vector.load %arg23[%c9_323, %c126_324] : memref<64x256xf32, #tpu.memory_space<vmem>>, vector<48x32xf32>
    %c9_325 = arith.constant 9 : index
    %c128_326 = arith.constant 128 : index
    %372 = vector.load %arg23[%c9_325, %c128_326] : memref<64x256xf32, #tpu.memory_space<vmem>>, vector<48x32xf32>
    %c9_327 = arith.constant 9 : index
    %c130_328 = arith.constant 130 : index
    %373 = vector.load %arg23[%c9_327, %c130_328] : memref<64x256xf32, #tpu.memory_space<vmem>>, vector<48x32xf32>
    %374 = arith.addf %365, %366 : vector<48x32xf32>
    %375 = arith.addf %367, %368 : vector<48x32xf32>
    %376 = arith.addf %369, %370 : vector<48x32xf32>
    %377 = arith.addf %371, %372 : vector<48x32xf32>
    %378 = arith.addf %374, %375 : vector<48x32xf32>
    %379 = arith.addf %376, %377 : vector<48x32xf32>
    %380 = arith.addf %378, %379 : vector<48x32xf32>
    %381 = arith.addf %380, %373 : vector<48x32xf32>
    %cst_329 = arith.constant 0.111111112 : f32
    %382 = vector.broadcast %cst_329 : f32 to vector<48x32xf32>
    %383 = arith.mulf %381, %382 : vector<48x32xf32>
    %384 = arith.truncf %383 : vector<48x32xf32> to vector<48x32xbf16>
    %c2_330 = arith.constant 2 : index
    %c0_331 = arith.constant 0 : index
    %c0_332 = arith.constant 0 : index
    %385 = vector.load %arg11[%c2_330, %c0_331, %c0_332] : memref<3x32x32xbf16, #tpu.memory_space<vmem>>, vector<1x32x32xbf16>
    %386 = vector.shape_cast %385 : vector<1x32x32xbf16> to vector<32x32xbf16>
    %cst_333 = arith.constant dense<0.000000e+00> : vector<48x32xf32>
    %387 = tpu.matmul %384, %386, %cst_333 {dimension_numbers = #tpu.dot_dimension_numbers<[1], [0], [0], [1], [0, 0, 1, 1], [], []>} : vector<48x32xbf16>, vector<32x32xbf16>, vector<48x32xf32> -> vector<48x32xf32>
    %c2_334 = arith.constant 2 : index
    %c0_335 = arith.constant 0 : index
    %c0_336 = arith.constant 0 : index
    %388 = vector.load %arg12[%c2_334, %c0_335, %c0_336] : memref<3x1x32xf32, #tpu.memory_space<vmem>>, vector<1x1x32xf32>
    %389 = vector.shape_cast %388 : vector<1x1x32xf32> to vector<1x32xf32>
    %390 = vector.broadcast %389 : vector<1x32xf32> to vector<48x32xf32>
    %391 = arith.mulf %387, %390 : vector<48x32xf32>
    %c2_337 = arith.constant 2 : index
    %c0_338 = arith.constant 0 : index
    %c0_339 = arith.constant 0 : index
    %392 = vector.load %arg13[%c2_337, %c0_338, %c0_339] : memref<3x1x32xf32, #tpu.memory_space<vmem>>, vector<1x1x32xf32>
    %393 = vector.shape_cast %392 : vector<1x1x32xf32> to vector<1x32xf32>
    %394 = vector.broadcast %393 : vector<1x32xf32> to vector<48x32xf32>
    %395 = arith.addf %391, %394 : vector<48x32xf32>
    %cst_340 = arith.constant 0.000000e+00 : f32
    %396 = vector.broadcast %cst_340 : f32 to vector<48x32xf32>
    %397 = arith.subf %396, %395 : vector<48x32xf32>
    %398 = math.exp %397 : vector<48x32xf32>
    %cst_341 = arith.constant 1.000000e+00 : f32
    %399 = vector.broadcast %cst_341 : f32 to vector<48x32xf32>
    %400 = arith.addf %399, %398 : vector<48x32xf32>
    %cst_342 = arith.constant 1.000000e+00 : f32
    %401 = vector.broadcast %cst_342 : f32 to vector<48x32xf32>
    %402 = arith.divf %401, %400 : vector<48x32xf32>
    %403 = vector.extract_strided_slice %402 {offsets = [0, 0], sizes = [16, 32], strides = [1, 1]} : vector<48x32xf32> to vector<16x32xf32>
    %c8_343 = arith.constant 8 : index
    %c128_344 = arith.constant 128 : index
    %404 = vector.load %arg24[%c8_343, %c128_344] : memref<64x256xf32, #tpu.memory_space<vmem>>, vector<16x32xf32>
    tpu.vector_store %arg24[%c8_343, %c128_344], %403 {strides = array<i32>} : memref<64x256xf32, #tpu.memory_space<vmem>>, vector<16x32xf32>,
    %405 = vector.extract_strided_slice %402 {offsets = [24, 0], sizes = [16, 32], strides = [1, 1]} : vector<48x32xf32> to vector<16x32xf32>
    %c32_345 = arith.constant 32 : index
    %c128_346 = arith.constant 128 : index
    %406 = vector.load %arg24[%c32_345, %c128_346] : memref<64x256xf32, #tpu.memory_space<vmem>>, vector<16x32xf32>
    tpu.vector_store %arg24[%c32_345, %c128_346], %405 {strides = array<i32>} : memref<64x256xf32, #tpu.memory_space<vmem>>, vector<16x32xf32>,
    %c7_347 = arith.constant 7 : index
    %c126_348 = arith.constant 126 : index
    %407 = vector.load %arg24[%c7_347, %c126_348] : memref<64x256xf32, #tpu.memory_space<vmem>>, vector<48x32xf32>
    %c7_349 = arith.constant 7 : index
    %c128_350 = arith.constant 128 : index
    %408 = vector.load %arg24[%c7_349, %c128_350] : memref<64x256xf32, #tpu.memory_space<vmem>>, vector<48x32xf32>
    %c7_351 = arith.constant 7 : index
    %c130_352 = arith.constant 130 : index
    %409 = vector.load %arg24[%c7_351, %c130_352] : memref<64x256xf32, #tpu.memory_space<vmem>>, vector<48x32xf32>
    %c8_353 = arith.constant 8 : index
    %c126_354 = arith.constant 126 : index
    %410 = vector.load %arg24[%c8_353, %c126_354] : memref<64x256xf32, #tpu.memory_space<vmem>>, vector<48x32xf32>
    %c8_355 = arith.constant 8 : index
    %c128_356 = arith.constant 128 : index
    %411 = vector.load %arg24[%c8_355, %c128_356] : memref<64x256xf32, #tpu.memory_space<vmem>>, vector<48x32xf32>
    %c8_357 = arith.constant 8 : index
    %c130_358 = arith.constant 130 : index
    %412 = vector.load %arg24[%c8_357, %c130_358] : memref<64x256xf32, #tpu.memory_space<vmem>>, vector<48x32xf32>
    %c9_359 = arith.constant 9 : index
    %c126_360 = arith.constant 126 : index
    %413 = vector.load %arg24[%c9_359, %c126_360] : memref<64x256xf32, #tpu.memory_space<vmem>>, vector<48x32xf32>
    %c9_361 = arith.constant 9 : index
    %c128_362 = arith.constant 128 : index
    %414 = vector.load %arg24[%c9_361, %c128_362] : memref<64x256xf32, #tpu.memory_space<vmem>>, vector<48x32xf32>
    %c9_363 = arith.constant 9 : index
    %c130_364 = arith.constant 130 : index
    %415 = vector.load %arg24[%c9_363, %c130_364] : memref<64x256xf32, #tpu.memory_space<vmem>>, vector<48x32xf32>
    %416 = arith.addf %407, %408 : vector<48x32xf32>
    %417 = arith.addf %409, %410 : vector<48x32xf32>
    %418 = arith.addf %411, %412 : vector<48x32xf32>
    %419 = arith.addf %413, %414 : vector<48x32xf32>
    %420 = arith.addf %416, %417 : vector<48x32xf32>
    %421 = arith.addf %418, %419 : vector<48x32xf32>
    %422 = arith.addf %420, %421 : vector<48x32xf32>
    %423 = arith.addf %422, %415 : vector<48x32xf32>
    %cst_365 = arith.constant 0.111111112 : f32
    %424 = vector.broadcast %cst_365 : f32 to vector<48x32xf32>
    %425 = arith.mulf %423, %424 : vector<48x32xf32>
    %426 = arith.subf %402, %425 : vector<48x32xf32>
    %427 = arith.truncf %426 : vector<48x32xf32> to vector<48x32xbf16>
    %c2_366 = arith.constant 2 : index
    %c0_367 = arith.constant 0 : index
    %c0_368 = arith.constant 0 : index
    %428 = vector.load %arg14[%c2_366, %c0_367, %c0_368] : memref<3x32x32xbf16, #tpu.memory_space<vmem>>, vector<1x32x32xbf16>
    %429 = vector.shape_cast %428 : vector<1x32x32xbf16> to vector<32x32xbf16>
    %cst_369 = arith.constant dense<0.000000e+00> : vector<48x32xf32>
    %430 = tpu.matmul %427, %429, %cst_369 {dimension_numbers = #tpu.dot_dimension_numbers<[1], [0], [0], [1], [0, 0, 1, 1], [], []>} : vector<48x32xbf16>, vector<32x32xbf16>, vector<48x32xf32> -> vector<48x32xf32>
    %c2_370 = arith.constant 2 : index
    %c0_371 = arith.constant 0 : index
    %c0_372 = arith.constant 0 : index
    %431 = vector.load %arg15[%c2_370, %c0_371, %c0_372] : memref<3x1x32xf32, #tpu.memory_space<vmem>>, vector<1x1x32xf32>
    %432 = vector.shape_cast %431 : vector<1x1x32xf32> to vector<1x32xf32>
    %433 = vector.broadcast %432 : vector<1x32xf32> to vector<48x32xf32>
    %434 = arith.mulf %430, %433 : vector<48x32xf32>
    %c2_373 = arith.constant 2 : index
    %c0_374 = arith.constant 0 : index
    %c0_375 = arith.constant 0 : index
    %435 = vector.load %arg16[%c2_373, %c0_374, %c0_375] : memref<3x1x32xf32, #tpu.memory_space<vmem>>, vector<1x1x32xf32>
    %436 = vector.shape_cast %435 : vector<1x1x32xf32> to vector<1x32xf32>
    %437 = vector.broadcast %436 : vector<1x32xf32> to vector<48x32xf32>
    %438 = arith.addf %434, %437 : vector<48x32xf32>
    %cst_376 = arith.constant 0.000000e+00 : f32
    %439 = vector.broadcast %cst_376 : f32 to vector<48x32xf32>
    %440 = arith.subf %439, %438 : vector<48x32xf32>
    %441 = math.exp %440 : vector<48x32xf32>
    %cst_377 = arith.constant 1.000000e+00 : f32
    %442 = vector.broadcast %cst_377 : f32 to vector<48x32xf32>
    %443 = arith.addf %442, %441 : vector<48x32xf32>
    %cst_378 = arith.constant 1.000000e+00 : f32
    %444 = vector.broadcast %cst_378 : f32 to vector<48x32xf32>
    %445 = arith.divf %444, %443 : vector<48x32xf32>
    %c0_379 = arith.constant 0 : index
    %c0_380 = arith.constant 0 : index
    %446 = vector.load %arg25[%c0_379, %c0_380] : memref<48x64xf32, #tpu.memory_space<vmem>>, vector<48x64xf32>
    %447 = arith.addf %402, %445 : vector<48x32xf32>
    %448 = arith.truncf %447 : vector<48x32xf32> to vector<48x32xbf16>
    %c3_381 = arith.constant 3 : index
    %c0_382 = arith.constant 0 : index
    %c0_383 = arith.constant 0 : index
    %449 = vector.load %arg17[%c3_381, %c0_382, %c0_383] : memref<4x32x64xbf16, #tpu.memory_space<vmem>>, vector<1x32x64xbf16>
    %450 = vector.shape_cast %449 : vector<1x32x64xbf16> to vector<32x64xbf16>
    %cst_384 = arith.constant dense<0.000000e+00> : vector<48x64xf32>
    %451 = tpu.matmul %448, %450, %cst_384 {dimension_numbers = #tpu.dot_dimension_numbers<[1], [0], [0], [1], [0, 0, 1, 1], [], []>} : vector<48x32xbf16>, vector<32x64xbf16>, vector<48x64xf32> -> vector<48x64xf32>
    %452 = arith.addf %446, %451 : vector<48x64xf32>
    %c0_385 = arith.constant 0 : index
    %c0_386 = arith.constant 0 : index
    %453 = vector.load %arg25[%c0_385, %c0_386] : memref<48x64xf32, #tpu.memory_space<vmem>>, vector<48x64xf32>
    tpu.vector_store %arg25[%c0_385, %c0_386], %452 {strides = array<i32>} : memref<48x64xf32, #tpu.memory_space<vmem>>, vector<48x64xf32>,
    %c0_387 = arith.constant 0 : index
    %c0_388 = arith.constant 0 : index
    %454 = vector.load %arg25[%c0_387, %c0_388] : memref<48x64xf32, #tpu.memory_space<vmem>>, vector<48x64xf32>
    %c0_389 = arith.constant 0 : index
    %c0_390 = arith.constant 0 : index
    %455 = vector.load %arg18[%c0_389, %c0_390] : memref<1x64xf32, #tpu.memory_space<vmem>>, vector<1x64xf32>
    %456 = vector.broadcast %455 : vector<1x64xf32> to vector<48x64xf32>
    %457 = arith.mulf %454, %456 : vector<48x64xf32>
    %c0_391 = arith.constant 0 : index
    %c0_392 = arith.constant 0 : index
    %458 = vector.load %arg19[%c0_391, %c0_392] : memref<1x64xf32, #tpu.memory_space<vmem>>, vector<1x64xf32>
    %459 = vector.broadcast %458 : vector<1x64xf32> to vector<48x64xf32>
    %460 = arith.addf %457, %459 : vector<48x64xf32>
    %cst_393 = arith.constant 0.000000e+00 : f32
    %461 = vector.broadcast %cst_393 : f32 to vector<48x64xf32>
    %462 = arith.maximumf %460, %461 : vector<48x64xf32>
    %463 = vector.extract_strided_slice %462 {offsets = [0, 0], sizes = [16, 64], strides = [1, 1]} : vector<48x64xf32> to vector<16x64xf32>
    %464 = arith.truncf %463 : vector<16x64xf32> to vector<16x64xbf16>
    %c0_394 = arith.constant 0 : index
    %c0_395 = arith.constant 0 : index
    %c0_396 = arith.constant 0 : index
    %465 = vector.load %arg20[%c0_394, %c0_395, %c0_396] : memref<2x16x64xbf16, #tpu.memory_space<vmem>>, vector<1x16x64xbf16>
    %466 = vector.shape_cast %465 : vector<1x16x64xbf16> to vector<16x64xbf16>
    %467 = vector.shape_cast %464 : vector<16x64xbf16> to vector<1x16x64xbf16>
    tpu.vector_store %arg20[%c0_394, %c0_395, %c0_396], %467 {strides = array<i32>} : memref<2x16x64xbf16, #tpu.memory_space<vmem>>, vector<1x16x64xbf16>,
    %468 = vector.extract_strided_slice %462 {offsets = [24, 0], sizes = [16, 64], strides = [1, 1]} : vector<48x64xf32> to vector<16x64xf32>
    %469 = arith.truncf %468 : vector<16x64xf32> to vector<16x64xbf16>
    %c1_397 = arith.constant 1 : index
    %c0_398 = arith.constant 0 : index
    %c0_399 = arith.constant 0 : index
    %470 = vector.load %arg20[%c1_397, %c0_398, %c0_399] : memref<2x16x64xbf16, #tpu.memory_space<vmem>>, vector<1x16x64xbf16>
    %471 = vector.shape_cast %470 : vector<1x16x64xbf16> to vector<16x64xbf16>
    %472 = vector.shape_cast %469 : vector<16x64xbf16> to vector<1x16x64xbf16>
    tpu.vector_store %arg20[%c1_397, %c0_398, %c0_399], %472 {strides = array<i32>} : memref<2x16x64xbf16, #tpu.memory_space<vmem>>, vector<1x16x64xbf16>,
    return
  }
  func.func @transform_0(%arg0: i32) -> (i32, i32, i32) {
    %c0_i32 = arith.constant 0 : i32
    %c0_i32_0 = arith.constant 0 : i32
    %c0_i32_1 = arith.constant 0 : i32
    return %arg0, %c0_i32, %c0_i32_0 : i32, i32, i32
  }
  func.func @transform_1(%arg0: i32) -> (i32, i32, i32) {
    %c0_i32 = arith.constant 0 : i32
    %c0_i32_0 = arith.constant 0 : i32
    %c0_i32_1 = arith.constant 0 : i32
    %c0_i32_2 = arith.constant 0 : i32
    return %c0_i32, %c0_i32_0, %c0_i32_1 : i32, i32, i32
  }
  func.func @transform_2(%arg0: i32) -> (i32, i32) {
    %c0_i32 = arith.constant 0 : i32
    %c0_i32_0 = arith.constant 0 : i32
    %c0_i32_1 = arith.constant 0 : i32
    return %c0_i32, %c0_i32_0 : i32, i32
  }
  func.func @transform_3(%arg0: i32) -> (i32, i32) {
    %c0_i32 = arith.constant 0 : i32
    %c0_i32_0 = arith.constant 0 : i32
    %c0_i32_1 = arith.constant 0 : i32
    return %c0_i32, %c0_i32_0 : i32, i32
  }
  func.func @transform_4(%arg0: i32) -> (i32, i32, i32) {
    %c0_i32 = arith.constant 0 : i32
    %c0_i32_0 = arith.constant 0 : i32
    %c0_i32_1 = arith.constant 0 : i32
    %c0_i32_2 = arith.constant 0 : i32
    return %c0_i32, %c0_i32_0, %c0_i32_1 : i32, i32, i32
  }
  func.func @transform_5(%arg0: i32) -> (i32, i32) {
    %c0_i32 = arith.constant 0 : i32
    %c0_i32_0 = arith.constant 0 : i32
    %c0_i32_1 = arith.constant 0 : i32
    return %c0_i32, %c0_i32_0 : i32, i32
  }
  func.func @transform_6(%arg0: i32) -> (i32, i32) {
    %c0_i32 = arith.constant 0 : i32
    %c0_i32_0 = arith.constant 0 : i32
    %c0_i32_1 = arith.constant 0 : i32
    return %c0_i32, %c0_i32_0 : i32, i32
  }
  func.func @transform_7(%arg0: i32) -> (i32, i32) {
    %c0_i32 = arith.constant 0 : i32
    %c0_i32_0 = arith.constant 0 : i32
    %c0_i32_1 = arith.constant 0 : i32
    return %c0_i32, %c0_i32_0 : i32, i32
  }
  func.func @transform_8(%arg0: i32) -> (i32, i32) {
    %c0_i32 = arith.constant 0 : i32
    %c0_i32_0 = arith.constant 0 : i32
    %c0_i32_1 = arith.constant 0 : i32
    return %c0_i32, %c0_i32_0 : i32, i32
  }
  func.func @transform_9(%arg0: i32) -> (i32, i32) {
    %c0_i32 = arith.constant 0 : i32
    %c0_i32_0 = arith.constant 0 : i32
    %c0_i32_1 = arith.constant 0 : i32
    return %c0_i32, %c0_i32_0 : i32, i32
  }
  func.func @transform_10(%arg0: i32) -> (i32, i32, i32) {
    %c0_i32 = arith.constant 0 : i32
    %c0_i32_0 = arith.constant 0 : i32
    %c0_i32_1 = arith.constant 0 : i32
    %c0_i32_2 = arith.constant 0 : i32
    return %c0_i32, %c0_i32_0, %c0_i32_1 : i32, i32, i32
  }
  func.func @transform_11(%arg0: i32) -> (i32, i32, i32) {
    %c0_i32 = arith.constant 0 : i32
    %c0_i32_0 = arith.constant 0 : i32
    %c0_i32_1 = arith.constant 0 : i32
    %c0_i32_2 = arith.constant 0 : i32
    return %c0_i32, %c0_i32_0, %c0_i32_1 : i32, i32, i32
  }
  func.func @transform_12(%arg0: i32) -> (i32, i32, i32) {
    %c0_i32 = arith.constant 0 : i32
    %c0_i32_0 = arith.constant 0 : i32
    %c0_i32_1 = arith.constant 0 : i32
    %c0_i32_2 = arith.constant 0 : i32
    return %c0_i32, %c0_i32_0, %c0_i32_1 : i32, i32, i32
  }
  func.func @transform_13(%arg0: i32) -> (i32, i32, i32) {
    %c0_i32 = arith.constant 0 : i32
    %c0_i32_0 = arith.constant 0 : i32
    %c0_i32_1 = arith.constant 0 : i32
    %c0_i32_2 = arith.constant 0 : i32
    return %c0_i32, %c0_i32_0, %c0_i32_1 : i32, i32, i32
  }
  func.func @transform_14(%arg0: i32) -> (i32, i32, i32) {
    %c0_i32 = arith.constant 0 : i32
    %c0_i32_0 = arith.constant 0 : i32
    %c0_i32_1 = arith.constant 0 : i32
    %c0_i32_2 = arith.constant 0 : i32
    return %c0_i32, %c0_i32_0, %c0_i32_1 : i32, i32, i32
  }
  func.func @transform_15(%arg0: i32) -> (i32, i32, i32) {
    %c0_i32 = arith.constant 0 : i32
    %c0_i32_0 = arith.constant 0 : i32
    %c0_i32_1 = arith.constant 0 : i32
    %c0_i32_2 = arith.constant 0 : i32
    return %c0_i32, %c0_i32_0, %c0_i32_1 : i32, i32, i32
  }
  func.func @transform_16(%arg0: i32) -> (i32, i32, i32) {
    %c0_i32 = arith.constant 0 : i32
    %c0_i32_0 = arith.constant 0 : i32
    %c0_i32_1 = arith.constant 0 : i32
    %c0_i32_2 = arith.constant 0 : i32
    return %c0_i32, %c0_i32_0, %c0_i32_1 : i32, i32, i32
  }
  func.func @transform_17(%arg0: i32) -> (i32, i32) {
    %c0_i32 = arith.constant 0 : i32
    %c0_i32_0 = arith.constant 0 : i32
    %c0_i32_1 = arith.constant 0 : i32
    return %c0_i32, %c0_i32_0 : i32, i32
  }
  func.func @transform_18(%arg0: i32) -> (i32, i32) {
    %c0_i32 = arith.constant 0 : i32
    %c0_i32_0 = arith.constant 0 : i32
    %c0_i32_1 = arith.constant 0 : i32
    return %c0_i32, %c0_i32_0 : i32, i32
  }
  func.func @transform_19(%arg0: i32) -> (i32, i32, i32) {
    %c0_i32 = arith.constant 0 : i32
    %c0_i32_0 = arith.constant 0 : i32
    %c0_i32_1 = arith.constant 0 : i32
    return %arg0, %c0_i32, %c0_i32_0 : i32, i32, i32
  }
}

</mosaic_0001>

<bundles_post_ra>
// kernel: _lambda_.3
= control target key start
LH: loop header
LB: loop body
LE: loop exit
PB: predicated region body
PF: predicated region fallthrough
CT: control target
= control target key end

     0   :  { %s375_s1 = inlined_call_operand.vmem [shape: bf16[128,128], index: 1, kind: input, shape index: {}]   ;;  %s376_s0 = inlined_call_operand.vmem [shape: bf16[32,128], index: 0, kind: input, shape index: {}]   ;;  %s377_s2 = inlined_call_operand.vmem [shape: f32[1,128], index: 2, kind: input, shape index: {}]   ;;  %s378_s3 = inlined_call_operand.vmem [shape: f32[1,128], index: 3, kind: input, shape index: {}]   ;;  %s379_s4 = inlined_call_operand.vmem [shape: bf16[32,128], index: 4, kind: output, shape index: {}]  }
   0x1   :  { %v282_v0 = vld [vmem:[%s375_s1] sm:$0xff]   ;;  %v283_v1 = vld [vmem:[%s375_s1 + $0x8] sm:$0xff]   ;;  %v284_v2 = vld [vmem:[%s375_s1 + $0x10] sm:$0xff]  }
   0x2   :  { %262 = vmatprep.subr.bf16.mxu0 %v282_v0  ;;  %v285_v3 = vld [vmem:[%s375_s1 + $0x18] sm:$0xff]   ;;  %v290_v4 = vld [vmem:[%s376_s0] sm:$0xff]   ;;  %v287_v6 = vld [vmem:[%s375_s1 + $0x28] sm:$0xff]  }
   0x3   :  { %263 = vmatpush3.bf16.msra.mxu0 %v282_v0  ;;  %278 = vmatprep.mubr.bf16.mxu0 %v290_v4  ;;  %v286_v5 = vld [vmem:[%s375_s1 + $0x20] sm:$0xff]   ;;  %v288_v7 = vld [vmem:[%s375_s1 + $0x30] sm:$0xff]   ;;  %v289_v8 = vld [vmem:[%s375_s1 + $0x38] sm:$0xff]  }
   0x4   :  { %264 = vmatprep.subr.bf16.mxu0 %v283_v1  ;;  %v291_v9 = vld [vmem:[%s376_s0 + $0x8] sm:$0xff]   ;;  %v231_v10 = vld [vmem:[%s377_s2] ss:$0 sm:$0xff] }
   0x5   :  { %v232_v12 = vld [vmem:[%s378_s3] ss:$0 sm:$0xff] }
   0x7   :  { %265 = vmatpush3.bf16.msra.mxu0 %v283_v1 }
   0x8   :  { %266 = vmatprep.subr.bf16.mxu0 %v284_v2 }
   0xb   :  { %267 = vmatpush3.bf16.msra.mxu0 %v284_v2 }
   0xc   :  { %268 = vmatprep.subr.bf16.mxu0 %v285_v3 }
   0xf   :  { %269 = vmatpush3.bf16.msra.mxu0 %v285_v3 }
  0x10   :  { %270 = vmatprep.subr.bf16.mxu0 %v286_v5 }
  0x13   :  { %271 = vmatpush3.bf16.msra.mxu0 %v286_v5 }
  0x14   :  { %272 = vmatprep.subr.bf16.mxu0 %v287_v6 }
  0x17   :  { %273 = vmatpush3.bf16.msra.mxu0 %v287_v6 }
  0x18   :  { %274 = vmatprep.subr.bf16.mxu0 %v288_v7 }
  0x1b   :  { %275 = vmatpush3.bf16.msra.mxu0 %v288_v7 }
  0x1c   :  { %276 = vmatprep.subr.bf16.mxu0 %v289_v8 }
  0x1f   :  { %277 = vmatpush3.bf16.msra.mxu0 %v289_v8 }
  0x22   :  { %279 = vmatmul.mubr.bf16.vlgmr.msra.gmra.mrb[0].mxu0 %v291_v9 }
  0xf5   :  { %v280_v11 = vpop.f32.mrb[0].mxu0 }
  0xf6   :  { %v156_v13 = vmul.f32 %v280_v11, %v231_v10  ;;  %v132_v14 = vpop.f32.mrb[1].mxu0 }
  0xf7   :  { %v154_v15 = vmul.f32 %v231_v10, %v132_v14  ;;  %v281_v16 = vpop.f32.mrb[2].mxu0 }
  0xf8   :  { %v167_v17 = vadd.f32 %v232_v12, %v156_v13  ;;  %v157_v18 = vmul.f32 %v281_v16, %v231_v10  ;;  %v135_v19 = vpop.f32.mrb[3].mxu0 }
  0xf9   :  { %v165_v20 = vadd.f32 %v232_v12, %v154_v15  ;;  %v155_v21 = vmul.f32 %v231_v10, %v135_v19 }
  0xfa   :  { %v171_v22 = vsub.f32 0.0, %v167_v17  ;;  %v168_v23 = vadd.f32 %v232_v12, %v157_v18 }
  0xfb   :  { %v169_v24 = vsub.f32 0.0, %v165_v20  ;;  %v166_v25 = vadd.f32 %v232_v12, %v155_v21 }
  0xfc   :  { %v177_v26 = vmul.f32 1.442695, %v171_v22  ;;  %v172_v27 = vsub.f32 0.0, %v168_v23 }
  0xfd   :  { %v173_v28 = vmul.f32 1.442695, %v169_v24  ;;  %v170_v29 = vsub.f32 0.0, %v166_v25 }
  0xfe   :  { %292 = vpow2.f32 %v177_v26  ;;  %v179_v30 = vmul.f32 1.442695, %v172_v27 }
  0xff   :  { %294 = vpow2.f32 %v173_v28  ;;  %v175_v31 = vmul.f32 1.442695, %v170_v29 }
 0x100   :  { %296 = vpow2.f32 %v179_v30 }
 0x101   :  { %298 = vpow2.f32 %v175_v31 }
 0x108   :  { %v293_v32 = vpop.eup %292 }
 0x109   :  { %v295_v33 = vpop.eup %294  ;;  %v183_v34 = vadd.f32 1.0, %v293_v32 }
 0x10a   :  { %v297_v35 = vpop.eup %296  ;;  %v181_v36 = vadd.f32 1.0, %v295_v33 }
 0x10b   :  { %v299_v37 = vpop.eup %298  ;;  %300 = vrcp.f32 %v183_v34  ;;  %v184_v38 = vadd.f32 1.0, %v297_v35 }
 0x10c   :  { %302 = vrcp.f32 %v181_v36  ;;  %v182_v39 = vadd.f32 1.0, %v299_v37 }
 0x10d   :  { %304 = vrcp.f32 %v184_v38 }
 0x10e   :  { %306 = vrcp.f32 %v182_v39 }
 0x115   :  { %v301_v40 = vpop.eup %300 }
 0x116   :  { %v303_v41 = vpop.eup %302  ;;  %v195_v44 = vmul.f32 %v301_v40, %v167_v17 }
 0x117   :  { %v305_v42 = vpop.eup %304  ;;  %v193_v46 = vmul.f32 %v303_v41, %v165_v20 }
 0x118   :  { %v307_v43 = vpop.eup %306  ;;  %v196_v45 = vmul.f32 %v305_v42, %v168_v23 }
 0x119   :  { %v194_v47 = vmul.f32 %v307_v43, %v166_v25 }
 0x11a   :  { %v249_v48 = vpack.c.bf16 %v196_v45, %v195_v44 }
 0x11b   :  { %v244_v49 = vpack.c.bf16 %v194_v47, %v193_v46 }
 0x11c   :  { %251 = vst [vmem:[%s379_s4 + $0x8] sm:$0xff] %v249_v48  }
 0x11d   :  { %245 = vst [vmem:[%s379_s4] sm:$0xff] %v244_v49  }

// kernel: _lambda_.5
= control target key start
LH: loop header
LB: loop body
LE: loop exit
PB: predicated region body
PF: predicated region fallthrough
CT: control target
= control target key end

     0   :  { %vm90_vm0 = vcmask 523264   ;;  %s549_s2 = inlined_call_operand.vmem [shape: bf16[128,128], index: 2, kind: input, shape index: {}]   ;;  %s550_s3 = inlined_call_operand.vmem [shape: bf16[64,128], index: 3, kind: input, shape index: {}]   ;;  %s551_s1 = inlined_call_operand.vmem [shape: bf16[32,64], index: 1, kind: input, shape index: {}]   ;;  %s552_s0 = inlined_call_operand.vmem [shape: bf16[32,128], index: 0, kind: input, shape index: {}]   ;;  %s553_s4 = inlined_call_operand.vmem [shape: f32[1,128], index: 4, kind: input, shape index: {}]   ;;  %s554_s5 = inlined_call_operand.vmem [shape: f32[1,128], index: 5, kind: input, shape index: {}]   ;;  %s555_s6 = inlined_call_operand.vmem [shape: bf16[32,128], index: 6, kind: output, shape index: {}]  }
   0x1   :  { %v420_v0 = vld [vmem:[%s549_s2] sm:$0xff]   ;;  %v421_v1 = vld [vmem:[%s549_s2 + $0x8] sm:$0xff]   ;;  %v422_v2 = vld [vmem:[%s549_s2 + $0x10] sm:$0xff]  }
   0x2   :  { %396 = vmatprep.subr.bf16.mxu0 %v420_v0  ;;  %v424_v3 = vld [vmem:[%s550_s3] sm:$0xff]   ;;  %v426_v4 = vld [vmem:[%s550_s3 + $0x8] sm:$0xff]   ;;  %v423_v5 = vld [vmem:[%s549_s2 + $0x18] sm:$0xff]  }
   0x3   :  { %397 = vmatpush3.bf16.msra.mxu0 %v420_v0  ;;  %384 = vmatprep.subr.bf16.mxu1 %v424_v3  ;;  %v428_v6 = vld [vmem:[%s550_s3 + $0x10] sm:$0xff]   ;;  %v425_v7 = vld [vmem:[%s549_s2 + $0x20] sm:$0xff]   ;;  %v430_v9 = vld [vmem:[%s550_s3 + $0x18] sm:$0xff]  }
   0x4   :  { %398 = vmatprep.subr.bf16.mxu0 %v421_v1  ;;  %385 = vmatpush3.bf16.msra.mxu1 %v424_v3  ;;  %v431_v8 = vld [vmem:[%s551_s1] sm:$0xff]   ;;  %v427_v11 = vld [vmem:[%s549_s2 + $0x28] sm:$0xff]   ;;  %v429_v13 = vld [vmem:[%s549_s2 + $0x30] sm:$0xff]  }
   0x5   :  { %386 = vmatprep.subr.bf16.mxu1 %v426_v4  ;;  %392 = vmatprep.mubr.msk.bf16.mxu1 %vm90_vm0, %v431_v8  ;;  %v434_v10 = vld [vmem:[%s552_s0] sm:$0xff]   ;;  %v433_v12 = vld [vmem:[%s551_s1 + $0x8] sm:$0xff]   ;;  %v432_v14 = vld [vmem:[%s549_s2 + $0x38] sm:$0xff]  }
   0x6   :  { %412 = vmatprep.mubr.bf16.mxu0 %v434_v10  ;;  %v435_v15 = vld [vmem:[%s552_s0 + $0x8] sm:$0xff]   ;;  %v347_v21 = vld [vmem:[%s553_s4] ss:$0 sm:$0xff] }
   0x7   :  { %399 = vmatpush3.bf16.msra.mxu0 %v421_v1  ;;  %v348_v24 = vld [vmem:[%s554_s5] ss:$0 sm:$0xff] }
   0x8   :  { %400 = vmatprep.subr.bf16.mxu0 %v422_v2  ;;  %387 = vmatpush3.bf16.msra.mxu1 %v426_v4 }
   0x9   :  { %388 = vmatprep.subr.bf16.mxu1 %v428_v6 }
   0xb   :  { %401 = vmatpush3.bf16.msra.mxu0 %v422_v2 }
   0xc   :  { %402 = vmatprep.subr.bf16.mxu0 %v423_v5  ;;  %389 = vmatpush3.bf16.msra.mxu1 %v428_v6 }
   0xd   :  { %390 = vmatprep.subr.bf16.mxu1 %v430_v9 }
   0xf   :  { %403 = vmatpush3.bf16.msra.mxu0 %v423_v5 }
  0x10   :  { %404 = vmatprep.subr.bf16.mxu0 %v425_v7  ;;  %391 = vmatpush3.bf16.msra.mxu1 %v430_v9 }
  0x13   :  { %405 = vmatpush3.bf16.msra.mxu0 %v425_v7  ;;  %393 = vmatmul.mubr.msk.bf16.vlgmr.msra.gmra.mrb[0].mxu1 %vm90_vm0, %v433_v12 }
  0x14   :  { %406 = vmatprep.subr.bf16.mxu0 %v427_v11 }
  0x17   :  { %407 = vmatpush3.bf16.msra.mxu0 %v427_v11 }
  0x18   :  { %408 = vmatprep.subr.bf16.mxu0 %v429_v13 }
  0x1b   :  { %409 = vmatpush3.bf16.msra.mxu0 %v429_v13 }
  0x1c   :  { %410 = vmatprep.subr.bf16.mxu0 %v432_v14 }
  0x1f   :  { %411 = vmatpush3.bf16.msra.mxu0 %v432_v14 }
  0x22   :  { %413 = vmatmul.mubr.bf16.vlgmr.msra.gmra.mrb[0].mxu0 %v435_v15 }
  0xe6   :  { %v394_v16 = vpop.f32.mrb[0].mxu1 }
  0xe7   :  { %v131_v17 = vpop.f32.mrb[1].mxu1 }
  0xe8   :  { %v395_v18 = vpop.f32.mrb[2].mxu1 }
  0xe9   :  { %v134_v19 = vpop.f32.mrb[3].mxu1 }
  0xf5   :  { %v414_v20 = vpop.f32.mrb[0].mxu0 }
  0xf6   :  { %v249_v22 = vadd.f32 %v414_v20, %v394_v16  ;;  %v240_v23 = vpop.f32.mrb[1].mxu0 }
  0xf7   :  { %v241_v25 = vadd.f32 %v240_v23, %v131_v17  ;;  %v415_v26 = vpop.f32.mrb[2].mxu0 }
  0xf8   :  { %v264_v27 = vmul.f32 %v347_v21, %v249_v22  ;;  %v252_v28 = vadd.f32 %v415_v26, %v395_v18  ;;  %v243_v29 = vpop.f32.mrb[3].mxu0 }
  0xf9   :  { %v262_v30 = vmul.f32 %v347_v21, %v241_v25  ;;  %v244_v31 = vadd.f32 %v243_v29, %v134_v19 }
  0xfa   :  { %v275_v32 = vadd.f32 %v348_v24, %v264_v27  ;;  %v265_v33 = vmul.f32 %v347_v21, %v252_v28 }
  0xfb   :  { %v273_v34 = vadd.f32 %v348_v24, %v262_v30  ;;  %v263_v35 = vmul.f32 %v347_v21, %v244_v31 }
  0xfc   :  { %v279_v36 = vsub.f32 0.0, %v275_v32  ;;  %v276_v37 = vadd.f32 %v348_v24, %v265_v33 }
  0xfd   :  { %v277_v38 = vsub.f32 0.0, %v273_v34  ;;  %v274_v39 = vadd.f32 %v348_v24, %v263_v35 }
  0xfe   :  { %v285_v40 = vmul.f32 1.442695, %v279_v36  ;;  %v280_v41 = vsub.f32 0.0, %v276_v37 }
  0xff   :  { %v281_v42 = vmul.f32 1.442695, %v277_v38  ;;  %v278_v43 = vsub.f32 0.0, %v274_v39 }
 0x100   :  { %436 = vpow2.f32 %v285_v40  ;;  %v287_v44 = vmul.f32 1.442695, %v280_v41 }
 0x101   :  { %438 = vpow2.f32 %v281_v42  ;;  %v283_v45 = vmul.f32 1.442695, %v278_v43 }
 0x102   :  { %440 = vpow2.f32 %v287_v44 }
 0x103   :  { %442 = vpow2.f32 %v283_v45 }
 0x10a   :  { %v437_v46 = vpop.eup %436 }
 0x10b   :  { %v439_v47 = vpop.eup %438  ;;  %v291_v48 = vadd.f32 1.0, %v437_v46 }
 0x10c   :  { %v441_v49 = vpop.eup %440  ;;  %v289_v50 = vadd.f32 1.0, %v439_v47 }
 0x10d   :  { %v443_v51 = vpop.eup %442  ;;  %444 = vrcp.f32 %v291_v48  ;;  %v292_v52 = vadd.f32 1.0, %v441_v49 }
 0x10e   :  { %446 = vrcp.f32 %v289_v50  ;;  %v290_v53 = vadd.f32 1.0, %v443_v51 }
 0x10f   :  { %448 = vrcp.f32 %v292_v52 }
 0x110   :  { %450 = vrcp.f32 %v290_v53 }
 0x117   :  { %v445_v54 = vpop.eup %444 }
 0x118   :  { %v447_v55 = vpop.eup %446  ;;  %v303_v58 = vmul.f32 %v445_v54, %v275_v32 }
 0x119   :  { %v449_v56 = vpop.eup %448  ;;  %v301_v60 = vmul.f32 %v447_v55, %v273_v34 }
 0x11a   :  { %v451_v57 = vpop.eup %450  ;;  %v304_v59 = vmul.f32 %v449_v56, %v276_v37 }
 0x11b   :  { %v302_v61 = vmul.f32 %v451_v57, %v274_v39 }
 0x11c   :  { %v365_v62 = vpack.c.bf16 %v304_v59, %v303_v58 }
 0x11d   :  { %v360_v63 = vpack.c.bf16 %v302_v61, %v301_v60 }
 0x11e   :  { %367 = vst [vmem:[%s555_s6 + $0x8] sm:$0xff] %v365_v62  }
 0x11f   :  { %361 = vst [vmem:[%s555_s6] sm:$0xff] %v360_v63  }

// kernel: _lambda_.4
= control target key start
LH: loop header
LB: loop body
LE: loop exit
PB: predicated region body
PF: predicated region fallthrough
CT: control target
= control target key end

     0   :  { %vm63_vm0 = vcmask 1048544   ;;  %vm65_vm1 = vcmask 556032   ;;  %v12344_v0 = vmov 0.0   ;;  %vm135_vm2 = vcmask 523264   ;;  %s8886_s27 = smov 4   ;;  %s12321_s0 = inlined_call_operand.vmem [shape: bf16[2,16,64], index: 0, kind: input, shape index: {}]   ;;  %s12322_s1 = inlined_call_operand.vmem [shape: bf16[9,64,64], index: 1, kind: input, shape index: {}]   ;;  %s12323_s4 = inlined_call_operand.vmem [shape: bf16[9,64,64], index: 4, kind: input, shape index: {}]   ;;  %s12324_s2 = inlined_call_operand.vmem [shape: f32[1,64], index: 2, kind: input, shape index: {}]   ;;  %s12325_s3 = inlined_call_operand.vmem [shape: f32[1,64], index: 3, kind: input, shape index: {}]   ;;  %s12326_s7 = inlined_call_operand.vmem [shape: bf16[64,32], index: 7, kind: input, shape index: {}]   ;;  %s12327_s5 = inlined_call_operand.vmem [shape: f32[1,64], index: 5, kind: input, shape index: {}]   ;;  %s12328_s6 = inlined_call_operand.vmem [shape: f32[1,64], index: 6, kind: input, shape index: {}]   ;;  %s12329_s16 = inlined_call_operand.vmem [shape: bf16[4,32,64], index: 16, kind: input, shape index: {}]   ;;  %s12330_s8 = inlined_call_operand.vmem [shape: f32[1,32], index: 8, kind: input, shape index: {}]   ;;  %s12331_s9 = inlined_call_operand.vmem [shape: f32[1,32], index: 9, kind: input, shape index: {}]   ;;  %s12332_s10 = inlined_call_operand.vmem [shape: bf16[3,32,32], index: 10, kind: input, shape index: {}]   ;;  %s12333_s11 = inlined_call_operand.vmem [shape: f32[3,1,32], index: 11, kind: input, shape index: {}]   ;;  %s12334_s12 = inlined_call_operand.vmem [shape: f32[3,1,32], index: 12, kind: input, shape index: {}]   ;;  %s12335_s13 = inlined_call_operand.vmem [shape: bf16[3,32,32], index: 13, kind: input, shape index: {}]   ;;  %s12336_s14 = inlined_call_operand.vmem [shape: f32[3,1,32], index: 14, kind: input, shape index: {}]   ;;  %s12337_s15 = inlined_call_operand.vmem [shape: f32[3,1,32], index: 15, kind: input, shape index: {}]   ;;  %s12338_s17 = inlined_call_operand.vmem [shape: f32[1,64], index: 17, kind: input, shape index: {}]   ;;  %s12339_s18 = inlined_call_operand.vmem [shape: f32[1,64], index: 18, kind: input, shape index: {}]   ;;  %s12340_s19 = inlined_call_operand.vmem [shape: bf16[2,16,64], index: 19, kind: output, shape index: {}]  }
   0x1   :  { %12370 = sst [smem:[#allocation11_spill]] %s12321_s0  ;;  %67 = vst.msk [vmem:[#allocation2 + $0x10] sm:$0xff] %vm63_vm0, %v12344_v0  ;;  %69 = vst.msk [vmem:[#allocation2 + $0x20] sm:$0xff] %vm63_vm0, %v12344_v0  ;;  %7822 = vmatprep.subr.bf16.mxu0 %v12344_v0  ;;  %8362 = vmatprep.subr.bf16.mxu1 %v12344_v0  ;;  %vm8885_vm3 = vmmov 0   ;;  %vm596_vm4 = vsmask.f32 7424 }
   0x2   :  { %12371 = sst [smem:[#allocation12_spill]] %s12322_s1  ;;  %64 = vst.msk [vmem:[#allocation2] sm:$0xff] %vm63_vm0, %v12344_v0  ;;  %71 = vst.msk [vmem:[#allocation2 + $0x30] sm:$0xff] %vm63_vm0, %v12344_v0  ;;  %s12374_s20 = sld [smem:[#allocation11_spill]]  ;;  %7830 = vmatprep.mubr.msk.bf16.mxu0 %vm8885_vm3, %v12344_v0  ;;  %7838 = vmatprep.mubr.msk.bf16.mxu1 %vm8885_vm3, %v12344_v0  ;;  %vm200_vm5 = vsmask.f32 4352 }
   0x3   :  { %12372 = sst [smem:[#allocation13_spill]] %s12323_s4  ;;  %73 = vst.msk [vmem:[#allocation2 + $0x40] sm:$0xff] %vm63_vm0, %v12344_v0  ;;  %75 = vst.msk [vmem:[#allocation2 + $0x50] sm:$0xff] %vm63_vm0, %v12344_v0  ;;  %s12375_s23 = sld [smem:[#allocation12_spill]]  ;;  %vm366_vm6 = vcmask 31744   ;;  %vm99_vm7 = vcmask 277504  }
   0x4   :  { %12373 = sst [smem:[#allocation14_spill]] %s12324_s2  ;;  %77 = vst.msk [vmem:[#allocation2 + $0x60] sm:$0xff] %vm63_vm0, %v12344_v0  ;;  %79 = vst.msk [vmem:[#allocation2 + $0x70] sm:$0xff] %vm63_vm0, %v12344_v0  ;;  %s12376_s4 = sld [smem:[#allocation13_spill]]  ;;  %vm97_vm8 = vcmask 1048560   ;;  %vm2748_vm9 = vcmask 261120  }
   0x5   :  { %81 = vst.msk [vmem:[#allocation3] sm:$0xff] %vm63_vm0, %v12344_v0  ;;  %83 = vst.msk [vmem:[#allocation3 + $0x10] sm:$0xff] %vm63_vm0, %v12344_v0  ;;  %s12377_s21 = sld [smem:[#allocation14_spill]]  ;;  %s8888_s1 = smov 126   ;;  %vm2904_vm10 = vcmask 1046528   ;;  %vm3200_vm11 = vcmask 1045504  }
   0x6   :  { %85 = vst.msk [vmem:[#allocation3 + $0x20] sm:$0xff] %vm63_vm0, %v12344_v0  ;;  %87 = vst.msk [vmem:[#allocation3 + $0x30] sm:$0xff] %vm63_vm0, %v12344_v0  ;;  %vm3129_vm12 = vcmask 15360   ;;  %vm3953_vm13 = vcmask 1040384   ;;  %vm7233_vm14 = vcmask 519168  }
   0x7   :  { %89 = vst.msk [vmem:[#allocation3 + $0x40] sm:$0xff] %vm63_vm0, %v12344_v0  ;;  %91 = vst.msk [vmem:[#allocation3 + $0x50] sm:$0xff] %vm63_vm0, %v12344_v0 }
   0x8   :  { %93 = vst.msk [vmem:[#allocation3 + $0x60] sm:$0xff] %vm63_vm0, %v12344_v0  ;;  %95 = vst.msk [vmem:[#allocation3 + $0x70] sm:$0xff] %vm63_vm0, %v12344_v0  ;;  %v7631_v1 = vld [vmem:[%s12374_s20] sm:$0xff]   ;;  %v7638_v2 = vld [vmem:[%s12374_s20 + $0x8] sm:$0xff]   ;;  %s8887_s20 = smov 124  }
   0x9   :  { %66 = vst.msk [vmem:[#allocation2 + $0x8] sm:$0xff] %vm65_vm1, %v12344_v0  ;;  %68 = vst.msk [vmem:[#allocation2 + $0x18] sm:$0xff] %vm65_vm1, %v12344_v0  ;;  %v7632_v3 = vunpack.c.l.bf16 %v7631_v1  ;;  %v7633_v4 = vunpack.c.h.bf16 %v7631_v1  ;;  %v7636_v5 = vunpack.c.l.bf16 %v7638_v2  ;;  %v7637_v6 = vunpack.c.h.bf16 %v7638_v2  ;;  %v8565_v7 = vld [vmem:[%s12375_s23 + $0x20] sm:$0xff]   ;;  %v8566_v8 = vld [vmem:[%s12375_s23 + $0x28] sm:$0xff]  }
   0xa   :  { %70 = vst.msk [vmem:[#allocation2 + $0x28] sm:$0xff] %vm65_vm1, %v12344_v0  ;;  %72 = vst.msk [vmem:[#allocation2 + $0x38] sm:$0xff] %vm65_vm1, %v12344_v0  ;;  %7823 = vmatpush3.bf16.msra.mxu0 %v8565_v7  ;;  %8366 = vmatpush3.bf16.msra.mxu1 %v8565_v7  ;;  %v8567_v9 = vld [vmem:[%s12375_s23 + $0x30] sm:$0xff]   ;;  %v9081_v11 = vld [vmem:[#allocation2 + $0x20] sm:$0xff] }
   0xb   :  { %74 = vst.msk [vmem:[#allocation2 + $0x48] sm:$0xff] %vm65_vm1, %v12344_v0  ;;  %76 = vst.msk [vmem:[#allocation2 + $0x58] sm:$0xff] %vm65_vm1, %v12344_v0  ;;  %7824 = vmatprep.subr.bf16.mxu0 %v12344_v0  ;;  %8363 = vmatprep.subr.bf16.mxu1 %v12344_v0  ;;  %v147_v10 = vld [vmem:[#allocation2 + $0x10] sm:$0xff]  ;;  %v145_v12 = vld [vmem:[#allocation2] sm:$0x80] }
   0xc   :  { %78 = vst.msk [vmem:[#allocation2 + $0x68] sm:$0xff] %vm65_vm1, %v12344_v0  ;;  %80 = vst.msk [vmem:[#allocation2 + $0x78] sm:$0xff] %vm65_vm1, %v12344_v0  ;;  %v333_v13 = vpack.c.bf16 %v9081_v11, %v147_v10  ;;  %v175_v14 = vpack.c.bf16 %v147_v10, %v145_v12  ;;  %v151_v15 = vld [vmem:[#allocation2 + $0x30] sm:$0xff]  ;;  %v153_v16 = vld [vmem:[#allocation2 + $0x40] sm:$0xff] }
   0xd   :  { %82 = vst.msk [vmem:[#allocation3 + $0x8] sm:$0xff] %vm65_vm1, %v12344_v0  ;;  %84 = vst.msk [vmem:[#allocation3 + $0x18] sm:$0xff] %vm65_vm1, %v12344_v0  ;;  %v155_v17 = vld [vmem:[#allocation2 + $0x50] sm:$0xff]  ;;  %v9087_v19 = vpack.c.bf16 %v153_v16, %v151_v15  ;;  %v9090_v20 = vpack.c.bf16 %v151_v15, %v9081_v11  ;;  %v8568_v27 = vld [vmem:[%s12375_s23 + $0x38] sm:$0xff]  }
   0xe   :  { %86 = vst.msk [vmem:[#allocation3 + $0x28] sm:$0xff] %vm65_vm1, %v12344_v0  ;;  %88 = vst.msk [vmem:[#allocation3 + $0x38] sm:$0xff] %vm65_vm1, %v12344_v0  ;;  %7825 = vmatpush3.bf16.msra.mxu0 %v8566_v8  ;;  %8367 = vmatpush3.bf16.msra.mxu1 %v8566_v8  ;;  %v9085_v18 = vpack.c.bf16 %v155_v17, %v153_v16  ;;  %v817_v22 = vshrl.u32 %v175_v14, 16  ;;  %v820_v28 = vshll.u32 %v175_v14, 16  ;;  %v159_v32 = vld [vmem:[#allocation2 + $0x60] sm:$0xff] }
   0xf   :  { %90 = vst.msk [vmem:[#allocation3 + $0x48] sm:$0xff] %vm65_vm1, %v12344_v0  ;;  %92 = vst.msk [vmem:[#allocation3 + $0x58] sm:$0xff] %vm65_vm1, %v12344_v0  ;;  %7826 = vmatprep.subr.bf16.mxu0 %v12344_v0  ;;  %8364 = vmatprep.subr.bf16.mxu1 %v12344_v0  ;;  %v825_v36 = vshrl.u32 %v9090_v20, 16  ;;  %v828_v39 = vshll.u32 %v9090_v20, 16  ;;  %v9113_v45 = vpack.c.bf16 %v159_v32, %v155_v17  ;;  %v157_v63 = vld [vmem:[#allocation2 + $0x60] sm:$0x7f] }
  0x10   :  { %94 = vst.msk [vmem:[#allocation3 + $0x68] sm:$0xff] %vm65_vm1, %v12344_v0  ;;  %96 = vst.msk [vmem:[#allocation3 + $0x78] sm:$0xff] %vm65_vm1, %v12344_v0  ;;  %v146_v21 = vld [vmem:[#allocation2 + $0x8] sm:$0x80]  ;;  %354 = vrot.lane.b32.xlu0 %v333_v13, %s8886_s27  ;;  %358 = vrot.lane.b32.xlu1 %v9087_v19, %s8886_s27  ;;  %v834_v34 = vshrl.u32 %v9085_v18, 16  ;;  %v837_v35 = vshll.u32 %v9085_v18, 16 }
  0x11   :  { %136 = vst.msk [vmem:[#allocation2 + $0x18] sm:$0xff] %vm135_vm2, %v7632_v3  ;;  %137 = vst.msk [vmem:[#allocation2 + $0x28] sm:$0xff] %vm135_vm2, %v7633_v4  ;;  %v152_v25 = vld [vmem:[#allocation2 + $0x38] sm:$0xff]  ;;  %v9106_v38 = vrot.slane %v817_v22, 3  ;;  %v9115_v47 = vrot.slane %v820_v28, 4  ;;  %v827_v10 = vrot.slane %v825_v36, 3  ;;  %v181_v22 = vpack.c.bf16 %v157_v63, %v157_v63 }
  0x12   :  { %143 = vst.msk [vmem:[#allocation2 + $0x48] sm:$0xff] %vm135_vm2, %v7636_v5  ;;  %144 = vst.msk [vmem:[#allocation2 + $0x58] sm:$0xff] %vm135_vm2, %v7637_v6  ;;  %7827 = vmatpush3.bf16.msra.mxu0 %v8567_v9  ;;  %8368 = vmatpush3.bf16.msra.mxu1 %v8567_v9  ;;  %v9123_v55 = vrot.slane %v834_v34, 3  ;;  %v8569_v9 = vld [vmem:[%s12375_s23 + $0x60] sm:$0xff]   ;;  %v830_v12 = vrot.slane %v828_v39, 4  ;;  %v8570_v18 = vld [vmem:[%s12375_s23 + $0x68] sm:$0xff]  }
  0x13   :  { %v160_v31 = vld [vmem:[#allocation2 + $0x68] sm:$0xff]  ;;  %7828 = vmatprep.subr.bf16.mxu0 %v12344_v0  ;;  %8365 = vmatprep.subr.bf16.mxu1 %v12344_v0  ;;  %v174_v42 = vld [vmem:[#allocation2 + $0x78] sm:$0x1]  ;;  %v843_v28 = vshrl.u32 %v181_v22, 16  ;;  %102 = vst.msk [vmem:[#allocation4 + $0x18] sm:$0xff] %vm99_vm7, %v12344_v0  ;;  %100 = vst.msk [vmem:[#allocation4 + $0x8] sm:$0xff] %vm99_vm7, %v12344_v0 }
  0x14   :  { %v577_v58 = vpack.c.bf16 %v174_v42, %v174_v42  ;;  %v158_v1 = vld [vmem:[#allocation2 + $0x68] sm:$0x7f]  ;;  %v831_v34 = vor.u32 %v830_v12, %v827_v10  ;;  %104 = vst.msk [vmem:[#allocation4 + $0x28] sm:$0xff] %vm99_vm7, %v12344_v0  ;;  %106 = vst.msk [vmem:[#allocation4 + $0x38] sm:$0xff] %vm99_vm7, %v12344_v0 }
  0x15   :  { %v845_v36 = vrot.slane %v843_v28, 3  ;;  %v8577_v28 = vld [vmem:[%s12375_s23 + $0xe0] sm:$0xff]   ;;  %108 = vst.msk [vmem:[#allocation4 + $0x48] sm:$0xff] %vm99_vm7, %v12344_v0  ;;  %110 = vst.msk [vmem:[#allocation4 + $0x58] sm:$0xff] %vm99_vm7, %v12344_v0 }
  0x16   :  { %7829 = vmatpush3.bf16.msra.mxu0 %v8568_v27  ;;  %8369 = vmatpush3.bf16.msra.mxu1 %v8568_v27  ;;  %v621_v4 = vshll.u32 %v577_v58, 16  ;;  %v839_v27 = vrot.slane %v837_v35, 4  ;;  %112 = vst.msk [vmem:[#allocation4 + $0x68] sm:$0xff] %vm99_vm7, %v12344_v0  ;;  %114 = vst.msk [vmem:[#allocation4 + $0x78] sm:$0xff] %vm99_vm7, %v12344_v0 }
  0x17   :  { %7842 = vmatprep.subr.bf16.mxu0 %v12344_v0  ;;  %8002 = vmatprep.subr.bf16.mxu1 %v12344_v0  ;;  %116 = vst.msk [vmem:[#allocation5 + $0x8] sm:$0xff] %vm99_vm7, %v12344_v0  ;;  %118 = vst.msk [vmem:[#allocation5 + $0x18] sm:$0xff] %vm99_vm7, %v12344_v0 }
  0x18   :  { %v148_v23 = vld [vmem:[#allocation2 + $0x18] sm:$0xff]  ;;  %v150_v24 = vld [vmem:[#allocation2 + $0x28] sm:$0xff]  ;;  %v623_v16 = vrot.slane %v621_v4, 1  ;;  %120 = vst.msk [vmem:[#allocation5 + $0x28] sm:$0xff] %vm99_vm7, %v12344_v0  ;;  %122 = vst.msk [vmem:[#allocation5 + $0x38] sm:$0xff] %vm99_vm7, %v12344_v0 }
  0x19   :  { %v154_v26 = vld [vmem:[#allocation2 + $0x48] sm:$0xff]  ;;  %v9099_v29 = vpack.c.bf16 %v150_v24, %v148_v23  ;;  %v176_v30 = vpack.c.bf16 %v148_v23, %v146_v21  ;;  %v162_v33 = vld [vmem:[#allocation2 + $0x18] sm:$0xfe]  ;;  %v178_v41 = vpack.c.bf16 %v152_v25, %v150_v24  ;;  %v182_v23 = vpack.c.bf16 %v158_v1, %v158_v1  ;;  %124 = vst.msk [vmem:[#allocation5 + $0x48] sm:$0xff] %vm99_vm7, %v12344_v0 }
  0x1a   :  { %v156_v37 = vld [vmem:[#allocation2 + $0x58] sm:$0xff]  ;;  %v9111_v40 = vpack.c.bf16 %v154_v26, %v152_v25  ;;  %v571_v46 = vpack.c.bf16 %v150_v24, %v162_v33  ;;  %v823_v33 = vor.u32 %v9115_v47, %v9106_v38  ;;  %v1152_v1 = vshll.u32 %v9113_v45, 16  ;;  %126 = vst.msk [vmem:[#allocation5 + $0x58] sm:$0xff] %vm99_vm7, %v12344_v0  ;;  %128 = vst.msk [vmem:[#allocation5 + $0x68] sm:$0xff] %vm99_vm7, %v12344_v0 }
  0x1b   :  { %356 = vrot.lane.b32.xlu0 %v9099_v29, %s8886_s27  ;;  %v202_v43 = vshrl.u32 %v176_v30, 16  ;;  %v180_v44 = vpack.c.bf16 %v156_v37, %v154_v26  ;;  %v205_v48 = vshll.u32 %v176_v30, 16  ;;  %v9119_v49 = vpack.c.bf16 %v160_v31, %v156_v37  ;;  %130 = vst.msk [vmem:[#allocation5 + $0x78] sm:$0xff] %vm99_vm7, %v12344_v0 }
  0x1c   :  { %360 = vrot.lane.b32.xlu1 %v9111_v40, %s8886_s27  ;;  %v605_v50 = vshll.u32 %v9111_v40, 16  ;;  %v210_v51 = vshrl.u32 %v178_v41, 16  ;;  %v213_v52 = vshll.u32 %v178_v41, 16  ;;  %v598_v53 = vshrl.u32 %v571_v46, 16  ;;  %v8571_v41 = vld [vmem:[%s12375_s23 + $0x70] sm:$0xff]   ;;  %101 = vst.msk [vmem:[#allocation4 + $0x10] sm:$0xff] %vm97_vm8, %v12344_v0 }
  0x1d   :  { %v600_v54 = vshll.u32 %v571_v46, 16  ;;  %v219_v56 = vshrl.u32 %v180_v44, 16  ;;  %v609_v57 = vshrl.u32 %v9111_v40, 16  ;;  %v222_v59 = vshll.u32 %v180_v44, 16  ;;  %98 = vst.msk [vmem:[#allocation4] sm:$0xff] %vm97_vm8, %v12344_v0  ;;  %103 = vst.msk [vmem:[#allocation4 + $0x20] sm:$0xff] %vm97_vm8, %v12344_v0 }
  0x1e   :  { %v613_v61 = vshll.u32 %v9119_v49, 16  ;;  %v204_v62 = vrot.slane %v202_v43, 3  ;;  %v607_v2 = vrot.slane %v605_v50, 1  ;;  %v617_v3 = vshrl.u32 %v9119_v49, 16  ;;  %v8572_v50 = vld [vmem:[%s12375_s23 + $0x78] sm:$0xff]   ;;  %105 = vst.msk [vmem:[#allocation4 + $0x30] sm:$0xff] %vm97_vm8, %v12344_v0 }
  0x1f   :  { %362 = vrot.lane.b32.xlu0 %v9113_v45, %s8886_s27  ;;  %v602_v60 = vrot.slane %v600_v54, 1  ;;  %v207_v5 = vrot.slane %v205_v48, 4  ;;  %v212_v7 = vrot.slane %v210_v51, 3  ;;  %v215_v8 = vrot.slane %v213_v52, 4  ;;  %107 = vst.msk [vmem:[#allocation4 + $0x40] sm:$0xff] %vm97_vm8, %v12344_v0  ;;  %109 = vst.msk [vmem:[#allocation4 + $0x50] sm:$0xff] %vm97_vm8, %v12344_v0 }
  0x20   :  { %364 = vrot.lane.b32.xlu1 %v9119_v49, %s8886_s27  ;;  %v611_v14 = vor.u32 %v609_v57, %v607_v2  ;;  %v615_v15 = vrot.slane %v613_v61, 1  ;;  %v221_v20 = vrot.slane %v219_v56, 3  ;;  %v224_v21 = vrot.slane %v222_v59, 4  ;;  %111 = vst.msk [vmem:[#allocation4 + $0x60] sm:$0xff] %vm97_vm8, %v12344_v0  ;;  %113 = vst.msk [vmem:[#allocation4 + $0x70] sm:$0xff] %vm97_vm8, %v12344_v0 }
  0x21   :  { %v603_v6 = vor.u32 %v602_v60, %v598_v53  ;;  %v208_v13 = vor.u32 %v207_v5, %v204_v62  ;;  %v216_v17 = vor.u32 %v215_v8, %v212_v7  ;;  %v846_v30 = vshll.u32 %v181_v22, 16  ;;  %v173_v5 = vld [vmem:[#allocation2 + $0x70] sm:$0x1]  ;;  %v8576_v22 = vld [vmem:[%s12375_s23 + $0xb8] sm:$0xff]   ;;  %115 = vst.msk [vmem:[#allocation5] sm:$0xff] %vm97_vm8, %v12344_v0  ;;  %117 = vst.msk [vmem:[#allocation5 + $0x10] sm:$0xff] %vm97_vm8, %v12344_v0 }
  0x22   :  { %v619_v25 = vor.u32 %v617_v3, %v615_v15  ;;  %v228_v31 = vshrl.u32 %v182_v23, 16  ;;  %v9150_v32 = vsel %vm596_vm4, %v611_v14, %v615_v15  ;;  %v231_v35 = vshll.u32 %v182_v23, 16  ;;  %119 = vst.msk [vmem:[#allocation5 + $0x20] sm:$0xff] %vm97_vm8, %v12344_v0  ;;  %121 = vst.msk [vmem:[#allocation5 + $0x30] sm:$0xff] %vm97_vm8, %v12344_v0 }
  0x23   :  { %476 = vrot.lane.b32.xlu0 %v9099_v29, %s8887_s20  ;;  %v9141_v24 = vsel %vm596_vm4, %v603_v6, %v607_v2  ;;  %v217_v26 = vsel %vm200_vm5, %v208_v13, %v216_v17  ;;  %v225_v38 = vor.u32 %v224_v21, %v221_v20  ;;  %v848_v42 = vrot.slane %v846_v30, 4  ;;  %v8573_v13 = vld [vmem:[%s12375_s23 + $0xa0] sm:$0xff]   ;;  %v8575_v20 = vld [vmem:[%s12375_s23 + $0xb0] sm:$0xff]   ;;  %v8578_v30 = vld [vmem:[%s12375_s23 + $0xe8] sm:$0xff]   ;;  %123 = vst.msk [vmem:[#allocation5 + $0x40] sm:$0xff] %vm97_vm8, %v12344_v0 }
  0x24   :  { %478 = vrot.lane.b32.xlu1 %v9111_v40, %s8887_s20  ;;  %7831 = vmatmul.mubr.msk.bf16.vlgmr.msra.gmra.mrb[0].mxu0 %vm135_vm2, %v217_v26  ;;  %v230_v37 = vrot.slane %v228_v31, 3  ;;  %v9163_v39 = vsel %vm596_vm4, %v619_v25, %v623_v16  ;;  %v233_v43 = vrot.slane %v231_v35, 4  ;;  %v832_v44 = vsel %vm200_vm5, %v823_v33, %v831_v34  ;;  %v8579_v33 = vld [vmem:[%s12375_s23 + $0xf0] sm:$0xff]   ;;  %v8581_v35 = vld [vmem:[%s12375_s23 + $0x100] sm:$0xff]   ;;  %125 = vst.msk [vmem:[#allocation5 + $0x50] sm:$0xff] %vm97_vm8, %v12344_v0 }
  0x25   :  { %7843 = vmatpush3.bf16.msra.mxu0 %v8569_v9  ;;  %7834 = vmatprep.mubr.msk.bf16.mxu0 %vm8885_vm3, %v12344_v0  ;;  %v840_v46 = vor.u32 %v839_v27, %v9123_v55  ;;  %v226_v48 = vsel %vm200_vm5, %v216_v17, %v225_v38  ;;  %v849_v52 = vor.u32 %v848_v42, %v845_v36  ;;  %v161_v55 = vld [vmem:[#allocation2 + $0x10] sm:$0xfe]  ;;  %v1144_v60 = vshll.u32 %v9087_v19, 16  ;;  %v8582_v36 = vld [vmem:[%s12375_s23 + $0x108] sm:$0xff]  }
  0x26   :  { %7844 = vmatprep.subr.bf16.mxu0 %v12344_v0  ;;  %v234_v47 = vor.u32 %v233_v43, %v230_v37  ;;  %v570_v56 = vpack.c.bf16 %v9081_v11, %v161_v55  ;;  %v1148_v11 = vshrl.u32 %v9087_v19, 16  ;;  %v1154_v3 = vrot.slane %v1152_v1, 1  ;;  %v8583_v37 = vld [vmem:[%s12375_s23 + $0x110] sm:$0xff]   ;;  %v8588_v43 = vld [vmem:[%s12375_s23 + $0x18] sm:$0xff]   ;;  %127 = vst.msk [vmem:[#allocation5 + $0x60] sm:$0xff] %vm97_vm8, %v12344_v0  ;;  %129 = vst.msk [vmem:[#allocation5 + $0x70] sm:$0xff] %vm97_vm8, %v12344_v0 }
  0x27   :  { %480 = vrot.lane.b32.xlu0 %v9119_v49, %s8887_s20  ;;  %v841_v51 = vsel %vm200_vm5, %v831_v34, %v840_v46  ;;  %v850_v54 = vsel %vm200_vm5, %v840_v46, %v849_v52  ;;  %v1146_v62 = vrot.slane %v1144_v60, 1  ;;  %v576_v6 = vpack.c.bf16 %v173_v5, %v173_v5  ;;  %v8580_v34 = vld [vmem:[%s12375_s23 + $0xf8] sm:$0xff]   ;;  %v8587_v42 = vld [vmem:[%s12375_s23 + $0x10] sm:$0xff]  }
  0x28   :  { %722 = vrot.lane.b32.xlu1 %v9141_v24, %s8887_s20  ;;  %v235_v53 = vsel %vm200_vm5, %v225_v38, %v234_v47  ;;  %v1139_v57 = vshll.u32 %v570_v56, 16  ;;  %v1137_v58 = vshrl.u32 %v570_v56, 16  ;;  %v1156_v7 = vshrl.u32 %v9113_v45, 16  ;;  %v8574_v45 = vld [vmem:[%s12375_s23 + $0xa8] sm:$0xff]   ;;  %v8585_v38 = vld [vmem:[%s12375_s23] sm:$0xff]   ;;  %v8591_v55 = vld [vmem:[%s12375_s23 + $0x50] sm:$0xff]  }
  0x29   :  { %7845 = vmatpush3.bf16.msra.mxu0 %v8570_v18  ;;  %7839 = vmatmul.mubr.msk.bf16.vlgmr.msra.gmra.mrb[0].mxu1 %vm135_vm2, %v235_v53  ;;  %v1150_v2 = vor.u32 %v1148_v11, %v1146_v62  ;;  %v1160_v8 = vshll.u32 %v576_v6, 16  ;;  %v8592_v56 = vld [vmem:[%s12375_s23 + $0x58] sm:$0xff]   ;;  %v8595_v11 = vld [vmem:[%s12375_s23 + $0x90] sm:$0xff]  }
  0x2a   :  { %7846 = vmatprep.subr.bf16.mxu0 %v12344_v0  ;;  %8010 = vmatprep.mubr.msk.bf16.mxu1 %vm8885_vm3, %v12344_v0  ;;  %v1141_v59 = vrot.slane %v1139_v57, 1  ;;  %v1158_v19 = vor.u32 %v1156_v7, %v1154_v3  ;;  %v8596_v1 = vld [vmem:[%s12375_s23 + $0x98] sm:$0xff]   ;;  %v8599_v5 = vld [vmem:[%s12375_s23 + $0xd0] sm:$0xff]  }
  0x2b   :  { %724 = vrot.lane.b32.xlu0 %v9150_v32, %s8887_s20  ;;  %v1155_v4 = vsel %vm596_vm4, %v1150_v2, %v1154_v3  ;;  %v1162_v9 = vrot.slane %v1160_v8, 1  ;;  %v8597_v3 = vld [vmem:[%s12375_s23 + $0xc0] sm:$0xff]  }
  0x2c   :  { %726 = vrot.lane.b32.xlu1 %v9163_v39, %s8887_s20  ;;  %7835 = vmatmul.mubr.msk.bf16.gmra.mrb[4].mxu0 %vm135_vm2, %v226_v48  ;;  %v1142_v61 = vor.u32 %v1141_v59, %v1137_v58 }
  0x2d   :  { %7847 = vmatpush3.bf16.msra.mxu0 %v8571_v41  ;;  %7850 = vmatprep.mubr.msk.bf16.mxu0 %vm8885_vm3, %v12344_v0  ;;  %v1163_v10 = vsel %vm596_vm4, %v1158_v19, %v1162_v9  ;;  %v8586_v41 = vld [vmem:[%s12375_s23 + $0x8] sm:$0xff]  }
  0x2e   :  { %7848 = vmatprep.subr.bf16.mxu0 %v12344_v0  ;;  %v1147_v63 = vsel %vm596_vm4, %v1142_v61, %v1146_v62  ;;  %v8593_v61 = vld [vmem:[%s12375_s23 + $0x80] sm:$0xff]   ;;  %v8594_v62 = vld [vmem:[%s12375_s23 + $0x88] sm:$0xff]  }
  0x2f   :  { %851 = vrot.lane.b32.xlu0 %v832_v44, %s8886_s27 }
  0x30   :  { %853 = vrot.lane.b32.xlu1 %v217_v26, %s8886_s27 }
  0x31   :  { %7849 = vmatpush3.bf16.msra.mxu0 %v8572_v50  ;;  %v8589_v50 = vld [vmem:[%s12375_s23 + $0x40] sm:$0xff]  }
  0x32   :  { %7862 = vmatprep.subr.bf16.mxu0 %v12344_v0 }
  0x33   :  { %855 = vrot.lane.b32.xlu0 %v841_v51, %s8886_s27  ;;  %v8590_v51 = vld [vmem:[%s12375_s23 + $0x48] sm:$0xff]  }
  0x34   :  { %857 = vrot.lane.b32.xlu1 %v226_v48, %s8886_s27 }
  0x37   :  { %859 = vrot.lane.b32.xlu0 %v850_v54, %s8886_s27 }
  0x38   :  { %861 = vrot.lane.b32.xlu1 %v235_v53, %s8886_s27 }
  0x3b   :  { %954 = vrot.lane.b32.xlu0 %v217_v26, %s8887_s20 }
  0x3c   :  { %956 = vrot.lane.b32.xlu1 %v226_v48, %s8887_s20 }
  0x3f   :  { %958 = vrot.lane.b32.xlu0 %v235_v53, %s8887_s20 }
  0x40   :  { %1164 = vrot.lane.b32.xlu1 %v1147_v63, %s8886_s27 }
  0x43   :  { %1166 = vrot.lane.b32.xlu0 %v9141_v24, %s8886_s27 }
  0x44   :  { %1168 = vrot.lane.b32.xlu1 %v1155_v4, %s8886_s27  ;;  %v8598_v4 = vld [vmem:[%s12375_s23 + $0xc8] sm:$0xff]  }
  0x47   :  { %1170 = vrot.lane.b32.xlu0 %v9150_v32, %s8886_s27 }
  0x48   :  { %1172 = vrot.lane.b32.xlu1 %v1163_v10, %s8886_s27 }
  0x4b   :  { %1174 = vrot.lane.b32.xlu0 %v9163_v39, %s8886_s27 }
  0x82   :  { %v355_v12 = vpop.permute.xlu0 %354  ;;  %v359_v14 = vpop.permute.xlu1 %358 }
  0x8d   :  { %v357_v15 = vpop.permute.xlu0 %356 }
  0x8e   :  { %v367_v16 = vsel %vm366_vm6, %v355_v12, %v357_v15  ;;  %v361_v17 = vpop.permute.xlu1 %360 }
  0x8f   :  { %7851 = vmatmul.mubr.msk.bf16.vlgmr.msra.gmra.mrb[0].mxu0 %vm135_vm2, %v367_v16  ;;  %v368_v21 = vsel %vm366_vm6, %v359_v14, %v361_v17  ;;  %v1341_v17 = vld [vmem:[#allocation3 + $0x20] sm:$0xff] }
  0x90   :  { %7863 = vmatpush3.bf16.msra.mxu0 %v8573_v13  ;;  %7854 = vmatprep.mubr.msk.bf16.mxu0 %vm8885_vm3, %v12344_v0 }
  0x91   :  { %7864 = vmatprep.subr.bf16.mxu0 %v12344_v0  ;;  %v363_v25 = vpop.permute.xlu0 %362 }
  0x92   :  { %v365_v23 = vpop.permute.xlu1 %364 }
  0x93   :  { %v369_v26 = vsel %vm366_vm6, %v363_v25, %v365_v23  ;;  %v8601_v23 = vld [vmem:[%s12376_s4 + $0x20] sm:$0xff]  }
  0x94   :  { %7865 = vmatpush3.bf16.msra.mxu0 %v8574_v45  ;;  %v1339_v45 = vld [vmem:[#allocation3 + $0x10] sm:$0xff]  ;;  %8003 = vmatpush3.bf16.msra.mxu1 %v8601_v23 }
  0x95   :  { %7866 = vmatprep.subr.bf16.mxu0 %v12344_v0  ;;  %v477_v27 = vpop.permute.xlu0 %476  ;;  %8004 = vmatprep.subr.bf16.mxu1 %v12344_v0 }
  0x96   :  { %v479_v31 = vpop.permute.xlu1 %478 }
  0x97   :  { %7855 = vmatmul.mubr.msk.bf16.gmra.mrb[4].mxu0 %vm135_vm2, %v368_v21  ;;  %v1343_v21 = vld [vmem:[#allocation3 + $0x30] sm:$0xff] }
  0x98   :  { %7867 = vmatpush3.bf16.msra.mxu0 %v8575_v20  ;;  %7858 = vmatprep.mubr.msk.bf16.mxu0 %vm8885_vm3, %v12344_v0  ;;  %v1526_v20 = vpack.c.bf16 %v1341_v17, %v1339_v45 }
  0x99   :  { %7868 = vmatprep.subr.bf16.mxu0 %v12344_v0  ;;  %v481_v18 = vpop.permute.xlu0 %480 }
  0x9a   :  { %1547 = vrot.lane.b32.xlu1 %v1526_v20, %s8886_s27 }
  0x9c   :  { %7869 = vmatpush3.bf16.msra.mxu0 %v8576_v22  ;;  %v1345_v22 = vld [vmem:[#allocation3 + $0x40] sm:$0xff] }
  0x9d   :  { %7882 = vmatprep.subr.bf16.mxu0 %v12344_v0  ;;  %v1528_v25 = vpack.c.bf16 %v1345_v22, %v1343_v21 }
  0x9f   :  { %7859 = vmatmul.mubr.msk.bf16.gmra.mrb[8].mxu0 %vm135_vm2, %v369_v26  ;;  %1551 = vrot.lane.b32.xlu1 %v1528_v25, %s8886_s27  ;;  %v1347_v26 = vld [vmem:[#allocation3 + $0x50] sm:$0xff] }
  0xa0   :  { %7870 = vmatprep.mubr.msk.bf16.mxu0 %vm8885_vm3, %v12344_v0 }
  0xa7   :  { %7871 = vmatmul.mubr.msk.bf16.vlgmr.msra.gmra.mrb[0].mxu0 %vm135_vm2, %v477_v27  ;;  %v1351_v27 = vld [vmem:[#allocation3 + $0x60] sm:$0xff] }
  0xa8   :  { %7883 = vmatpush3.bf16.msra.mxu0 %v8577_v28  ;;  %7874 = vmatprep.mubr.msk.bf16.mxu0 %vm8885_vm3, %v12344_v0  ;;  %v8602_v28 = vld [vmem:[%s12376_s4 + $0x28] sm:$0xff]  }
  0xa9   :  { %7884 = vmatprep.subr.bf16.mxu0 %v12344_v0  ;;  %8005 = vmatpush3.bf16.msra.mxu1 %v8602_v28 }
  0xaa   :  { %8006 = vmatprep.subr.bf16.mxu1 %v12344_v0 }
  0xac   :  { %7885 = vmatpush3.bf16.msra.mxu0 %v8578_v30  ;;  %v9426_v30 = vpack.c.bf16 %v1351_v27, %v1347_v26 }
  0xad   :  { %7886 = vmatprep.subr.bf16.mxu0 %v12344_v0 }
  0xae   :  { %1555 = vrot.lane.b32.xlu1 %v9426_v30, %s8886_s27 }
  0xaf   :  { %7875 = vmatmul.mubr.msk.bf16.gmra.mrb[4].mxu0 %vm135_vm2, %v479_v31  ;;  %v8603_v31 = vld [vmem:[%s12376_s4 + $0x30] sm:$0xff]  }
  0xb0   :  { %7887 = vmatpush3.bf16.msra.mxu0 %v8579_v33  ;;  %7878 = vmatprep.mubr.msk.bf16.mxu0 %vm8885_vm3, %v12344_v0  ;;  %v8604_v33 = vld [vmem:[%s12376_s4 + $0x38] sm:$0xff]  }
  0xb1   :  { %7888 = vmatprep.subr.bf16.mxu0 %v12344_v0  ;;  %8007 = vmatpush3.bf16.msra.mxu1 %v8603_v31 }
  0xb2   :  { %8008 = vmatprep.subr.bf16.mxu1 %v12344_v0 }
  0xb4   :  { %7889 = vmatpush3.bf16.msra.mxu0 %v8580_v34  ;;  %v1369_v34 = vpack.c.bf16 %v1343_v21, %v1341_v17 }
  0xb5   :  { %7902 = vmatprep.subr.bf16.mxu0 %v12344_v0  ;;  %8009 = vmatpush3.bf16.msra.mxu1 %v8604_v33 }
  0xb6   :  { %8022 = vmatprep.subr.bf16.mxu1 %v12344_v0 }
  0xb7   :  { %7879 = vmatmul.mubr.msk.bf16.gmra.mrb[8].mxu0 %vm135_vm2, %v481_v18  ;;  %v1371_v18 = vpack.c.bf16 %v1347_v26, %v1345_v22 }
  0xb8   :  { %7890 = vmatprep.mubr.msk.bf16.mxu0 %vm8885_vm3, %v12344_v0 }
  0xbf   :  { %7891 = vmatmul.mubr.msk.bf16.vlgmr.msra.gmra.mrb[0].mxu0 %vm135_vm2, %v9141_v24  ;;  %v8584_v24 = vld [vmem:[%s12375_s23 + $0x118] sm:$0xff]  }
  0xc0   :  { %7903 = vmatpush3.bf16.msra.mxu0 %v8581_v35  ;;  %7894 = vmatprep.mubr.msk.bf16.mxu0 %vm8885_vm3, %v12344_v0  ;;  %v1337_v35 = vld [vmem:[#allocation3] sm:$0x80] }
  0xc1   :  { %7904 = vmatprep.subr.bf16.mxu0 %v12344_v0 }
  0xc4   :  { %7905 = vmatpush3.bf16.msra.mxu0 %v8582_v36  ;;  %v1367_v36 = vpack.c.bf16 %v1339_v45, %v1337_v35 }
  0xc5   :  { %7906 = vmatprep.subr.bf16.mxu0 %v12344_v0 }
  0xc7   :  { %7895 = vmatmul.mubr.msk.bf16.gmra.mrb[4].mxu0 %vm135_vm2, %v9150_v32  ;;  %v723_v32 = vpop.permute.xlu1 %722 }
  0xc8   :  { %7907 = vmatpush3.bf16.msra.mxu0 %v8583_v37  ;;  %7898 = vmatprep.mubr.msk.bf16.mxu0 %vm8885_vm3, %v12344_v0  ;;  %v2024_v37 = vshrl.u32 %v1369_v34, 16 }
  0xc9   :  { %7908 = vmatprep.subr.bf16.mxu0 %v12344_v0 }
  0xcb   :  { %v727_v44 = vpop.permute.xlu1 %726 }
  0xcc   :  { %7909 = vmatpush3.bf16.msra.mxu0 %v8584_v24  ;;  %v2027_v24 = vshll.u32 %v1369_v34, 16 }
  0xcd   :  { %7922 = vmatprep.subr.bf16.mxu0 %v12344_v0 }
  0xcf   :  { %7899 = vmatmul.mubr.msk.bf16.gmra.mrb[8].mxu0 %vm135_vm2, %v9163_v39  ;;  %v725_v39 = vpop.permute.xlu0 %724  ;;  %v854_v47 = vpop.permute.xlu1 %853 }
  0xd0   :  { %7910 = vmatprep.mubr.msk.bf16.mxu0 %vm8885_vm3, %v12344_v0 }
  0xd3   :  { %v852_v46 = vpop.permute.xlu0 %851  ;;  %v858_v53 = vpop.permute.xlu1 %857 }
  0xd4   :  { %v863_v48 = vsel %vm366_vm6, %v852_v46, %v854_v47  ;;  %v2029_v46 = vrot.slane %v2027_v24, 4 }
  0xd7   :  { %7911 = vmatmul.mubr.msk.bf16.vlgmr.msra.gmra.mrb[0].mxu0 %vm135_vm2, %v723_v32  ;;  %v856_v52 = vpop.permute.xlu0 %855  ;;  %v862_v58 = vpop.permute.xlu1 %861  ;;  %v2016_v32 = vshrl.u32 %v1367_v36, 16 }
  0xd8   :  { %7923 = vmatpush3.bf16.msra.mxu0 %v8585_v38  ;;  %7914 = vmatprep.mubr.msk.bf16.mxu0 %vm8885_vm3, %v12344_v0  ;;  %v864_v54 = vsel %vm366_vm6, %v856_v52, %v858_v53  ;;  %v2019_v38 = vshll.u32 %v1367_v36, 16 }
  0xd9   :  { %7924 = vmatprep.subr.bf16.mxu0 %v12344_v0 }
  0xdb   :  { %v860_v57 = vpop.permute.xlu0 %859  ;;  %v957_v63 = vpop.permute.xlu1 %956 }
  0xdc   :  { %7925 = vmatpush3.bf16.msra.mxu0 %v8586_v41  ;;  %v865_v59 = vsel %vm366_vm6, %v860_v57, %v862_v58  ;;  %v2033_v41 = vshrl.u32 %v1371_v18, 16 }
  0xdd   :  { %7926 = vmatprep.subr.bf16.mxu0 %v12344_v0 }
  0xdf   :  { %7915 = vmatmul.mubr.msk.bf16.gmra.mrb[4].mxu0 %vm135_vm2, %v725_v39  ;;  %v955_v60 = vpop.permute.xlu0 %954  ;;  %v1165_v6 = vpop.permute.xlu1 %1164  ;;  %v2036_v39 = vshll.u32 %v1371_v18, 16 }
  0xe0   :  { %7927 = vmatpush3.bf16.msra.mxu0 %v8587_v42  ;;  %7918 = vmatprep.mubr.msk.bf16.mxu0 %vm8885_vm3, %v12344_v0  ;;  %v2018_v42 = vrot.slane %v2016_v32, 3 }
  0xe1   :  { %7928 = vmatprep.subr.bf16.mxu0 %v12344_v0  ;;  %v2038_v52 = vrot.slane %v2036_v39, 4 }
  0xe3   :  { %v959_v2 = vpop.permute.xlu0 %958  ;;  %v1169_v19 = vpop.permute.xlu1 %1168 }
  0xe4   :  { %7929 = vmatpush3.bf16.msra.mxu0 %v8588_v43  ;;  %v2021_v43 = vrot.slane %v2019_v38, 4 }
  0xe5   :  { %7942 = vmatprep.subr.bf16.mxu0 %v12344_v0 }
  0xe6   :  { %v2022_v47 = vor.u32 %v2021_v43, %v2018_v42 }
  0xe7   :  { %7919 = vmatmul.mubr.msk.bf16.gmra.mrb[8].mxu0 %vm135_vm2, %v727_v44  ;;  %v1173_v10 = vpop.permute.xlu1 %1172  ;;  %v2026_v44 = vrot.slane %v2024_v37, 3 }
  0xe8   :  { %7930 = vmatprep.mubr.msk.bf16.mxu0 %vm8885_vm3, %v12344_v0 }
  0xef   :  { %7931 = vmatmul.mubr.msk.bf16.vlgmr.msra.gmra.mrb[0].mxu0 %vm135_vm2, %v863_v48  ;;  %v2030_v48 = vor.u32 %v2029_v46, %v2026_v44 }
  0xf0   :  { %7943 = vmatpush3.bf16.msra.mxu0 %v8589_v50  ;;  %7934 = vmatprep.mubr.msk.bf16.mxu0 %vm8885_vm3, %v12344_v0 }
  0xf1   :  { %7944 = vmatprep.subr.bf16.mxu0 %v12344_v0  ;;  %v9440_v50 = vsel %vm200_vm5, %v2022_v47, %v2030_v48 }
  0xf4   :  { %7945 = vmatpush3.bf16.msra.mxu0 %v8590_v51  ;;  %v2035_v51 = vrot.slane %v2033_v41, 3 }
  0xf5   :  { %7946 = vmatprep.subr.bf16.mxu0 %v12344_v0 }
  0xf6   :  { %v9442_v53 = vor.u32 %v2038_v52, %v2035_v51  ;;  %v1338_v51 = vld [vmem:[#allocation3 + $0x8] sm:$0x80] }
  0xf7   :  { %7935 = vmatmul.mubr.msk.bf16.gmra.mrb[4].mxu0 %vm135_vm2, %v864_v54 }
  0xf8   :  { %7947 = vmatpush3.bf16.msra.mxu0 %v8591_v55  ;;  %7938 = vmatprep.mubr.msk.bf16.mxu0 %vm8885_vm3, %v12344_v0  ;;  %v9446_v54 = vsel %vm200_vm5, %v2030_v48, %v9442_v53  ;;  %v1353_v55 = vld [vmem:[#allocation3 + $0x10] sm:$0xfe] }
  0xf9   :  { %7948 = vmatprep.subr.bf16.mxu0 %v12344_v0 }
  0xfc   :  { %7949 = vmatpush3.bf16.msra.mxu0 %v8592_v56  ;;  %v9415_v13 = vpop.f32.mrb[0].mxu1  ;;  %v1766_v56 = vpack.c.bf16 %v1341_v17, %v1353_v55 }
  0xfd   :  { %7962 = vmatprep.subr.bf16.mxu0 %v12344_v0  ;;  %v7840_v14 = vpop.f32.mrb[1].mxu1 }
  0xfe   :  { %v321_v15 = vpop.f32.mrb[2].mxu1  ;;  %v2344_v57 = vshll.u32 %v1766_v56, 16  ;;  %v2342_v58 = vshrl.u32 %v1766_v56, 16  ;;  %v1344_v56 = vld [vmem:[#allocation3 + $0x38] sm:$0xff] }
  0xff   :  { %7939 = vmatmul.mubr.msk.bf16.gmra.mrb[8].mxu0 %vm135_vm2, %v865_v59  ;;  %v7841_v16 = vpop.f32.mrb[3].mxu1 }
 0x100   :  { %7950 = vmatprep.mubr.msk.bf16.mxu0 %vm8885_vm3, %v12344_v0  ;;  %v2346_v59 = vrot.slane %v2344_v57, 1 }
 0x107   :  { %7951 = vmatmul.mubr.msk.bf16.vlgmr.msra.gmra.mrb[0].mxu0 %vm135_vm2, %v955_v60  ;;  %v2349_v60 = vshll.u32 %v1528_v25, 16 }
 0x108   :  { %7963 = vmatpush3.bf16.msra.mxu0 %v8593_v61  ;;  %7954 = vmatprep.mubr.msk.bf16.mxu0 %vm8885_vm3, %v12344_v0  ;;  %v2347_v61 = vor.u32 %v2346_v59, %v2342_v58 }
 0x109   :  { %7964 = vmatprep.subr.bf16.mxu0 %v12344_v0 }
 0x10c   :  { %7965 = vmatpush3.bf16.msra.mxu0 %v8594_v62  ;;  %v2351_v62 = vrot.slane %v2349_v60, 1 }
 0x10d   :  { %7966 = vmatprep.subr.bf16.mxu0 %v12344_v0 }
 0x10f   :  { %7955 = vmatmul.mubr.msk.bf16.gmra.mrb[4].mxu0 %vm135_vm2, %v957_v63  ;;  %v9449_v63 = vsel %vm596_vm4, %v2347_v61, %v2351_v62 }
 0x110   :  { %7967 = vmatpush3.bf16.msra.mxu0 %v8595_v11  ;;  %7958 = vmatprep.mubr.msk.bf16.mxu0 %vm8885_vm3, %v12344_v0  ;;  %v2353_v11 = vshrl.u32 %v1528_v25, 16 }
 0x111   :  { %7968 = vmatprep.subr.bf16.mxu0 %v12344_v0 }
 0x114   :  { %7969 = vmatpush3.bf16.msra.mxu0 %v8596_v1  ;;  %v2357_v1 = vshll.u32 %v9426_v30, 16 }
 0x115   :  { %7982 = vmatprep.subr.bf16.mxu0 %v12344_v0 }
 0x117   :  { %7959 = vmatmul.mubr.msk.bf16.gmra.mrb[8].mxu0 %vm135_vm2, %v959_v2  ;;  %v2355_v2 = vor.u32 %v2353_v11, %v2351_v62 }
 0x118   :  { %7970 = vmatprep.mubr.msk.bf16.mxu0 %vm8885_vm3, %v12344_v0 }
 0x11f   :  { %7971 = vmatmul.mubr.msk.bf16.vlgmr.msra.gmra.mrb[0].mxu0 %vm135_vm2, %v9099_v29  ;;  %v8600_v29 = vld [vmem:[%s12375_s23 + $0xd8] sm:$0xff]  }
 0x120   :  { %7983 = vmatpush3.bf16.msra.mxu0 %v8597_v3  ;;  %7974 = vmatprep.mubr.msk.bf16.mxu0 %vm8885_vm3, %v12344_v0  ;;  %v9452_v3 = vrot.slane %v2357_v1, 1 }
 0x121   :  { %7984 = vmatprep.subr.bf16.mxu0 %v12344_v0 }
 0x124   :  { %7985 = vmatpush3.bf16.msra.mxu0 %v8598_v4  ;;  %v9456_v4 = vsel %vm596_vm4, %v2355_v2, %v9452_v3 }
 0x125   :  { %7986 = vmatprep.subr.bf16.mxu0 %v12344_v0 }
 0x127   :  { %7975 = vmatmul.mubr.msk.bf16.gmra.mrb[4].mxu0 %vm135_vm2, %v9111_v40  ;;  %v1167_v40 = vpop.permute.xlu0 %1166 }
 0x128   :  { %7987 = vmatpush3.bf16.msra.mxu0 %v8599_v5  ;;  %7978 = vmatprep.mubr.msk.bf16.mxu0 %vm8885_vm3, %v12344_v0  ;;  %v1176_v7 = vsel %vm366_vm6, %v1165_v6, %v1167_v40  ;;  %v7380_v5 = vld [vmem:[%s12377_s21] ss:$0 sm:$0xff] }
 0x129   :  { %7988 = vmatprep.subr.bf16.mxu0 %v12344_v0  ;;  %v7381_v40 = vld [vmem:[%s12325_s3] ss:$0 sm:$0xff] }
 0x12b   :  { %v1171_v8 = vpop.permute.xlu0 %1170 }
 0x12c   :  { %7989 = vmatpush3.bf16.msra.mxu0 %v8600_v29  ;;  %v1177_v9 = vsel %vm366_vm6, %v1169_v19, %v1171_v8 }
 0x12d   :  { %8182 = vmatprep.subr.bf16.mxu0 %v12344_v0 }
 0x12f   :  { %7979 = vmatmul.mubr.msk.bf16.gmra.mrb[8].mxu0 %vm135_vm2, %v9119_v49  ;;  %v1175_v49 = vpop.permute.xlu0 %1174 }
 0x130   :  { %7990 = vmatprep.mubr.msk.bf16.mxu0 %vm8885_vm3, %v12344_v0  ;;  %v1178_v12 = vsel %vm366_vm6, %v1173_v10, %v1175_v49 }
 0x137   :  { %7991 = vmatmul.mubr.msk.bf16.vlgmr.msra.gmra.mrb[0].mxu0 %vm135_vm2, %v1176_v7 }
 0x138   :  { %7994 = vmatprep.mubr.msk.bf16.mxu0 %vm8885_vm3, %v12344_v0 }
 0x13f   :  { %7995 = vmatmul.mubr.msk.bf16.gmra.mrb[4].mxu0 %vm135_vm2, %v1177_v9 }
 0x140   :  { %7998 = vmatprep.mubr.msk.bf16.mxu0 %vm8885_vm3, %v12344_v0 }
 0x147   :  { %7999 = vmatmul.mubr.msk.bf16.gmra.mrb[8].mxu0 %vm135_vm2, %v1178_v12 }
 0x148   :  { %8190 = vmatprep.mubr.msk.bf16.mxu0 %vm8885_vm3, %v12344_v0 }
 0x20a   :  { %v1246_v29 = vpop.f32.mrb[0].mxu0 }
 0x20b   :  { %v1290_v6 = vmul.f32 %v7380_v5, %v1246_v29  ;;  %v7992_v7 = vpop.f32.mrb[1].mxu0 }
 0x20c   :  { %v1249_v8 = vpop.f32.mrb[2].mxu0 }
 0x20d   :  { %v1301_v19 = vadd.f32 %v7381_v40, %v1290_v6  ;;  %v1291_v9 = vmul.f32 %v7380_v5, %v1249_v8  ;;  %v7993_v49 = vpop.f32.mrb[3].mxu0 }
 0x20f   :  { %v1305_v10 = vsub.f32 0.0, %v1301_v19  ;;  %v1302_v12 = vadd.f32 %v7381_v40, %v1291_v9 }
 0x211   :  { %v1309_v14 = vmul.f32 1.442695, %v1305_v10  ;;  %v1306_v15 = vsub.f32 0.0, %v1302_v12  ;;  %v8605_v10 = vld [vmem:[%s12376_s4 + $0x60] sm:$0xff]  }
 0x212   :  { %v1254_v16 = vpop.f32.mrb[4].mxu0 }
 0x213   :  { %8661 = vpow2.f32 %v1309_v14  ;;  %v1311_v45 = vmul.f32 1.442695, %v1306_v15  ;;  %v7996_v17 = vpop.f32.mrb[5].mxu0  ;;  %v1350_v16 = vld [vmem:[#allocation3 + $0x68] sm:$0x7f] }
 0x214   :  { %v1256_v20 = vpop.f32.mrb[6].mxu0  ;;  %v8606_v17 = vld [vmem:[%s12376_s4 + $0x68] sm:$0xff]  }
 0x215   :  { %8663 = vpow2.f32 %v1311_v45  ;;  %v1292_v21 = vmul.f32 %v7380_v5, %v1256_v20  ;;  %v7997_v22 = vpop.f32.mrb[7].mxu0 }
 0x216   :  { %v1352_v22 = vld [vmem:[#allocation3 + $0x68] sm:$0xff] }
 0x217   :  { %v1303_v23 = vadd.f32 %v7381_v40, %v1292_v21  ;;  %v1349_v21 = vld [vmem:[#allocation3 + $0x60] sm:$0x7f] }
 0x219   :  { %v1307_v25 = vsub.f32 0.0, %v1303_v23 }
 0x21a   :  { %v1261_v26 = vpop.f32.mrb[8].mxu0 }
 0x21b   :  { %v1313_v27 = vmul.f32 1.442695, %v1307_v25  ;;  %v8370_v28 = vadd.f32 %v1261_v26, %v9415_v13  ;;  %v8000_v31 = vpop.f32.mrb[9].mxu0  ;;  %v1366_v25 = vld [vmem:[#allocation3 + $0x78] sm:$0x1] }
 0x21c   :  { %v1264_v33 = vpop.f32.mrb[10].mxu0  ;;  %v8607_v31 = vld [vmem:[%s12376_s4 + $0x70] sm:$0xff]  }
 0x21d   :  { %v8662_v34 = vpop.eup %8661  ;;  %8665 = vpow2.f32 %v1313_v27  ;;  %v1293_v18 = vmul.f32 %v8370_v28, %v7380_v5  ;;  %v8001_v35 = vpop.f32.mrb[11].mxu0  ;;  %v1373_v28 = vpack.c.bf16 %v1349_v21, %v1349_v21  ;;  %v8612_v21 = vld [vmem:[%s12376_s4 + $0xb8] sm:$0xff]  }
 0x21e   :  { %v1317_v36 = vadd.f32 1.0, %v8662_v34  ;;  %v1773_v35 = vpack.c.bf16 %v1366_v25, %v1366_v25 }
 0x21f   :  { %v8664_v37 = vpop.eup %8663  ;;  %v1304_v24 = vadd.f32 %v7381_v40, %v1293_v18 }
 0x220   :  { %8667 = vrcp.f32 %v1317_v36  ;;  %v1318_v32 = vadd.f32 1.0, %v8664_v37 }
 0x221   :  { %v1308_v38 = vsub.f32 0.0, %v1304_v24 }
 0x222   :  { %8669 = vrcp.f32 %v1318_v32 }
 0x223   :  { %v1315_v41 = vmul.f32 1.442695, %v1308_v38 }
 0x225   :  { %8671 = vpow2.f32 %v1315_v41 }
 0x227   :  { %v8666_v39 = vpop.eup %8665 }
 0x228   :  { %v1319_v42 = vadd.f32 1.0, %v8666_v39 }
 0x22a   :  { %v8668_v43 = vpop.eup %8667  ;;  %8673 = vrcp.f32 %v1319_v42  ;;  %v2042_v42 = vshrl.u32 %v1373_v28, 16 }
 0x22b   :  { %v1329_v13 = vmul.f32 %v8668_v43, %v1301_v19  ;;  %v2045_v43 = vshll.u32 %v1373_v28, 16  ;;  %v8614_v28 = vld [vmem:[%s12376_s4 + $0xe8] sm:$0xff]  }
 0x22c   :  { %v8670_v44 = vpop.eup %8669 }
 0x22d   :  { %1333 = vst.msk [vmem:[#allocation3 + $0x18] sm:$0xff] %vm135_vm2, %v1329_v13  ;;  %v1330_v46 = vmul.f32 %v8670_v44, %v1302_v12  ;;  %v8608_v13 = vld [vmem:[%s12376_s4 + $0x78] sm:$0xff]  }
 0x22f   :  { %v8672_v47 = vpop.eup %8671  ;;  %1334 = vst.msk [vmem:[#allocation3 + $0x28] sm:$0xff] %vm135_vm2, %v1330_v46 }
 0x230   :  { %v1320_v48 = vadd.f32 1.0, %v8672_v47 }
 0x232   :  { %8675 = vrcp.f32 %v1320_v48 }
 0x234   :  { %v8674_v52 = vpop.eup %8673  ;;  %v1340_v55 = vld [vmem:[#allocation3 + $0x18] sm:$0xff] }
 0x235   :  { %v1331_v57 = vmul.f32 %v8674_v52, %v1303_v23  ;;  %v1368_v58 = vpack.c.bf16 %v1340_v55, %v1338_v51  ;;  %v1354_v15 = vld [vmem:[#allocation3 + $0x18] sm:$0xfe]  ;;  %v1374_v23 = vpack.c.bf16 %v1350_v16, %v1350_v16  ;;  %v1816_v52 = vshll.u32 %v1773_v35, 16 }
 0x236   :  { %v1342_v59 = vld [vmem:[#allocation3 + $0x28] sm:$0xff] }
 0x237   :  { %1335 = vst.msk [vmem:[#allocation3 + $0x48] sm:$0xff] %vm135_vm2, %v1331_v57  ;;  %v1393_v60 = vshrl.u32 %v1368_v58, 16  ;;  %v1396_v61 = vshll.u32 %v1368_v58, 16  ;;  %v9468_v62 = vpack.c.bf16 %v1342_v59, %v1340_v55  ;;  %v1370_v11 = vpack.c.bf16 %v1344_v56, %v1342_v59 }
 0x238   :  { %v1767_v45 = vpack.c.bf16 %v1342_v59, %v1354_v15  ;;  %v1419_v36 = vshrl.u32 %v1374_v23, 16  ;;  %v1422_v39 = vshll.u32 %v1374_v23, 16 }
 0x239   :  { %v1395_v1 = vrot.slane %v1393_v60, 3  ;;  %v1398_v2 = vrot.slane %v1396_v61, 4  ;;  %1670 = vrot.lane.b32.xlu1 %v9468_v62, %s8887_s20  ;;  %v1401_v5 = vshrl.u32 %v1370_v11, 16  ;;  %v1404_v29 = vshll.u32 %v1370_v11, 16  ;;  %1549 = vrot.lane.b32.xlu0 %v9468_v62, %s8886_s27 }
 0x23a   :  { %v1795_v27 = vshll.u32 %v1767_v45, 16  ;;  %v1793_v51 = vshrl.u32 %v1767_v45, 16  ;;  %v1421_v59 = vrot.slane %v1419_v36, 3  ;;  %v1424_v61 = vrot.slane %v1422_v39, 4  ;;  %v8617_v36 = vld [vmem:[%s12376_s4 + $0x100] sm:$0xff]   ;;  %v8622_v39 = vld [vmem:[%s12376_s4 + $0x8] sm:$0xff]  }
 0x23b   :  { %v1403_v40 = vrot.slane %v1401_v5, 3  ;;  %v1406_v6 = vrot.slane %v1404_v29, 4  ;;  %v1399_v19 = vor.u32 %v1398_v2, %v1395_v1  ;;  %v2044_v11 = vrot.slane %v2042_v42, 3  ;;  %v8623_v42 = vld [vmem:[%s12376_s4 + $0x10] sm:$0xff]  }
 0x23c   :  { %v8676_v7 = vpop.eup %8675  ;;  %v1797_v41 = vrot.slane %v1795_v27, 1  ;;  %v2047_v1 = vrot.slane %v2045_v43, 4  ;;  %v1818_v29 = vrot.slane %v1816_v52, 1  ;;  %v8626_v52 = vld [vmem:[%s12376_s4 + $0x48] sm:$0xff]  }
 0x23d   :  { %v1332_v8 = vmul.f32 %v8676_v7, %v1304_v24  ;;  %v1407_v9 = vor.u32 %v1406_v6, %v1403_v40  ;;  %v1425_v40 = vor.u32 %v1424_v61, %v1421_v59  ;;  %v8628_v59 = vld [vmem:[%s12376_s4 + $0x58] sm:$0xff]  }
 0x23e   :  { %v1346_v49 = vld [vmem:[#allocation3 + $0x48] sm:$0xff]  ;;  %v1798_v57 = vor.u32 %v1797_v41, %v1793_v51  ;;  %v2048_v6 = vor.u32 %v2047_v1, %v2044_v11  ;;  %v8629_v1 = vld [vmem:[%s12376_s4 + $0x80] sm:$0xff]  }
 0x23f   :  { %1336 = vst.msk [vmem:[#allocation3 + $0x58] sm:$0xff] %vm135_vm2, %v1332_v8  ;;  %v9479_v12 = vsel %vm200_vm5, %v1399_v19, %v1407_v9  ;;  %v9481_v14 = vpack.c.bf16 %v1346_v49, %v1344_v56 }
 0x240   :  { %8011 = vmatmul.mubr.msk.bf16.vlgmr.msra.gmra.mrb[4].mxu1 %vm135_vm2, %v9479_v12  ;;  %v2049_v19 = vsel %vm200_vm5, %v9442_v53, %v2048_v6  ;;  %v8632_v6 = vld [vmem:[%s12376_s4 + $0x98] sm:$0xff]  }
 0x241   :  { %1553 = vrot.lane.b32.xlu0 %v9481_v14, %s8886_s27  ;;  %8014 = vmatprep.mubr.msk.bf16.mxu1 %vm8885_vm3, %v12344_v0  ;;  %v1800_v20 = vshll.u32 %v9481_v14, 16  ;;  %v1804_v32 = vshrl.u32 %v9481_v14, 16 }
 0x242   :  { %8023 = vmatpush3.bf16.msra.mxu1 %v8605_v10 }
 0x243   :  { %8024 = vmatprep.subr.bf16.mxu1 %v12344_v0  ;;  %v1802_v18 = vrot.slane %v1800_v20, 1 }
 0x245   :  { %v1806_v47 = vor.u32 %v1804_v32, %v1802_v18  ;;  %v9522_v2 = vsel %vm596_vm4, %v1798_v57, %v1802_v18  ;;  %v8616_v18 = vld [vmem:[%s12376_s4 + $0xf8] sm:$0xff]  }
 0x246   :  { %v1348_v26 = vld [vmem:[#allocation3 + $0x58] sm:$0xff]  ;;  %8025 = vmatpush3.bf16.msra.mxu1 %v8606_v17 }
 0x247   :  { %v9497_v33 = vpack.c.bf16 %v1352_v22, %v1348_v26  ;;  %v1372_v34 = vpack.c.bf16 %v1348_v26, %v1346_v49  ;;  %8026 = vmatprep.subr.bf16.mxu1 %v12344_v0  ;;  %v8613_v26 = vld [vmem:[%s12376_s4 + $0xe0] sm:$0xff]   ;;  %v8620_v32 = vld [vmem:[%s12376_s4 + $0x118] sm:$0xff]  }
 0x249   :  { %1674 = vrot.lane.b32.xlu1 %v9497_v33, %s8887_s20  ;;  %v1410_v37 = vshrl.u32 %v1372_v34, 16  ;;  %v1413_v24 = vshll.u32 %v1372_v34, 16  ;;  %1557 = vrot.lane.b32.xlu0 %v9497_v33, %s8886_s27  ;;  %v1808_v38 = vshll.u32 %v9497_v33, 16  ;;  %v1812_v58 = vshrl.u32 %v9497_v33, 16 }
 0x24a   :  { %8027 = vmatpush3.bf16.msra.mxu1 %v8607_v31  ;;  %v8615_v31 = vld [vmem:[%s12376_s4 + $0xf0] sm:$0xff]  }
 0x24b   :  { %v1412_v44 = vrot.slane %v1410_v37, 3  ;;  %v1415_v46 = vrot.slane %v1413_v24, 4  ;;  %v1810_v48 = vrot.slane %v1808_v38, 1  ;;  %8028 = vmatprep.subr.bf16.mxu1 %v12344_v0  ;;  %v8618_v37 = vld [vmem:[%s12376_s4 + $0x108] sm:$0xff]   ;;  %v8619_v24 = vld [vmem:[%s12376_s4 + $0x110] sm:$0xff]   ;;  %v8621_v38 = vld [vmem:[%s12376_s4] sm:$0xff]  }
 0x24d   :  { %1672 = vrot.lane.b32.xlu0 %v9481_v14, %s8887_s20  ;;  %v9513_v55 = vsel %vm596_vm4, %v1806_v47, %v1810_v48  ;;  %v1416_v56 = vor.u32 %v1415_v46, %v1412_v44  ;;  %v1814_v5 = vor.u32 %v1812_v58, %v1810_v48  ;;  %v8625_v47 = vld [vmem:[%s12376_s4 + $0x40] sm:$0xff]  }
 0x24e   :  { %1921 = vrot.lane.b32.xlu1 %v9513_v55, %s8887_s20  ;;  %8029 = vmatpush3.bf16.msra.mxu1 %v8608_v13  ;;  %v8624_v13 = vld [vmem:[%s12376_s4 + $0x18] sm:$0xff]  }
 0x24f   :  { %v1417_v60 = vsel %vm200_vm5, %v1407_v9, %v1416_v56  ;;  %8042 = vmatprep.subr.bf16.mxu1 %v12344_v0  ;;  %v9531_v7 = vsel %vm596_vm4, %v1814_v5, %v1818_v29  ;;  %v1426_v8 = vsel %vm200_vm5, %v1416_v56, %v1425_v40  ;;  %v8627_v56 = vld [vmem:[%s12376_s4 + $0x50] sm:$0xff]   ;;  %v8630_v5 = vld [vmem:[%s12376_s4 + $0x88] sm:$0xff]  }
 0x250   :  { %8015 = vmatmul.mubr.msk.bf16.gmra.mrb[8].mxu1 %vm135_vm2, %v1417_v60  ;;  %v8631_v29 = vld [vmem:[%s12376_s4 + $0x90] sm:$0xff]  }
 0x251   :  { %1919 = vrot.lane.b32.xlu0 %v9522_v2, %s8887_s20  ;;  %8018 = vmatprep.mubr.msk.bf16.mxu1 %vm8885_vm3, %v12344_v0 }
 0x252   :  { %2050 = vrot.lane.b32.xlu1 %v9440_v50, %s8886_s27  ;;  %v1365_v50 = vld [vmem:[#allocation3 + $0x70] sm:$0x1] }
 0x253   :  { %v1772_v53 = vpack.c.bf16 %v1365_v50, %v1365_v50  ;;  %v8635_v50 = vld [vmem:[%s12376_s4 + $0xd0] sm:$0xff]  }
 0x255   :  { %1923 = vrot.lane.b32.xlu0 %v9531_v7, %s8887_s20  ;;  %v2365_v9 = vshll.u32 %v1772_v53, 16 }
 0x256   :  { %2054 = vrot.lane.b32.xlu1 %v9446_v54, %s8886_s27  ;;  %v2361_v54 = vshrl.u32 %v9426_v30, 16  ;;  %v8609_v30 = vld [vmem:[%s12376_s4 + $0xa0] sm:$0xff]  }
 0x257   :  { %v2367_v10 = vrot.slane %v2365_v9, 1 }
 0x258   :  { %8019 = vmatmul.mubr.msk.bf16.gmra.mrb[12].mxu1 %vm135_vm2, %v1426_v8  ;;  %v2363_v49 = vor.u32 %v2361_v54, %v9452_v3  ;;  %v8610_v3 = vld [vmem:[%s12376_s4 + $0xa8] sm:$0xff]  }
 0x259   :  { %2052 = vrot.lane.b32.xlu0 %v9479_v12, %s8886_s27  ;;  %8030 = vmatprep.mubr.msk.bf16.mxu1 %vm8885_vm3, %v12344_v0 }
 0x25a   :  { %2058 = vrot.lane.b32.xlu1 %v2049_v19, %s8886_s27  ;;  %v8634_v19 = vld [vmem:[%s12376_s4 + $0xc8] sm:$0xff]  }
 0x25d   :  { %2056 = vrot.lane.b32.xlu0 %v1417_v60, %s8886_s27 }
 0x25e   :  { %2155 = vrot.lane.b32.xlu1 %v9479_v12, %s8887_s20  ;;  %v2368_v12 = vsel %vm596_vm4, %v2363_v49, %v2367_v10 }
 0x261   :  { %2060 = vrot.lane.b32.xlu0 %v1426_v8, %s8886_s27 }
 0x262   :  { %2159 = vrot.lane.b32.xlu1 %v1426_v8, %s8887_s20  ;;  %v8633_v8 = vld [vmem:[%s12376_s4 + $0xc0] sm:$0xff]  }
 0x265   :  { %2157 = vrot.lane.b32.xlu0 %v1417_v60, %s8887_s20 }
 0x266   :  { %2371 = vrot.lane.b32.xlu1 %v9522_v2, %s8886_s27 }
 0x269   :  { %2369 = vrot.lane.b32.xlu0 %v9449_v63, %s8886_s27  ;;  %v1548_v63 = vpop.permute.xlu1 %1547 }
 0x26a   :  { %2375 = vrot.lane.b32.xlu1 %v9513_v55, %s8886_s27 }
 0x26d   :  { %2373 = vrot.lane.b32.xlu0 %v9456_v4, %s8886_s27  ;;  %v8611_v4 = vld [vmem:[%s12376_s4 + $0xb0] sm:$0xff]   ;;  %v1552_v45 = vpop.permute.xlu1 %1551 }
 0x26e   :  { %2379 = vrot.lane.b32.xlu1 %v9531_v7, %s8886_s27 }
 0x271   :  { %2377 = vrot.lane.b32.xlu0 %v2368_v12, %s8886_s27  ;;  %v1556_v22 = vpop.permute.xlu1 %1555 }
 0x2ab   :  { %v1550_v15 = vpop.permute.xlu0 %1549  ;;  %v1671_v27 = vpop.permute.xlu1 %1670 }
 0x2ac   :  { %v1559_v16 = vsel %vm366_vm6, %v1548_v63, %v1550_v15  ;;  %v8637_v63 = vld [vmem:[%s12326_s7] sm:$0xff]   ;;  %v8638_v15 = vld [vmem:[%s12326_s7 + $0x8] sm:$0xff]  }
 0x2ad   :  { %8031 = vmatmul.mubr.msk.bf16.vlgmr.msra.gmra.mrb[4].mxu1 %vm135_vm2, %v1559_v16  ;;  %8183 = vmatpush3.bf16.msra.mxu0 %v8637_v63  ;;  %v8639_v16 = vld [vmem:[%s12326_s7 + $0x10] sm:$0xff]  }
 0x2ae   :  { %8043 = vmatpush3.bf16.msra.mxu1 %v8609_v30  ;;  %8034 = vmatprep.mubr.msk.bf16.mxu1 %vm8885_vm3, %v12344_v0 }
 0x2af   :  { %8044 = vmatprep.subr.bf16.mxu1 %v12344_v0  ;;  %8184 = vmatprep.subr.bf16.mxu0 %v12344_v0 }
 0x2b1   :  { %8185 = vmatpush3.bf16.msra.mxu0 %v8638_v15 }
 0x2b2   :  { %8045 = vmatpush3.bf16.msra.mxu1 %v8610_v3  ;;  %8186 = vmatprep.subr.bf16.mxu0 %v12344_v0  ;;  %v8640_v3 = vld [vmem:[%s12326_s7 + $0x18] sm:$0xff]  }
 0x2b3   :  { %v1554_v17 = vpop.permute.xlu0 %1553  ;;  %8046 = vmatprep.subr.bf16.mxu1 %v12344_v0 }
 0x2b4   :  { %v1560_v20 = vsel %vm366_vm6, %v1552_v45, %v1554_v17  ;;  %v7510_v17 = vld [vmem:[%s12328_s6] ss:$0 sm:$0xff] }
 0x2b5   :  { %8035 = vmatmul.mubr.msk.bf16.gmra.mrb[8].mxu1 %vm135_vm2, %v1560_v20  ;;  %8187 = vmatpush3.bf16.msra.mxu0 %v8639_v16 }
 0x2b6   :  { %8047 = vmatpush3.bf16.msra.mxu1 %v8611_v4  ;;  %8038 = vmatprep.mubr.msk.bf16.mxu1 %vm8885_vm3, %v12344_v0  ;;  %v7509_v4 = vld [vmem:[%s12327_s5] ss:$0 sm:$0xff] }
 0x2b7   :  { %8048 = vmatprep.subr.bf16.mxu1 %v12344_v0  ;;  %8188 = vmatprep.subr.bf16.mxu0 %v12344_v0 }
 0x2b9   :  { %8189 = vmatpush3.bf16.msra.mxu0 %v8640_v3 }
 0x2ba   :  { %8049 = vmatpush3.bf16.msra.mxu1 %v8612_v21  ;;  %8218 = vmatprep.subr.bf16.mxu0 %v12344_v0 }
 0x2bb   :  { %v1558_v23 = vpop.permute.xlu0 %1557  ;;  %8062 = vmatprep.subr.bf16.mxu1 %v12344_v0  ;;  %v1675_v35 = vpop.permute.xlu1 %1674 }
 0x2bc   :  { %v1561_v25 = vsel %vm366_vm6, %v1556_v22, %v1558_v23 }
 0x2bd   :  { %8039 = vmatmul.mubr.msk.bf16.gmra.mrb[12].mxu1 %vm135_vm2, %v1561_v25 }
 0x2be   :  { %8050 = vmatprep.mubr.msk.bf16.mxu1 %vm8885_vm3, %v12344_v0 }
 0x2bf   :  { %v1673_v34 = vpop.permute.xlu0 %1672 }
 0x2c0   :  { %v1922_v43 = vpop.permute.xlu1 %1921 }
 0x2c3   :  { %v1920_v41 = vpop.permute.xlu0 %1919 }
 0x2c4   :  { %v2051_v48 = vpop.permute.xlu1 %2050 }
 0x2c5   :  { %8051 = vmatmul.mubr.msk.bf16.vlgmr.msra.gmra.mrb[4].mxu1 %vm135_vm2, %v1671_v27 }
 0x2c6   :  { %8063 = vmatpush3.bf16.msra.mxu1 %v8613_v26  ;;  %8054 = vmatprep.mubr.msk.bf16.mxu1 %vm8885_vm3, %v12344_v0 }
 0x2c7   :  { %8064 = vmatprep.subr.bf16.mxu1 %v12344_v0  ;;  %v1924_v44 = vpop.permute.xlu0 %1923 }
 0x2c8   :  { %v2055_v57 = vpop.permute.xlu1 %2054 }
 0x2ca   :  { %8065 = vmatpush3.bf16.msra.mxu1 %v8614_v28 }
 0x2cb   :  { %8066 = vmatprep.subr.bf16.mxu1 %v12344_v0  ;;  %v2053_v46 = vpop.permute.xlu0 %2052 }
 0x2cc   :  { %v2062_v51 = vsel %vm366_vm6, %v2051_v48, %v2053_v46  ;;  %v2059_v61 = vpop.permute.xlu1 %2058 }
 0x2cd   :  { %8055 = vmatmul.mubr.msk.bf16.gmra.mrb[8].mxu1 %vm135_vm2, %v1673_v34 }
 0x2ce   :  { %8067 = vmatpush3.bf16.msra.mxu1 %v8615_v31  ;;  %8058 = vmatprep.mubr.msk.bf16.mxu1 %vm8885_vm3, %v12344_v0 }
 0x2cf   :  { %8068 = vmatprep.subr.bf16.mxu1 %v12344_v0 }
 0x2d2   :  { %8069 = vmatpush3.bf16.msra.mxu1 %v8616_v18 }
 0x2d3   :  { %8082 = vmatprep.subr.bf16.mxu1 %v12344_v0 }
 0x2d5   :  { %8059 = vmatmul.mubr.msk.bf16.gmra.mrb[12].mxu1 %vm135_vm2, %v1675_v35 }
 0x2d6   :  { %8070 = vmatprep.mubr.msk.bf16.mxu1 %vm8885_vm3, %v12344_v0 }
 0x2dd   :  { %8071 = vmatmul.mubr.msk.bf16.vlgmr.msra.gmra.mrb[4].mxu1 %vm135_vm2, %v9522_v2  ;;  %v2156_v2 = vpop.permute.xlu1 %2155 }
 0x2de   :  { %8083 = vmatpush3.bf16.msra.mxu1 %v8617_v36  ;;  %8074 = vmatprep.mubr.msk.bf16.mxu1 %vm8885_vm3, %v12344_v0 }
 0x2df   :  { %8084 = vmatprep.subr.bf16.mxu1 %v12344_v0 }
 0x2e2   :  { %8085 = vmatpush3.bf16.msra.mxu1 %v8618_v37 }
 0x2e3   :  { %8086 = vmatprep.subr.bf16.mxu1 %v12344_v0 }
 0x2e5   :  { %8075 = vmatmul.mubr.msk.bf16.gmra.mrb[8].mxu1 %vm135_vm2, %v9513_v55  ;;  %v2057_v55 = vpop.permute.xlu0 %2056 }
 0x2e6   :  { %8087 = vmatpush3.bf16.msra.mxu1 %v8619_v24  ;;  %8078 = vmatprep.mubr.msk.bf16.mxu1 %vm8885_vm3, %v12344_v0  ;;  %v2063_v58 = vsel %vm366_vm6, %v2055_v57, %v2057_v55 }
 0x2e7   :  { %8088 = vmatprep.subr.bf16.mxu1 %v12344_v0 }
 0x2e9   :  { %v2061_v60 = vpop.permute.xlu0 %2060 }
 0x2ea   :  { %8089 = vmatpush3.bf16.msra.mxu1 %v8620_v32  ;;  %v2064_v11 = vsel %vm366_vm6, %v2059_v61, %v2061_v60 }
 0x2eb   :  { %8102 = vmatprep.subr.bf16.mxu1 %v12344_v0 }
 0x2ed   :  { %8079 = vmatmul.mubr.msk.bf16.gmra.mrb[12].mxu1 %vm135_vm2, %v9531_v7  ;;  %v2158_v40 = vpop.permute.xlu0 %2157  ;;  %v2160_v7 = vpop.permute.xlu1 %2159 }
 0x2ee   :  { %8090 = vmatprep.mubr.msk.bf16.mxu1 %vm8885_vm3, %v12344_v0 }
 0x2f1   :  { %v2372_v53 = vpop.permute.xlu1 %2371 }
 0x2f5   :  { %8091 = vmatmul.mubr.msk.bf16.vlgmr.msra.gmra.mrb[4].mxu1 %vm135_vm2, %v1920_v41  ;;  %v2376_v49 = vpop.permute.xlu1 %2375 }
 0x2f6   :  { %8103 = vmatpush3.bf16.msra.mxu1 %v8621_v38  ;;  %8094 = vmatprep.mubr.msk.bf16.mxu1 %vm8885_vm3, %v12344_v0 }
 0x2f7   :  { %8104 = vmatprep.subr.bf16.mxu1 %v12344_v0 }
 0x2f9   :  { %v2380_v12 = vpop.permute.xlu1 %2379 }
 0x2fa   :  { %8105 = vmatpush3.bf16.msra.mxu1 %v8622_v39 }
 0x2fb   :  { %8106 = vmatprep.subr.bf16.mxu1 %v12344_v0 }
 0x2fd   :  { %8095 = vmatmul.mubr.msk.bf16.gmra.mrb[8].mxu1 %vm135_vm2, %v1922_v43 }
 0x2fe   :  { %8107 = vmatpush3.bf16.msra.mxu1 %v8623_v42  ;;  %8098 = vmatprep.mubr.msk.bf16.mxu1 %vm8885_vm3, %v12344_v0 }
 0x2ff   :  { %8108 = vmatprep.subr.bf16.mxu1 %v12344_v0 }
 0x302   :  { %8109 = vmatpush3.bf16.msra.mxu1 %v8624_v13 }
 0x303   :  { %8122 = vmatprep.subr.bf16.mxu1 %v12344_v0 }
 0x305   :  { %8099 = vmatmul.mubr.msk.bf16.gmra.mrb[12].mxu1 %vm135_vm2, %v1924_v44 }
 0x306   :  { %8110 = vmatprep.mubr.msk.bf16.mxu1 %vm8885_vm3, %v12344_v0 }
 0x30d   :  { %8111 = vmatmul.mubr.msk.bf16.vlgmr.msra.gmra.mrb[4].mxu1 %vm135_vm2, %v2062_v51 }
 0x30e   :  { %8123 = vmatpush3.bf16.msra.mxu1 %v8625_v47  ;;  %8114 = vmatprep.mubr.msk.bf16.mxu1 %vm8885_vm3, %v12344_v0 }
 0x30f   :  { %8124 = vmatprep.subr.bf16.mxu1 %v12344_v0 }
 0x312   :  { %8125 = vmatpush3.bf16.msra.mxu1 %v8626_v52 }
 0x313   :  { %8126 = vmatprep.subr.bf16.mxu1 %v12344_v0 }
 0x315   :  { %8115 = vmatmul.mubr.msk.bf16.gmra.mrb[8].mxu1 %vm135_vm2, %v2063_v58 }
 0x316   :  { %8127 = vmatpush3.bf16.msra.mxu1 %v8627_v56  ;;  %8118 = vmatprep.mubr.msk.bf16.mxu1 %vm8885_vm3, %v12344_v0 }
 0x317   :  { %8128 = vmatprep.subr.bf16.mxu1 %v12344_v0 }
 0x31a   :  { %8129 = vmatpush3.bf16.msra.mxu1 %v8628_v59 }
 0x31b   :  { %8142 = vmatprep.subr.bf16.mxu1 %v12344_v0 }
 0x31d   :  { %8119 = vmatmul.mubr.msk.bf16.gmra.mrb[12].mxu1 %vm135_vm2, %v2064_v11 }
 0x31e   :  { %8130 = vmatprep.mubr.msk.bf16.mxu1 %vm8885_vm3, %v12344_v0 }
 0x325   :  { %8131 = vmatmul.mubr.msk.bf16.vlgmr.msra.gmra.mrb[4].mxu1 %vm135_vm2, %v2156_v2 }
 0x326   :  { %8143 = vmatpush3.bf16.msra.mxu1 %v8629_v1  ;;  %8134 = vmatprep.mubr.msk.bf16.mxu1 %vm8885_vm3, %v12344_v0 }
 0x327   :  { %8144 = vmatprep.subr.bf16.mxu1 %v12344_v0 }
 0x32a   :  { %8145 = vmatpush3.bf16.msra.mxu1 %v8630_v5 }
 0x32b   :  { %8146 = vmatprep.subr.bf16.mxu1 %v12344_v0 }
 0x32d   :  { %8135 = vmatmul.mubr.msk.bf16.gmra.mrb[8].mxu1 %vm135_vm2, %v2158_v40 }
 0x32e   :  { %8147 = vmatpush3.bf16.msra.mxu1 %v8631_v29  ;;  %8138 = vmatprep.mubr.msk.bf16.mxu1 %vm8885_vm3, %v12344_v0 }
 0x32f   :  { %8148 = vmatprep.subr.bf16.mxu1 %v12344_v0 }
 0x332   :  { %8149 = vmatpush3.bf16.msra.mxu1 %v8632_v6 }
 0x333   :  { %8162 = vmatprep.subr.bf16.mxu1 %v12344_v0 }
 0x335   :  { %8139 = vmatmul.mubr.msk.bf16.gmra.mrb[12].mxu1 %vm135_vm2, %v2160_v7 }
 0x336   :  { %8150 = vmatprep.mubr.msk.bf16.mxu1 %vm8885_vm3, %v12344_v0 }
 0x33d   :  { %8151 = vmatmul.mubr.msk.bf16.vlgmr.msra.gmra.mrb[4].mxu1 %vm135_vm2, %v9468_v62  ;;  %v8636_v62 = vld [vmem:[%s12376_s4 + $0xd8] sm:$0xff]  }
 0x33e   :  { %8163 = vmatpush3.bf16.msra.mxu1 %v8633_v8  ;;  %8154 = vmatprep.mubr.msk.bf16.mxu1 %vm8885_vm3, %v12344_v0 }
 0x33f   :  { %8164 = vmatprep.subr.bf16.mxu1 %v12344_v0 }
 0x342   :  { %8165 = vmatpush3.bf16.msra.mxu1 %v8634_v19 }
 0x343   :  { %8166 = vmatprep.subr.bf16.mxu1 %v12344_v0 }
 0x345   :  { %8155 = vmatmul.mubr.msk.bf16.gmra.mrb[8].mxu1 %vm135_vm2, %v9481_v14  ;;  %v2370_v14 = vpop.permute.xlu0 %2369 }
 0x346   :  { %8167 = vmatpush3.bf16.msra.mxu1 %v8635_v50  ;;  %8158 = vmatprep.mubr.msk.bf16.mxu1 %vm8885_vm3, %v12344_v0  ;;  %v2381_v54 = vsel %vm366_vm6, %v2370_v14, %v2372_v53 }
 0x347   :  { %8168 = vmatprep.subr.bf16.mxu1 %v12344_v0 }
 0x349   :  { %v2374_v9 = vpop.permute.xlu0 %2373 }
 0x34a   :  { %8169 = vmatpush3.bf16.msra.mxu1 %v8636_v62  ;;  %v2382_v10 = vsel %vm366_vm6, %v2374_v9, %v2376_v49 }
 0x34b   :  { %8202 = vmatprep.subr.bf16.mxu1 %v12344_v0 }
 0x34d   :  { %8159 = vmatmul.mubr.msk.bf16.gmra.mrb[12].mxu1 %vm135_vm2, %v9497_v33  ;;  %v2378_v33 = vpop.permute.xlu0 %2377 }
 0x34e   :  { %8170 = vmatprep.mubr.msk.bf16.mxu1 %vm8885_vm3, %v12344_v0  ;;  %v2383_v30 = vsel %vm366_vm6, %v2378_v33, %v2380_v12 }
 0x355   :  { %8171 = vmatmul.mubr.msk.bf16.vlgmr.msra.gmra.mrb[4].mxu1 %vm135_vm2, %v2381_v54 }
 0x356   :  { %8174 = vmatprep.mubr.msk.bf16.mxu1 %vm8885_vm3, %v12344_v0 }
 0x35d   :  { %8175 = vmatmul.mubr.msk.bf16.gmra.mrb[8].mxu1 %vm135_vm2, %v2382_v10 }
 0x35e   :  { %8178 = vmatprep.mubr.msk.bf16.mxu1 %vm8885_vm3, %v12344_v0 }
 0x365   :  { %8179 = vmatmul.mubr.msk.bf16.gmra.mrb[12].mxu1 %vm135_vm2, %v2383_v30 }
 0x366   :  { %8206 = vmatprep.mubr.msk.bf16.mxu1 %vm8885_vm3, %v12344_v0 }
 0x428   :  { %v2451_v45 = vpop.f32.mrb[4].mxu1 }
 0x429   :  { %v2505_v20 = vmul.f32 %v7509_v4, %v2451_v45  ;;  %v8172_v21 = vpop.f32.mrb[5].mxu1 }
 0x42a   :  { %v2454_v22 = vpop.f32.mrb[6].mxu1  ;;  %v9836_v21 = vld [vmem:[#allocation4 + $0x38] sm:$0xff] }
 0x42b   :  { %v2518_v23 = vadd.f32 %v7510_v17, %v2505_v20  ;;  %v2506_v25 = vmul.f32 %v7509_v4, %v2454_v22  ;;  %v8173_v26 = vpop.f32.mrb[7].mxu1  ;;  %v8642_v20 = vld [vmem:[%s12329_s16 + $0x8] sm:$0xff]   ;;  %2992 = vrot.lane.b32.xlu0 %v9836_v21, %s8888_s1  ;;  %v7518_v22 = vld [vmem:[%s12330_s8] ss:$0 sm:$0xff]  ;;  %s8889_s8 = smov 2  }
 0x42d   :  { %v2524_v27 = vsub.f32 0.0, %v2518_v23  ;;  %v2519_v28 = vadd.f32 %v7510_v17, %v2506_v25  ;;  %v7519_v25 = vld [vmem:[%s12331_s9] ss:$0 sm:$0xff] }
 0x42f   :  { %v2530_v31 = vmul.f32 1.442695, %v2524_v27  ;;  %v2525_v34 = vsub.f32 0.0, %v2519_v28 }
 0x430   :  { %v2459_v18 = vpop.f32.mrb[8].mxu1 }
 0x431   :  { %8677 = vpow2.f32 %v2530_v31  ;;  %v2532_v35 = vmul.f32 1.442695, %v2525_v34  ;;  %v2507_v36 = vmul.f32 %v7509_v4, %v2459_v18  ;;  %v8176_v37 = vpop.f32.mrb[9].mxu1 }
 0x432   :  { %v2462_v24 = vpop.f32.mrb[10].mxu1 }
 0x433   :  { %8679 = vpow2.f32 %v2532_v35  ;;  %v2520_v32 = vadd.f32 %v7510_v17, %v2507_v36  ;;  %v2508_v38 = vmul.f32 %v7509_v4, %v2462_v24  ;;  %v8177_v41 = vpop.f32.mrb[11].mxu1 }
 0x435   :  { %v2526_v39 = vsub.f32 0.0, %v2520_v32  ;;  %v2521_v42 = vadd.f32 %v7510_v17, %v2508_v38 }
 0x437   :  { %v2534_v43 = vmul.f32 1.442695, %v2526_v39  ;;  %v2527_v13 = vsub.f32 0.0, %v2521_v42 }
 0x438   :  { %v2467_v44 = vpop.f32.mrb[12].mxu1 }
 0x439   :  { %8681 = vpow2.f32 %v2534_v43  ;;  %v2536_v46 = vmul.f32 1.442695, %v2527_v13  ;;  %v2509_v47 = vmul.f32 %v7509_v4, %v2467_v44  ;;  %v8180_v48 = vpop.f32.mrb[13].mxu1 }
 0x43a   :  { %v2470_v51 = vpop.f32.mrb[14].mxu1 }
 0x43b   :  { %v8678_v52 = vpop.eup %8677  ;;  %8683 = vpow2.f32 %v2536_v46  ;;  %v2522_v55 = vadd.f32 %v7510_v17, %v2509_v47  ;;  %v2510_v56 = vmul.f32 %v7509_v4, %v2470_v51  ;;  %v8181_v57 = vpop.f32.mrb[15].mxu1 }
 0x43c   :  { %v2542_v58 = vadd.f32 1.0, %v8678_v52 }
 0x43d   :  { %v8680_v59 = vpop.eup %8679  ;;  %v2528_v60 = vsub.f32 0.0, %v2522_v55  ;;  %v2523_v61 = vadd.f32 %v7510_v17, %v2510_v56  ;;  %v8641_v17 = vld [vmem:[%s12329_s16] sm:$0xff]  }
 0x43e   :  { %8685 = vrcp.f32 %v2542_v58  ;;  %v2543_v11 = vadd.f32 1.0, %v8680_v59  ;;  %8203 = vmatpush3.bf16.msra.mxu1 %v8641_v17 }
 0x43f   :  { %v2538_v1 = vmul.f32 1.442695, %v2528_v60  ;;  %v2529_v2 = vsub.f32 0.0, %v2523_v61  ;;  %8204 = vmatprep.subr.bf16.mxu1 %v12344_v0 }
 0x440   :  { %8687 = vrcp.f32 %v2543_v11 }
 0x441   :  { %8689 = vpow2.f32 %v2538_v1  ;;  %v2540_v5 = vmul.f32 1.442695, %v2529_v2 }
 0x442   :  { %8205 = vmatpush3.bf16.msra.mxu1 %v8642_v20 }
 0x443   :  { %v8682_v29 = vpop.eup %8681  ;;  %8691 = vpow2.f32 %v2540_v5  ;;  %8234 = vmatprep.subr.bf16.mxu1 %v12344_v0 }
 0x444   :  { %v2544_v40 = vadd.f32 1.0, %v8682_v29 }
 0x445   :  { %v8684_v6 = vpop.eup %8683 }
 0x446   :  { %8693 = vrcp.f32 %v2544_v40  ;;  %v2545_v7 = vadd.f32 1.0, %v8684_v6 }
 0x448   :  { %v8686_v8 = vpop.eup %8685  ;;  %8695 = vrcp.f32 %v2545_v7 }
 0x449   :  { %v2560_v62 = vmul.f32 %v8686_v8, %v2518_v23 }
 0x44a   :  { %v8688_v19 = vpop.eup %8687 }
 0x44b   :  { %v8690_v50 = vpop.eup %8689  ;;  %v2561_v14 = vmul.f32 %v8688_v19, %v2519_v28 }
 0x44c   :  { %v2546_v53 = vadd.f32 1.0, %v8690_v50 }
 0x44d   :  { %v8692_v54 = vpop.eup %8691  ;;  %v2566_v9 = vpack.c.bf16 %v2561_v14, %v2560_v62 }
 0x44e   :  { %8697 = vrcp.f32 %v2546_v53  ;;  %v2547_v49 = vadd.f32 1.0, %v8692_v54 }
 0x44f   :  { %8191 = vmatmul.mubr.msk.bf16.vlgmr.msra.gmra.mrb[12].mxu0 %vm135_vm2, %v2566_v9 }
 0x450   :  { %v8694_v10 = vpop.eup %8693  ;;  %8699 = vrcp.f32 %v2547_v49  ;;  %8194 = vmatprep.mubr.msk.bf16.mxu0 %vm8885_vm3, %v12344_v0 }
 0x451   :  { %v2562_v12 = vmul.f32 %v8694_v10, %v2520_v32 }
 0x452   :  { %v8696_v33 = vpop.eup %8695 }
 0x453   :  { %v2563_v30 = vmul.f32 %v8696_v33, %v2521_v42 }
 0x455   :  { %v2567_v63 = vpack.c.bf16 %v2563_v30, %v2562_v12 }
 0x457   :  { %8195 = vmatmul.mubr.msk.bf16.gmra.mrb[16].mxu0 %vm135_vm2, %v2567_v63 }
 0x458   :  { %v8698_v15 = vpop.eup %8697  ;;  %8198 = vmatprep.mubr.msk.bf16.mxu0 %vm8885_vm3, %v12344_v0 }
 0x459   :  { %v2564_v3 = vmul.f32 %v8698_v15, %v2522_v55 }
 0x45a   :  { %v8700_v16 = vpop.eup %8699 }
 0x45b   :  { %v2565_v4 = vmul.f32 %v8700_v16, %v2523_v61 }
 0x45d   :  { %v2568_v45 = vpack.c.bf16 %v2565_v4, %v2564_v3 }
 0x45f   :  { %8199 = vmatmul.mubr.msk.bf16.gmra.mrb[20].mxu0 %vm135_vm2, %v2568_v45 }
 0x460   :  { %8222 = vmatprep.mubr.msk.bf16.mxu0 %vm8885_vm3, %v12344_v0 }
 0x522   :  { %v2644_v23 = vpop.f32.mrb[12].mxu0 }
 0x523   :  { %v2674_v26 = vmul.f32 %v7518_v22, %v2644_v23  ;;  %v8192_v27 = vpop.f32.mrb[13].mxu0 }
 0x524   :  { %v2647_v28 = vpop.f32.mrb[14].mxu0  ;;  %v9917_v27 = vld [vmem:[#allocation4 + $0x10] sm:$0xff] }
 0x525   :  { %v2687_v31 = vadd.f32 %v7519_v25, %v2674_v26  ;;  %v2675_v34 = vmul.f32 %v7518_v22, %v2647_v28  ;;  %v8193_v18 = vpop.f32.mrb[15].mxu0  ;;  %v9913_v26 = vld [vmem:[#allocation4 + $0x78] sm:$0x1]  ;;  %v9921_v28 = vld [vmem:[#allocation4 + $0x20] sm:$0xff] }
 0x526   :  { %v9929_v18 = vld [vmem:[#allocation4 + $0x30] sm:$0xff] }
 0x527   :  { %v2693_v35 = vsub.f32 0.0, %v2687_v31  ;;  %v2688_v36 = vadd.f32 %v7519_v25, %v2675_v34  ;;  %v2905_v31 = vrot.slane %v9917_v27, 1  ;;  %v2907_v34 = vrot.slane %v9921_v28, 1 }
 0x529   :  { %v2699_v37 = vmul.f32 1.442695, %v2693_v35  ;;  %v2694_v24 = vsub.f32 0.0, %v2688_v36  ;;  %v2908_v35 = vsel %vm2904_vm10, %v2905_v31, %v2907_v34  ;;  %v2911_v36 = vrot.slane %v9929_v18, 1 }
 0x52a   :  { %v2652_v32 = vpop.f32.mrb[16].mxu0 }
 0x52b   :  { %8701 = vpow2.f32 %v2699_v37  ;;  %v2701_v38 = vmul.f32 1.442695, %v2694_v24  ;;  %v2676_v41 = vmul.f32 %v7518_v22, %v2652_v32  ;;  %v8196_v39 = vpop.f32.mrb[17].mxu0  ;;  %v9936_v37 = vld [vmem:[#allocation4 + $0x40] sm:$0xff] }
 0x52c   :  { %v2655_v42 = vpop.f32.mrb[18].mxu0 }
 0x52d   :  { %8703 = vpow2.f32 %v2701_v38  ;;  %v2689_v43 = vadd.f32 %v7519_v25, %v2676_v41  ;;  %v2677_v13 = vmul.f32 %v7518_v22, %v2655_v42  ;;  %v8197_v44 = vpop.f32.mrb[19].mxu0  ;;  %v2912_v38 = vsel %vm2904_vm10, %v2907_v34, %v2911_v36 }
 0x52e   :  { %v2915_v41 = vrot.slane %v9936_v37, 1  ;;  %v2913_v42 = vrot.slane %v9836_v21, 1 }
 0x52f   :  { %v2695_v46 = vsub.f32 0.0, %v2689_v43  ;;  %v2690_v47 = vadd.f32 %v7519_v25, %v2677_v13 }
 0x530   :  { %v2916_v43 = vsel %vm2904_vm10, %v2911_v36, %v2915_v41 }
 0x531   :  { %v2703_v48 = vmul.f32 1.442695, %v2695_v46  ;;  %v2696_v51 = vsub.f32 0.0, %v2690_v47  ;;  %v2993_v47 = vpop.permute.xlu0 %2992 }
 0x532   :  { %v2660_v52 = vpop.f32.mrb[20].mxu0 }
 0x533   :  { %8705 = vpow2.f32 %v2703_v48  ;;  %v2705_v55 = vmul.f32 1.442695, %v2696_v51  ;;  %v2678_v56 = vmul.f32 %v7518_v22, %v2660_v52  ;;  %v8200_v57 = vpop.f32.mrb[21].mxu0 }
 0x534   :  { %v2663_v58 = vpop.f32.mrb[22].mxu0 }
 0x535   :  { %v8702_v59 = vpop.eup %8701  ;;  %8707 = vpow2.f32 %v2705_v55  ;;  %v2691_v60 = vadd.f32 %v7519_v25, %v2678_v56  ;;  %v2679_v61 = vmul.f32 %v7518_v22, %v2663_v58  ;;  %v8201_v11 = vpop.f32.mrb[23].mxu0  ;;  %v9900_v22 = vld [vmem:[#allocation4 + $0x68] sm:$0xff]  ;;  %v9961_v55 = vld [vmem:[#allocation4 + $0x60] sm:$0xff]  ;;  %v2853_v58 = vld [vmem:[#allocation4 + $0x70] sm:$0x1] }
 0x536   :  { %v2711_v1 = vadd.f32 1.0, %v8702_v59 }
 0x537   :  { %v8704_v2 = vpop.eup %8703  ;;  %v2697_v5 = vsub.f32 0.0, %v2691_v60  ;;  %v2692_v29 = vadd.f32 %v7519_v25, %v2679_v61 }
 0x538   :  { %8709 = vrcp.f32 %v2711_v1  ;;  %v2712_v40 = vadd.f32 1.0, %v8704_v2 }
 0x539   :  { %v2707_v6 = vmul.f32 1.442695, %v2697_v5  ;;  %v2698_v7 = vsub.f32 0.0, %v2692_v29 }
 0x53a   :  { %8711 = vrcp.f32 %v2712_v40 }
 0x53b   :  { %8713 = vpow2.f32 %v2707_v6  ;;  %v2709_v8 = vmul.f32 1.442695, %v2698_v7 }
 0x53d   :  { %v8706_v19 = vpop.eup %8705  ;;  %8715 = vpow2.f32 %v2709_v8  ;;  %v3014_v8 = vadd.f32 %v2993_v47, %v9836_v21 }
 0x53e   :  { %v2713_v50 = vadd.f32 1.0, %v8706_v19  ;;  %v2841_v19 = vld [vmem:[#allocation4 + $0x10] sm:$0xfe] }
 0x53f   :  { %v8708_v62 = vpop.eup %8707 }
 0x540   :  { %v2714_v14 = vadd.f32 1.0, %v8708_v62  ;;  %8717 = vrcp.f32 %v2713_v50 }
 0x542   :  { %v8710_v53 = vpop.eup %8709  ;;  %8719 = vrcp.f32 %v2714_v14 }
 0x543   :  { %2821 = vst.msk [vmem:[#allocation4 + $0x18] sm:$0xff] %vm2748_vm9, %v8710_v53 }
 0x544   :  { %v8712_v54 = vpop.eup %8711 }
 0x545   :  { %v8714_v9 = vpop.eup %8713  ;;  %2822 = vst.msk [vmem:[#allocation4 + $0x28] sm:$0xff] %vm2748_vm9, %v8712_v54  ;;  %v2729_v49 = vpack.c.bf16 %v8712_v54, %v8710_v53 }
 0x546   :  { %v2715_v10 = vadd.f32 1.0, %v8714_v9 }
 0x547   :  { %v8716_v33 = vpop.eup %8715  ;;  %8207 = vmatmul.mubr.msk.bf16.vlgmr.msra.gmra.mrb[16].mxu1 %vm2748_vm9, %v2729_v49  ;;  %v3013_v49 = vadd.f32 %v2993_v47, %v9929_v18 }
 0x548   :  { %8721 = vrcp.f32 %v2715_v10  ;;  %v2716_v12 = vadd.f32 1.0, %v8716_v33  ;;  %8210 = vmatprep.mubr.msk.bf16.mxu1 %vm8885_vm3, %v12344_v0  ;;  %v3087_v10 = vrot.slane %v3014_v8, 1 }
 0x54a   :  { %8723 = vrcp.f32 %v2716_v12  ;;  %v9883_v30 = vld [vmem:[#allocation4 + $0x18] sm:$0xfe]  ;;  %v8718_v63 = vpop.eup %8717 }
 0x54b   :  { %2988 = vrot.lane.b32.xlu0 %v9883_v30, %s8888_s1  ;;  %v9911_v25 = vld [vmem:[#allocation4 + $0x18] sm:$0xff] }
 0x54c   :  { %v8720_v15 = vpop.eup %8719  ;;  %v9887_v16 = vld [vmem:[#allocation4 + $0x28] sm:$0xff]  ;;  %v2906_v24 = vrot.slane %v9911_v25, 1 }
 0x54d   :  { %2823 = vst.msk [vmem:[#allocation4 + $0x48] sm:$0xff] %vm2748_vm9, %v8720_v15  ;;  %2990 = vrot.lane.b32.xlu1 %v9887_v16, %s8888_s1  ;;  %v2730_v3 = vpack.c.bf16 %v8720_v15, %v8718_v63  ;;  %v2909_v32 = vrot.slane %v9887_v16, 1 }
 0x54f   :  { %8211 = vmatmul.mubr.msk.bf16.gmra.mrb[20].mxu1 %vm2748_vm9, %v2730_v3  ;;  %v2910_v39 = vsel %vm2904_vm10, %v2906_v24, %v2909_v32  ;;  %v2914_v13 = vsel %vm2904_vm10, %v2909_v32, %v2913_v42  ;;  %v3085_v3 = vrot.slane %v3013_v49, 1  ;;  %v3201_v49 = vrot.slane %v9883_v30, 2 }
 0x550   :  { %8214 = vmatprep.mubr.msk.bf16.mxu1 %vm8885_vm3, %v12344_v0 }
 0x552   :  { %v8722_v4 = vpop.eup %8721 }
 0x553   :  { %2824 = vst.msk [vmem:[#allocation4 + $0x58] sm:$0xff] %vm2748_vm9, %v8722_v4 }
 0x554   :  { %v8724_v45 = vpop.eup %8723  ;;  %v9896_v17 = vld [vmem:[#allocation4 + $0x48] sm:$0xff] }
 0x555   :  { %2994 = vrot.lane.b32.xlu1 %v9896_v17, %s8888_s1  ;;  %v2731_v20 = vpack.c.bf16 %v8724_v45, %v8722_v4  ;;  %v2917_v44 = vrot.slane %v9896_v17, 1 }
 0x557   :  { %8215 = vmatmul.mubr.msk.bf16.gmra.mrb[24].mxu1 %vm2748_vm9, %v2731_v20  ;;  %v2918_v46 = vsel %vm2904_vm10, %v2913_v42, %v2917_v44 }
 0x558   :  { %8238 = vmatprep.mubr.msk.bf16.mxu1 %vm8885_vm3, %v12344_v0 }
 0x559   :  { %2998 = vrot.lane.b32.xlu1 %v9900_v22, %s8888_s1 }
 0x55a   :  { %v9907_v23 = vld [vmem:[#allocation4 + $0x58] sm:$0xff] }
 0x55b   :  { %2996 = vrot.lane.b32.xlu0 %v9907_v23, %s8888_s1 }
 0x55d   :  { %2864 = vrot.lane.b32.xlu1 %v9911_v25, %s8888_s1 }
 0x55f   :  { %3000 = vrot.lane.b32.xlu0 %v9913_v26, %s8888_s1 }
 0x561   :  { %2868 = vrot.lane.b32.xlu1 %v9836_v21, %s8888_s1 }
 0x563   :  { %2866 = vrot.lane.b32.xlu0 %v9887_v16, %s8888_s1 }
 0x565   :  { %2927 = vrot.lane.b32.xlu1 %v2905_v31, %s8886_s27 }
 0x567   :  { %2870 = vrot.lane.b32.xlu0 %v9896_v17, %s8888_s1 }
 0x569   :  { %2931 = vrot.lane.b32.xlu1 %v2908_v35, %s8886_s27  ;;  %v9992_v35 = vld [vmem:[#allocation4 + $0x50] sm:$0xff] }
 0x56b   :  { %2929 = vrot.lane.b32.xlu0 %v2906_v24, %s8886_s27 }
 0x56d   :  { %2935 = vrot.lane.b32.xlu1 %v2912_v38, %s8886_s27 }
 0x56f   :  { %2933 = vrot.lane.b32.xlu0 %v2910_v39, %s8886_s27 }
 0x571   :  { %2939 = vrot.lane.b32.xlu1 %v2916_v43, %s8886_s27 }
 0x573   :  { %2937 = vrot.lane.b32.xlu0 %v2914_v13, %s8886_s27 }
 0x577   :  { %2941 = vrot.lane.b32.xlu0 %v2918_v46, %s8886_s27 }
 0x57b   :  { %2977 = vrot.lane.b32.xlu0 %v9900_v22, %s8888_s1 }
 0x5bd   :  { %v2989_v51 = vpop.permute.xlu0 %2988 }
 0x5be   :  { %v3010_v5 = vadd.f32 %v2989_v51, %v9883_v30  ;;  %v3009_v54 = vadd.f32 %v2989_v51, %v2841_v19  ;;  %v3206_v30 = vrot.slane %v9896_v17, 2 }
 0x5bf   :  { %v2991_v48 = vpop.permute.xlu1 %2990 }
 0x5c0   :  { %v3012_v11 = vadd.f32 %v2991_v48, %v9887_v16  ;;  %v3011_v50 = vadd.f32 %v2991_v48, %v9921_v28  ;;  %v3082_v9 = vrot.slane %v3010_v5, 1  ;;  %v3079_v15 = vrot.slane %v3009_v54, 1 }
 0x5c2   :  { %v3083_v62 = vrot.slane %v3012_v11, 1  ;;  %v3080_v33 = vrot.slane %v3011_v50, 1 }
 0x5c4   :  { %v3084_v63 = vsel %vm2904_vm10, %v3082_v9, %v3083_v62  ;;  %v3088_v4 = vsel %vm2904_vm10, %v3083_v62, %v3087_v10  ;;  %v3081_v34 = vsel %vm2904_vm10, %v3079_v15, %v3080_v33  ;;  %v3086_v32 = vsel %vm2904_vm10, %v3080_v33, %v3085_v3 }
 0x5c5   :  { %v3202_v33 = vrot.slane %v9887_v16, 2 }
 0x5c7   :  { %v2995_v52 = vpop.permute.xlu1 %2994 }
 0x5c8   :  { %v3016_v12 = vadd.f32 %v2995_v52, %v9896_v17  ;;  %v3015_v45 = vadd.f32 %v2995_v52, %v9936_v37  ;;  %v2921_v52 = vrot.slane %v9907_v23, 1 }
 0x5ca   :  { %v3091_v20 = vrot.slane %v3016_v12, 1  ;;  %v3089_v38 = vrot.slane %v3015_v45, 1 }
 0x5cb   :  { %v2999_v57 = vpop.permute.xlu1 %2998 }
 0x5cc   :  { %v9964_v59 = vadd.f32 %v2999_v57, %v9961_v55  ;;  %v9967_v60 = vadd.f32 %v2999_v57, %v9900_v22  ;;  %v3092_v43 = vsel %vm2904_vm10, %v3087_v10, %v3091_v20  ;;  %v3090_v51 = vsel %vm2904_vm10, %v3085_v3, %v3089_v38 }
 0x5cd   :  { %v2997_v56 = vpop.permute.xlu0 %2996  ;;  %v3204_v10 = vrot.slane %v9836_v21, 2  ;;  %v3203_v3 = vsel %vm3200_vm11, %v3201_v49, %v3202_v33 }
 0x5ce   :  { %v3097_v29 = vrot.slane %v9964_v59, 1  ;;  %v3099_v40 = vrot.slane %v9967_v60, 1  ;;  %v3018_v31 = vadd.f32 %v2997_v56, %v9907_v23  ;;  %v3017_v39 = vadd.f32 %v2997_v56, %v9992_v35 }
 0x5cf   :  { %v9998_v24 = vpop.permute.xlu1 %2864  ;;  %v2919_v56 = vrot.slane %v9992_v35, 1  ;;  %v3205_v15 = vsel %vm3200_vm11, %v3202_v33, %v3204_v10 }
 0x5d0   :  { %v3095_v42 = vrot.slane %v3018_v31, 1  ;;  %v3093_v47 = vrot.slane %v3017_v39, 1 }
 0x5d1   :  { %v3001_v61 = vpop.permute.xlu0 %3000  ;;  %v2920_v11 = vsel %vm2904_vm10, %v2915_v41, %v2919_v56 }
 0x5d2   :  { %v3021_v1 = vadd.f32 %v3001_v61, %v2853_v58  ;;  %v3022_v2 = vadd.f32 %v3001_v61, %v9913_v26  ;;  %v3096_v48 = vsel %vm2904_vm10, %v3091_v20, %v3095_v42  ;;  %v3094_v57 = vsel %vm2904_vm10, %v3089_v38, %v3093_v47 }
 0x5d3   :  { %v10005_v13 = vpop.permute.xlu1 %2868  ;;  %v2922_v58 = vsel %vm2904_vm10, %v2917_v44, %v2921_v52  ;;  %v2923_v44 = vrot.slane %v9961_v55, 1 }
 0x5d4   :  { %v3101_v6 = vrot.slane %v3021_v1, 1  ;;  %v3103_v7 = vrot.slane %v3022_v2, 1  ;;  %v2925_v1 = vrot.slane %v9900_v22, 1  ;;  %v3100_v2 = vsel %vm2904_vm10, %v3095_v42, %v3099_v40 }
 0x5d5   :  { %v9994_v36 = vpop.permute.xlu0 %2866  ;;  %v2924_v41 = vsel %vm2904_vm10, %v2919_v56, %v2923_v44 }
 0x5d6   :  { %v3104_v14 = vsel %vm2904_vm10, %v3099_v40, %v3103_v7  ;;  %v3102_v53 = vsel %vm2904_vm10, %v3097_v29, %v3101_v6  ;;  %v3098_v7 = vsel %vm2904_vm10, %v3093_v47, %v3097_v29  ;;  %v2926_v8 = vsel %vm2904_vm10, %v2921_v52, %v2925_v1  ;;  %v10036_v40 = vld [vmem:[#allocation4 + $0x8] sm:$0x80] }
 0x5d7   :  { %3127 = vrot.lane.b32.xlu0 %v3104_v14, %s8889_s8  ;;  %3125 = vrot.lane.b32.xlu1 %v3102_v53, %s8889_s8  ;;  %v2928_v60 = vpop.permute.xlu1 %2927 }
 0x5d9   :  { %v10007_v46 = vpop.permute.xlu0 %2870 }
 0x5db   :  { %3107 = vrot.lane.b32.xlu0 %v3084_v63, %s8889_s8  ;;  %2872 = vrot.lane.b32.xlu1 %v9907_v23, %s8888_s1  ;;  %v2932_v5 = vpop.permute.xlu1 %2931 }
 0x5dd   :  { %v2930_v61 = vpop.permute.xlu0 %2929 }
 0x5de   :  { %v2956_v19 = vsel %vm366_vm6, %v2928_v60, %v2930_v61  ;;  %v10078_v61 = vadd.f32 %v9998_v24, %v9911_v25 }
 0x5df   :  { %3111 = vrot.lane.b32.xlu0 %v3088_v4, %s8889_s8  ;;  %3105 = vrot.lane.b32.xlu1 %v3081_v34, %s8889_s8  ;;  %v2936_v50 = vpop.permute.xlu1 %2935  ;;  %v2970_v59 = vadd.f32 %v2956_v19, %v10036_v40  ;;  %v3207_v4 = vsel %vm3200_vm11, %v3204_v10, %v3206_v30 }
 0x5e1   :  { %v2934_v6 = vpop.permute.xlu0 %2933 }
 0x5e2   :  { %v2957_v14 = vsel %vm366_vm6, %v2932_v5, %v2934_v6  ;;  %v10084_v5 = vadd.f32 %v9994_v36, %v9887_v16 }
 0x5e3   :  { %3115 = vrot.lane.b32.xlu0 %v3092_v43, %s8889_s8  ;;  %3109 = vrot.lane.b32.xlu1 %v3086_v32, %s8889_s8  ;;  %v2940_v53 = vpop.permute.xlu1 %2939  ;;  %v2971_v9 = vadd.f32 %v2957_v14, %v9911_v25  ;;  %v10091_v25 = vadd.f32 %v10005_v13, %v9836_v21  ;;  %v10099_v14 = vadd.f32 %v10007_v46, %v9896_v17 }
 0x5e5   :  { %v2938_v55 = vpop.permute.xlu0 %2937 }
 0x5e6   :  { %v2958_v29 = vsel %vm366_vm6, %v2936_v50, %v2938_v55 }
 0x5e7   :  { %3119 = vrot.lane.b32.xlu0 %v3096_v48, %s8889_s8  ;;  %3113 = vrot.lane.b32.xlu1 %v3090_v51, %s8889_s8  ;;  %v2972_v62 = vadd.f32 %v2958_v29, %v9887_v16 }
 0x5e9   :  { %v2942_v54 = vpop.permute.xlu0 %2941 }
 0x5ea   :  { %v2959_v12 = vsel %vm366_vm6, %v2940_v53, %v2942_v54 }
 0x5eb   :  { %3117 = vrot.lane.b32.xlu1 %v3094_v57, %s8889_s8  ;;  %2945 = vrot.lane.b32.xlu0 %v2922_v58, %s8886_s27  ;;  %v2973_v63 = vadd.f32 %v2959_v12, %v9836_v21 }
 0x5ed   :  { %v2978_v52 = vpop.permute.xlu0 %2977 }
 0x5ef   :  { %2943 = vrot.lane.b32.xlu1 %v2920_v11, %s8886_s27  ;;  %3123 = vrot.lane.b32.xlu0 %v3100_v2, %s8889_s8 }
 0x5f3   :  { %3121 = vrot.lane.b32.xlu1 %v3098_v7, %s8889_s8  ;;  %2949 = vrot.lane.b32.xlu0 %v2926_v8, %s8886_s27 }
 0x5f7   :  { %2947 = vrot.lane.b32.xlu1 %v2924_v41, %s8886_s27  ;;  %2953 = vrot.lane.b32.xlu0 %v2925_v1, %s8886_s27 }
 0x5fb   :  { %2951 = vrot.lane.b32.xlu1 %v2923_v44, %s8886_s27  ;;  %3030 = vrot.lane.b32.xlu0 %v2970_v59, %s8887_s20 }
 0x5ff   :  { %2862 = vrot.lane.b32.xlu1 %v10036_v40, %s8888_s1  ;;  %3034 = vrot.lane.b32.xlu0 %v2972_v62, %s8887_s20 }
 0x603   :  { %3032 = vrot.lane.b32.xlu1 %v2971_v9, %s8887_s20  ;;  %3214 = vrot.lane.b32.xlu0 %v3201_v49, %s8887_s20 }
 0x607   :  { %3036 = vrot.lane.b32.xlu1 %v2973_v63, %s8887_s20  ;;  %3218 = vrot.lane.b32.xlu0 %v3205_v15, %s8887_s20 }
 0x60b   :  { %3216 = vrot.lane.b32.xlu1 %v3203_v3, %s8887_s20 }
 0x60f   :  { %3220 = vrot.lane.b32.xlu1 %v3207_v4, %s8887_s20 }
 0x61a   :  { %v2792_v45 = vpop.f32.mrb[16].mxu1 }
 0x61b   :  { %2815 = vst.msk [vmem:[#allocation6] sm:$0xff] %vm135_vm2, %v2792_v45  ;;  %v8208_v20 = vpop.f32.mrb[17].mxu1 }
 0x61c   :  { %v2795_v31 = vpop.f32.mrb[18].mxu1 }
 0x61d   :  { %2816 = vst.msk [vmem:[#allocation6 + $0x8] sm:$0xff] %vm135_vm2, %v2795_v31  ;;  %v8209_v34 = vpop.f32.mrb[19].mxu1  ;;  %v2980_v31 = vadd.f32 %v2978_v52, %v9900_v22 }
 0x622   :  { %v2800_v32 = vpop.f32.mrb[20].mxu1 }
 0x623   :  { %2817 = vst.msk [vmem:[#allocation6 + $0x10] sm:$0xff] %vm135_vm2, %v2800_v32  ;;  %v8212_v38 = vpop.f32.mrb[21].mxu1 }
 0x624   :  { %v2803_v39 = vpop.f32.mrb[22].mxu1 }
 0x625   :  { %2818 = vst.msk [vmem:[#allocation6 + $0x18] sm:$0xff] %vm135_vm2, %v2803_v39  ;;  %v8213_v42 = vpop.f32.mrb[23].mxu1 }
 0x62a   :  { %v2808_v43 = vpop.f32.mrb[24].mxu1 }
 0x62b   :  { %2819 = vst.msk [vmem:[#allocation6 + $0x20] sm:$0xff] %vm135_vm2, %v2808_v43  ;;  %v8216_v47 = vpop.f32.mrb[25].mxu1 }
 0x62c   :  { %v2811_v48 = vpop.f32.mrb[26].mxu1 }
 0x62d   :  { %2820 = vst.msk [vmem:[#allocation6 + $0x28] sm:$0xff] %vm135_vm2, %v2811_v48  ;;  %v8217_v51 = vpop.f32.mrb[27].mxu1 }
 0x62e   :  { %v3208_v51 = vrot.slane %v9907_v23, 2 }
 0x649   :  { %v3126_v56 = vpop.permute.xlu1 %3125  ;;  %v3128_v57 = vpop.permute.xlu0 %3127 }
 0x64a   :  { %v3135_v32 = vsel %vm3129_vm12, %v3126_v56, %v3128_v57  ;;  %v3209_v56 = vsel %vm3200_vm11, %v3206_v30, %v3208_v51  ;;  %v3210_v57 = vrot.slane %v9900_v22, 2  ;;  %v3212_v22 = vrot.slane %v9913_v26, 2 }
 0x64b   :  { %v3147_v47 = vadd.f32 %v3135_v32, %v2980_v31  ;;  %v2887_v31 = vadd.f32 %v9994_v36, %v9921_v28 }
 0x64d   :  { %v3108_v58 = vpop.permute.xlu0 %3107  ;;  %v10074_v60 = vpop.permute.xlu1 %2872  ;;  %v3163_v52 = vrot.slane %v3147_v47, 1 }
 0x64e   :  { %v10111_v45 = vadd.f32 %v10074_v60, %v9907_v23 }
 0x651   :  { %v3112_v11 = vpop.permute.xlu0 %3111  ;;  %v3106_v1 = vpop.permute.xlu1 %3105 }
 0x652   :  { %v3130_v2 = vsel %vm3129_vm12, %v3106_v1, %v3108_v58 }
 0x653   :  { %v3142_v44 = vadd.f32 %v3130_v2, %v10078_v61 }
 0x655   :  { %v3154_v6 = vrot.slane %v3142_v44, 1  ;;  %v3116_v7 = vpop.permute.xlu0 %3115  ;;  %v3110_v8 = vpop.permute.xlu1 %3109  ;;  %v10130_v44 = vld [vmem:[#allocation4 + $0x68] sm:$0x7f] }
 0x656   :  { %v3131_v41 = vsel %vm3129_vm12, %v3110_v8, %v3112_v11  ;;  %v8643_v8 = vld [vmem:[%s12332_s10] sm:$0xff]  }
 0x657   :  { %v3143_v19 = vadd.f32 %v3131_v41, %v10084_v5  ;;  %3165 = vrot.lane.b32.xlu0 %v3154_v6, %s8888_s1  ;;  %v8644_v41 = vld [vmem:[%s12332_s10 + $0x8] sm:$0xff]   ;;  %8219 = vmatpush3.bf16.msra.mxu0 %v8643_v8 }
 0x658   :  { %8220 = vmatprep.subr.bf16.mxu0 %v12344_v0 }
 0x659   :  { %v3155_v50 = vrot.slane %v3143_v19, 1  ;;  %v3120_v55 = vpop.permute.xlu0 %3119  ;;  %v3114_v59 = vpop.permute.xlu1 %3113 }
 0x65a   :  { %v3132_v29 = vsel %vm3129_vm12, %v3114_v59, %v3116_v7  ;;  %v3213_v7 = vsel %vm3200_vm11, %v3210_v57, %v3212_v22 }
 0x65b   :  { %v3144_v16 = vadd.f32 %v3132_v29, %v10091_v25  ;;  %v3156_v62 = vsel %vm2904_vm10, %v3154_v6, %v3155_v50  ;;  %8221 = vmatpush3.bf16.msra.mxu0 %v8644_v41 }
 0x65c   :  { %3167 = vrot.lane.b32.xlu1 %v3156_v62, %s8888_s1  ;;  %8250 = vmatprep.subr.bf16.mxu0 %v12344_v0 }
 0x65d   :  { %v3157_v53 = vrot.slane %v3144_v16, 1  ;;  %v3118_v54 = vpop.permute.xlu1 %3117  ;;  %v2946_v9 = vpop.permute.xlu0 %2945  ;;  %v2825_v16 = vld [vmem:[#allocation4] sm:$0x80] }
 0x65e   :  { %v3133_v21 = vsel %vm3129_vm12, %v3118_v54, %v3120_v55 }
 0x65f   :  { %v3145_v49 = vadd.f32 %v3133_v21, %v10099_v14  ;;  %v3158_v10 = vsel %vm2904_vm10, %v3155_v50, %v3157_v53 }
 0x660   :  { %3169 = vrot.lane.b32.xlu0 %v3158_v10, %s8888_s1 }
 0x661   :  { %v3159_v33 = vrot.slane %v3145_v49, 1  ;;  %v2944_v12 = vpop.permute.xlu1 %2943  ;;  %v3124_v3 = vpop.permute.xlu0 %3123 }
 0x662   :  { %v2960_v63 = vsel %vm366_vm6, %v2944_v12, %v2946_v9 }
 0x663   :  { %v2974_v15 = vadd.f32 %v2960_v63, %v9896_v17  ;;  %v3160_v4 = vsel %vm2904_vm10, %v3157_v53, %v3159_v33  ;;  %v3211_v17 = vsel %vm3200_vm11, %v3208_v51, %v3210_v57 }
 0x664   :  { %3171 = vrot.lane.b32.xlu1 %v3160_v4, %s8888_s1 }
 0x665   :  { %v3122_v20 = vpop.permute.xlu1 %3121  ;;  %3038 = vrot.lane.b32.xlu0 %v2974_v15, %s8887_s20  ;;  %v2950_v42 = vpop.permute.xlu0 %2949 }
 0x666   :  { %v3134_v34 = vsel %vm3129_vm12, %v3122_v20, %v3124_v3 }
 0x667   :  { %v3146_v38 = vadd.f32 %v3134_v34, %v10111_v45 }
 0x669   :  { %v3161_v39 = vrot.slane %v3146_v38, 1  ;;  %v2948_v43 = vpop.permute.xlu1 %2947  ;;  %v2954_v2 = vpop.permute.xlu0 %2953 }
 0x66a   :  { %v2961_v48 = vsel %vm366_vm6, %v2948_v43, %v2950_v42 }
 0x66b   :  { %v2975_v58 = vadd.f32 %v2961_v48, %v9907_v23  ;;  %v3162_v11 = vsel %vm2904_vm10, %v3159_v33, %v3161_v39  ;;  %v3164_v1 = vsel %vm2904_vm10, %v3161_v39, %v3163_v52  ;;  %v2885_v33 = vadd.f32 %v9998_v24, %v9917_v27 }
 0x66c   :  { %3173 = vrot.lane.b32.xlu0 %v3162_v11, %s8888_s1 }
 0x66d   :  { %3040 = vrot.lane.b32.xlu1 %v2975_v58, %s8887_s20  ;;  %v2952_v23 = vpop.permute.xlu1 %2951  ;;  %v3031_v19 = vpop.permute.xlu0 %3030 }
 0x66e   :  { %v2962_v6 = vsel %vm366_vm6, %v2952_v23, %v2954_v2 }
 0x66f   :  { %v2976_v30 = vadd.f32 %v2962_v6, %v10130_v44 }
 0x670   :  { %3222 = vrot.lane.b32.xlu0 %v3209_v56, %s8887_s20 }
 0x671   :  { %3175 = vrot.lane.b32.xlu1 %v3164_v1, %s8888_s1  ;;  %v2863_v26 = vpop.permute.xlu1 %2862  ;;  %v3035_v55 = vpop.permute.xlu0 %3034 }
 0x672   :  { %v2883_v54 = vadd.f32 %v2863_v26, %v2825_v16  ;;  %v2884_v9 = vadd.f32 %v2863_v26, %v10036_v40  ;;  %v3055_v40 = vadd.f32 %v3035_v55, %v2887_v31  ;;  %v3056_v47 = vadd.f32 %v3035_v55, %v10084_v5 }
 0x674   :  { %2874 = vrot.lane.b32.xlu0 %v10130_v44, %s8888_s1  ;;  %v3051_v10 = vadd.f32 %v3031_v19, %v2883_v54  ;;  %v3052_v12 = vadd.f32 %v3031_v19, %v2884_v9 }
 0x675   :  { %3224 = vrot.lane.b32.xlu1 %v3211_v17, %s8887_s20  ;;  %v3033_v50 = vpop.permute.xlu1 %3032  ;;  %v3215_v29 = vpop.permute.xlu0 %3214 }
 0x676   :  { %v3053_v15 = vadd.f32 %v3033_v50, %v2885_v33  ;;  %v3054_v3 = vadd.f32 %v3033_v50, %v10078_v61  ;;  %v2889_v61 = vadd.f32 %v10005_v13, %v9929_v18 }
 0x678   :  { %3177 = vrot.lane.b32.xlu0 %v3163_v52, %s8888_s1 }
 0x679   :  { %3042 = vrot.lane.b32.xlu1 %v2976_v30, %s8887_s20  ;;  %v3037_v59 = vpop.permute.xlu1 %3036  ;;  %v3219_v53 = vpop.permute.xlu0 %3218 }
 0x67a   :  { %v3057_v28 = vadd.f32 %v3037_v59, %v2889_v61  ;;  %v3058_v36 = vadd.f32 %v3037_v59, %v10091_v25  ;;  %v2891_v25 = vadd.f32 %v10007_v46, %v9936_v37 }
 0x67d   :  { %3226 = vrot.lane.b32.xlu1 %v3213_v7, %s8887_s20  ;;  %v3217_v62 = vpop.permute.xlu1 %3216 }
 0x681   :  { %v3221_v49 = vpop.permute.xlu1 %3220 }
 0x6c9   :  { %v3166_v21 = vpop.permute.xlu0 %3165 }
 0x6ca   :  { %v3186_v63 = vadd.f32 %v3166_v21, %v3051_v10  ;;  %v3187_v4 = vadd.f32 %v3166_v21, %v3052_v12  ;;  %v2893_v12 = vadd.f32 %v10074_v60, %v9992_v35  ;;  %v2837_v60 = vld [vmem:[#allocation4 + $0x60] sm:$0x7f] }
 0x6cc   :  { %v3235_v38 = vadd.f32 %v3215_v29, %v3186_v63  ;;  %v3236_v39 = vadd.f32 %v3215_v29, %v3187_v4 }
 0x6ce   :  { %v3168_v20 = vpop.permute.xlu1 %3167  ;;  %v3249_v58 = vmul.f32 0.11111111, %v3235_v38  ;;  %v3250_v52 = vmul.f32 0.11111111, %v3236_v39 }
 0x6cf   :  { %v3188_v34 = vadd.f32 %v3168_v20, %v3053_v15  ;;  %v3189_v32 = vadd.f32 %v3168_v20, %v3054_v3 }
 0x6d1   :  { %v3237_v42 = vadd.f32 %v3217_v62, %v3188_v34  ;;  %v3238_v43 = vadd.f32 %v3217_v62, %v3189_v32 }
 0x6d2   :  { %v3170_v27 = vpop.permute.xlu0 %3169 }
 0x6d3   :  { %v3251_v24 = vmul.f32 0.11111111, %v3237_v42  ;;  %v3252_v48 = vmul.f32 0.11111111, %v3238_v43  ;;  %v3190_v51 = vadd.f32 %v3170_v27, %v3055_v40  ;;  %v3191_v11 = vadd.f32 %v3170_v27, %v3056_v47 }
 0x6d5   :  { %v3263_v56 = vpack.c.bf16 %v3251_v24, %v3249_v58  ;;  %v3264_v1 = vpack.c.bf16 %v3252_v48, %v3250_v52  ;;  %v3239_v2 = vadd.f32 %v3219_v53, %v3190_v51  ;;  %v3240_v23 = vadd.f32 %v3219_v53, %v3191_v11 }
 0x6d6   :  { %v3172_v57 = vpop.permute.xlu1 %3171 }
 0x6d7   :  { %v3192_v6 = vadd.f32 %v3172_v57, %v3057_v28  ;;  %v3193_v5 = vadd.f32 %v3172_v57, %v3058_v36  ;;  %v3276_v17 = vshrl.u32 %v3263_v56, 16  ;;  %v3039_v7 = vpop.permute.xlu0 %3038  ;;  %v3279_v8 = vshll.u32 %v3263_v56, 16 }
 0x6d8   :  { %v3293_v41 = vshrl.u32 %v3264_v1, 16  ;;  %v3296_v18 = vshll.u32 %v3264_v1, 16  ;;  %v3253_v13 = vmul.f32 0.11111111, %v3239_v2  ;;  %v3254_v26 = vmul.f32 0.11111111, %v3240_v23 }
 0x6d9   :  { %v3241_v30 = vadd.f32 %v3221_v49, %v3192_v6  ;;  %v3242_v22 = vadd.f32 %v3221_v49, %v3193_v5  ;;  %v3278_v54 = vrot.slane %v3276_v17, 3  ;;  %v3281_v9 = vrot.slane %v3279_v8, 4 }
 0x6da   :  { %v3295_v62 = vrot.slane %v3293_v41, 3  ;;  %v3298_v53 = vrot.slane %v3296_v18, 4  ;;  %v3059_v63 = vadd.f32 %v3039_v7, %v2891_v25  ;;  %v3060_v15 = vadd.f32 %v3039_v7, %v10099_v14 }
 0x6db   :  { %v3255_v19 = vmul.f32 0.11111111, %v3241_v30  ;;  %v3256_v50 = vmul.f32 0.11111111, %v3242_v22  ;;  %v3282_v40 = vor.u32 %v3281_v9, %v3278_v54 }
 0x6dc   :  { %v3299_v38 = vor.u32 %v3298_v53, %v3295_v62 }
 0x6dd   :  { %v3265_v55 = vpack.c.bf16 %v3255_v19, %v3253_v13  ;;  %v3266_v59 = vpack.c.bf16 %v3256_v50, %v3254_v26 }
 0x6de   :  { %v3174_v29 = vpop.permute.xlu0 %3173 }
 0x6df   :  { %v3041_v16 = vpop.permute.xlu1 %3040  ;;  %v3284_v21 = vshrl.u32 %v3265_v55, 16  ;;  %v3287_v49 = vshll.u32 %v3265_v55, 16  ;;  %v3301_v10 = vshrl.u32 %v3266_v59, 16  ;;  %v3304_v33 = vshll.u32 %v3266_v59, 16 }
 0x6e0   :  { %v3194_v31 = vadd.f32 %v3174_v29, %v3059_v63  ;;  %v3195_v34 = vadd.f32 %v3174_v29, %v3060_v15  ;;  %v3061_v39 = vadd.f32 %v3041_v16, %v2893_v12  ;;  %v3062_v42 = vadd.f32 %v3041_v16, %v10111_v45 }
 0x6e1   :  { %v3303_v37 = vrot.slane %v3301_v10, 3  ;;  %v3306_v46 = vrot.slane %v3304_v33, 4  ;;  %v3286_v4 = vrot.slane %v3284_v21, 3  ;;  %v3289_v20 = vrot.slane %v3287_v49, 4 }
 0x6e2   :  { %v3223_v3 = vpop.permute.xlu0 %3222 }
 0x6e3   :  { %v3176_v32 = vpop.permute.xlu1 %3175  ;;  %v3307_v43 = vor.u32 %v3306_v46, %v3303_v37  ;;  %v3290_v47 = vor.u32 %v3289_v20, %v3286_v4  ;;  %v3243_v27 = vadd.f32 %v3223_v3, %v3194_v31  ;;  %v3244_v35 = vadd.f32 %v3223_v3, %v3195_v34 }
 0x6e4   :  { %v3196_v24 = vadd.f32 %v3176_v32, %v3061_v39  ;;  %v3197_v14 = vadd.f32 %v3176_v32, %v3062_v42  ;;  %v10181_v32 = vld [vmem:[#allocation5 + $0x38] sm:$0xff]  ;;  %v3507_v42 = vld [vmem:[#allocation5 + $0x10] sm:$0xff] }
 0x6e5   :  { %v3308_v48 = vsel %vm200_vm5, %v3299_v38, %v3307_v43  ;;  %v3291_v51 = vsel %vm200_vm5, %v3282_v40, %v3290_v47  ;;  %v3257_v36 = vmul.f32 0.11111111, %v3243_v27  ;;  %v3258_v56 = vmul.f32 0.11111111, %v3244_v35  ;;  %v10183_v38 = vld [vmem:[#allocation5 + $0x68] sm:$0xff]  ;;  %v10204_v35 = vld [vmem:[#allocation5 + $0x30] sm:$0xff] }
 0x6e6   :  { %3347 = vrot.lane.b32.xlu1 %v3308_v48, %s8889_s8  ;;  %3345 = vrot.lane.b32.xlu0 %v3291_v51, %s8889_s8  ;;  %v2875_v61 = vpop.permute.xlu0 %2874  ;;  %v10189_v40 = vld [vmem:[#allocation5 + $0x78] sm:$0x1] }
 0x6e7   :  { %v3225_v58 = vpop.permute.xlu1 %3224  ;;  %v2895_v11 = vadd.f32 %v2875_v61, %v2837_v60  ;;  %v2896_v45 = vadd.f32 %v2875_v61, %v10130_v44  ;;  %v10195_v39 = vld [vmem:[#allocation5 + $0x78] sm:$0x1]  ;;  %v10216_v61 = vld [vmem:[#allocation5 + $0x50] sm:$0xff] }
 0x6e8   :  { %v3245_v52 = vadd.f32 %v3225_v58, %v3196_v24  ;;  %v3246_v28 = vadd.f32 %v3225_v58, %v3197_v14  ;;  %v3590_v24 = vrot.slane %v10204_v35, 1  ;;  %v10211_v14 = vld [vmem:[#allocation5 + $0x40] sm:$0xff] }
 0x6e9   :  { %v3594_v51 = vrot.slane %v10211_v14, 1 }
 0x6ea   :  { %v3259_v57 = vmul.f32 0.11111111, %v3245_v52  ;;  %v3260_v1 = vmul.f32 0.11111111, %v3246_v28  ;;  %v3178_v41 = vpop.permute.xlu0 %3177 }
 0x6eb   :  { %v3043_v2 = vpop.permute.xlu1 %3042  ;;  %v3595_v58 = vsel %vm2904_vm10, %v3590_v24, %v3594_v51 }
 0x6ec   :  { %v3267_v23 = vpack.c.bf16 %v3259_v57, %v3257_v36  ;;  %v3268_v6 = vpack.c.bf16 %v3260_v1, %v3258_v56  ;;  %v3063_v5 = vadd.f32 %v3043_v2, %v2895_v11  ;;  %v3064_v17 = vadd.f32 %v3043_v2, %v2896_v45 }
 0x6ed   :  { %v3598_v11 = vrot.slane %v10216_v61, 1 }
 0x6ee   :  { %v3310_v30 = vshrl.u32 %v3267_v23, 16  ;;  %v3313_v22 = vshll.u32 %v3267_v23, 16  ;;  %v3319_v7 = vshrl.u32 %v3268_v6, 16  ;;  %v3322_v8 = vshll.u32 %v3268_v6, 16 }
 0x6ef   :  { %v3227_v18 = vpop.permute.xlu1 %3226  ;;  %v3198_v13 = vadd.f32 %v3178_v41, %v3063_v5  ;;  %v3199_v26 = vadd.f32 %v3178_v41, %v3064_v17  ;;  %v10223_v45 = vsel %vm2904_vm10, %v3594_v51, %v3598_v11  ;;  %v3531_v17 = vld [vmem:[#allocation5 + $0x60] sm:$0xff] }
 0x6f0   :  { %v3312_v44 = vrot.slane %v3310_v30, 3  ;;  %v3315_v19 = vrot.slane %v3313_v22, 4  ;;  %v3321_v50 = vrot.slane %v3319_v7, 3  ;;  %v3324_v25 = vrot.slane %v3322_v8, 4  ;;  %v3533_v22 = vld [vmem:[#allocation5 + $0x70] sm:$0x1] }
 0x6f1   :  { %v3247_v55 = vadd.f32 %v3227_v18, %v3198_v13  ;;  %v3248_v59 = vadd.f32 %v3227_v18, %v3199_v26 }
 0x6f2   :  { %v3325_v29 = vor.u32 %v3324_v25, %v3321_v50  ;;  %v3316_v16 = vor.u32 %v3315_v19, %v3312_v44 }
 0x6f3   :  { %v3261_v62 = vmul.f32 0.11111111, %v3247_v55  ;;  %v3262_v53 = vmul.f32 0.11111111, %v3248_v59  ;;  %v10259_v59 = vrot.slane %v3531_v17, 1 }
 0x6f4   :  { %v3326_v54 = vsel %vm200_vm5, %v3307_v43, %v3325_v29  ;;  %v3317_v9 = vsel %vm200_vm5, %v3290_v47, %v3316_v16  ;;  %v10197_v43 = vld [vmem:[#allocation5 + $0x20] sm:$0xff]  ;;  %v3584_v47 = vrot.slane %v3507_v42, 1 }
 0x6f5   :  { %v3269_v21 = vpack.c.bf16 %v3261_v62, %v3261_v62  ;;  %v3270_v49 = vpack.c.bf16 %v3262_v53, %v3262_v53  ;;  %3351 = vrot.lane.b32.xlu1 %v3326_v54, %s8889_s8  ;;  %3349 = vrot.lane.b32.xlu0 %v3317_v9, %s8889_s8  ;;  %v3586_v27 = vrot.slane %v10197_v43, 1  ;;  %v4311_v53 = vld [vmem:[#allocation5 + $0x70] sm:$0x1] }
 0x6f7   :  { %v3328_v10 = vshrl.u32 %v3269_v21, 16  ;;  %v3331_v33 = vshll.u32 %v3269_v21, 16  ;;  %v3337_v12 = vshrl.u32 %v3270_v49, 16  ;;  %v3340_v63 = vshll.u32 %v3270_v49, 16 }
 0x6f8   :  { %v3587_v60 = vsel %vm2904_vm10, %v3584_v47, %v3586_v27  ;;  %v3591_v48 = vsel %vm2904_vm10, %v3586_v27, %v3590_v24 }
 0x6f9   :  { %v3330_v15 = vrot.slane %v3328_v10, 3  ;;  %v3333_v3 = vrot.slane %v3331_v33, 4  ;;  %v3339_v37 = vrot.slane %v3337_v12, 3  ;;  %v3342_v46 = vrot.slane %v3340_v63, 4  ;;  %v7530_v63 = vld [vmem:[%s12333_s11] ss:$0 sm:$0xff] }
 0x6fb   :  { %v3343_v4 = vor.u32 %v3342_v46, %v3339_v37  ;;  %v3334_v20 = vor.u32 %v3333_v3, %v3330_v15  ;;  %v7531_v3 = vld [vmem:[%s12334_s12] ss:$0 sm:$0xff] }
 0x6fd   :  { %v3344_v31 = vsel %vm200_vm5, %v3325_v29, %v3343_v4  ;;  %v3335_v34 = vsel %vm200_vm5, %v3316_v16, %v3334_v20  ;;  %v10263_v29 = vsel %vm2904_vm10, %v3598_v11, %v10259_v59  ;;  %v10268_v16 = vrot.slane %v10183_v38, 1 }
 0x6fe   :  { %3355 = vrot.lane.b32.xlu1 %v3344_v31, %s8889_s8  ;;  %3353 = vrot.lane.b32.xlu0 %v3335_v34, %s8889_s8 }
 0x702   :  { %3670 = vrot.lane.b32.xlu0 %v10181_v32, %s8888_s1  ;;  %3676 = vrot.lane.b32.xlu1 %v10183_v38, %s8888_s1 }
 0x706   :  { %3678 = vrot.lane.b32.xlu0 %v10189_v40, %s8888_s1  ;;  %4448 = vrot.lane.b32.xlu1 %v10181_v32, %s8888_s1 }
 0x70a   :  { %4456 = vrot.lane.b32.xlu1 %v10195_v39, %s8888_s1  ;;  %4454 = vrot.lane.b32.xlu0 %v10183_v38, %s8888_s1 }
 0x70e   :  { %3606 = vrot.lane.b32.xlu1 %v3584_v47, %s8886_s27  ;;  %3548 = vrot.lane.b32.xlu0 %v10181_v32, %s8888_s1 }
 0x712   :  { %3610 = vrot.lane.b32.xlu1 %v3587_v60, %s8886_s27 }
 0x716   :  { %3614 = vrot.lane.b32.xlu1 %v3591_v48, %s8886_s27 }
 0x71a   :  { %3618 = vrot.lane.b32.xlu1 %v3595_v58, %s8886_s27 }
 0x71e   :  { %3622 = vrot.lane.b32.xlu1 %v10223_v45, %s8886_s27 }
 0x722   :  { %3655 = vrot.lane.b32.xlu1 %v10183_v38, %s8888_s1 }
 0x758   :  { %v3348_v52 = vpop.permute.xlu1 %3347  ;;  %v3346_v28 = vpop.permute.xlu0 %3345 }
 0x759   :  { %v3358_v36 = vsel %vm3129_vm12, %v3346_v28, %v3348_v52 }
 0x75a   :  { %8223 = vmatmul.mubr.msk.bf16.vlgmr.msra.gmra.mrb[24].mxu0 %vm2748_vm9, %v3358_v36 }
 0x75b   :  { %8226 = vmatprep.mubr.msk.bf16.mxu0 %vm8885_vm3, %v12344_v0 }
 0x767   :  { %v3352_v56 = vpop.permute.xlu1 %3351  ;;  %v3350_v57 = vpop.permute.xlu0 %3349 }
 0x768   :  { %v3359_v1 = vsel %vm3129_vm12, %v3350_v57, %v3352_v56 }
 0x769   :  { %8227 = vmatmul.mubr.msk.bf16.gmra.mrb[28].mxu0 %vm2748_vm9, %v3359_v1 }
 0x76a   :  { %8230 = vmatprep.mubr.msk.bf16.mxu0 %vm8885_vm3, %v12344_v0 }
 0x770   :  { %v3356_v2 = vpop.permute.xlu1 %3355  ;;  %v3354_v23 = vpop.permute.xlu0 %3353 }
 0x771   :  { %v3360_v6 = vsel %vm3129_vm12, %v3354_v23, %v3356_v2 }
 0x772   :  { %8231 = vmatmul.mubr.msk.bf16.gmra.mrb[32].mxu0 %vm2748_vm9, %v3360_v6 }
 0x773   :  { %8254 = vmatprep.mubr.msk.bf16.mxu0 %vm8885_vm3, %v12344_v0 }
 0x774   :  { %v10241_v5 = vpop.permute.xlu0 %3670  ;;  %v3677_v30 = vpop.permute.xlu1 %3676 }
 0x775   :  { %v10243_v8 = vadd.f32 %v3677_v30, %v3531_v17  ;;  %v10246_v41 = vadd.f32 %v3677_v30, %v10183_v38 }
 0x777   :  { %v12348_v26 = vrot.slane %v10243_v8, 1  ;;  %v12349_v44 = vrot.slane %v10246_v41, 1 }
 0x778   :  { %v3679_v7 = vpop.permute.xlu0 %3678  ;;  %v10280_v62 = vpop.permute.xlu1 %4448 }
 0x779   :  { %v3699_v18 = vadd.f32 %v3679_v7, %v3533_v22  ;;  %v3700_v13 = vadd.f32 %v3679_v7, %v10189_v40 }
 0x77b   :  { %v3779_v19 = vrot.slane %v3699_v18, 1  ;;  %v3781_v50 = vrot.slane %v3700_v13, 1 }
 0x77c   :  { %v10283_v54 = vpop.permute.xlu1 %4456  ;;  %v10285_v9 = vpop.permute.xlu0 %4454 }
 0x77d   :  { %v3782_v25 = vsel %vm2904_vm10, %v12349_v44, %v3781_v50  ;;  %v3780_v55 = vsel %vm2904_vm10, %v12348_v26, %v3779_v19  ;;  %v4477_v21 = vadd.f32 %v10283_v54, %v4311_v53  ;;  %v10289_v49 = vadd.f32 %v10285_v9, %v3531_v17 }
 0x77e   :  { %3805 = vrot.lane.b32.xlu1 %v3782_v25, %s8889_s8  ;;  %3803 = vrot.lane.b32.xlu0 %v3780_v55, %s8889_s8 }
 0x77f   :  { %v4557_v10 = vrot.slane %v4477_v21, 1  ;;  %v12346_v33 = vrot.slane %v10289_v49, 1 }
 0x781   :  { %v4558_v12 = vsel %vm2904_vm10, %v12346_v33, %v4557_v10 }
 0x782   :  { %3626 = vrot.lane.b32.xlu0 %v10263_v29, %s8886_s27  ;;  %3632 = vrot.lane.b32.xlu1 %v10268_v16, %s8886_s27 }
 0x786   :  { %3630 = vrot.lane.b32.xlu0 %v10259_v59, %s8886_s27  ;;  %4433 = vrot.lane.b32.xlu1 %v10183_v38, %s8888_s1 }
 0x78a   :  { %4326 = vrot.lane.b32.xlu0 %v10181_v32, %s8888_s1 }
 0x78e   :  { %4384 = vrot.lane.b32.xlu0 %v3584_v47, %s8886_s27 }
 0x792   :  { %4388 = vrot.lane.b32.xlu0 %v3587_v60, %s8886_s27 }
 0x796   :  { %4392 = vrot.lane.b32.xlu0 %v3591_v48, %s8886_s27 }
 0x79a   :  { %4396 = vrot.lane.b32.xlu0 %v3595_v58, %s8886_s27 }
 0x79e   :  { %4581 = vrot.lane.b32.xlu0 %v4558_v12, %s8889_s8 }
 0x82d   :  { %v3416_v15 = vpop.f32.mrb[24].mxu0 }
 0x82e   :  { %v3446_v37 = vmul.f32 %v7530_v63, %v3416_v15  ;;  %v8224_v46 = vpop.f32.mrb[25].mxu0 }
 0x82f   :  { %v3419_v4 = vpop.f32.mrb[26].mxu0 }
 0x830   :  { %v3459_v20 = vadd.f32 %v7531_v3, %v3446_v37  ;;  %v3447_v31 = vmul.f32 %v7530_v63, %v3419_v4  ;;  %v8225_v34 = vpop.f32.mrb[27].mxu0 }
 0x832   :  { %v3465_v42 = vsub.f32 0.0, %v3459_v20  ;;  %v3460_v47 = vadd.f32 %v7531_v3, %v3447_v31 }
 0x834   :  { %v3471_v27 = vmul.f32 1.442695, %v3465_v42  ;;  %v3466_v60 = vsub.f32 0.0, %v3460_v47  ;;  %v3592_v47 = vrot.slane %v10181_v32, 1 }
 0x836   :  { %8725 = vpow2.f32 %v3471_v27  ;;  %v3473_v24 = vmul.f32 1.442695, %v3466_v60 }
 0x838   :  { %8727 = vpow2.f32 %v3473_v24 }
 0x83c   :  { %v3424_v48 = vpop.f32.mrb[28].mxu0 }
 0x83d   :  { %v3448_v51 = vmul.f32 %v7530_v63, %v3424_v48  ;;  %v8228_v58 = vpop.f32.mrb[29].mxu0 }
 0x83e   :  { %v3427_v11 = vpop.f32.mrb[30].mxu0 }
 0x83f   :  { %v10303_v52 = vadd.f32 %v7531_v3, %v3448_v51  ;;  %v3449_v28 = vmul.f32 %v7530_v63, %v3427_v11  ;;  %v8229_v36 = vpop.f32.mrb[31].mxu0 }
 0x840   :  { %v8726_v56 = vpop.eup %8725 }
 0x841   :  { %v3462_v57 = vadd.f32 %v7531_v3, %v3449_v28  ;;  %v3483_v1 = vadd.f32 1.0, %v8726_v56 }
 0x842   :  { %v8728_v2 = vpop.eup %8727 }
 0x843   :  { %v3468_v23 = vsub.f32 0.0, %v3462_v57  ;;  %8729 = vrcp.f32 %v3483_v1  ;;  %v3484_v6 = vadd.f32 1.0, %v8728_v2 }
 0x845   :  { %v3477_v17 = vmul.f32 1.442695, %v3468_v23  ;;  %v3432_v30 = vpop.f32.mrb[32].mxu0  ;;  %8731 = vrcp.f32 %v3484_v6 }
 0x846   :  { %v3450_v22 = vmul.f32 %v7530_v63, %v3432_v30  ;;  %v8232_v7 = vpop.f32.mrb[33].mxu0 }
 0x847   :  { %8733 = vpow2.f32 %v3477_v17  ;;  %v3435_v18 = vpop.f32.mrb[34].mxu0  ;;  %v4478_v7 = vadd.f32 %v10283_v54, %v10195_v39  ;;  %v10419_v39 = vpop.permute.xlu0 %3548 }
 0x848   :  { %v3463_v13 = vadd.f32 %v7531_v3, %v3450_v22  ;;  %v3451_v19 = vmul.f32 %v7530_v63, %v3435_v18  ;;  %v8233_v50 = vpop.f32.mrb[35].mxu0  ;;  %v10406_v18 = vadd.f32 %v10285_v9, %v10183_v38 }
 0x84a   :  { %v3469_v25 = vsub.f32 0.0, %v3463_v13  ;;  %v10305_v55 = vadd.f32 %v7531_v3, %v3451_v19  ;;  %v4559_v19 = vrot.slane %v4478_v7, 1  ;;  %v12347_v50 = vrot.slane %v10406_v18, 1 }
 0x84c   :  { %v3479_v53 = vmul.f32 1.442695, %v3469_v25  ;;  %v4560_v54 = vsel %vm2904_vm10, %v12347_v50, %v4559_v19  ;;  %v3692_v19 = vadd.f32 %v10241_v5, %v10181_v32 }
 0x84d   :  { %v10307_v21 = vpop.eup %8729 }
 0x84e   :  { %12378 = vst [vmem:[#allocation7_spill] sm:$0xff] %v10307_v21  ;;  %8735 = vpow2.f32 %v3479_v53  ;;  %3501 = vst.msk [vmem:[#allocation5 + $0x18] sm:$0xff] %vm2748_vm9, %v10307_v21  ;;  %v3765_v26 = vrot.slane %v3692_v19, 1 }
 0x84f   :  { %v10311_v10 = vpop.eup %8731 }
 0x850   :  { %12379 = vst [vmem:[#allocation8_spill] sm:$0xff] %v10311_v10  ;;  %3502 = vst.msk [vmem:[#allocation5 + $0x28] sm:$0xff] %vm2748_vm9, %v10311_v10 }
 0x851   :  { %v8734_v12 = vpop.eup %8733 }
 0x852   :  { %v3486_v15 = vadd.f32 1.0, %v8734_v12 }
 0x854   :  { %8737 = vrcp.f32 %v3486_v15 }
 0x855   :  { %v10315_v63 = vld [vmem:[#allocation5 + $0x18] sm:$0xfe] }
 0x856   :  { %v10317_v37 = vld [vmem:[#allocation5 + $0x18] sm:$0xff]  ;;  %3666 = vrot.lane.b32.xlu0 %v10315_v63, %s8888_s1 }
 0x857   :  { %4279 = vst.msk [vmem:[#allocation5 + $0x18] sm:$0xff] %vm2748_vm9, %v10307_v21  ;;  %v10323_v46 = vld [vmem:[#allocation5 + $0x28] sm:$0xff]  ;;  %v3585_v20 = vrot.slane %v10317_v37, 1 }
 0x858   :  { %v8736_v3 = vpop.eup %8735  ;;  %3668 = vrot.lane.b32.xlu1 %v10323_v46, %s8888_s1  ;;  %4280 = vst.msk [vmem:[#allocation5 + $0x28] sm:$0xff] %vm2748_vm9, %v10311_v10  ;;  %v3588_v34 = vrot.slane %v10323_v46, 1 }
 0x859   :  { %v3487_v4 = vadd.f32 1.0, %v8736_v3 }
 0x85a   :  { %3544 = vrot.lane.b32.xlu0 %v10317_v37, %s8888_s1  ;;  %v3589_v27 = vsel %vm2904_vm10, %v3585_v20, %v3588_v34  ;;  %v3593_v24 = vsel %vm2904_vm10, %v3588_v34, %v3592_v47 }
 0x85b   :  { %8739 = vrcp.f32 %v3487_v4 }
 0x85c   :  { %3546 = vrot.lane.b32.xlu1 %v10323_v46, %s8888_s1 }
 0x85e   :  { %v10334_v31 = vpop.eup %8737  ;;  %3608 = vrot.lane.b32.xlu0 %v3585_v20, %s8886_s27  ;;  %v10340_v42 = vld [vmem:[#allocation5 + $0x18] sm:$0xfe] }
 0x85f   :  { %12380 = vst [vmem:[#allocation9_spill] sm:$0xff] %v10334_v31  ;;  %3503 = vst.msk [vmem:[#allocation5 + $0x48] sm:$0xff] %vm2748_vm9, %v10334_v31  ;;  %v10359_v51 = vld [vmem:[#allocation5 + $0x18] sm:$0xff]  ;;  %v10367_v11 = vld [vmem:[#allocation5 + $0x28] sm:$0xff] }
 0x860   :  { %4444 = vrot.lane.b32.xlu1 %v10340_v42, %s8888_s1  ;;  %v4363_v36 = vrot.slane %v10359_v51, 1  ;;  %v4366_v57 = vrot.slane %v10367_v11, 1 }
 0x862   :  { %3612 = vrot.lane.b32.xlu0 %v3589_v27, %s8886_s27  ;;  %v4367_v1 = vsel %vm2904_vm10, %v4363_v36, %v4366_v57  ;;  %v4371_v2 = vsel %vm2904_vm10, %v4366_v57, %v3592_v47 }
 0x865   :  { %v10347_v60 = vpop.eup %8739 }
 0x866   :  { %12381 = vst [vmem:[#allocation10_spill] sm:$0xff] %v10347_v60  ;;  %3504 = vst.msk [vmem:[#allocation5 + $0x58] sm:$0xff] %vm2748_vm9, %v10347_v60  ;;  %v10352_v48 = vld [vmem:[#allocation5 + $0x48] sm:$0xff]  ;;  %3616 = vrot.lane.b32.xlu0 %v3593_v24, %s8886_s27 }
 0x867   :  { %3672 = vrot.lane.b32.xlu1 %v10352_v48, %s8888_s1  ;;  %4281 = vst.msk [vmem:[#allocation5 + $0x48] sm:$0xff] %vm2748_vm9, %v10334_v31  ;;  %v3596_v28 = vrot.slane %v10352_v48, 1 }
 0x869   :  { %v3597_v56 = vsel %vm2904_vm10, %v3592_v47, %v3596_v28 }
 0x86a   :  { %4322 = vrot.lane.b32.xlu0 %v10359_v51, %s8888_s1 }
 0x86b   :  { %3550 = vrot.lane.b32.xlu1 %v10352_v48, %s8888_s1 }
 0x86d   :  { %v10365_v58 = vld [vmem:[#allocation5 + $0x58] sm:$0xff] }
 0x86e   :  { %4282 = vst.msk [vmem:[#allocation5 + $0x58] sm:$0xff] %vm2748_vm9, %v10347_v60  ;;  %4446 = vrot.lane.b32.xlu0 %v10367_v11, %s8888_s1  ;;  %v10389_v23 = vld [vmem:[#allocation5 + $0x48] sm:$0xff]  ;;  %v3600_v6 = vrot.slane %v10365_v58, 1 }
 0x86f   :  { %4324 = vrot.lane.b32.xlu1 %v10367_v11, %s8888_s1  ;;  %v4374_v22 = vrot.slane %v10389_v23, 1 }
 0x870   :  { %v3601_v17 = vsel %vm2904_vm10, %v3596_v28, %v3600_v6  ;;  %v3605_v30 = vsel %vm2904_vm10, %v3600_v6, %v10268_v16 }
 0x871   :  { %v4375_v13 = vsel %vm2904_vm10, %v3592_v47, %v4374_v22 }
 0x872   :  { %3620 = vrot.lane.b32.xlu0 %v3597_v56, %s8886_s27 }
 0x873   :  { %4386 = vrot.lane.b32.xlu1 %v4363_v36, %s8886_s27 }
 0x875   :  { %v10413_v25 = vld [vmem:[#allocation5 + $0x58] sm:$0xff] }
 0x876   :  { %3674 = vrot.lane.b32.xlu0 %v10365_v58, %s8888_s1  ;;  %v4378_v9 = vrot.slane %v10413_v25, 1 }
 0x877   :  { %4390 = vrot.lane.b32.xlu1 %v4367_v1, %s8886_s27 }
 0x878   :  { %v4379_v53 = vsel %vm2904_vm10, %v4374_v22, %v4378_v9  ;;  %v4383_v15 = vsel %vm2904_vm10, %v4378_v9, %v10268_v16 }
 0x87a   :  { %3552 = vrot.lane.b32.xlu0 %v10365_v58, %s8888_s1 }
 0x87b   :  { %4394 = vrot.lane.b32.xlu1 %v4371_v2, %s8886_s27 }
 0x87e   :  { %4450 = vrot.lane.b32.xlu0 %v10389_v23, %s8888_s1 }
 0x87f   :  { %4328 = vrot.lane.b32.xlu1 %v10389_v23, %s8888_s1 }
 0x882   :  { %3624 = vrot.lane.b32.xlu0 %v3601_v17, %s8886_s27 }
 0x883   :  { %3628 = vrot.lane.b32.xlu1 %v3605_v30, %s8886_s27 }
 0x886   :  { %4400 = vrot.lane.b32.xlu0 %v10223_v45, %s8886_s27  ;;  %v10427_v45 = vld [vmem:[#allocation5 + $0x8] sm:$0x80] }
 0x887   :  { %4398 = vrot.lane.b32.xlu1 %v4375_v13, %s8886_s27 }
 0x88a   :  { %4404 = vrot.lane.b32.xlu0 %v10263_v29, %s8886_s27  ;;  %v10434_v29 = vpop.permute.xlu0 %3803 }
 0x88b   :  { %4452 = vrot.lane.b32.xlu1 %v10413_v25, %s8888_s1 }
 0x88e   :  { %4408 = vrot.lane.b32.xlu0 %v10259_v59, %s8886_s27  ;;  %v3607_v59 = vpop.permute.xlu1 %3606  ;;  %v10440_v12 = vpop.permute.xlu0 %3626 }
 0x88f   :  { %4583 = vrot.lane.b32.xlu1 %v4560_v54, %s8889_s8 }
 0x892   :  { %3542 = vrot.lane.b32.xlu0 %v10427_v45, %s8888_s1  ;;  %v3611_v3 = vpop.permute.xlu1 %3610  ;;  %v10445_v4 = vpop.permute.xlu0 %3630 }
 0x893   :  { %4410 = vrot.lane.b32.xlu1 %v10268_v16, %s8886_s27 }
 0x896   :  { %4330 = vrot.lane.b32.xlu0 %v10413_v25, %s8888_s1  ;;  %v3615_v20 = vpop.permute.xlu1 %3614  ;;  %v10447_v34 = vpop.permute.xlu0 %4326 }
 0x897   :  { %4402 = vrot.lane.b32.xlu1 %v4379_v53, %s8886_s27  ;;  %v3521_v53 = vld [vmem:[#allocation5 + $0x10] sm:$0xfe] }
 0x89a   :  { %v10449_v47 = vpop.permute.xlu1 %3618  ;;  %v10451_v27 = vpop.permute.xlu0 %4384 }
 0x89b   :  { %4406 = vrot.lane.b32.xlu1 %v4383_v15, %s8886_s27 }
 0x89e   :  { %v10453_v24 = vpop.permute.xlu1 %3622  ;;  %v10455_v28 = vpop.permute.xlu0 %4388 }
 0x8a2   :  { %v10457_v36 = vpop.permute.xlu1 %3655  ;;  %v10459_v56 = vpop.permute.xlu0 %4392 }
 0x8a6   :  { %v10461_v16 = vpop.permute.xlu1 %3805  ;;  %v10463_v57 = vpop.permute.xlu0 %4396 }
 0x8aa   :  { %v10465_v1 = vpop.permute.xlu1 %3632  ;;  %v10467_v2 = vpop.permute.xlu0 %4581 }
 0x8ae   :  { %v10469_v6 = vpop.permute.xlu1 %4433 }
 0x8c8   :  { %v3667_v17 = vpop.permute.xlu0 %3666 }
 0x8c9   :  { %v3688_v30 = vadd.f32 %v3667_v17, %v10315_v63  ;;  %v3687_v44 = vadd.f32 %v3667_v17, %v3521_v53 }
 0x8ca   :  { %v3669_v22 = vpop.permute.xlu1 %3668 }
 0x8cb   :  { %v3690_v7 = vadd.f32 %v3669_v22, %v10323_v46  ;;  %v3760_v54 = vrot.slane %v3688_v30, 1  ;;  %v3689_v0 = vadd.f32 %v3669_v22, %v10197_v43  ;;  %v3691_v22 = vadd.f32 %v10241_v5, %v10204_v35 }
 0x8cc   :  { %v10473_v13 = vpop.permute.xlu0 %3544 }
 0x8cd   :  { %v3761_v9 = vrot.slane %v3690_v7, 1  ;;  %v3758_v10 = vrot.slane %v3689_v0, 1 }
 0x8ce   :  { %v10477_v15 = vpop.permute.xlu1 %3546 }
 0x8cf   :  { %v3762_v33 = vsel %vm2904_vm10, %v3760_v54, %v3761_v9  ;;  %v3766_v30 = vsel %vm2904_vm10, %v3761_v9, %v3765_v26  ;;  %v3757_v54 = vrot.slane %v3687_v44, 1 }
 0x8d0   :  { %v3609_v50 = vpop.permute.xlu0 %3608  ;;  %3785 = vrot.lane.b32.xlu0 %v3762_v33, %s8889_s8 }
 0x8d1   :  { %v3634_v60 = vsel %vm366_vm6, %v3607_v59, %v3609_v50  ;;  %v3759_v50 = vsel %vm2904_vm10, %v3757_v54, %v3758_v10  ;;  %v3763_v59 = vrot.slane %v3691_v22, 1 }
 0x8d2   :  { %v3648_v31 = vadd.f32 %v3634_v60, %v10427_v45  ;;  %v4445_v7 = vpop.permute.xlu1 %4444 }
 0x8d4   :  { %v3613_v21 = vpop.permute.xlu0 %3612  ;;  %3708 = vrot.lane.b32.xlu1 %v3648_v31, %s8887_s20  ;;  %3789 = vrot.lane.b32.xlu0 %v3766_v30, %s8889_s8 }
 0x8d5   :  { %v3635_v33 = vsel %vm366_vm6, %v3611_v3, %v3613_v21  ;;  %v3764_v21 = vsel %vm2904_vm10, %v3758_v10, %v3763_v59  ;;  %v4299_v3 = vld [vmem:[#allocation5 + $0x10] sm:$0xfe]  ;;  %v4466_v10 = vadd.f32 %v4445_v7, %v10340_v42 }
 0x8d6   :  { %v3649_v17 = vadd.f32 %v3635_v33, %v10317_v37  ;;  %v4465_v54 = vadd.f32 %v4445_v7, %v4299_v3  ;;  %v4470_v7 = vadd.f32 %v10280_v62, %v10181_v32 }
 0x8d8   :  { %v3617_v60 = vpop.permute.xlu0 %3616  ;;  %3783 = vrot.lane.b32.xlu1 %v3759_v50, %s8889_s8  ;;  %3710 = vrot.lane.b32.xlu0 %v3649_v17, %s8887_s20 }
 0x8d9   :  { %v3673_v0 = vpop.permute.xlu1 %3672  ;;  %v3636_v19 = vsel %vm366_vm6, %v3615_v20, %v3617_v60 }
 0x8da   :  { %v3694_v31 = vadd.f32 %v3673_v0, %v10352_v48  ;;  %v3693_v5 = vadd.f32 %v3673_v0, %v10211_v14  ;;  %v3650_v30 = vadd.f32 %v3636_v19, %v10323_v46  ;;  %v4469_v0 = vadd.f32 %v10280_v62, %v10204_v35 }
 0x8dc   :  { %v3769_v44 = vrot.slane %v3694_v31, 1  ;;  %v10498_v9 = vpop.permute.xlu0 %4322  ;;  %3787 = vrot.lane.b32.xlu1 %v3764_v21, %s8889_s8  ;;  %v3767_v33 = vrot.slane %v3693_v5, 1  ;;  %v4535_v31 = vrot.slane %v4465_v54, 1 }
 0x8dd   :  { %v10501_v53 = vpop.permute.xlu1 %3550 }
 0x8de   :  { %v3770_v22 = vsel %vm2904_vm10, %v3765_v26, %v3769_v44  ;;  %v3768_v5 = vsel %vm2904_vm10, %v3763_v59, %v3767_v33 }
 0x8df   :  { %3793 = vrot.lane.b32.xlu0 %v3770_v22, %s8889_s8  ;;  %v4541_v22 = vrot.slane %v4469_v0, 1 }
 0x8e0   :  { %v4447_v20 = vpop.permute.xlu0 %4446  ;;  %3712 = vrot.lane.b32.xlu1 %v3650_v30, %s8887_s20  ;;  %v4538_v30 = vrot.slane %v4466_v10, 1 }
 0x8e1   :  { %v10507_v17 = vpop.permute.xlu1 %4324  ;;  %v4467_v50 = vadd.f32 %v4447_v20, %v10197_v43  ;;  %v4468_v60 = vadd.f32 %v4447_v20, %v10367_v11  ;;  %v4543_v20 = vrot.slane %v4470_v7, 1 }
 0x8e3   :  { %v4536_v26 = vrot.slane %v4467_v50, 1  ;;  %v4539_v19 = vrot.slane %v4468_v60, 1 }
 0x8e4   :  { %v3621_v21 = vpop.permute.xlu0 %3620  ;;  %3791 = vrot.lane.b32.xlu1 %v3768_v5, %s8889_s8 }
 0x8e5   :  { %v10516_v3 = vpop.permute.xlu1 %4386  ;;  %v4537_v43 = vsel %vm2904_vm10, %v4535_v31, %v4536_v26  ;;  %v4540_v35 = vsel %vm2904_vm10, %v4538_v30, %v4539_v19  ;;  %v4542_v62 = vsel %vm2904_vm10, %v4536_v26, %v4541_v22  ;;  %v4544_v0 = vsel %vm2904_vm10, %v4539_v19, %v4543_v20 }
 0x8e6   :  { %4561 = vrot.lane.b32.xlu0 %v4537_v43, %s8889_s8 }
 0x8e8   :  { %v3675_v54 = vpop.permute.xlu0 %3674  ;;  %4563 = vrot.lane.b32.xlu1 %v4540_v35, %s8889_s8 }
 0x8e9   :  { %v10524_v59 = vpop.permute.xlu1 %4390  ;;  %v3695_v50 = vadd.f32 %v3675_v54, %v10216_v61  ;;  %v3696_v60 = vadd.f32 %v3675_v54, %v10365_v58  ;;  %v3878_v54 = vrot.slane %v10323_v46, 2 }
 0x8ea   :  { %4565 = vrot.lane.b32.xlu0 %v4542_v62, %s8889_s8  ;;  %v12383_v62 = vrot.slane %v10243_v8, 1 }
 0x8eb   :  { %v3771_v10 = vrot.slane %v3695_v50, 1  ;;  %v3773_v31 = vrot.slane %v3696_v60, 1  ;;  %v12382_v50 = vrot.slane %v10246_v41, 1 }
 0x8ec   :  { %v10531_v5 = vpop.permute.xlu0 %3552  ;;  %4567 = vrot.lane.b32.xlu1 %v4544_v0, %s8889_s8  ;;  %v3877_v0 = vrot.slane %v10315_v63, 2 }
 0x8ed   :  { %v10534_v30 = vpop.permute.xlu1 %4394  ;;  %v3774_v7 = vsel %vm2904_vm10, %v3769_v44, %v3773_v31  ;;  %v3772_v43 = vsel %vm2904_vm10, %v3767_v33, %v3771_v10  ;;  %v3778_v60 = vsel %vm2904_vm10, %v3773_v31, %v12382_v50  ;;  %v3776_v33 = vsel %vm2904_vm10, %v3771_v10, %v12383_v62 }
 0x8ee   :  { %3797 = vrot.lane.b32.xlu0 %v3774_v7, %s8889_s8  ;;  %v3637_v62 = vsel %vm366_vm6, %v10449_v47, %v3621_v21  ;;  %v3882_v47 = vrot.slane %v10352_v48, 2 }
 0x8f0   :  { %v4451_v35 = vpop.permute.xlu0 %4450  ;;  %3795 = vrot.lane.b32.xlu1 %v3772_v43, %s8889_s8 }
 0x8f1   :  { %v10540_v26 = vpop.permute.xlu1 %4328  ;;  %v4471_v19 = vadd.f32 %v4451_v35, %v10211_v14  ;;  %v4472_v44 = vadd.f32 %v4451_v35, %v10389_v23  ;;  %v3879_v14 = vsel %vm3200_vm11, %v3877_v0, %v3878_v54 }
 0x8f2   :  { %3801 = vrot.lane.b32.xlu0 %v3778_v60, %s8889_s8 }
 0x8f3   :  { %v4545_v43 = vrot.slane %v4471_v19, 1  ;;  %v4547_v41 = vrot.slane %v4472_v44, 1  ;;  %v10564_v44 = vrot.slane %v10181_v32, 2 }
 0x8f4   :  { %3799 = vrot.lane.b32.xlu1 %v3776_v33, %s8889_s8 }
 0x8f5   :  { %v3629_v7 = vpop.permute.xlu1 %3628  ;;  %v4546_v35 = vsel %vm2904_vm10, %v4541_v22, %v4545_v43  ;;  %v4548_v8 = vsel %vm2904_vm10, %v4543_v20, %v4547_v41  ;;  %v3881_v20 = vsel %vm3200_vm11, %v3878_v54, %v10564_v44 }
 0x8f6   :  { %3892 = vrot.lane.b32.xlu0 %v3879_v14, %s8887_s20 }
 0x8f8   :  { %3890 = vrot.lane.b32.xlu1 %v3877_v0, %s8887_s20  ;;  %v3625_v0 = vpop.permute.xlu0 %3624 }
 0x8f9   :  { %v4399_v31 = vpop.permute.xlu1 %4398  ;;  %v3638_v21 = vsel %vm366_vm6, %v10453_v24, %v3625_v0  ;;  %v10599_v24 = vld [vmem:[#allocation5 + $0x68] sm:$0x7f] }
 0x8fa   :  { %4569 = vrot.lane.b32.xlu0 %v4546_v35, %s8889_s8  ;;  %v3652_v54 = vadd.f32 %v3638_v21, %v10352_v48 }
 0x8fc   :  { %4571 = vrot.lane.b32.xlu1 %v4548_v8, %s8889_s8  ;;  %v3884_v8 = vrot.slane %v10365_v58, 2 }
 0x8fd   :  { %v4453_v63 = vpop.permute.xlu1 %4452 }
 0x8fe   :  { %v4473_v10 = vadd.f32 %v4453_v63, %v10216_v61  ;;  %v4474_v19 = vadd.f32 %v4453_v63, %v10413_v25  ;;  %v3651_v61 = vadd.f32 %v3637_v62, %v10181_v32  ;;  %v3883_v63 = vsel %vm3200_vm11, %v10564_v44, %v3882_v47  ;;  %v10629_v62 = vld [vmem:[#allocation5 + $0x8] sm:$0x80] }
 0x900   :  { %v4549_v50 = vrot.slane %v4473_v10, 1  ;;  %v4551_v60 = vrot.slane %v4474_v19, 1  ;;  %v3640_v10 = vsel %vm366_vm6, %v10445_v4, %v10465_v1  ;;  %v3639_v19 = vsel %vm366_vm6, %v10440_v12, %v3629_v7 }
 0x901   :  { %v3888_v12 = vrot.slane %v10189_v40, 2  ;;  %v4412_v40 = vsel %vm366_vm6, %v10451_v27, %v10516_v3  ;;  %v4415_v27 = vsel %vm366_vm6, %v10463_v57, %v4399_v31 }
 0x902   :  { %v4552_v22 = vsel %vm2904_vm10, %v4547_v41, %v4551_v60  ;;  %v4550_v33 = vsel %vm2904_vm10, %v4545_v43, %v4549_v50  ;;  %v12384_v43 = vrot.slane %v10406_v18, 1  ;;  %v12385_v41 = vrot.slane %v10289_v49, 1 }
 0x903   :  { %4575 = vrot.lane.b32.xlu1 %v4552_v22, %s8889_s8  ;;  %4573 = vrot.lane.b32.xlu0 %v4550_v33, %s8889_s8  ;;  %v3658_v49 = vadd.f32 %v10457_v36, %v10183_v38  ;;  %v3812_v18 = vsel %vm3129_vm12, %v10434_v29, %v10461_v16  ;;  %v3654_v29 = vadd.f32 %v3640_v10, %v10599_v24 }
 0x904   :  { %v4556_v14 = vsel %vm2904_vm10, %v4551_v60, %v12384_v43  ;;  %v4554_v35 = vsel %vm2904_vm10, %v4549_v50, %v12385_v41  ;;  %v3885_v50 = vsel %vm3200_vm11, %v3882_v47, %v3884_v8  ;;  %v3653_v16 = vadd.f32 %v3639_v19, %v10365_v58 }
 0x905   :  { %v10610_v36 = vadd.f32 %v3812_v18, %v3658_v49  ;;  %v10615_v60 = vrot.slane %v10183_v38, 2  ;;  %v4413_v22 = vsel %vm366_vm6, %v10455_v28, %v10524_v59  ;;  %v4426_v33 = vadd.f32 %v4412_v40, %v10629_v62  ;;  %v10653_v59 = vpop.permute.xlu0 %4400 }
 0x906   :  { %v4429_v3 = vadd.f32 %v4415_v27, %v10181_v32  ;;  %v10681_v18 = vadd.f32 %v10477_v15, %v10323_v46  ;;  %v10694_v46 = vadd.f32 %v10419_v39, %v10181_v32 }
 0x907   :  { %3894 = vrot.lane.b32.xlu1 %v3881_v20, %s8887_s20  ;;  %3714 = vrot.lane.b32.xlu0 %v3651_v61, %s8887_s20  ;;  %v3840_v4 = vrot.slane %v10610_v36, 1  ;;  %v3887_v1 = vsel %vm3200_vm11, %v3884_v8, %v10615_v60  ;;  %v3889_v7 = vsel %vm3200_vm11, %v10615_v60, %v3888_v12  ;;  %v4427_v61 = vadd.f32 %v4413_v22, %v10359_v51 }
 0x908   :  { %v4414_v20 = vsel %vm366_vm6, %v10459_v56, %v10534_v30  ;;  %v10657_v56 = vpop.permute.xlu1 %4583 }
 0x909   :  { %v4428_v28 = vadd.f32 %v4414_v20, %v10367_v11  ;;  %v10655_v0 = vpop.permute.xlu0 %4404  ;;  %v10700_v20 = vadd.f32 %v10498_v9, %v10359_v51  ;;  %v4590_v36 = vsel %vm3129_vm12, %v10467_v2, %v10657_v56 }
 0x90b   :  { %4579 = vrot.lane.b32.xlu1 %v4556_v14, %s8889_s8  ;;  %4577 = vrot.lane.b32.xlu0 %v4554_v35, %s8889_s8  ;;  %v10675_v35 = vadd.f32 %v10473_v13, %v10317_v37 }
 0x90c   :  { %v10661_v57 = vpop.permute.xlu1 %4410 }
 0x90d   :  { %v10659_v30 = vpop.permute.xlu0 %4408 }
 0x90f   :  { %3896 = vrot.lane.b32.xlu0 %v3883_v63, %s8887_s20  ;;  %3716 = vrot.lane.b32.xlu1 %v3652_v54, %s8887_s20 }
 0x910   :  { %v10665_v47 = vpop.permute.xlu1 %4402 }
 0x911   :  { %v10663_v31 = vpop.permute.xlu0 %3542 }
 0x913   :  { %3554 = vrot.lane.b32.xlu0 %v10599_v24, %s8888_s1  ;;  %3898 = vrot.lane.b32.xlu1 %v3885_v50, %s8887_s20 }
 0x914   :  { %v10669_v43 = vpop.permute.xlu1 %4406 }
 0x915   :  { %v10667_v21 = vpop.permute.xlu0 %4330 }
 0x917   :  { %3720 = vrot.lane.b32.xlu0 %v3654_v29, %s8887_s20  ;;  %3718 = vrot.lane.b32.xlu1 %v3653_v16, %s8887_s20 }
 0x91b   :  { %3854 = vrot.lane.b32.xlu0 %v3840_v4, %s8888_s1  ;;  %3900 = vrot.lane.b32.xlu1 %v3887_v1, %s8887_s20 }
 0x91f   :  { %3902 = vrot.lane.b32.xlu0 %v3889_v7, %s8887_s20  ;;  %4320 = vrot.lane.b32.xlu1 %v10629_v62, %s8888_s1 }
 0x923   :  { %4486 = vrot.lane.b32.xlu0 %v4426_v33, %s8887_s20  ;;  %4488 = vrot.lane.b32.xlu1 %v4427_v61, %s8887_s20 }
 0x927   :  { %4490 = vrot.lane.b32.xlu0 %v4428_v28, %s8887_s20  ;;  %4492 = vrot.lane.b32.xlu1 %v4429_v3, %s8887_s20 }
 0x942   :  { %v3786_v14 = vpop.permute.xlu0 %3785 }
 0x946   :  { %v10671_v41 = vpop.permute.xlu1 %3708  ;;  %v3790_v54 = vpop.permute.xlu0 %3789 }
 0x94a   :  { %v3784_v8 = vpop.permute.xlu1 %3783  ;;  %v10684_v29 = vpop.permute.xlu0 %3710 }
 0x94b   :  { %v3807_v63 = vsel %vm3129_vm12, %v3784_v8, %v3786_v14 }
 0x94c   :  { %v3819_v49 = vadd.f32 %v3807_v63, %v10675_v35  ;;  %v10708_v63 = vadd.f32 %v10507_v17, %v10367_v11 }
 0x94e   :  { %v3831_v10 = vrot.slane %v3819_v49, 1  ;;  %v3788_v19 = vpop.permute.xlu1 %3787 }
 0x94f   :  { %v3808_v50 = vsel %vm3129_vm12, %v3788_v19, %v3790_v54 }
 0x950   :  { %v3820_v16 = vadd.f32 %v3808_v50, %v10681_v18  ;;  %3842 = vrot.lane.b32.xlu0 %v3831_v10, %s8888_s1 }
 0x951   :  { %v3794_v1 = vpop.permute.xlu0 %3793 }
 0x952   :  { %v3832_v37 = vrot.slane %v3820_v16, 1  ;;  %v10688_v12 = vpop.permute.xlu1 %3712  ;;  %v10715_v16 = vadd.f32 %v10501_v53, %v10352_v48 }
 0x954   :  { %v3833_v7 = vsel %vm2904_vm10, %v3831_v10, %v3832_v37 }
 0x955   :  { %3844 = vrot.lane.b32.xlu1 %v3833_v7, %s8888_s1 }
 0x956   :  { %v3792_v40 = vpop.permute.xlu1 %3791 }
 0x957   :  { %v3809_v22 = vsel %vm3129_vm12, %v3792_v40, %v3794_v1  ;;  %v4656_v40 = vrot.slane %v10367_v11, 2 }
 0x958   :  { %v3821_v33 = vadd.f32 %v3809_v22, %v10694_v46  ;;  %v4562_v61 = vpop.permute.xlu0 %4561 }
 0x95a   :  { %v3834_v27 = vrot.slane %v3821_v33, 1  ;;  %v4564_v28 = vpop.permute.xlu1 %4563 }
 0x95b   :  { %v4585_v3 = vsel %vm3129_vm12, %v4562_v61, %v4564_v28  ;;  %v4655_v28 = vrot.slane %v10340_v42, 2 }
 0x95c   :  { %v4597_v14 = vadd.f32 %v4585_v3, %v10700_v20  ;;  %v4566_v54 = vpop.permute.xlu0 %4565  ;;  %v3835_v8 = vsel %vm2904_vm10, %v3832_v37, %v3834_v27  ;;  %v10725_v3 = vadd.f32 %v10531_v5, %v10365_v58  ;;  %v4660_v58 = vrot.slane %v10389_v23, 2 }
 0x95d   :  { %3846 = vrot.lane.b32.xlu0 %v3835_v8, %s8888_s1 }
 0x95e   :  { %v4609_v49 = vrot.slane %v4597_v14, 1  ;;  %v4568_v10 = vpop.permute.xlu1 %4567 }
 0x95f   :  { %v4586_v51 = vsel %vm3129_vm12, %v4566_v54, %v4568_v10  ;;  %v4657_v10 = vsel %vm3200_vm11, %v4655_v28, %v4656_v40 }
 0x960   :  { %v4598_v19 = vadd.f32 %v4586_v51, %v10708_v63  ;;  %v3798_v50 = vpop.permute.xlu0 %3797 }
 0x961   :  { %4620 = vrot.lane.b32.xlu0 %v4609_v49, %s8888_s1 }
 0x962   :  { %v4610_v37 = vrot.slane %v4598_v19, 1  ;;  %v3796_v1 = vpop.permute.xlu1 %3795 }
 0x963   :  { %v3810_v7 = vsel %vm3129_vm12, %v3796_v1, %v3798_v50  ;;  %v10743_v50 = vadd.f32 %v10447_v34, %v10181_v32  ;;  %v10755_v32 = vadd.f32 %v10540_v26, %v10389_v23 }
 0x964   :  { %v3822_v22 = vadd.f32 %v3810_v7, %v10715_v16  ;;  %v3802_v33 = vpop.permute.xlu0 %3801  ;;  %v4611_v61 = vsel %vm2904_vm10, %v4609_v49, %v4610_v37 }
 0x965   :  { %4622 = vrot.lane.b32.xlu1 %v4611_v61, %s8888_s1  ;;  %v4661_v61 = vsel %vm3200_vm11, %v10564_v44, %v4660_v58 }
 0x966   :  { %v3836_v48 = vrot.slane %v3822_v22, 1  ;;  %v3800_v14 = vpop.permute.xlu1 %3799 }
 0x967   :  { %v3811_v54 = vsel %vm3129_vm12, %v3800_v14, %v3802_v33  ;;  %v4659_v33 = vsel %vm3200_vm11, %v4656_v40, %v10564_v44 }
 0x968   :  { %v3823_v8 = vadd.f32 %v3811_v54, %v10725_v3  ;;  %v10729_v11 = vpop.permute.xlu0 %3892  ;;  %v3837_v49 = vsel %vm2904_vm10, %v3834_v27, %v3836_v48 }
 0x969   :  { %4670 = vrot.lane.b32.xlu1 %v4657_v10, %s8887_s20  ;;  %3848 = vrot.lane.b32.xlu0 %v3837_v49, %s8888_s1 }
 0x96a   :  { %v3838_v42 = vrot.slane %v3823_v8, 1  ;;  %v10735_v51 = vpop.permute.xlu1 %3890 }
 0x96c   :  { %v3839_v19 = vsel %vm2904_vm10, %v3836_v48, %v3838_v42  ;;  %v4570_v27 = vpop.permute.xlu0 %4569  ;;  %v4416_v48 = vsel %vm366_vm6, %v10653_v59, %v10665_v47  ;;  %v3841_v40 = vsel %vm2904_vm10, %v3838_v42, %v3840_v4  ;;  %v4436_v4 = vadd.f32 %v10469_v6, %v10183_v38 }
 0x96d   :  { %4668 = vrot.lane.b32.xlu0 %v4655_v28, %s8887_s20  ;;  %3850 = vrot.lane.b32.xlu1 %v3839_v19, %s8888_s1  ;;  %v4430_v49 = vadd.f32 %v4416_v48, %v10389_v23 }
 0x96e   :  { %v4572_v1 = vpop.permute.xlu1 %4571  ;;  %v4602_v42 = vadd.f32 %v4590_v36, %v4436_v4 }
 0x96f   :  { %v4587_v7 = vsel %vm3129_vm12, %v4570_v27, %v4572_v1  ;;  %v10786_v27 = vadd.f32 %v10667_v21, %v10413_v25 }
 0x970   :  { %v4599_v22 = vadd.f32 %v4587_v7, %v10743_v50  ;;  %v4618_v6 = vrot.slane %v4602_v42, 1 }
 0x971   :  { %4672 = vrot.lane.b32.xlu0 %v4659_v33, %s8887_s20  ;;  %4674 = vrot.lane.b32.xlu1 %v4661_v61, %s8887_s20  ;;  %v10797_v61 = vld [vmem:[#allocation5 + $0x68] sm:$0x7f] }
 0x972   :  { %v4612_v28 = vrot.slane %v4599_v22, 1 }
 0x974   :  { %v4613_v44 = vsel %vm2904_vm10, %v4610_v37, %v4612_v28  ;;  %v4417_v37 = vsel %vm366_vm6, %v10655_v0, %v10669_v43  ;;  %v4662_v43 = vrot.slane %v10413_v25, 2 }
 0x975   :  { %v4576_v14 = vpop.permute.xlu1 %4575  ;;  %v4574_v54 = vpop.permute.xlu0 %4573  ;;  %3852 = vrot.lane.b32.xlu1 %v3841_v40, %s8888_s1  ;;  %4624 = vrot.lane.b32.xlu0 %v4613_v44, %s8888_s1  ;;  %v4431_v56 = vadd.f32 %v4417_v37, %v10413_v25  ;;  %v8869_v25 = vld [vmem:[#allocation5 + $0x78] sm:$0x1] }
 0x976   :  { %v4588_v8 = vsel %vm3129_vm12, %v4574_v54, %v4576_v14  ;;  %v4665_v48 = vsel %vm3200_vm11, %v4662_v43, %v10615_v60  ;;  %v4663_v14 = vsel %vm3200_vm11, %v4660_v58, %v4662_v43  ;;  %v4666_v40 = vrot.slane %v8869_v25, 2 }
 0x977   :  { %v4600_v10 = vadd.f32 %v4588_v8, %v10755_v32 }
 0x979   :  { %v4614_v19 = vrot.slane %v4600_v10, 1  ;;  %v10769_v59 = vpop.permute.xlu1 %3894  ;;  %v10771_v47 = vpop.permute.xlu0 %3714  ;;  %4494 = vrot.lane.b32.xlu0 %v4430_v49, %s8887_s20 }
 0x97b   :  { %v4615_v23 = vsel %vm2904_vm10, %v4612_v28, %v4614_v19  ;;  %v4418_v28 = vsel %vm366_vm6, %v10659_v30, %v10661_v57  ;;  %v4667_v30 = vsel %vm3200_vm11, %v10615_v60, %v4666_v40 }
 0x97c   :  { %4626 = vrot.lane.b32.xlu1 %v4615_v23, %s8888_s1  ;;  %v4432_v44 = vadd.f32 %v4418_v28, %v10797_v61  ;;  %v3505_v23 = vld [vmem:[#allocation5] sm:$0x80] }
 0x97d   :  { %v4580_v1 = vpop.permute.xlu1 %4579  ;;  %v4578_v2 = vpop.permute.xlu0 %4577 }
 0x97e   :  { %v4589_v7 = vsel %vm3129_vm12, %v4578_v2, %v4580_v1  ;;  %v3563_v2 = vadd.f32 %v10663_v31, %v3505_v23 }
 0x97f   :  { %v4601_v38 = vadd.f32 %v4589_v7, %v10786_v27 }
 0x980   :  { %4496 = vrot.lane.b32.xlu1 %v4431_v56, %s8887_s20  ;;  %v3564_v56 = vadd.f32 %v10663_v31, %v10427_v45  ;;  %v3729_v7 = vadd.f32 %v10671_v41, %v3563_v2  ;;  %v3732_v31 = vadd.f32 %v10684_v29, %v10675_v35 }
 0x981   :  { %v4616_v0 = vrot.slane %v4601_v38, 1  ;;  %v10815_v57 = vpop.permute.xlu0 %3896  ;;  %v10817_v58 = vpop.permute.xlu1 %3716 }
 0x982   :  { %v3730_v38 = vadd.f32 %v10671_v41, %v3564_v56  ;;  %v8645_v41 = vld [vmem:[%s12335_s13] sm:$0xff]  }
 0x983   :  { %v4619_v22 = vsel %vm2904_vm10, %v4616_v0, %v4618_v6  ;;  %v4617_v33 = vsel %vm2904_vm10, %v4614_v19, %v4616_v0  ;;  %8235 = vmatpush3.bf16.msra.mxu1 %v8645_v41  ;;  %v8871_v56 = vld [vmem:[#allocation5 + $0x20] sm:$0xff] }
 0x984   :  { %4630 = vrot.lane.b32.xlu1 %v4619_v22, %s8888_s1  ;;  %4628 = vrot.lane.b32.xlu0 %v4617_v33, %s8888_s1  ;;  %v10848_v33 = vld [vmem:[#allocation5 + $0x10] sm:$0xff] }
 0x985   :  { %v10819_v54 = vpop.permute.xlu0 %3554  ;;  %v10821_v8 = vpop.permute.xlu1 %3898  ;;  %v3565_v28 = vadd.f32 %v10848_v33, %v10473_v13  ;;  %v12386_v13 = vmov 0.0  }
 0x986   :  { %8236 = vmatprep.subr.bf16.mxu1 %v12386_v13 }
 0x987   :  { %v3731_v45 = vadd.f32 %v10684_v29, %v3565_v28 }
 0x988   :  { %4678 = vrot.lane.b32.xlu1 %v4665_v48, %s8887_s20  ;;  %4676 = vrot.lane.b32.xlu0 %v4663_v14, %s8887_s20 }
 0x989   :  { %v10823_v10 = vpop.permute.xlu0 %3720  ;;  %v10825_v49 = vpop.permute.xlu1 %3718 }
 0x98c   :  { %4498 = vrot.lane.b32.xlu1 %v4432_v44, %s8887_s20  ;;  %4332 = vrot.lane.b32.xlu0 %v10797_v61, %s8888_s1 }
 0x98d   :  { %v10827_v19 = vpop.permute.xlu0 %3854  ;;  %v10829_v36 = vpop.permute.xlu1 %3900 }
 0x990   :  { %4632 = vrot.lane.b32.xlu0 %v4618_v6, %s8888_s1  ;;  %4680 = vrot.lane.b32.xlu1 %v4667_v30, %s8887_s20 }
 0x991   :  { %v10831_v60 = vpop.permute.xlu0 %3902  ;;  %v10833_v4 = vpop.permute.xlu1 %4320 }
 0x995   :  { %v10835_v37 = vpop.permute.xlu0 %4486  ;;  %v10837_v42 = vpop.permute.xlu1 %4488 }
 0x999   :  { %v10839_v1 = vpop.permute.xlu0 %4490  ;;  %v10846_v0 = vpop.permute.xlu1 %4492 }
 0x9c2   :  { %v3843_v6 = vpop.permute.xlu0 %3842 }
 0x9c3   :  { %v3863_v43 = vadd.f32 %v3843_v6, %v3729_v7  ;;  %v3864_v22 = vadd.f32 %v3843_v6, %v3730_v38  ;;  %v3567_v7 = vadd.f32 %v8871_v56, %v10477_v15  ;;  %v3734_v6 = vadd.f32 %v10688_v12, %v10681_v18 }
 0x9c5   :  { %v3911_v48 = vadd.f32 %v10735_v51, %v3863_v43  ;;  %v3912_v14 = vadd.f32 %v10735_v51, %v3864_v22  ;;  %v3733_v38 = vadd.f32 %v10688_v12, %v3567_v7 }
 0x9c7   :  { %v3925_v25 = vmul.f32 0.11111111, %v3911_v48  ;;  %v3845_v40 = vpop.permute.xlu1 %3844  ;;  %v3926_v23 = vmul.f32 0.11111111, %v3912_v14 }
 0x9c8   :  { %v3865_v44 = vadd.f32 %v3845_v40, %v3731_v45  ;;  %v3866_v30 = vadd.f32 %v3845_v40, %v3732_v31 }
 0x9c9   :  { %v3954_v43 = vrot.slane %v3925_v25, 7  ;;  %v3957_v22 = vrot.slane %v3926_v23, 7 }
 0x9ca   :  { %v3913_v2 = vadd.f32 %v10729_v11, %v3865_v44  ;;  %v3914_v51 = vadd.f32 %v10729_v11, %v3866_v30  ;;  %v8646_v11 = vld [vmem:[%s12335_s13 + $0x8] sm:$0xff]  }
 0x9cb   :  { %8237 = vmatpush3.bf16.msra.mxu1 %v8646_v11  ;;  %v4342_v11 = vadd.f32 %v10833_v4, %v10629_v62 }
 0x9cc   :  { %v3927_v35 = vmul.f32 0.11111111, %v3913_v2  ;;  %v3928_v29 = vmul.f32 0.11111111, %v3914_v51  ;;  %8266 = vmatprep.subr.bf16.mxu1 %v12386_v13  ;;  %v10880_v51 = vld [vmem:[#allocation5 + $0x30] sm:$0xff] }
 0x9cd   :  { %v3569_v7 = vadd.f32 %v10880_v51, %v10419_v39  ;;  %v3736_v39 = vadd.f32 %v10771_v47, %v10694_v46  ;;  %v4343_v46 = vadd.f32 %v10848_v33, %v10498_v9  ;;  %v4508_v9 = vadd.f32 %v10835_v37, %v4342_v11 }
 0x9ce   :  { %v3955_v28 = vrot.slane %v3927_v35, 7  ;;  %v3958_v48 = vrot.slane %v3928_v29, 7  ;;  %v3517_v35 = vld [vmem:[#allocation5 + $0x60] sm:$0x7f]  ;;  %v4283_v29 = vld [vmem:[#allocation5] sm:$0x80] }
 0x9cf   :  { %v3847_v14 = vpop.permute.xlu0 %3846 }
 0x9d0   :  { %v3867_v45 = vadd.f32 %v3847_v14, %v3733_v38  ;;  %v3868_v31 = vadd.f32 %v3847_v14, %v3734_v6  ;;  %v3959_v15 = vsel %vm3953_vm13, %v3957_v22, %v3958_v48  ;;  %v3956_v41 = vsel %vm3953_vm13, %v3954_v43, %v3955_v28  ;;  %v10888_v6 = vld [vmem:[#allocation5 + $0x40] sm:$0xff] }
 0x9d1   :  { %3982 = vrot.lane.b32.xlu1 %v3959_v15, %s8889_s8  ;;  %3980 = vrot.lane.b32.xlu0 %v3956_v41, %s8889_s8  ;;  %v3571_v43 = vadd.f32 %v10888_v6, %v10501_v53  ;;  %v3735_v22 = vadd.f32 %v10771_v47, %v3569_v7  ;;  %v3575_v14 = vadd.f32 %v10819_v54, %v3517_v35  ;;  %v10901_v15 = vld [vmem:[#allocation5 + $0x50] sm:$0xff] }
 0x9d2   :  { %v3915_v18 = vadd.f32 %v10769_v59, %v3867_v45  ;;  %v3916_v12 = vadd.f32 %v10769_v59, %v3868_v31  ;;  %v3573_v53 = vadd.f32 %v10901_v15, %v10531_v5  ;;  %v4345_v47 = vadd.f32 %v8871_v56, %v10507_v17 }
 0x9d3   :  { %v4621_v23 = vpop.permute.xlu0 %4620  ;;  %v3741_v5 = vadd.f32 %v10823_v10, %v3575_v14 }
 0x9d4   :  { %v10877_v25 = vmul.f32 0.11111111, %v3915_v18  ;;  %v3930_v40 = vmul.f32 0.11111111, %v3916_v12  ;;  %v3739_v62 = vadd.f32 %v10825_v49, %v3573_v53 }
 0x9d6   :  { %v3960_v44 = vrot.slane %v10877_v25, 7  ;;  %v3962_v30 = vrot.slane %v3930_v40, 7 }
 0x9d7   :  { %v4623_v2 = vpop.permute.xlu1 %4622 }
 0x9d8   :  { %v3963_v59 = vsel %vm3953_vm13, %v3958_v48, %v3962_v30  ;;  %v3961_v38 = vsel %vm3953_vm13, %v3955_v28, %v3960_v44  ;;  %v3576_v48 = vadd.f32 %v10819_v54, %v10599_v24  ;;  %v4341_v28 = vadd.f32 %v10833_v4, %v4283_v29 }
 0x9d9   :  { %3986 = vrot.lane.b32.xlu1 %v3963_v59, %s8889_s8  ;;  %3984 = vrot.lane.b32.xlu0 %v3961_v38, %s8889_s8  ;;  %v3737_v24 = vadd.f32 %v10817_v58, %v3571_v43  ;;  %v3738_v54 = vadd.f32 %v10817_v58, %v10715_v16  ;;  %v4509_v58 = vadd.f32 %v10837_v42, %v4343_v46 }
 0x9da   :  { %v3742_v25 = vadd.f32 %v10823_v10, %v3576_v48  ;;  %v4507_v40 = vadd.f32 %v10835_v37, %v4341_v28  ;;  %v4510_v29 = vadd.f32 %v10837_v42, %v10700_v20  ;;  %v4642_v59 = vadd.f32 %v4621_v23, %v4508_v9 }
 0x9db   :  { %v4671_v45 = vpop.permute.xlu1 %4670  ;;  %v3849_v31 = vpop.permute.xlu0 %3848  ;;  %v4643_v37 = vadd.f32 %v4623_v2, %v4509_v58  ;;  %v3740_v42 = vadd.f32 %v10825_v49, %v10725_v3  ;;  %v4511_v46 = vadd.f32 %v10839_v1, %v4345_v47  ;;  %v4347_v47 = vadd.f32 %v10880_v51, %v10447_v34 }
 0x9dc   :  { %v3869_v41 = vadd.f32 %v3849_v31, %v3735_v22  ;;  %v3870_v18 = vadd.f32 %v3849_v31, %v3736_v39  ;;  %v4644_v39 = vadd.f32 %v4623_v2, %v4510_v29  ;;  %v3876_v2 = vadd.f32 %v10827_v19, %v3742_v25 }
 0x9de   :  { %v3917_v4 = vadd.f32 %v10815_v57, %v3869_v41  ;;  %v3918_v12 = vadd.f32 %v10815_v57, %v3870_v18  ;;  %v4641_v57 = vadd.f32 %v4621_v23, %v4507_v40  ;;  %v4691_v23 = vadd.f32 %v4671_v45, %v4643_v37 }
 0x9df   :  { %v3851_v17 = vpop.permute.xlu1 %3850  ;;  %v4669_v33 = vpop.permute.xlu0 %4668  ;;  %v4692_v18 = vadd.f32 %v4671_v45, %v4644_v39 }
 0x9e0   :  { %v3931_v56 = vmul.f32 0.11111111, %v3917_v4  ;;  %v3932_v7 = vmul.f32 0.11111111, %v3918_v12  ;;  %v3871_v35 = vadd.f32 %v3851_v17, %v3737_v24  ;;  %v3872_v16 = vadd.f32 %v3851_v17, %v3738_v54 }
 0x9e1   :  { %v4689_v14 = vadd.f32 %v4669_v33, %v4641_v57  ;;  %v4690_v48 = vadd.f32 %v4669_v33, %v4642_v59  ;;  %v3924_v12 = vadd.f32 %v10831_v60, %v3876_v2  ;;  %v4706_v17 = vmul.f32 0.11111111, %v4692_v18 }
 0x9e2   :  { %v3964_v38 = vrot.slane %v3931_v56, 7  ;;  %v3966_v43 = vrot.slane %v3932_v7, 7  ;;  %v3919_v10 = vadd.f32 %v10821_v8, %v3871_v35  ;;  %v3920_v22 = vadd.f32 %v10821_v8, %v3872_v16 }
 0x9e3   :  { %v4675_v28 = vpop.permute.xlu1 %4674  ;;  %v4673_v11 = vpop.permute.xlu0 %4672  ;;  %v3875_v8 = vadd.f32 %v10827_v19, %v3741_v5  ;;  %v4703_v54 = vmul.f32 0.11111111, %v4689_v14  ;;  %v4704_v4 = vmul.f32 0.11111111, %v4690_v48  ;;  %v4705_v5 = vmul.f32 0.11111111, %v4691_v23 }
 0x9e4   :  { %v3933_v31 = vmul.f32 0.11111111, %v3919_v10  ;;  %v3934_v53 = vmul.f32 0.11111111, %v3920_v22  ;;  %v3967_v41 = vsel %vm3953_vm13, %v3962_v30, %v3966_v43  ;;  %v3965_v20 = vsel %vm3953_vm13, %v3960_v44, %v3964_v38 }
 0x9e5   :  { %3990 = vrot.lane.b32.xlu1 %v3967_v41, %s8889_s8  ;;  %3988 = vrot.lane.b32.xlu0 %v3965_v20, %s8889_s8  ;;  %v4512_v30 = vadd.f32 %v10839_v1, %v10708_v63  ;;  %v3923_v45 = vadd.f32 %v10831_v60, %v3875_v8  ;;  %v4717_v33 = vpack.c.bf16 %v4705_v5, %v4703_v54  ;;  %v3938_v51 = vmul.f32 0.11111111, %v3924_v12 }
 0x9e6   :  { %v3968_v24 = vrot.slane %v3933_v31, 7  ;;  %v3970_v44 = vrot.slane %v3934_v53, 7  ;;  %v4718_v56 = vpack.c.bf16 %v4706_v17, %v4704_v4  ;;  %v4513_v60 = vadd.f32 %v10846_v0, %v4347_v47 }
 0x9e7   :  { %v3853_v3 = vpop.permute.xlu1 %3852  ;;  %v4625_v49 = vpop.permute.xlu0 %4624  ;;  %v3937_v34 = vmul.f32 0.11111111, %v3923_v45  ;;  %v4349_v22 = vadd.f32 %v10888_v6, %v10540_v26  ;;  %v4731_v37 = vshrl.u32 %v4717_v33, 16  ;;  %v4351_v26 = vadd.f32 %v10901_v15, %v10667_v21 }
 0x9e8   :  { %v3873_v40 = vadd.f32 %v3853_v3, %v3739_v62  ;;  %v3874_v9 = vadd.f32 %v3853_v3, %v3740_v42  ;;  %v4645_v19 = vadd.f32 %v4625_v49, %v4511_v46  ;;  %v4646_v25 = vadd.f32 %v4625_v49, %v4512_v30 }
 0x9e9   :  { %v3971_v7 = vsel %vm3953_vm13, %v3966_v43, %v3970_v44  ;;  %v3969_v35 = vsel %vm3953_vm13, %v3964_v38, %v3968_v24  ;;  %v4514_v62 = vadd.f32 %v10846_v0, %v10743_v50  ;;  %v4734_v50 = vshll.u32 %v4717_v33, 16 }
 0x9ea   :  { %v3921_v63 = vadd.f32 %v10829_v36, %v3873_v40  ;;  %v3922_v1 = vadd.f32 %v10829_v36, %v3874_v9  ;;  %3994 = vrot.lane.b32.xlu1 %v3971_v7, %s8889_s8  ;;  %3992 = vrot.lane.b32.xlu0 %v3969_v35, %s8889_s8  ;;  %v4693_v36 = vadd.f32 %v4673_v11, %v4645_v19  ;;  %v4748_v0 = vshrl.u32 %v4718_v56, 16 }
 0x9eb   :  { %v4694_v29 = vadd.f32 %v4673_v11, %v4646_v25  ;;  %v4495_v39 = vpop.permute.xlu0 %4494  ;;  %v3976_v41 = vrot.slane %v3937_v34, 7  ;;  %v3978_v11 = vrot.slane %v3938_v51, 7  ;;  %v4751_v20 = vshll.u32 %v4718_v56, 16 }
 0x9ec   :  { %v3935_v16 = vmul.f32 0.11111111, %v3921_v63  ;;  %v3936_v58 = vmul.f32 0.11111111, %v3922_v1  ;;  %v4707_v42 = vmul.f32 0.11111111, %v4693_v36  ;;  %v4515_v30 = vadd.f32 %v4495_v39, %v4349_v22 }
 0x9ed   :  { %v4708_v6 = vmul.f32 0.11111111, %v4694_v29  ;;  %v4736_v2 = vrot.slane %v4734_v50, 4  ;;  %v4750_v46 = vrot.slane %v4748_v0, 3  ;;  %v4753_v3 = vrot.slane %v4751_v20, 4 }
 0x9ee   :  { %v4627_v57 = vpop.permute.xlu1 %4626  ;;  %v3972_v59 = vrot.slane %v3935_v16, 7  ;;  %v3974_v43 = vrot.slane %v3936_v58, 7  ;;  %v4516_v49 = vadd.f32 %v4495_v39, %v10755_v32  ;;  %v4295_v29 = vld [vmem:[#allocation5 + $0x60] sm:$0x7f] }
 0x9ef   :  { %v4647_v10 = vadd.f32 %v4627_v57, %v4513_v60  ;;  %v4648_v38 = vadd.f32 %v4627_v57, %v4514_v62  ;;  %v4754_v58 = vor.u32 %v4753_v3, %v4750_v46 }
 0x9f0   :  { %v3975_v31 = vsel %vm3953_vm13, %v3970_v44, %v3974_v43  ;;  %v3973_v53 = vsel %vm3953_vm13, %v3968_v24, %v3972_v59  ;;  %v3979_v54 = vsel %vm3953_vm13, %v3974_v43, %v3978_v11  ;;  %v3977_v4 = vsel %vm3953_vm13, %v3972_v59, %v3976_v41 }
 0x9f1   :  { %v4695_v14 = vadd.f32 %v4675_v28, %v4647_v10  ;;  %v4696_v48 = vadd.f32 %v4675_v28, %v4648_v38  ;;  %3998 = vrot.lane.b32.xlu1 %v3975_v31, %s8889_s8  ;;  %3996 = vrot.lane.b32.xlu0 %v3973_v53, %s8889_s8  ;;  %v4733_v28 = vrot.slane %v4731_v37, 3 }
 0x9f2   :  { %v4497_v23 = vpop.permute.xlu1 %4496 }
 0x9f3   :  { %v4709_v18 = vmul.f32 0.11111111, %v4695_v14  ;;  %v4710_v8 = vmul.f32 0.11111111, %v4696_v48  ;;  %v4517_v45 = vadd.f32 %v4497_v23, %v4351_v26  ;;  %v4518_v12 = vadd.f32 %v4497_v23, %v10786_v27 }
 0x9f4   :  { %v4737_v51 = vor.u32 %v4736_v2, %v4733_v28 }
 0x9f5   :  { %v4719_v24 = vpack.c.bf16 %v4709_v18, %v4707_v42  ;;  %v4720_v44 = vpack.c.bf16 %v4710_v8, %v4708_v6  ;;  %4002 = vrot.lane.b32.xlu1 %v3979_v54, %s8889_s8  ;;  %4000 = vrot.lane.b32.xlu0 %v3977_v4, %s8889_s8 }
 0x9f6   :  { %v4631_v21 = vpop.permute.xlu1 %4630  ;;  %v4629_v15 = vpop.permute.xlu0 %4628 }
 0x9f7   :  { %v4739_v40 = vshrl.u32 %v4719_v24, 16  ;;  %v4742_v9 = vshll.u32 %v4719_v24, 16  ;;  %v4756_v5 = vshrl.u32 %v4720_v44, 16  ;;  %v4759_v17 = vshll.u32 %v4720_v44, 16 }
 0x9f8   :  { %v4651_v19 = vadd.f32 %v4631_v21, %v4517_v45  ;;  %v4652_v25 = vadd.f32 %v4631_v21, %v4518_v12  ;;  %v4649_v47 = vadd.f32 %v4629_v15, %v4515_v30  ;;  %v4650_v63 = vadd.f32 %v4629_v15, %v4516_v49 }
 0x9f9   :  { %v4758_v1 = vrot.slane %v4756_v5, 3  ;;  %v4761_v33 = vrot.slane %v4759_v17, 4  ;;  %v4741_v32 = vrot.slane %v4739_v40, 3  ;;  %v4744_v56 = vrot.slane %v4742_v9, 4 }
 0x9fa   :  { %v4679_v7 = vpop.permute.xlu1 %4678  ;;  %v4677_v27 = vpop.permute.xlu0 %4676 }
 0x9fb   :  { %v4699_v35 = vadd.f32 %v4679_v7, %v4651_v19  ;;  %v4700_v60 = vadd.f32 %v4679_v7, %v4652_v25  ;;  %v4697_v62 = vadd.f32 %v4677_v27, %v4649_v47  ;;  %v4698_v16 = vadd.f32 %v4677_v27, %v4650_v63  ;;  %v10982_v7 = vld [vmem:[#allocation4 + $0x78] sm:$0x1] }
 0x9fc   :  { %v4762_v34 = vor.u32 %v4761_v33, %v4758_v1  ;;  %v4745_v36 = vor.u32 %v4744_v56, %v4741_v32  ;;  %v10974_v32 = vld [vmem:[#allocation4 + $0x38] sm:$0xff]  ;;  %v10976_v56 = vld [vmem:[#allocation4 + $0x68] sm:$0xff] }
 0x9fd   :  { %v4713_v57 = vmul.f32 0.11111111, %v4699_v35  ;;  %v4714_v59 = vmul.f32 0.11111111, %v4700_v60  ;;  %v4711_v43 = vmul.f32 0.11111111, %v4697_v62 }
 0x9fe   :  { %v4712_v10 = vmul.f32 0.11111111, %v4698_v16  ;;  %v4499_v38 = vpop.permute.xlu1 %4498  ;;  %v4763_v22 = vsel %vm200_vm5, %v4754_v58, %v4762_v34  ;;  %v4746_v37 = vsel %vm200_vm5, %v4737_v51, %v4745_v36  ;;  %v4333_v50 = vpop.permute.xlu0 %4332  ;;  %v10988_v27 = vld [vmem:[#allocation4 + $0x78] sm:$0x1]  ;;  %v3467_v35 = vsub.f32 0.0, %v10303_v52  ;;  %v8647_v52 = vld [vmem:[%s12332_s10 + $0x10] sm:$0xff]  }
 0x9ff   :  { %v4721_v0 = vpack.c.bf16 %v4713_v57, %v4711_v43  ;;  %4802 = vrot.lane.b32.xlu1 %v4763_v22, %s8889_s8  ;;  %4800 = vrot.lane.b32.xlu0 %v4746_v37, %s8889_s8  ;;  %v4353_v39 = vadd.f32 %v4333_v50, %v4295_v29  ;;  %v4354_v14 = vadd.f32 %v4333_v50, %v10797_v61  ;;  %v3470_v62 = vsub.f32 0.0, %v10305_v55  ;;  %v8648_v50 = vld [vmem:[%s12332_s10 + $0x18] sm:$0xff]  }
 0xa00   :  { %v4722_v48 = vpack.c.bf16 %v4714_v59, %v4712_v10  ;;  %v3475_v60 = vmul.f32 1.442695, %v3467_v35  ;;  %v12387_v59 = vld [vmem:[#allocation7_spill] sm:$0xff]  ;;  %v12388_v10 = vld [vmem:[#allocation8_spill] sm:$0xff] }
 0xa01   :  { %v4765_v31 = vshrl.u32 %v4721_v0, 16  ;;  %v4768_v53 = vshll.u32 %v4721_v0, 16  ;;  %v4519_v41 = vadd.f32 %v4499_v38, %v4353_v39  ;;  %v4520_v11 = vadd.f32 %v4499_v38, %v4354_v14 }
 0xa02   :  { %v4774_v20 = vshrl.u32 %v4722_v48, 16  ;;  %v4777_v42 = vshll.u32 %v4722_v48, 16  ;;  %v4633_v23 = vpop.permute.xlu0 %4632  ;;  %v4681_v26 = vpop.permute.xlu1 %4680  ;;  %8741 = vpow2.f32 %v3475_v60  ;;  %v11054_v60 = vld [vmem:[#allocation4 + $0x40] sm:$0xff] }
 0xa03   :  { %v4767_v6 = vrot.slane %v4765_v31, 3  ;;  %v4770_v18 = vrot.slane %v4768_v53, 4  ;;  %v4653_v8 = vadd.f32 %v4633_v23, %v4519_v41  ;;  %v4654_v28 = vadd.f32 %v4633_v23, %v4520_v11  ;;  %v12389_v23 = vld [vmem:[#allocation9_spill] sm:$0xff] }
 0xa04   :  { %v4776_v2 = vrot.slane %v4774_v20, 3  ;;  %v4779_v46 = vrot.slane %v4777_v42, 4 }
 0xa05   :  { %v4701_v30 = vadd.f32 %v4681_v26, %v4653_v8  ;;  %v4702_v24 = vadd.f32 %v4681_v26, %v4654_v28  ;;  %v4771_v44 = vor.u32 %v4770_v18, %v4767_v6 }
 0xa06   :  { %v4780_v54 = vor.u32 %v4779_v46, %v4776_v2 }
 0xa07   :  { %v4715_v61 = vmul.f32 0.11111111, %v4701_v30  ;;  %v4716_v4 = vmul.f32 0.11111111, %v4702_v24  ;;  %v4772_v3 = vsel %vm200_vm5, %v4745_v36, %v4771_v44 }
 0xa08   :  { %v4781_v49 = vsel %vm200_vm5, %v4762_v34, %v4780_v54  ;;  %4804 = vrot.lane.b32.xlu0 %v4772_v3, %s8889_s8  ;;  %v3481_v34 = vmul.f32 1.442695, %v3470_v62  ;;  %v5050_v62 = vrot.slane %v11054_v60, 1 }
 0xa09   :  { %v4723_v45 = vpack.c.bf16 %v4715_v61, %v4715_v61  ;;  %v4724_v12 = vpack.c.bf16 %v4716_v4, %v4716_v4  ;;  %4806 = vrot.lane.b32.xlu1 %v4781_v49, %s8889_s8 }
 0xa0a   :  { %8743 = vpow2.f32 %v3481_v34  ;;  %v8649_v34 = vld [vmem:[%s12329_s16 + $0x10] sm:$0xff]  }
 0xa0b   :  { %v4783_v21 = vshrl.u32 %v4723_v45, 16  ;;  %v4786_v15 = vshll.u32 %v4723_v45, 16  ;;  %v4792_v40 = vshrl.u32 %v4724_v12, 16  ;;  %v4795_v9 = vshll.u32 %v4724_v12, 16  ;;  %8251 = vmatpush3.bf16.msra.mxu0 %v8649_v34 }
 0xa0c   :  { %v8742_v22 = vpop.eup %8741  ;;  %8252 = vmatprep.subr.bf16.mxu0 %v12386_v13 }
 0xa0d   :  { %v4785_v5 = vrot.slane %v4783_v21, 3  ;;  %v4788_v17 = vrot.slane %v4786_v15, 4  ;;  %v4794_v19 = vrot.slane %v4792_v40, 3  ;;  %v4797_v25 = vrot.slane %v4795_v9, 4 }
 0xa0e   :  { %v3485_v37 = vadd.f32 1.0, %v8742_v22  ;;  %v4989_v22 = vld [vmem:[#allocation4 + $0x70] sm:$0x1] }
 0xa0f   :  { %v4798_v47 = vor.u32 %v4797_v25, %v4794_v19  ;;  %v4789_v63 = vor.u32 %v4788_v17, %v4785_v5  ;;  %v4963_v17 = vld [vmem:[#allocation4 + $0x10] sm:$0xff]  ;;  %v11044_v25 = vld [vmem:[#allocation4 + $0x20] sm:$0xff] }
 0xa10   :  { %8745 = vrcp.f32 %v3485_v37  ;;  %v5040_v19 = vrot.slane %v4963_v17, 1 }
 0xa11   :  { %v4799_v1 = vsel %vm200_vm5, %v4780_v54, %v4798_v47  ;;  %v4790_v33 = vsel %vm200_vm5, %v4771_v44, %v4789_v63  ;;  %v12390_v44 = vld [vmem:[#allocation10_spill] sm:$0xff]  ;;  %v5042_v47 = vrot.slane %v11044_v25, 1 }
 0xa12   :  { %4810 = vrot.lane.b32.xlu1 %v4799_v1, %s8889_s8  ;;  %4808 = vrot.lane.b32.xlu0 %v4790_v33, %s8889_s8  ;;  %v11049_v1 = vld [vmem:[#allocation4 + $0x30] sm:$0xff] }
 0xa13   :  { %v5043_v63 = vsel %vm2904_vm10, %v5040_v19, %v5042_v47  ;;  %v5046_v33 = vrot.slane %v11049_v1, 1 }
 0xa14   :  { %v8744_v0 = vpop.eup %8743 }
 0xa15   :  { %v3488_v48 = vadd.f32 1.0, %v8744_v0  ;;  %v5047_v35 = vsel %vm2904_vm10, %v5042_v47, %v5046_v33 }
 0xa16   :  { %5126 = vrot.lane.b32.xlu0 %v10974_v32, %s8888_s1  ;;  %5132 = vrot.lane.b32.xlu1 %v10976_v56, %s8888_s1 }
 0xa17   :  { %8747 = vrcp.f32 %v3488_v48 }
 0xa1a   :  { %5134 = vrot.lane.b32.xlu0 %v10982_v7, %s8888_s1  ;;  %5906 = vrot.lane.b32.xlu1 %v10974_v32, %s8888_s1  ;;  %v11014_v11 = vpop.eup %8745 }
 0xa1e   :  { %5914 = vrot.lane.b32.xlu1 %v10988_v27, %s8888_s1  ;;  %5912 = vrot.lane.b32.xlu0 %v10976_v56, %s8888_s1 }
 0xa21   :  { %v11023_v30 = vpop.eup %8747 }
 0xa22   :  { %5004 = vrot.lane.b32.xlu0 %v10974_v32, %s8888_s1  ;;  %5062 = vrot.lane.b32.xlu1 %v5040_v19, %s8886_s27 }
 0xa26   :  { %5066 = vrot.lane.b32.xlu1 %v5043_v63, %s8886_s27 }
 0xa2a   :  { %5070 = vrot.lane.b32.xlu1 %v5047_v35, %s8886_s27 }
 0xa43   :  { %v3983_v16 = vpop.permute.xlu1 %3982  ;;  %v3981_v58 = vpop.permute.xlu0 %3980 }
 0xa44   :  { %v4004_v51 = vsel %vm3129_vm12, %v3981_v58, %v3983_v16  ;;  %v5051_v16 = vsel %vm2904_vm10, %v5046_v33, %v5050_v62  ;;  %v11059_v58 = vld [vmem:[#allocation4 + $0x50] sm:$0xff] }
 0xa45   :  { %v4016_v43 = vsub.f32 %v12387_v59, %v4004_v51  ;;  %5074 = vrot.lane.b32.xlu1 %v5051_v16, %s8886_s27  ;;  %v5054_v51 = vrot.slane %v11059_v58, 1 }
 0xa4b   :  { %v3987_v36 = vpop.permute.xlu1 %3986  ;;  %v3985_v29 = vpop.permute.xlu0 %3984 }
 0xa4c   :  { %v4005_v57 = vsel %vm3129_vm12, %v3985_v29, %v3987_v36  ;;  %v11068_v29 = vsel %vm2904_vm10, %v5050_v62, %v5054_v51 }
 0xa4d   :  { %v4017_v38 = vsub.f32 %v12388_v10, %v4005_v57  ;;  %5078 = vrot.lane.b32.xlu1 %v11068_v29, %s8886_s27  ;;  %v8650_v57 = vld [vmem:[%s12329_s16 + $0x18] sm:$0xff]  }
 0xa4e   :  { %8253 = vmatpush3.bf16.msra.mxu0 %v8650_v57 }
 0xa4f   :  { %v4022_v55 = vpack.c.bf16 %v4017_v38, %v4016_v43  ;;  %v4987_v43 = vld [vmem:[#allocation4 + $0x60] sm:$0xff]  ;;  %8282 = vmatprep.subr.bf16.mxu0 %v12386_v13 }
 0xa51   :  { %8239 = vmatmul.mubr.msk.bf16.vlgmr.msra.gmra.mrb[28].mxu1 %vm2748_vm9, %v4022_v55  ;;  %5111 = vrot.lane.b32.xlu1 %v10976_v56, %s8888_s1 }
 0xa52   :  { %8267 = vmatpush3.bf16.msra.mxu1 %v8647_v52  ;;  %8242 = vmatprep.mubr.msk.bf16.mxu1 %vm8885_vm3, %v12386_v13 }
 0xa53   :  { %8268 = vmatprep.subr.bf16.mxu1 %v12386_v13 }
 0xa56   :  { %8269 = vmatpush3.bf16.msra.mxu1 %v8648_v50 }
 0xa57   :  { %8298 = vmatprep.subr.bf16.mxu1 %v12386_v13  ;;  %v3991_v39 = vpop.permute.xlu1 %3990  ;;  %v3989_v14 = vpop.permute.xlu0 %3988 }
 0xa58   :  { %v4006_v31 = vsel %vm3129_vm12, %v3989_v14, %v3991_v39 }
 0xa59   :  { %v4018_v42 = vsub.f32 %v11014_v11, %v4006_v31 }
 0xa5c   :  { %v3995_v53 = vpop.permute.xlu1 %3994  ;;  %v3993_v41 = vpop.permute.xlu0 %3992 }
 0xa5d   :  { %v4007_v20 = vsel %vm3129_vm12, %v3993_v41, %v3995_v53  ;;  %v11095_v41 = vrot.slane %v4987_v43, 1 }
 0xa5e   :  { %v4019_v26 = vsub.f32 %v12389_v23, %v4007_v20 }
 0xa5f   :  { %v11099_v20 = vsel %vm2904_vm10, %v5054_v51, %v11095_v41 }
 0xa60   :  { %v4023_v6 = vpack.c.bf16 %v4019_v26, %v4018_v42  ;;  %v11104_v42 = vrot.slane %v10976_v56, 1 }
 0xa62   :  { %8243 = vmatmul.mubr.msk.bf16.gmra.mrb[32].mxu1 %vm2748_vm9, %v4023_v6  ;;  %v5769_v6 = vld [vmem:[#allocation4 + $0x70] sm:$0x1] }
 0xa63   :  { %v3999_v18 = vpop.permute.xlu1 %3998  ;;  %v3997_v8 = vpop.permute.xlu0 %3996  ;;  %8246 = vmatprep.mubr.msk.bf16.mxu1 %vm8885_vm3, %v12386_v13 }
 0xa64   :  { %v4008_v28 = vsel %vm3129_vm12, %v3997_v8, %v3999_v18 }
 0xa65   :  { %v4020_v54 = vsub.f32 %v12390_v44, %v4008_v28 }
 0xa67   :  { %v4003_v2 = vpop.permute.xlu1 %4002  ;;  %v4001_v46 = vpop.permute.xlu0 %4000 }
 0xa68   :  { %v4009_v24 = vsel %vm3129_vm12, %v4001_v46, %v4003_v2 }
 0xa69   :  { %v4021_v61 = vsub.f32 %v11023_v30, %v4009_v24 }
 0xa6b   :  { %v4024_v4 = vpack.c.bf16 %v4021_v61, %v4020_v54  ;;  %v7537_v61 = vld [vmem:[%s12336_s14] ss:$0 sm:$0xff] }
 0xa6d   :  { %8247 = vmatmul.mubr.msk.bf16.gmra.mrb[36].mxu1 %vm2748_vm9, %v4024_v4 }
 0xa6e   :  { %8270 = vmatprep.mubr.msk.bf16.mxu1 %vm8885_vm3, %v12386_v13 }
 0xa71   :  { %v4803_v3 = vpop.permute.xlu1 %4802  ;;  %v4801_v49 = vpop.permute.xlu0 %4800 }
 0xa72   :  { %v4812_v45 = vsel %vm3129_vm12, %v4801_v49, %v4803_v3  ;;  %v7538_v3 = vld [vmem:[%s12337_s15] ss:$0 sm:$0xff] }
 0xa75   :  { %8271 = vmatmul.mubr.msk.bf16.vlgmr.msra.gmra.mrb[40].mxu1 %vm2748_vm9, %v4812_v45 }
 0xa76   :  { %8274 = vmatprep.mubr.msk.bf16.mxu1 %vm8885_vm3, %v12386_v13 }
 0xa7a   :  { %v4805_v12 = vpop.permute.xlu0 %4804 }
 0xa7b   :  { %v4807_v21 = vpop.permute.xlu1 %4806 }
 0xa7c   :  { %v4813_v15 = vsel %vm3129_vm12, %v4805_v12, %v4807_v21 }
 0xa7d   :  { %8275 = vmatmul.mubr.msk.bf16.gmra.mrb[44].mxu1 %vm2748_vm9, %v4813_v15 }
 0xa7e   :  { %8278 = vmatprep.mubr.msk.bf16.mxu1 %vm8885_vm3, %v12386_v13 }
 0xa84   :  { %v4811_v40 = vpop.permute.xlu1 %4810  ;;  %v4809_v9 = vpop.permute.xlu0 %4808 }
 0xa85   :  { %v4814_v5 = vsel %vm3129_vm12, %v4809_v9, %v4811_v40 }
 0xa86   :  { %8279 = vmatmul.mubr.msk.bf16.gmra.mrb[48].mxu1 %vm2748_vm9, %v4814_v5 }
 0xa87   :  { %8302 = vmatprep.mubr.msk.bf16.mxu1 %vm8885_vm3, %v12386_v13 }
 0xa88   :  { %v11065_v36 = vpop.permute.xlu0 %5126  ;;  %v5133_v38 = vpop.permute.xlu1 %5132 }
 0xa89   :  { %v11076_v55 = vadd.f32 %v5133_v38, %v4987_v43  ;;  %v11079_v37 = vadd.f32 %v5133_v38, %v10976_v56 }
 0xa8b   :  { %v12360_v39 = vrot.slane %v11076_v55, 1  ;;  %v12361_v14 = vrot.slane %v11079_v37, 1 }
 0xa8c   :  { %v5135_v52 = vpop.permute.xlu0 %5134  ;;  %v11116_v26 = vpop.permute.xlu1 %5906 }
 0xa8d   :  { %v5155_v50 = vadd.f32 %v5135_v52, %v4989_v22  ;;  %v5156_v0 = vadd.f32 %v5135_v52, %v10982_v7 }
 0xa8f   :  { %v5235_v48 = vrot.slane %v5155_v50, 1  ;;  %v5237_v31 = vrot.slane %v5156_v0, 1 }
 0xa90   :  { %v11119_v18 = vpop.permute.xlu1 %5914  ;;  %v11121_v8 = vpop.permute.xlu0 %5912 }
 0xa91   :  { %v5238_v53 = vsel %vm2904_vm10, %v12361_v14, %v5237_v31  ;;  %v5236_v7 = vsel %vm2904_vm10, %v12360_v39, %v5235_v48  ;;  %v5935_v28 = vadd.f32 %v11119_v18, %v5769_v6  ;;  %v11125_v2 = vadd.f32 %v11121_v8, %v4987_v43 }
 0xa92   :  { %5261 = vrot.lane.b32.xlu1 %v5238_v53, %s8889_s8  ;;  %5259 = vrot.lane.b32.xlu0 %v5236_v7, %s8889_s8 }
 0xa93   :  { %v6015_v46 = vrot.slane %v5935_v28, 1  ;;  %v12358_v24 = vrot.slane %v11125_v2, 1 }
 0xa95   :  { %v6016_v54 = vsel %vm2904_vm10, %v12358_v24, %v6015_v46 }
 0xa96   :  { %5082 = vrot.lane.b32.xlu0 %v11099_v20, %s8886_s27  ;;  %5088 = vrot.lane.b32.xlu1 %v11104_v42, %s8886_s27 }
 0xa9a   :  { %5086 = vrot.lane.b32.xlu0 %v11095_v41, %s8886_s27  ;;  %5891 = vrot.lane.b32.xlu1 %v10976_v56, %s8888_s1 }
 0xa9e   :  { %5784 = vrot.lane.b32.xlu0 %v10974_v32, %s8888_s1 }
 0xaa2   :  { %5842 = vrot.lane.b32.xlu0 %v5040_v19, %s8886_s27 }
 0xaa6   :  { %5846 = vrot.lane.b32.xlu0 %v5043_v63, %s8886_s27 }
 0xaaa   :  { %5850 = vrot.lane.b32.xlu0 %v5047_v35, %s8886_s27 }
 0xaae   :  { %5854 = vrot.lane.b32.xlu0 %v5051_v16, %s8886_s27 }
 0xab2   :  { %6039 = vrot.lane.b32.xlu0 %v6016_v54, %s8889_s8 }
 0xb24   :  { %v4084_v4 = vpop.f32.mrb[28].mxu1 }
 0xb25   :  { %v4114_v49 = vmul.f32 %v7537_v61, %v4084_v4  ;;  %v8240_v45 = vpop.f32.mrb[29].mxu1 }
 0xb26   :  { %v4087_v12 = vpop.f32.mrb[30].mxu1 }
 0xb27   :  { %v4127_v21 = vadd.f32 %v7538_v3, %v4114_v49  ;;  %v4115_v15 = vmul.f32 %v7537_v61, %v4087_v12  ;;  %v8241_v40 = vpop.f32.mrb[31].mxu1 }
 0xb29   :  { %v4133_v9 = vsub.f32 0.0, %v4127_v21  ;;  %v4128_v5 = vadd.f32 %v7538_v3, %v4115_v15  ;;  %v7558_v15 = vld [vmem:[%s12333_s11 + $0x1] ss:$0 sm:$0xff] }
 0xb2b   :  { %v4139_v17 = vmul.f32 1.442695, %v4133_v9  ;;  %v4134_v19 = vsub.f32 0.0, %v4128_v5 }
 0xb2d   :  { %8749 = vpow2.f32 %v4139_v17  ;;  %v4141_v47 = vmul.f32 1.442695, %v4134_v19 }
 0xb2f   :  { %8751 = vpow2.f32 %v4141_v47 }
 0xb35   :  { %v4092_v33 = vpop.f32.mrb[32].mxu1 }
 0xb36   :  { %v4116_v62 = vmul.f32 %v7537_v61, %v4092_v33  ;;  %v8244_v16 = vpop.f32.mrb[33].mxu1 }
 0xb37   :  { %v8750_v63 = vpop.eup %8749  ;;  %v4095_v51 = vpop.f32.mrb[34].mxu1 }
 0xb38   :  { %v4151_v35 = vadd.f32 1.0, %v8750_v63  ;;  %v4129_v43 = vadd.f32 %v7538_v3, %v4116_v62  ;;  %v4117_v38 = vmul.f32 %v7537_v61, %v4095_v51  ;;  %v8245_v22 = vpop.f32.mrb[35].mxu1 }
 0xb39   :  { %v8752_v34 = vpop.eup %8751 }
 0xb3a   :  { %8753 = vrcp.f32 %v4151_v35  ;;  %v4152_v57 = vadd.f32 1.0, %v8752_v34  ;;  %v4135_v52 = vsub.f32 0.0, %v4129_v43  ;;  %v4130_v50 = vadd.f32 %v7538_v3, %v4117_v38 }
 0xb3c   :  { %8755 = vrcp.f32 %v4152_v57  ;;  %v4143_v0 = vmul.f32 1.442695, %v4135_v52  ;;  %v4136_v48 = vsub.f32 0.0, %v4130_v50 }
 0xb3e   :  { %8757 = vpow2.f32 %v4143_v0  ;;  %v4145_v31 = vmul.f32 1.442695, %v4136_v48 }
 0xb40   :  { %v4100_v53 = vpop.f32.mrb[36].mxu1  ;;  %8759 = vpow2.f32 %v4145_v31 }
 0xb41   :  { %v4118_v7 = vmul.f32 %v7537_v61, %v4100_v53  ;;  %v8248_v6 = vpop.f32.mrb[37].mxu1 }
 0xb42   :  { %v4103_v28 = vpop.f32.mrb[38].mxu1 }
 0xb43   :  { %v4131_v46 = vadd.f32 %v7538_v3, %v4118_v7  ;;  %v4119_v54 = vmul.f32 %v7537_v61, %v4103_v28  ;;  %v8249_v4 = vpop.f32.mrb[39].mxu1  ;;  %v7560_v61 = vld [vmem:[%s12334_s12 + $0x1] ss:$0 sm:$0xff] }
 0xb44   :  { %v8754_v49 = vpop.eup %8753 }
 0xb45   :  { %v4137_v45 = vsub.f32 0.0, %v4131_v46  ;;  %v4132_v12 = vadd.f32 %v7538_v3, %v4119_v54  ;;  %v4175_v40 = vadd.f32 %v8754_v49, %v12387_v59 }
 0xb46   :  { %v8756_v21 = vpop.eup %8755 }
 0xb47   :  { %v4176_v9 = vadd.f32 %v8756_v21, %v12388_v10  ;;  %v4147_v5 = vmul.f32 1.442695, %v4137_v45  ;;  %v4138_v17 = vsub.f32 0.0, %v4132_v12 }
 0xb48   :  { %v4870_v19 = vpop.f32.mrb[40].mxu1  ;;  %v8758_v35 = vpop.eup %8757 }
 0xb49   :  { %8761 = vpow2.f32 %v4147_v5  ;;  %v4149_v47 = vmul.f32 1.442695, %v4138_v17  ;;  %v4901_v63 = vmul.f32 %v7558_v15, %v4870_v19  ;;  %v8272_v3 = vpop.f32.mrb[41].mxu1  ;;  %v4181_v33 = vpack.c.bf16 %v4176_v9, %v4175_v40 }
 0xb4a   :  { %v4873_v62 = vpop.f32.mrb[42].mxu1  ;;  %v4153_v16 = vadd.f32 1.0, %v8758_v35  ;;  %v8760_v51 = vpop.eup %8759 }
 0xb4b   :  { %8763 = vpow2.f32 %v4149_v47  ;;  %v4915_v34 = vadd.f32 %v7560_v61, %v4901_v63  ;;  %v4902_v59 = vmul.f32 %v7558_v15, %v4873_v62  ;;  %8255 = vmatmul.mubr.msk.bf16.vlgmr.msra.gmra.mrb[36].mxu0 %vm2748_vm9, %v4181_v33  ;;  %v8273_v10 = vpop.f32.mrb[43].mxu1  ;;  %v4154_v57 = vadd.f32 1.0, %v8760_v51 }
 0xb4c   :  { %8258 = vmatprep.mubr.msk.bf16.mxu0 %vm8885_vm3, %v12386_v13  ;;  %8765 = vrcp.f32 %v4153_v16 }
 0xb4d   :  { %v4921_v43 = vsub.f32 0.0, %v4915_v34  ;;  %v4916_v38 = vadd.f32 %v7560_v61, %v4902_v59  ;;  %8767 = vrcp.f32 %v4154_v57 }
 0xb4f   :  { %v4927_v22 = vmul.f32 1.442695, %v4921_v43  ;;  %v4922_v52 = vsub.f32 0.0, %v4916_v38 }
 0xb50   :  { %v4878_v50 = vpop.f32.mrb[44].mxu1 }
 0xb51   :  { %8769 = vpow2.f32 %v4927_v22  ;;  %v4929_v0 = vmul.f32 1.442695, %v4922_v52  ;;  %v4903_v48 = vmul.f32 %v7558_v15, %v4878_v50  ;;  %v8276_v31 = vpop.f32.mrb[45].mxu1 }
 0xb52   :  { %v4881_v53 = vpop.f32.mrb[46].mxu1 }
 0xb53   :  { %v8762_v7 = vpop.eup %8761  ;;  %8771 = vpow2.f32 %v4929_v0  ;;  %v11150_v6 = vadd.f32 %v7560_v61, %v4903_v48  ;;  %v4904_v28 = vmul.f32 %v7558_v15, %v4881_v53  ;;  %v8277_v46 = vpop.f32.mrb[47].mxu1 }
 0xb54   :  { %v4155_v54 = vadd.f32 1.0, %v8762_v7 }
 0xb55   :  { %v8764_v4 = vpop.eup %8763  ;;  %v4918_v49 = vadd.f32 %v7560_v61, %v4904_v28 }
 0xb56   :  { %8773 = vrcp.f32 %v4155_v54  ;;  %v4156_v45 = vadd.f32 1.0, %v8764_v4  ;;  %v8766_v12 = vpop.eup %8765 }
 0xb57   :  { %v4924_v21 = vsub.f32 0.0, %v4918_v49  ;;  %v8768_v9 = vpop.eup %8767  ;;  %v4177_v47 = vadd.f32 %v8766_v12, %v11014_v11  ;;  %v5048_v12 = vrot.slane %v10974_v32, 1 }
 0xb58   :  { %8775 = vrcp.f32 %v4156_v45  ;;  %v4178_v63 = vadd.f32 %v8768_v9, %v12389_v23 }
 0xb59   :  { %v4886_v40 = vpop.f32.mrb[48].mxu1  ;;  %v4933_v5 = vmul.f32 1.442695, %v4924_v21 }
 0xb5a   :  { %v4905_v17 = vmul.f32 %v7558_v15, %v4886_v40  ;;  %v8280_v19 = vpop.f32.mrb[49].mxu1  ;;  %v4182_v59 = vpack.c.bf16 %v4178_v63, %v4177_v47 }
 0xb5b   :  { %v4889_v3 = vpop.f32.mrb[50].mxu1  ;;  %v8770_v33 = vpop.eup %8769  ;;  %8777 = vpow2.f32 %v4933_v5 }
 0xb5c   :  { %v4919_v35 = vadd.f32 %v7560_v61, %v4905_v17  ;;  %v4906_v62 = vmul.f32 %v7558_v15, %v4889_v3  ;;  %v8281_v16 = vpop.f32.mrb[51].mxu1  ;;  %v4939_v34 = vadd.f32 1.0, %v8770_v33  ;;  %8259 = vmatmul.mubr.msk.bf16.gmra.mrb[40].mxu0 %vm2748_vm9, %v4182_v59 }
 0xb5d   :  { %v8772_v10 = vpop.eup %8771  ;;  %8262 = vmatprep.mubr.msk.bf16.mxu0 %vm8885_vm3, %v12386_v13 }
 0xb5e   :  { %v4925_v51 = vsub.f32 0.0, %v4919_v35  ;;  %v11154_v57 = vadd.f32 %v7560_v61, %v4906_v62  ;;  %8779 = vrcp.f32 %v4939_v34  ;;  %v4940_v43 = vadd.f32 1.0, %v8772_v10 }
 0xb60   :  { %v4935_v38 = vmul.f32 1.442695, %v4925_v51  ;;  %v8774_v11 = vpop.eup %8773  ;;  %8781 = vrcp.f32 %v4940_v43  ;;  %v5936_v51 = vadd.f32 %v11119_v18, %v10988_v27  ;;  %v11263_v43 = vadd.f32 %v11121_v8, %v10976_v56  ;;  %v11280_v27 = vpop.permute.xlu0 %5004 }
 0xb61   :  { %v4179_v15 = vadd.f32 %v8774_v11, %v12390_v44 }
 0xb62   :  { %8783 = vpow2.f32 %v4935_v38  ;;  %v8776_v23 = vpop.eup %8775  ;;  %v6017_v11 = vrot.slane %v5936_v51, 1  ;;  %v5148_v51 = vadd.f32 %v11065_v36, %v10974_v32 }
 0xb63   :  { %v4180_v22 = vadd.f32 %v8776_v23, %v11023_v30  ;;  %v12359_v23 = vrot.slane %v11263_v43, 1 }
 0xb65   :  { %v8778_v52 = vpop.eup %8777  ;;  %v4183_v50 = vpack.c.bf16 %v4180_v22, %v4179_v15  ;;  %v6018_v56 = vsel %vm2904_vm10, %v12359_v23, %v6017_v11  ;;  %v5063_v22 = vpop.permute.xlu1 %5062  ;;  %v5221_v23 = vrot.slane %v5148_v51, 1 }
 0xb66   :  { %v4942_v61 = vadd.f32 1.0, %v8778_v52 }
 0xb67   :  { %8263 = vmatmul.mubr.msk.bf16.gmra.mrb[44].mxu0 %vm2748_vm9, %v4183_v50 }
 0xb68   :  { %v11162_v0 = vpop.eup %8779  ;;  %8785 = vrcp.f32 %v4942_v61  ;;  %8286 = vmatprep.mubr.msk.bf16.mxu0 %vm8885_vm3, %v12386_v13 }
 0xb69   :  { %12391 = vst [vmem:[#allocation7_spill] sm:$0xff] %v11162_v0  ;;  %4957 = vst.msk [vmem:[#allocation4 + $0x18] sm:$0xff] %vm2748_vm9, %v11162_v0  ;;  %v5067_v50 = vpop.permute.xlu1 %5066 }
 0xb6a   :  { %v11168_v48 = vpop.eup %8781 }
 0xb6b   :  { %12392 = vst [vmem:[#allocation8_spill] sm:$0xff] %v11168_v48  ;;  %4958 = vst.msk [vmem:[#allocation4 + $0x28] sm:$0xff] %vm2748_vm9, %v11168_v48 }
 0xb6c   :  { %v8784_v31 = vpop.eup %8783 }
 0xb6d   :  { %v4943_v30 = vadd.f32 1.0, %v8784_v31  ;;  %v5071_v31 = vpop.permute.xlu1 %5070 }
 0xb6f   :  { %8787 = vrcp.f32 %v4943_v30 }
 0xb70   :  { %v11172_v44 = vld [vmem:[#allocation4 + $0x18] sm:$0xfe] }
 0xb71   :  { %v11174_v53 = vld [vmem:[#allocation4 + $0x18] sm:$0xff]  ;;  %5122 = vrot.lane.b32.xlu0 %v11172_v44, %s8888_s1 }
 0xb72   :  { %5737 = vst.msk [vmem:[#allocation4 + $0x18] sm:$0xff] %vm2748_vm9, %v11162_v0  ;;  %v11180_v7 = vpop.eup %8785  ;;  %v11182_v28 = vld [vmem:[#allocation4 + $0x28] sm:$0xff]  ;;  %v5041_v46 = vrot.slane %v11174_v53, 1 }
 0xb73   :  { %12393 = vst [vmem:[#allocation9_spill] sm:$0xff] %v11180_v7  ;;  %4959 = vst.msk [vmem:[#allocation4 + $0x48] sm:$0xff] %vm2748_vm9, %v11180_v7  ;;  %5124 = vrot.lane.b32.xlu1 %v11182_v28, %s8888_s1  ;;  %v5044_v4 = vrot.slane %v11182_v28, 1 }
 0xb74   :  { %5738 = vst.msk [vmem:[#allocation4 + $0x28] sm:$0xff] %vm2748_vm9, %v11168_v48 }
 0xb75   :  { %5000 = vrot.lane.b32.xlu0 %v11174_v53, %s8888_s1  ;;  %v5045_v21 = vsel %vm2904_vm10, %v5041_v46, %v5044_v4  ;;  %v5049_v40 = vsel %vm2904_vm10, %v5044_v4, %v5048_v12 }
 0xb77   :  { %5002 = vrot.lane.b32.xlu1 %v11182_v28, %s8888_s1 }
 0xb79   :  { %v11195_v54 = vpop.eup %8787  ;;  %5064 = vrot.lane.b32.xlu0 %v5041_v46, %s8886_s27  ;;  %v11201_v49 = vld [vmem:[#allocation4 + $0x18] sm:$0xfe]  ;;  %v11306_v46 = vpop.permute.xlu1 %5074 }
 0xb7a   :  { %12394 = vst [vmem:[#allocation10_spill] sm:$0xff] %v11195_v54  ;;  %4960 = vst.msk [vmem:[#allocation4 + $0x58] sm:$0xff] %vm2748_vm9, %v11195_v54  ;;  %v11203_v45 = vld [vmem:[#allocation4 + $0x48] sm:$0xff]  ;;  %v11222_v5 = vld [vmem:[#allocation4 + $0x18] sm:$0xff] }
 0xb7b   :  { %5902 = vrot.lane.b32.xlu1 %v11201_v49, %s8888_s1  ;;  %5739 = vst.msk [vmem:[#allocation4 + $0x48] sm:$0xff] %vm2748_vm9, %v11180_v7  ;;  %v11226_v17 = vld [vmem:[#allocation4 + $0x28] sm:$0xff]  ;;  %v5052_v19 = vrot.slane %v11203_v45, 1  ;;  %v5821_v47 = vrot.slane %v11222_v5, 1 }
 0xb7c   :  { %v5824_v63 = vrot.slane %v11226_v17, 1 }
 0xb7d   :  { %5068 = vrot.lane.b32.xlu0 %v5045_v21, %s8886_s27  ;;  %v5053_v3 = vsel %vm2904_vm10, %v5048_v12, %v5052_v19 }
 0xb7e   :  { %v5825_v33 = vsel %vm2904_vm10, %v5821_v47, %v5824_v63  ;;  %v5829_v35 = vsel %vm2904_vm10, %v5824_v63, %v5048_v12 }
 0xb7f   :  { %5128 = vrot.lane.b32.xlu1 %v11203_v45, %s8888_s1 }
 0xb81   :  { %v11215_v9 = vld [vmem:[#allocation4 + $0x58] sm:$0xff]  ;;  %5072 = vrot.lane.b32.xlu0 %v5049_v40, %s8886_s27 }
 0xb82   :  { %5740 = vst.msk [vmem:[#allocation4 + $0x58] sm:$0xff] %vm2748_vm9, %v11195_v54  ;;  %v11246_v62 = vld [vmem:[#allocation4 + $0x48] sm:$0xff]  ;;  %v5056_v16 = vrot.slane %v11215_v9, 1 }
 0xb83   :  { %5006 = vrot.lane.b32.xlu1 %v11203_v45, %s8888_s1  ;;  %v5832_v34 = vrot.slane %v11246_v62, 1 }
 0xb84   :  { %v5061_v59 = vsel %vm2904_vm10, %v5056_v16, %v11104_v42  ;;  %v5057_v10 = vsel %vm2904_vm10, %v5052_v19, %v5056_v16 }
 0xb85   :  { %5780 = vrot.lane.b32.xlu0 %v11222_v5, %s8888_s1  ;;  %v5833_v38 = vsel %vm2904_vm10, %v5048_v12, %v5832_v34  ;;  %v11310_v12 = vpop.permute.xlu1 %5078 }
 0xb87   :  { %5782 = vrot.lane.b32.xlu1 %v11226_v17, %s8888_s1 }
 0xb89   :  { %5904 = vrot.lane.b32.xlu0 %v11226_v17, %s8888_s1  ;;  %v11270_v15 = vld [vmem:[#allocation4 + $0x58] sm:$0xff] }
 0xb8a   :  { %v5836_v18 = vrot.slane %v11270_v15, 1 }
 0xb8b   :  { %5844 = vrot.lane.b32.xlu1 %v5821_v47, %s8886_s27 }
 0xb8c   :  { %v5837_v8 = vsel %vm2904_vm10, %v5832_v34, %v5836_v18 }
 0xb8d   :  { %5076 = vrot.lane.b32.xlu0 %v5053_v3, %s8886_s27 }
 0xb8f   :  { %5848 = vrot.lane.b32.xlu1 %v5825_v33, %s8886_s27 }
 0xb91   :  { %5130 = vrot.lane.b32.xlu0 %v11215_v9, %s8888_s1 }
 0xb93   :  { %5852 = vrot.lane.b32.xlu1 %v5829_v35, %s8886_s27 }
 0xb95   :  { %5008 = vrot.lane.b32.xlu0 %v11215_v9, %s8888_s1 }
 0xb97   :  { %5786 = vrot.lane.b32.xlu1 %v11246_v62, %s8888_s1 }
 0xb99   :  { %5908 = vrot.lane.b32.xlu0 %v11246_v62, %s8888_s1 }
 0xb9b   :  { %5084 = vrot.lane.b32.xlu1 %v5061_v59, %s8886_s27 }
 0xb9d   :  { %5080 = vrot.lane.b32.xlu0 %v5057_v10, %s8886_s27 }
 0xb9f   :  { %5856 = vrot.lane.b32.xlu1 %v5833_v38, %s8886_s27 }
 0xba1   :  { %5858 = vrot.lane.b32.xlu0 %v11068_v29, %s8886_s27  ;;  %v11284_v29 = vld [vmem:[#allocation4 + $0x8] sm:$0x80] }
 0xba3   :  { %5910 = vrot.lane.b32.xlu1 %v11270_v15, %s8888_s1 }
 0xba5   :  { %5862 = vrot.lane.b32.xlu0 %v11099_v20, %s8886_s27  ;;  %v11291_v20 = vpop.permute.xlu0 %5259 }
 0xba7   :  { %6041 = vrot.lane.b32.xlu1 %v6018_v56, %s8889_s8  ;;  %v4977_v56 = vld [vmem:[#allocation4 + $0x10] sm:$0xfe] }
 0xba9   :  { %5866 = vrot.lane.b32.xlu0 %v11095_v41, %s8886_s27  ;;  %v5841_v41 = vsel %vm2904_vm10, %v5836_v18, %v11104_v42  ;;  %v11300_v52 = vpop.permute.xlu0 %5082 }
 0xbab   :  { %5868 = vrot.lane.b32.xlu1 %v11104_v42, %s8886_s27  ;;  %v11314_v42 = vpop.permute.xlu1 %5111 }
 0xbad   :  { %4998 = vrot.lane.b32.xlu0 %v11284_v29, %s8888_s1  ;;  %v11302_v61 = vpop.permute.xlu0 %5086 }
 0xbaf   :  { %5860 = vrot.lane.b32.xlu1 %v5837_v8, %s8886_s27  ;;  %v11318_v19 = vpop.permute.xlu1 %5261 }
 0xbb1   :  { %5788 = vrot.lane.b32.xlu0 %v11270_v15, %s8888_s1  ;;  %v11304_v30 = vpop.permute.xlu0 %5784 }
 0xbb3   :  { %5864 = vrot.lane.b32.xlu1 %v5841_v41, %s8886_s27  ;;  %v11322_v63 = vpop.permute.xlu1 %5088 }
 0xbb5   :  { %v11308_v4 = vpop.permute.xlu0 %5842 }
 0xbb7   :  { %v11326_v33 = vpop.permute.xlu1 %5891 }
 0xbb9   :  { %v11312_v21 = vpop.permute.xlu0 %5846 }
 0xbbd   :  { %v11316_v40 = vpop.permute.xlu0 %5850 }
 0xbc1   :  { %v11320_v47 = vpop.permute.xlu0 %5854 }
 0xbc5   :  { %v11324_v3 = vpop.permute.xlu0 %6039 }
 0xbe3   :  { %v5123_v35 = vpop.permute.xlu0 %5122 }
 0xbe4   :  { %v5144_v16 = vadd.f32 %v5123_v35, %v11172_v44  ;;  %v5143_v39 = vadd.f32 %v5123_v35, %v4977_v56 }
 0xbe5   :  { %v5125_v34 = vpop.permute.xlu1 %5124 }
 0xbe6   :  { %v5146_v59 = vadd.f32 %v5125_v34, %v11182_v28  ;;  %v5216_v38 = vrot.slane %v5144_v16, 1  ;;  %v5145_v8 = vadd.f32 %v5125_v34, %v11044_v25  ;;  %v5147_v34 = vadd.f32 %v11065_v36, %v11049_v1 }
 0xbe7   :  { %v11330_v10 = vpop.permute.xlu0 %5000 }
 0xbe8   :  { %v5217_v11 = vrot.slane %v5146_v59, 1  ;;  %v5214_v48 = vrot.slane %v5145_v8, 1 }
 0xbe9   :  { %v11334_v18 = vpop.permute.xlu1 %5002 }
 0xbea   :  { %v5218_v41 = vsel %vm2904_vm10, %v5216_v38, %v5217_v11  ;;  %v5222_v16 = vsel %vm2904_vm10, %v5217_v11, %v5221_v23  ;;  %v5213_v38 = vrot.slane %v5143_v39, 1 }
 0xbeb   :  { %v5065_v24 = vpop.permute.xlu0 %5064  ;;  %5241 = vrot.lane.b32.xlu0 %v5218_v41, %s8889_s8 }
 0xbec   :  { %v5090_v14 = vsel %vm366_vm6, %v5063_v22, %v5065_v24  ;;  %v5215_v22 = vsel %vm2904_vm10, %v5213_v38, %v5214_v48 }
 0xbed   :  { %v5104_v54 = vadd.f32 %v5090_v14, %v11284_v29  ;;  %v5903_v7 = vpop.permute.xlu1 %5902 }
 0xbef   :  { %v5069_v59 = vpop.permute.xlu0 %5068  ;;  %5164 = vrot.lane.b32.xlu1 %v5104_v54, %s8887_s20  ;;  %5245 = vrot.lane.b32.xlu0 %v5222_v16, %s8889_s8  ;;  %v5219_v54 = vrot.slane %v5147_v34, 1  ;;  %v5757_v16 = vld [vmem:[#allocation4 + $0x10] sm:$0xfe] }
 0xbf0   :  { %v5091_v51 = vsel %vm366_vm6, %v5067_v50, %v5069_v59 }
 0xbf1   :  { %v5105_v35 = vadd.f32 %v5091_v51, %v11174_v53  ;;  %v5129_v24 = vpop.permute.xlu1 %5128  ;;  %v5220_v50 = vsel %vm2904_vm10, %v5214_v48, %v5219_v54  ;;  %v5923_v51 = vadd.f32 %v5903_v7, %v5757_v16  ;;  %v5924_v48 = vadd.f32 %v5903_v7, %v11201_v49 }
 0xbf2   :  { %v5150_v14 = vadd.f32 %v5129_v24, %v11203_v45  ;;  %v5149_v36 = vadd.f32 %v5129_v24, %v11054_v60  ;;  %v5928_v7 = vadd.f32 %v11116_v26, %v10974_v32 }
 0xbf3   :  { %v5073_v56 = vpop.permute.xlu0 %5072  ;;  %5239 = vrot.lane.b32.xlu1 %v5215_v22, %s8889_s8  ;;  %5166 = vrot.lane.b32.xlu0 %v5105_v35, %s8887_s20  ;;  %v5996_v16 = vrot.slane %v5924_v48, 1 }
 0xbf4   :  { %v5225_v11 = vrot.slane %v5150_v14, 1  ;;  %v5092_v39 = vsel %vm366_vm6, %v5071_v31, %v5073_v56  ;;  %v5223_v35 = vrot.slane %v5149_v36, 1  ;;  %v5927_v14 = vadd.f32 %v11116_v26, %v11049_v1 }
 0xbf5   :  { %v11352_v8 = vpop.permute.xlu1 %5006  ;;  %v5106_v34 = vadd.f32 %v5092_v39, %v11182_v28  ;;  %v5993_v56 = vrot.slane %v5923_v51, 1 }
 0xbf6   :  { %v5226_v41 = vsel %vm2904_vm10, %v5221_v23, %v5225_v11  ;;  %v5999_v1 = vrot.slane %v5927_v14, 1 }
 0xbf7   :  { %v11358_v59 = vpop.permute.xlu0 %5780  ;;  %5243 = vrot.lane.b32.xlu1 %v5220_v50, %s8889_s8  ;;  %5249 = vrot.lane.b32.xlu0 %v5226_v41, %s8889_s8  ;;  %v5224_v41 = vsel %vm2904_vm10, %v5219_v54, %v5223_v35  ;;  %v6001_v54 = vrot.slane %v5928_v7, 1 }
 0xbf9   :  { %v11363_v38 = vpop.permute.xlu1 %5782 }
 0xbfb   :  { %v5905_v24 = vpop.permute.xlu0 %5904  ;;  %5168 = vrot.lane.b32.xlu1 %v5106_v34, %s8887_s20 }
 0xbfc   :  { %v5925_v23 = vadd.f32 %v5905_v24, %v11044_v25  ;;  %v5926_v31 = vadd.f32 %v5905_v24, %v11226_v17 }
 0xbfd   :  { %v11371_v22 = vpop.permute.xlu1 %5844 }
 0xbfe   :  { %v5994_v39 = vrot.slane %v5925_v23, 1  ;;  %v5997_v50 = vrot.slane %v5926_v31, 1 }
 0xbff   :  { %v5077_v36 = vpop.permute.xlu0 %5076  ;;  %5247 = vrot.lane.b32.xlu1 %v5224_v41, %s8889_s8 }
 0xc00   :  { %v5995_v25 = vsel %vm2904_vm10, %v5993_v56, %v5994_v39  ;;  %v5998_v51 = vsel %vm2904_vm10, %v5996_v16, %v5997_v50  ;;  %v6000_v26 = vsel %vm2904_vm10, %v5994_v39, %v5999_v1  ;;  %v6002_v14 = vsel %vm2904_vm10, %v5997_v50, %v6001_v54 }
 0xc01   :  { %v11378_v34 = vpop.permute.xlu1 %5848  ;;  %6019 = vrot.lane.b32.xlu0 %v5995_v25, %s8889_s8  ;;  %v12395_v50 = vrot.slane %v11079_v37, 1 }
 0xc03   :  { %v5131_v24 = vpop.permute.xlu0 %5130  ;;  %6021 = vrot.lane.b32.xlu1 %v5998_v51, %s8889_s8 }
 0xc04   :  { %v5151_v23 = vadd.f32 %v5131_v24, %v11059_v58  ;;  %v5152_v31 = vadd.f32 %v5131_v24, %v11215_v9  ;;  %v5334_v24 = vrot.slane %v11182_v28, 2 }
 0xc05   :  { %v11386_v48 = vpop.permute.xlu1 %5852  ;;  %6023 = vrot.lane.b32.xlu0 %v6000_v26, %s8889_s8 }
 0xc06   :  { %v5227_v56 = vrot.slane %v5151_v23, 1  ;;  %v5229_v41 = vrot.slane %v5152_v31, 1 }
 0xc07   :  { %v11390_v25 = vpop.permute.xlu0 %5008  ;;  %6025 = vrot.lane.b32.xlu1 %v6002_v14, %s8889_s8 }
 0xc08   :  { %v5230_v7 = vsel %vm2904_vm10, %v5225_v11, %v5229_v41  ;;  %v5228_v39 = vsel %vm2904_vm10, %v5223_v35, %v5227_v56  ;;  %v5234_v31 = vsel %vm2904_vm10, %v5229_v41, %v12395_v50  ;;  %v5333_v11 = vrot.slane %v11172_v44, 2 }
 0xc09   :  { %v11394_v16 = vpop.permute.xlu1 %5786  ;;  %5253 = vrot.lane.b32.xlu0 %v5230_v7, %s8889_s8  ;;  %v12396_v35 = vrot.slane %v11076_v55, 1 }
 0xc0b   :  { %v5909_v51 = vpop.permute.xlu0 %5908  ;;  %5251 = vrot.lane.b32.xlu1 %v5228_v39, %s8889_s8  ;;  %v5232_v7 = vsel %vm2904_vm10, %v5227_v56, %v12396_v35 }
 0xc0c   :  { %v5929_v23 = vadd.f32 %v5909_v51, %v11054_v60  ;;  %v5930_v14 = vadd.f32 %v5909_v51, %v11246_v62  ;;  %v5335_v60 = vsel %vm3200_vm11, %v5333_v11, %v5334_v24 }
 0xc0d   :  { %v5085_v26 = vpop.permute.xlu1 %5084  ;;  %5257 = vrot.lane.b32.xlu0 %v5234_v31, %s8889_s8  ;;  %v11423_v31 = vrot.slane %v10974_v32, 2 }
 0xc0e   :  { %v6003_v39 = vrot.slane %v5929_v23, 1  ;;  %v6005_v37 = vrot.slane %v5930_v14, 1 }
 0xc0f   :  { %5255 = vrot.lane.b32.xlu1 %v5232_v7, %s8889_s8  ;;  %v5337_v7 = vsel %vm3200_vm11, %v5334_v24, %v11423_v31  ;;  %v12397_v24 = vrot.slane %v11263_v43, 1 }
 0xc10   :  { %v6004_v44 = vsel %vm2904_vm10, %v5999_v1, %v6003_v39  ;;  %v6006_v51 = vsel %vm2904_vm10, %v6001_v54, %v6005_v37  ;;  %v4169_v54 = vld [vmem:[#allocation6] sm:$0xff] }
 0xc11   :  { %v11412_v0 = vpop.permute.xlu1 %5856  ;;  %5348 = vrot.lane.b32.xlu0 %v5335_v60, %s8887_s20  ;;  %v5081_v60 = vpop.permute.xlu0 %5080 }
 0xc13   :  { %5346 = vrot.lane.b32.xlu1 %v5333_v11, %s8887_s20  ;;  %v5093_v11 = vsel %vm366_vm6, %v11306_v46, %v5077_v36  ;;  %v4170_v36 = vld [vmem:[#allocation6 + $0x8] sm:$0xff] }
 0xc15   :  { %v5911_v41 = vpop.permute.xlu1 %5910  ;;  %6027 = vrot.lane.b32.xlu0 %v6004_v44, %s8889_s8 }
 0xc16   :  { %v5931_v55 = vadd.f32 %v5911_v41, %v11059_v58  ;;  %v5932_v56 = vadd.f32 %v5911_v41, %v11270_v15  ;;  %v5107_v58 = vadd.f32 %v5093_v11, %v10974_v32  ;;  %v5338_v32 = vrot.slane %v11203_v45, 2 }
 0xc17   :  { %6029 = vrot.lane.b32.xlu1 %v6006_v51, %s8889_s8  ;;  %v12398_v51 = vrot.slane %v11125_v2, 1  ;;  %v11455_v2 = vld [vmem:[#allocation4 + $0x68] sm:$0xff] }
 0xc18   :  { %v6007_v23 = vrot.slane %v5931_v55, 1  ;;  %v6009_v50 = vrot.slane %v5932_v56, 1  ;;  %v5094_v55 = vsel %vm366_vm6, %v11310_v12, %v5081_v60  ;;  %v5339_v12 = vsel %vm3200_vm11, %v11423_v31, %v5338_v32 }
 0xc19   :  { %v5114_v43 = vadd.f32 %v11455_v2, %v11314_v42 }
 0xc1a   :  { %v6010_v1 = vsel %vm2904_vm10, %v6005_v37, %v6009_v50  ;;  %v6008_v14 = vsel %vm2904_vm10, %v6003_v39, %v6007_v23  ;;  %v6014_v56 = vsel %vm2904_vm10, %v6009_v50, %v12397_v24  ;;  %v6012_v11 = vsel %vm2904_vm10, %v6007_v23, %v12398_v51  ;;  %v11462_v50 = vld [vmem:[#allocation4 + $0x68] sm:$0x7f]  ;;  %v11492_v24 = vld [vmem:[#allocation4 + $0x8] sm:$0x80] }
 0xc1b   :  { %6033 = vrot.lane.b32.xlu1 %v6010_v1, %s8889_s8  ;;  %6031 = vrot.lane.b32.xlu0 %v6008_v14, %s8889_s8  ;;  %v5108_v1 = vadd.f32 %v5094_v55, %v11203_v45  ;;  %v5340_v14 = vrot.slane %v11215_v9, 2  ;;  %v5268_v23 = vsel %vm3129_vm12, %v11291_v20, %v11318_v19  ;;  %v5871_v51 = vsel %vm366_vm6, %v11312_v21, %v11378_v34  ;;  %v4173_v21 = vld [vmem:[#allocation6 + $0x20] sm:$0xff] }
 0xc1c   :  { %v11473_v42 = vadd.f32 %v5268_v23, %v5114_v43  ;;  %v4174_v43 = vld [vmem:[#allocation6 + $0x28] sm:$0xff] }
 0xc1e   :  { %v4244_v35 = vpop.f32.mrb[36].mxu0 }
 0xc1f   :  { %v4267_v44 = vadd.f32 %v4244_v35, %v4169_v54  ;;  %5350 = vrot.lane.b32.xlu1 %v5337_v7, %s8887_s20  ;;  %5170 = vrot.lane.b32.xlu0 %v5107_v58, %s8887_s20  ;;  %v8256_v46 = vpop.f32.mrb[37].mxu0  ;;  %v5096_v58 = vsel %vm366_vm6, %v11302_v61, %v11322_v63  ;;  %v5095_v54 = vsel %vm366_vm6, %v11300_v52, %v5085_v26  ;;  %v11478_v7 = vrot.slane %v11455_v2, 2  ;;  %v8876_v52 = vld [vmem:[#allocation4 + $0x78] sm:$0x1]  ;;  %v4171_v26 = vld [vmem:[#allocation6 + $0x10] sm:$0xff] }
 0xc20   :  { %v4247_v39 = vpop.f32.mrb[38].mxu0  ;;  %v5341_v35 = vsel %vm3200_vm11, %v5338_v32, %v5340_v14  ;;  %v5110_v20 = vadd.f32 %v5096_v58, %v11462_v50  ;;  %v5109_v19 = vadd.f32 %v5095_v54, %v11215_v9  ;;  %v5344_v61 = vrot.slane %v8876_v52, 2  ;;  %v11515_v54 = vld [vmem:[#allocation4 + $0x38] sm:$0xff] }
 0xc21   :  { %4273 = vst.msk [vmem:[#allocation6] sm:$0xff] %vm135_vm2, %v4267_v44  ;;  %v4268_v37 = vadd.f32 %v4247_v39, %v4170_v36  ;;  %v8257_v41 = vpop.f32.mrb[39].mxu0  ;;  %v5296_v63 = vrot.slane %v11473_v42, 1  ;;  %v5343_v36 = vsel %vm3200_vm11, %v5340_v14, %v11478_v7  ;;  %v4172_v39 = vld [vmem:[#allocation6 + $0x18] sm:$0xff]  ;;  %v5872_v14 = vsel %vm366_vm6, %v11316_v40, %v11386_v48 }
 0xc22   :  { %v5345_v55 = vsel %vm3200_vm11, %v11478_v7, %v5344_v61  ;;  %v5886_v58 = vadd.f32 %v5872_v14, %v11226_v17  ;;  %v5894_v42 = vadd.f32 %v11455_v2, %v11326_v33 }
 0xc23   :  { %4274 = vst.msk [vmem:[#allocation6 + $0x8] sm:$0xff] %vm135_vm2, %v4268_v37  ;;  %6037 = vrot.lane.b32.xlu1 %v6014_v56, %s8889_s8  ;;  %6035 = vrot.lane.b32.xlu0 %v6012_v11, %s8889_s8  ;;  %v5870_v56 = vsel %vm366_vm6, %v11308_v4, %v11371_v22  ;;  %v5873_v4 = vsel %vm366_vm6, %v11320_v47, %v11412_v0  ;;  %v11522_v47 = vpop.permute.xlu0 %5858 }
 0xc24   :  { %v5884_v11 = vadd.f32 %v5870_v56, %v11492_v24  ;;  %v5887_v40 = vadd.f32 %v11515_v54, %v5873_v4  ;;  %v11550_v56 = vadd.f32 %v11334_v18, %v11182_v28  ;;  %v11563_v28 = vadd.f32 %v11515_v54, %v11280_v27 }
 0xc27   :  { %5352 = vrot.lane.b32.xlu0 %v5339_v12, %s8887_s20  ;;  %5172 = vrot.lane.b32.xlu1 %v5108_v1, %s8887_s20  ;;  %v5885_v1 = vadd.f32 %v5871_v51, %v11222_v5 }
 0xc2b   :  { %5010 = vrot.lane.b32.xlu0 %v11462_v50, %s8888_s1  ;;  %5354 = vrot.lane.b32.xlu1 %v5341_v35, %s8887_s20  ;;  %v11524_v35 = vpop.permute.xlu0 %5862 }
 0xc2f   :  { %5176 = vrot.lane.b32.xlu0 %v5110_v20, %s8887_s20  ;;  %5174 = vrot.lane.b32.xlu1 %v5109_v19, %s8887_s20  ;;  %v4252_v60 = vpop.f32.mrb[40].mxu0  ;;  %v11526_v20 = vpop.permute.xlu1 %6041 }
 0xc30   :  { %v4269_v44 = vadd.f32 %v4252_v60, %v4171_v26  ;;  %v8260_v46 = vpop.f32.mrb[41].mxu0  ;;  %v11528_v19 = vpop.permute.xlu0 %5866 }
 0xc31   :  { %v4255_v37 = vpop.f32.mrb[42].mxu0 }
 0xc32   :  { %4275 = vst.msk [vmem:[#allocation6 + $0x10] sm:$0xff] %vm135_vm2, %v4269_v44  ;;  %v4270_v41 = vadd.f32 %v4255_v37, %v4172_v39  ;;  %v8261_v32 = vpop.f32.mrb[43].mxu0  ;;  %v11544_v37 = vadd.f32 %v11330_v10, %v11174_v53 }
 0xc33   :  { %5310 = vrot.lane.b32.xlu0 %v5296_v63, %s8888_s1  ;;  %5356 = vrot.lane.b32.xlu1 %v5343_v36, %s8887_s20  ;;  %v11530_v52 = vpop.permute.xlu1 %5868 }
 0xc34   :  { %4276 = vst.msk [vmem:[#allocation6 + $0x18] sm:$0xff] %vm135_vm2, %v4270_v41  ;;  %v11532_v61 = vpop.permute.xlu0 %4998 }
 0xc37   :  { %5358 = vrot.lane.b32.xlu0 %v5345_v55, %s8887_s20  ;;  %5778 = vrot.lane.b32.xlu1 %v11492_v24, %s8888_s1  ;;  %v11534_v26 = vpop.permute.xlu1 %5860 }
 0xc38   :  { %v11536_v60 = vpop.permute.xlu0 %5788 }
 0xc3a   :  { %v4260_v22 = vpop.f32.mrb[44].mxu0 }
 0xc3b   :  { %v4271_v34 = vadd.f32 %v4260_v22, %v4173_v21  ;;  %5944 = vrot.lane.b32.xlu0 %v5884_v11, %s8887_s20  ;;  %5946 = vrot.lane.b32.xlu1 %v5885_v1, %s8887_s20  ;;  %v8264_v12 = vpop.f32.mrb[45].mxu0  ;;  %v11538_v44 = vpop.permute.xlu1 %5864 }
 0xc3c   :  { %v4263_v23 = vpop.f32.mrb[46].mxu0 }
 0xc3d   :  { %4277 = vst.msk [vmem:[#allocation6 + $0x20] sm:$0xff] %vm135_vm2, %v4271_v34  ;;  %v4272_v48 = vadd.f32 %v4263_v23, %v4174_v43  ;;  %v8265_v0 = vpop.f32.mrb[47].mxu0 }
 0xc3f   :  { %4278 = vst.msk [vmem:[#allocation6 + $0x28] sm:$0xff] %vm135_vm2, %v4272_v48  ;;  %5948 = vrot.lane.b32.xlu0 %v5886_v58, %s8887_s20  ;;  %5950 = vrot.lane.b32.xlu1 %v5887_v40, %s8887_s20  ;;  %v11569_v40 = vadd.f32 %v11358_v59, %v11222_v5 }
 0xc5d   :  { %v5242_v46 = vpop.permute.xlu0 %5241 }
 0xc61   :  { %v11540_v36 = vpop.permute.xlu1 %5164  ;;  %v5246_v39 = vpop.permute.xlu0 %5245 }
 0xc65   :  { %v5240_v41 = vpop.permute.xlu1 %5239  ;;  %v11552_v11 = vpop.permute.xlu0 %5166 }
 0xc66   :  { %v5263_v32 = vsel %vm3129_vm12, %v5240_v41, %v5242_v46 }
 0xc67   :  { %v5275_v55 = vadd.f32 %v5263_v32, %v11544_v37 }
 0xc69   :  { %v5287_v51 = vrot.slane %v5275_v55, 1  ;;  %v5244_v1 = vpop.permute.xlu1 %5243  ;;  %v5250_v22 = vpop.permute.xlu0 %5249  ;;  %v11577_v55 = vadd.f32 %v11363_v38, %v11226_v17 }
 0xc6a   :  { %v5264_v14 = vsel %vm3129_vm12, %v5244_v1, %v5246_v39 }
 0xc6b   :  { %v5276_v4 = vadd.f32 %v5264_v14, %v11550_v56  ;;  %5298 = vrot.lane.b32.xlu0 %v5287_v51, %s8888_s1 }
 0xc6d   :  { %v5288_v53 = vrot.slane %v5276_v4, 1  ;;  %v11557_v21 = vpop.permute.xlu1 %5168 }
 0xc6f   :  { %v5289_v34 = vsel %vm2904_vm10, %v5287_v51, %v5288_v53 }
 0xc70   :  { %5300 = vrot.lane.b32.xlu1 %v5289_v34, %s8888_s1 }
 0xc71   :  { %v5248_v12 = vpop.permute.xlu1 %5247 }
 0xc72   :  { %v5265_v43 = vsel %vm3129_vm12, %v5248_v12, %v5250_v22  ;;  %v11584_v22 = vadd.f32 %v11352_v8, %v11203_v45 }
 0xc73   :  { %v5277_v23 = vadd.f32 %v5265_v43, %v11563_v28  ;;  %v6020_v58 = vpop.permute.xlu0 %6019  ;;  %v6114_v43 = vrot.slane %v11226_v17, 2 }
 0xc75   :  { %v5290_v48 = vrot.slane %v5277_v23, 1  ;;  %v6022_v0 = vpop.permute.xlu1 %6021 }
 0xc76   :  { %v6043_v46 = vsel %vm3129_vm12, %v6020_v58, %v6022_v0 }
 0xc77   :  { %v6055_v39 = vadd.f32 %v6043_v46, %v11569_v40  ;;  %v6024_v41 = vpop.permute.xlu0 %6023  ;;  %v5291_v32 = vsel %vm2904_vm10, %v5288_v53, %v5290_v48  ;;  %v6113_v46 = vrot.slane %v11201_v49, 2 }
 0xc78   :  { %5302 = vrot.lane.b32.xlu0 %v5291_v32, %s8888_s1 }
 0xc79   :  { %v6067_v51 = vrot.slane %v6055_v39, 1  ;;  %v6026_v1 = vpop.permute.xlu1 %6025  ;;  %v11594_v39 = vadd.f32 %v11390_v25, %v11215_v9  ;;  %v6118_v9 = vrot.slane %v11246_v62, 2 }
 0xc7a   :  { %v6044_v5 = vsel %vm3129_vm12, %v6024_v41, %v6026_v1 }
 0xc7b   :  { %v6056_v14 = vadd.f32 %v6044_v5, %v11577_v55  ;;  %v5254_v4 = vpop.permute.xlu0 %5253  ;;  %v6115_v5 = vsel %vm3200_vm11, %v6113_v46, %v6114_v43 }
 0xc7c   :  { %6078 = vrot.lane.b32.xlu0 %v6067_v51, %s8888_s1 }
 0xc7d   :  { %v6068_v53 = vrot.slane %v6056_v14, 1  ;;  %v5252_v34 = vpop.permute.xlu1 %5251 }
 0xc7e   :  { %v5266_v12 = vsel %vm3129_vm12, %v5252_v34, %v5254_v4  ;;  %v11612_v34 = vadd.f32 %v11515_v54, %v11304_v30  ;;  %v11624_v54 = vadd.f32 %v11394_v16, %v11246_v62 }
 0xc7f   :  { %v5278_v23 = vadd.f32 %v5266_v12, %v11584_v22  ;;  %v5258_v58 = vpop.permute.xlu0 %5257  ;;  %v6069_v0 = vsel %vm2904_vm10, %v6067_v51, %v6068_v53 }
 0xc80   :  { %6080 = vrot.lane.b32.xlu1 %v6069_v0, %s8888_s1  ;;  %v6117_v0 = vsel %vm3200_vm11, %v6114_v43, %v11423_v31  ;;  %v5874_v43 = vsel %vm366_vm6, %v11522_v47, %v11534_v26  ;;  %v6048_v47 = vsel %vm3129_vm12, %v11324_v3, %v11526_v20 }
 0xc81   :  { %v5292_v45 = vrot.slane %v5278_v23, 1  ;;  %v5256_v41 = vpop.permute.xlu1 %5255  ;;  %v5888_v26 = vadd.f32 %v5874_v43, %v11246_v62 }
 0xc82   :  { %v5267_v32 = vsel %vm3129_vm12, %v5256_v41, %v5258_v58 }
 0xc83   :  { %v5279_v1 = vadd.f32 %v5267_v32, %v11594_v39  ;;  %v11598_v17 = vpop.permute.xlu0 %5348  ;;  %v5293_v51 = vsel %vm2904_vm10, %v5290_v48, %v5292_v45 }
 0xc84   :  { %6128 = vrot.lane.b32.xlu1 %v6115_v5, %s8887_s20  ;;  %5304 = vrot.lane.b32.xlu0 %v5293_v51, %s8888_s1 }
 0xc85   :  { %v5294_v49 = vrot.slane %v5279_v1, 1  ;;  %v11604_v14 = vpop.permute.xlu1 %5346 }
 0xc87   :  { %v5295_v4 = vsel %vm2904_vm10, %v5292_v45, %v5294_v49  ;;  %v6028_v48 = vpop.permute.xlu0 %6027  ;;  %v6119_v45 = vsel %vm3200_vm11, %v11423_v31, %v6118_v9  ;;  %v5297_v31 = vsel %vm2904_vm10, %v5294_v49, %v5296_v63  ;;  %v5875_v63 = vsel %vm366_vm6, %v11524_v35, %v11538_v44 }
 0xc88   :  { %6126 = vrot.lane.b32.xlu0 %v6113_v46, %s8887_s20  ;;  %5306 = vrot.lane.b32.xlu1 %v5295_v4, %s8888_s1  ;;  %v6060_v49 = vadd.f32 %v6048_v47, %v5894_v42  ;;  %v5889_v20 = vadd.f32 %v5875_v63, %v11270_v15 }
 0xc89   :  { %v6030_v12 = vpop.permute.xlu1 %6029 }
 0xc8a   :  { %v6045_v23 = vsel %vm3129_vm12, %v6028_v48, %v6030_v12  ;;  %v6076_v35 = vrot.slane %v6060_v49, 1  ;;  %v4961_v49 = vld [vmem:[#allocation4] sm:$0x80] }
 0xc8b   :  { %v6057_v58 = vadd.f32 %v6045_v23, %v11612_v34  ;;  %v11655_v23 = vadd.f32 %v11536_v60, %v11270_v15 }
 0xc8c   :  { %6130 = vrot.lane.b32.xlu0 %v6117_v0, %s8887_s20  ;;  %6132 = vrot.lane.b32.xlu1 %v6119_v45, %s8887_s20 }
 0xc8d   :  { %v6070_v46 = vrot.slane %v6057_v58, 1  ;;  %v6034_v41 = vpop.permute.xlu1 %6033  ;;  %v6032_v32 = vpop.permute.xlu0 %6031  ;;  %v6120_v58 = vrot.slane %v11270_v15, 2  ;;  %v8878_v15 = vld [vmem:[#allocation4 + $0x78] sm:$0x1] }
 0xc8e   :  { %v6046_v1 = vsel %vm3129_vm12, %v6032_v32, %v6034_v41  ;;  %v5876_v41 = vsel %vm366_vm6, %v11528_v19, %v11530_v52  ;;  %v6124_v43 = vrot.slane %v8878_v15, 2 }
 0xc8f   :  { %v6058_v5 = vadd.f32 %v6046_v1, %v11624_v54  ;;  %v6071_v51 = vsel %vm2904_vm10, %v6068_v53, %v6070_v46  ;;  %v6123_v32 = vsel %vm3200_vm11, %v6120_v58, %v11478_v7  ;;  %v6121_v1 = vsel %vm3200_vm11, %v6118_v9, %v6120_v58 }
 0xc90   :  { %5308 = vrot.lane.b32.xlu1 %v5297_v31, %s8888_s1  ;;  %6082 = vrot.lane.b32.xlu0 %v6071_v51, %s8888_s1  ;;  %v6125_v19 = vsel %vm3200_vm11, %v11478_v7, %v6124_v43 }
 0xc91   :  { %v6072_v4 = vrot.slane %v6058_v5, 1  ;;  %v11637_v48 = vpop.permute.xlu1 %5350  ;;  %v11639_v12 = vpop.permute.xlu0 %5170 }
 0xc93   :  { %v6073_v53 = vsel %vm2904_vm10, %v6070_v46, %v6072_v4  ;;  %v11666_v46 = vld [vmem:[#allocation4 + $0x68] sm:$0x7f] }
 0xc94   :  { %5952 = vrot.lane.b32.xlu0 %v5888_v26, %s8887_s20  ;;  %6084 = vrot.lane.b32.xlu1 %v6073_v53, %s8888_s1  ;;  %v5890_v5 = vadd.f32 %v5876_v41, %v11666_v46  ;;  %v8879_v41 = vld [vmem:[#allocation4 + $0x10] sm:$0xff] }
 0xc95   :  { %v6038_v3 = vpop.permute.xlu1 %6037  ;;  %v6036_v62 = vpop.permute.xlu0 %6035 }
 0xc96   :  { %v6047_v33 = vsel %vm3129_vm12, %v6036_v62, %v6038_v3 }
 0xc97   :  { %v6059_v2 = vadd.f32 %v6047_v33, %v11655_v23  ;;  %v5020_v33 = vadd.f32 %v11532_v61, %v11284_v29  ;;  %v5188_v29 = vadd.f32 %v11552_v11, %v11544_v37 }
 0xc98   :  { %5954 = vrot.lane.b32.xlu1 %v5889_v20, %s8887_s20  ;;  %v5019_v20 = vadd.f32 %v11532_v61, %v4961_v49 }
 0xc99   :  { %v6074_v44 = vrot.slane %v6059_v2, 1  ;;  %v11684_v52 = vpop.permute.xlu0 %5352  ;;  %v11686_v9 = vpop.permute.xlu1 %5172 }
 0xc9a   :  { %v5185_v2 = vadd.f32 %v11540_v36, %v5019_v20 }
 0xc9b   :  { %v6077_v0 = vsel %vm2904_vm10, %v6074_v44, %v6076_v35  ;;  %v6075_v45 = vsel %vm2904_vm10, %v6072_v4, %v6074_v44 }
 0xc9c   :  { %6088 = vrot.lane.b32.xlu1 %v6077_v0, %s8888_s1  ;;  %6086 = vrot.lane.b32.xlu0 %v6075_v45, %s8888_s1 }
 0xc9d   :  { %v11688_v31 = vpop.permute.xlu0 %5010  ;;  %v11690_v51 = vpop.permute.xlu1 %5354 }
 0xca0   :  { %6136 = vrot.lane.b32.xlu1 %v6123_v32, %s8887_s20  ;;  %6134 = vrot.lane.b32.xlu0 %v6121_v1, %s8887_s20  ;;  %v5021_v32 = vadd.f32 %v8879_v41, %v11330_v10  ;;  %v8651_v1 = vld [vmem:[%s12335_s13 + $0x10] sm:$0xff]  }
 0xca1   :  { %v11692_v4 = vpop.permute.xlu0 %5176  ;;  %v11694_v47 = vpop.permute.xlu1 %5174  ;;  %8283 = vmatpush3.bf16.msra.mxu0 %v8651_v1 }
 0xca2   :  { %v5187_v15 = vadd.f32 %v11552_v11, %v5021_v32  ;;  %8284 = vmatprep.subr.bf16.mxu0 %v12386_v13 }
 0xca4   :  { %5956 = vrot.lane.b32.xlu1 %v5890_v5, %s8887_s20  ;;  %5790 = vrot.lane.b32.xlu0 %v11666_v46, %s8888_s1 }
 0xca5   :  { %v11696_v26 = vpop.permute.xlu0 %5310  ;;  %v11698_v42 = vpop.permute.xlu1 %5356 }
 0xca8   :  { %6090 = vrot.lane.b32.xlu0 %v6076_v35, %s8888_s1  ;;  %6138 = vrot.lane.b32.xlu1 %v6125_v19, %s8887_s20  ;;  %v5186_v35 = vadd.f32 %v11540_v36, %v5020_v33 }
 0xca9   :  { %v11700_v7 = vpop.permute.xlu0 %5358  ;;  %v11702_v63 = vpop.permute.xlu1 %5778 }
 0xcad   :  { %v11704_v53 = vpop.permute.xlu0 %5944  ;;  %v11706_v3 = vpop.permute.xlu1 %5946 }
 0xcb1   :  { %v11708_v62 = vpop.permute.xlu0 %5948  ;;  %v11715_v58 = vpop.permute.xlu1 %5950 }
 0xcdd   :  { %v5299_v44 = vpop.permute.xlu0 %5298 }
 0xcde   :  { %v5319_v0 = vadd.f32 %v5299_v44, %v5185_v2  ;;  %v5320_v45 = vadd.f32 %v5299_v44, %v5186_v35  ;;  %v8880_v2 = vld [vmem:[#allocation4 + $0x20] sm:$0xff] }
 0xcdf   :  { %v5023_v35 = vadd.f32 %v8880_v2, %v11334_v18 }
 0xce0   :  { %v5367_v61 = vadd.f32 %v11604_v14, %v5319_v0  ;;  %v5368_v36 = vadd.f32 %v11604_v14, %v5320_v45  ;;  %v5190_v14 = vadd.f32 %v11557_v21, %v11550_v56 }
 0xce1   :  { %v5189_v44 = vadd.f32 %v11557_v21, %v5023_v35 }
 0xce2   :  { %v5301_v43 = vpop.permute.xlu1 %5300  ;;  %v5381_v10 = vmul.f32 0.11111111, %v5367_v61  ;;  %v5382_v49 = vmul.f32 0.11111111, %v5368_v36 }
 0xce3   :  { %v5321_v5 = vadd.f32 %v5301_v43, %v5187_v15  ;;  %v5322_v19 = vadd.f32 %v5301_v43, %v5188_v29  ;;  %v8652_v29 = vld [vmem:[%s12335_s13 + $0x18] sm:$0xff]  }
 0xce4   :  { %v5409_v0 = vrot.slane %v5381_v10, 7  ;;  %v5412_v45 = vrot.slane %v5382_v49, 7  ;;  %8285 = vmatpush3.bf16.msra.mxu0 %v8652_v29  ;;  %v5032_v29 = vadd.f32 %v11688_v31, %v11462_v50 }
 0xce5   :  { %v5369_v20 = vadd.f32 %v11598_v17, %v5321_v5  ;;  %v5370_v33 = vadd.f32 %v11598_v17, %v5322_v19  ;;  %8314 = vmatprep.subr.bf16.mxu0 %v12386_v13  ;;  %v5741_v19 = vld [vmem:[#allocation4] sm:$0x80] }
 0xce7   :  { %v5383_v37 = vmul.f32 0.11111111, %v5369_v20  ;;  %v5384_v11 = vmul.f32 0.11111111, %v5370_v33  ;;  %v4973_v20 = vld [vmem:[#allocation4 + $0x60] sm:$0x7f] }
 0xce9   :  { %v5410_v32 = vrot.slane %v5383_v37, 7  ;;  %v5413_v1 = vrot.slane %v5384_v11, 7  ;;  %v11749_v37 = vld [vmem:[#allocation4 + $0x30] sm:$0xff] }
 0xcea   :  { %v5303_v15 = vpop.permute.xlu0 %5302 }
 0xceb   :  { %v5323_v17 = vadd.f32 %v5303_v15, %v5189_v44  ;;  %v5324_v61 = vadd.f32 %v5303_v15, %v5190_v14  ;;  %v5414_v18 = vsel %vm3953_vm13, %v5412_v45, %v5413_v1  ;;  %v5411_v36 = vsel %vm3953_vm13, %v5409_v0, %v5410_v32  ;;  %v11757_v14 = vld [vmem:[#allocation4 + $0x40] sm:$0xff] }
 0xcec   :  { %5437 = vrot.lane.b32.xlu1 %v5414_v18, %s8889_s8  ;;  %5435 = vrot.lane.b32.xlu0 %v5411_v36, %s8889_s8  ;;  %v5027_v0 = vadd.f32 %v11757_v14, %v11352_v8  ;;  %v5799_v45 = vadd.f32 %v11702_v63, %v5741_v19  ;;  %v5800_v15 = vadd.f32 %v11702_v63, %v11492_v24  ;;  %v11774_v63 = vld [vmem:[#allocation4 + $0x50] sm:$0xff] }
 0xced   :  { %v5371_v56 = vadd.f32 %v11637_v48, %v5323_v17  ;;  %v5372_v21 = vadd.f32 %v11637_v48, %v5324_v61  ;;  %v5025_v48 = vadd.f32 %v11749_v37, %v11280_v27  ;;  %v5801_v8 = vadd.f32 %v8879_v41, %v11358_v59 }
 0xcee   :  { %v6079_v33 = vpop.permute.xlu0 %6078  ;;  %v5803_v17 = vadd.f32 %v8880_v2, %v11363_v38  ;;  %v5029_v18 = vadd.f32 %v11774_v63, %v11390_v25  ;;  %v5193_v36 = vadd.f32 %v11686_v9, %v5027_v0  ;;  %v5965_v59 = vadd.f32 %v11704_v53, %v5799_v45 }
 0xcef   :  { %v11743_v43 = vmul.f32 0.11111111, %v5371_v56  ;;  %v11745_v5 = vmul.f32 0.11111111, %v5372_v21  ;;  %v5191_v27 = vadd.f32 %v11639_v12, %v5025_v48  ;;  %v5967_v50 = vadd.f32 %v11706_v3, %v5801_v8 }
 0xcf0   :  { %v5966_v38 = vadd.f32 %v11704_v53, %v5800_v15  ;;  %v5198_v41 = vadd.f32 %v11692_v4, %v5032_v29  ;;  %v5968_v21 = vadd.f32 %v11706_v3, %v11569_v40 }
 0xcf1   :  { %v5415_v10 = vrot.slane %v11743_v43, 7  ;;  %v5417_v49 = vrot.slane %v11745_v5, 7  ;;  %v6099_v5 = vadd.f32 %v6079_v33, %v5965_v59  ;;  %v5970_v43 = vadd.f32 %v11708_v62, %v11577_v55 }
 0xcf2   :  { %v6081_v35 = vpop.permute.xlu1 %6080  ;;  %v6100_v19 = vadd.f32 %v6079_v33, %v5966_v38  ;;  %v5332_v3 = vadd.f32 %v11696_v26, %v5198_v41 }
 0xcf3   :  { %v5418_v11 = vsel %vm3953_vm13, %v5413_v1, %v5417_v49  ;;  %v5416_v44 = vsel %vm3953_vm13, %v5410_v32, %v5415_v10  ;;  %v5192_v1 = vadd.f32 %v11639_v12, %v11563_v28  ;;  %v5031_v32 = vadd.f32 %v11688_v31, %v4973_v20 }
 0xcf4   :  { %5441 = vrot.lane.b32.xlu1 %v5418_v11, %s8889_s8  ;;  %5439 = vrot.lane.b32.xlu0 %v5416_v44, %s8889_s8  ;;  %v5194_v12 = vadd.f32 %v11686_v9, %v11584_v22  ;;  %v6101_v22 = vadd.f32 %v6081_v35, %v5967_v50  ;;  %v6102_v0 = vadd.f32 %v6081_v35, %v5968_v21 }
 0xcf5   :  { %v5197_v31 = vadd.f32 %v11692_v4, %v5031_v32 }
 0xcf6   :  { %v6129_v61 = vpop.permute.xlu1 %6128  ;;  %v5305_v24 = vpop.permute.xlu0 %5304 }
 0xcf7   :  { %v5325_v56 = vadd.f32 %v5305_v24, %v5191_v27  ;;  %v5326_v28 = vadd.f32 %v5305_v24, %v5192_v1  ;;  %v6149_v45 = vadd.f32 %v6129_v61, %v6101_v22  ;;  %v5331_v40 = vadd.f32 %v11696_v26, %v5197_v31 }
 0xcf8   :  { %v6150_v33 = vadd.f32 %v6129_v61, %v6102_v0  ;;  %v5196_v26 = vadd.f32 %v11694_v47, %v11594_v39  ;;  %v5380_v61 = vadd.f32 %v11700_v7, %v5332_v3 }
 0xcf9   :  { %v5373_v2 = vadd.f32 %v11684_v52, %v5325_v56  ;;  %v5374_v25 = vadd.f32 %v11684_v52, %v5326_v28  ;;  %v6163_v50 = vmul.f32 0.11111111, %v6149_v45 }
 0xcfa   :  { %v5307_v9 = vpop.permute.xlu1 %5306  ;;  %v6127_v20 = vpop.permute.xlu0 %6126  ;;  %v5394_v55 = vmul.f32 0.11111111, %v5380_v61 }
 0xcfb   :  { %v5387_v48 = vmul.f32 0.11111111, %v5373_v2  ;;  %v5388_v11 = vmul.f32 0.11111111, %v5374_v25  ;;  %v5327_v44 = vadd.f32 %v5307_v9, %v5193_v36  ;;  %v5328_v53 = vadd.f32 %v5307_v9, %v5194_v12 }
 0xcfc   :  { %v6147_v15 = vadd.f32 %v6127_v20, %v6099_v5  ;;  %v6148_v4 = vadd.f32 %v6127_v20, %v6100_v19  ;;  %v5195_v12 = vadd.f32 %v11694_v47, %v5029_v18  ;;  %v5805_v25 = vadd.f32 %v11749_v37, %v11304_v30 }
 0xcfd   :  { %v5419_v27 = vrot.slane %v5387_v48, 7  ;;  %v5421_v1 = vrot.slane %v5388_v11, 7  ;;  %v5375_v52 = vadd.f32 %v11690_v51, %v5327_v44  ;;  %v5376_v32 = vadd.f32 %v11690_v51, %v5328_v53 }
 0xcfe   :  { %v6161_v29 = vmul.f32 0.11111111, %v6147_v15  ;;  %v6133_v8 = vpop.permute.xlu1 %6132  ;;  %v6131_v24 = vpop.permute.xlu0 %6130  ;;  %v5379_v51 = vadd.f32 %v11700_v7, %v5331_v40  ;;  %v6162_v59 = vmul.f32 0.11111111, %v6148_v4  ;;  %v5807_v47 = vadd.f32 %v11757_v14, %v11394_v16 }
 0xcff   :  { %v11794_v36 = vmul.f32 0.11111111, %v5375_v52  ;;  %v5390_v35 = vmul.f32 0.11111111, %v5376_v32  ;;  %v5422_v56 = vsel %vm3953_vm13, %v5417_v49, %v5421_v1  ;;  %v5420_v28 = vsel %vm3953_vm13, %v5415_v10, %v5419_v27 }
 0xd00   :  { %5445 = vrot.lane.b32.xlu1 %v5422_v56, %s8889_s8  ;;  %5443 = vrot.lane.b32.xlu0 %v5420_v28, %s8889_s8  ;;  %v5969_v49 = vadd.f32 %v11708_v62, %v5803_v17  ;;  %v6164_v10 = vmul.f32 0.11111111, %v6150_v33  ;;  %v6175_v31 = vpack.c.bf16 %v6163_v50, %v6161_v29  ;;  %v5393_v7 = vmul.f32 0.11111111, %v5379_v51 }
 0xd01   :  { %v5423_v18 = vrot.slane %v11794_v36, 7  ;;  %v5425_v38 = vrot.slane %v5390_v35, 7  ;;  %v5971_v62 = vadd.f32 %v11715_v58, %v5805_v25  ;;  %v5972_v20 = vadd.f32 %v11715_v58, %v11612_v34 }
 0xd02   :  { %v5309_v41 = vpop.permute.xlu1 %5308  ;;  %v6083_v2 = vpop.permute.xlu0 %6082  ;;  %v6176_v17 = vpack.c.bf16 %v6164_v10, %v6162_v59  ;;  %v6189_v30 = vshrl.u32 %v6175_v31, 16  ;;  %v6192_v0 = vshll.u32 %v6175_v31, 16  ;;  %v5433_v32 = vrot.slane %v5394_v55, 7 }
 0xd03   :  { %v5329_v21 = vadd.f32 %v5309_v41, %v5195_v12  ;;  %v5330_v5 = vadd.f32 %v5309_v41, %v5196_v26  ;;  %v6103_v39 = vadd.f32 %v6083_v2, %v5969_v49  ;;  %v6104_v19 = vadd.f32 %v6083_v2, %v5970_v43 }
 0xd04   :  { %v5426_v37 = vsel %vm3953_vm13, %v5421_v1, %v5425_v38  ;;  %v5424_v48 = vsel %vm3953_vm13, %v5419_v27, %v5423_v18  ;;  %v6206_v45 = vshrl.u32 %v6176_v17, 16  ;;  %v6209_v4 = vshll.u32 %v6176_v17, 16 }
 0xd05   :  { %v5377_v22 = vadd.f32 %v11698_v42, %v5329_v21  ;;  %v5378_v9 = vadd.f32 %v11698_v42, %v5330_v5  ;;  %v6151_v44 = vadd.f32 %v6131_v24, %v6103_v39  ;;  %5449 = vrot.lane.b32.xlu1 %v5426_v37, %s8889_s8  ;;  %5447 = vrot.lane.b32.xlu0 %v5424_v48, %s8889_s8  ;;  %v5431_v1 = vrot.slane %v5393_v7, 7 }
 0xd06   :  { %v6085_v11 = vpop.permute.xlu1 %6084  ;;  %v6152_v42 = vadd.f32 %v6131_v24, %v6104_v19  ;;  %v5809_v27 = vadd.f32 %v11774_v63, %v11536_v60  ;;  %v5953_v3 = vpop.permute.xlu0 %5952  ;;  %v6191_v29 = vrot.slane %v6189_v30, 3  ;;  %v6194_v28 = vrot.slane %v6192_v0, 4 }
 0xd07   :  { %v5391_v16 = vmul.f32 0.11111111, %v5377_v22  ;;  %v5392_v14 = vmul.f32 0.11111111, %v5378_v9  ;;  %v6105_v53 = vadd.f32 %v6085_v11, %v5971_v62  ;;  %v6106_v15 = vadd.f32 %v6085_v11, %v5972_v20 }
 0xd08   :  { %v6165_v36 = vmul.f32 0.11111111, %v6151_v44  ;;  %v6166_v24 = vmul.f32 0.11111111, %v6152_v42  ;;  %v6208_v50 = vrot.slane %v6206_v45, 3  ;;  %v6211_v59 = vrot.slane %v6209_v4, 4 }
 0xd09   :  { %v5427_v34 = vrot.slane %v5391_v16, 7  ;;  %v5429_v58 = vrot.slane %v5392_v14, 7  ;;  %v6153_v52 = vadd.f32 %v6133_v8, %v6105_v53  ;;  %v6154_v40 = vadd.f32 %v6133_v8, %v6106_v15  ;;  %v5753_v16 = vld [vmem:[#allocation4 + $0x60] sm:$0x7f] }
 0xd0a   :  { %v5955_v33 = vpop.permute.xlu1 %5954  ;;  %v5973_v63 = vadd.f32 %v5953_v3, %v5807_v47  ;;  %v5974_v26 = vadd.f32 %v5953_v3, %v11624_v54  ;;  %v6212_v30 = vor.u32 %v6211_v59, %v6208_v50  ;;  %v6195_v48 = vor.u32 %v6194_v28, %v6191_v29 }
 0xd0b   :  { %v6167_v35 = vmul.f32 0.11111111, %v6153_v52  ;;  %v5430_v56 = vsel %vm3953_vm13, %v5425_v38, %v5429_v58  ;;  %v6168_v12 = vmul.f32 0.11111111, %v6154_v40  ;;  %v5428_v51 = vsel %vm3953_vm13, %v5423_v18, %v5427_v34 }
 0xd0c   :  { %5453 = vrot.lane.b32.xlu1 %v5430_v56, %s8889_s8  ;;  %5451 = vrot.lane.b32.xlu0 %v5428_v51, %s8889_s8  ;;  %v5975_v61 = vadd.f32 %v5955_v33, %v5809_v27  ;;  %v5976_v49 = vadd.f32 %v5955_v33, %v11655_v23  ;;  %v5434_v41 = vsel %vm3953_vm13, %v5429_v58, %v5433_v32 }
 0xd0d   :  { %v6177_v60 = vpack.c.bf16 %v6167_v35, %v6165_v36  ;;  %v6178_v8 = vpack.c.bf16 %v6168_v12, %v6166_v24  ;;  %v5432_v18 = vsel %vm3953_vm13, %v5427_v34, %v5431_v1 }
 0xd0e   :  { %v6089_v43 = vpop.permute.xlu1 %6088  ;;  %v6087_v10 = vpop.permute.xlu0 %6086 }
 0xd0f   :  { %v6197_v38 = vshrl.u32 %v6177_v60, 16  ;;  %v6200_v31 = vshll.u32 %v6177_v60, 16  ;;  %v6214_v2 = vshrl.u32 %v6178_v8, 16  ;;  %v6217_v25 = vshll.u32 %v6178_v8, 16 }
 0xd10   :  { %v6109_v21 = vadd.f32 %v6089_v43, %v5975_v61  ;;  %v6110_v5 = vadd.f32 %v6089_v43, %v5976_v49  ;;  %5457 = vrot.lane.b32.xlu1 %v5434_v41, %s8889_s8  ;;  %v6107_v39 = vadd.f32 %v6087_v10, %v5973_v63  ;;  %v6108_v47 = vadd.f32 %v6087_v10, %v5974_v26 }
 0xd11   :  { %5455 = vrot.lane.b32.xlu0 %v5432_v18, %s8889_s8  ;;  %v6199_v54 = vrot.slane %v6197_v38, 3  ;;  %v6202_v23 = vrot.slane %v6200_v31, 4  ;;  %v6216_v19 = vrot.slane %v6214_v2, 3  ;;  %v6219_v55 = vrot.slane %v6217_v25, 4 }
 0xd12   :  { %v6137_v7 = vpop.permute.xlu1 %6136  ;;  %v6135_v17 = vpop.permute.xlu0 %6134 }
 0xd13   :  { %v6157_v62 = vadd.f32 %v6137_v7, %v6109_v21  ;;  %v6158_v22 = vadd.f32 %v6137_v7, %v6110_v5  ;;  %v6155_v9 = vadd.f32 %v6135_v17, %v6107_v39  ;;  %v6156_v20 = vadd.f32 %v6135_v17, %v6108_v47 }
 0xd14   :  { %v6220_v37 = vor.u32 %v6219_v55, %v6216_v19  ;;  %v6203_v11 = vor.u32 %v6202_v23, %v6199_v54  ;;  %v4923_v7 = vsub.f32 0.0, %v11150_v6  ;;  %v4926_v19 = vsub.f32 0.0, %v11154_v57  ;;  %v8653_v6 = vld [vmem:[%s12332_s10 + $0x20] sm:$0xff]  }
 0xd15   :  { %v6171_v14 = vmul.f32 0.11111111, %v6157_v62  ;;  %v6172_v44 = vmul.f32 0.11111111, %v6158_v22  ;;  %v6169_v53 = vmul.f32 0.11111111, %v6155_v9 }
 0xd16   :  { %v6170_v0 = vmul.f32 0.11111111, %v6156_v20  ;;  %v5957_v45 = vpop.permute.xlu1 %5956  ;;  %v6221_v42 = vsel %vm200_vm5, %v6212_v30, %v6220_v37  ;;  %v6204_v15 = vsel %vm200_vm5, %v6195_v48, %v6203_v11  ;;  %v5791_v4 = vpop.permute.xlu0 %5790  ;;  %v4931_v17 = vmul.f32 1.442695, %v4923_v7  ;;  %v12399_v48 = vld [vmem:[#allocation7_spill] sm:$0xff] }
 0xd17   :  { %v6179_v34 = vpack.c.bf16 %v6171_v14, %v6169_v53  ;;  %6260 = vrot.lane.b32.xlu1 %v6221_v42, %s8889_s8  ;;  %6258 = vrot.lane.b32.xlu0 %v6204_v15, %s8889_s8  ;;  %v5811_v58 = vadd.f32 %v5791_v4, %v5753_v16  ;;  %v5812_v52 = vadd.f32 %v5791_v4, %v11666_v46  ;;  %v4937_v22 = vmul.f32 1.442695, %v4926_v19  ;;  %v12400_v16 = vld [vmem:[#allocation8_spill] sm:$0xff] }
 0xd18   :  { %v6180_v27 = vpack.c.bf16 %v6172_v44, %v6170_v0  ;;  %8789 = vpow2.f32 %v4931_v17  ;;  %v8654_v0 = vld [vmem:[%s12332_s10 + $0x28] sm:$0xff]  }
 0xd19   :  { %v6223_v1 = vshrl.u32 %v6179_v34, 16  ;;  %v6226_v32 = vshll.u32 %v6179_v34, 16  ;;  %v5977_v40 = vadd.f32 %v5957_v45, %v5811_v58  ;;  %v5978_v3 = vadd.f32 %v5957_v45, %v5812_v52 }
 0xd1a   :  { %v6232_v33 = vshrl.u32 %v6180_v27, 16  ;;  %v6235_v29 = vshll.u32 %v6180_v27, 16  ;;  %v6091_v36 = vpop.permute.xlu0 %6090  ;;  %v6139_v35 = vpop.permute.xlu1 %6138  ;;  %8791 = vpow2.f32 %v4937_v22 }
 0xd1b   :  { %v6225_v56 = vrot.slane %v6223_v1, 3  ;;  %v6228_v28 = vrot.slane %v6226_v32, 4  ;;  %v6111_v24 = vadd.f32 %v6091_v36, %v5977_v40  ;;  %v6112_v12 = vadd.f32 %v6091_v36, %v5978_v3  ;;  %v12401_v40 = vld [vmem:[#allocation9_spill] sm:$0xff] }
 0xd1c   :  { %v6234_v51 = vrot.slane %v6232_v33, 3  ;;  %v6237_v50 = vrot.slane %v6235_v29, 4 }
 0xd1d   :  { %v6159_v59 = vadd.f32 %v6139_v35, %v6111_v24  ;;  %v6160_v60 = vadd.f32 %v6139_v35, %v6112_v12  ;;  %v6229_v63 = vor.u32 %v6228_v28, %v6225_v56 }
 0xd1e   :  { %v6238_v8 = vor.u32 %v6237_v50, %v6234_v51  ;;  %v12402_v51 = vld [vmem:[#allocation10_spill] sm:$0xff] }
 0xd1f   :  { %v6173_v46 = vmul.f32 0.11111111, %v6159_v59  ;;  %v6174_v26 = vmul.f32 0.11111111, %v6160_v60  ;;  %v6230_v61 = vsel %vm200_vm5, %v6203_v11, %v6229_v63 }
 0xd20   :  { %v6239_v49 = vsel %vm200_vm5, %v6220_v37, %v6238_v8  ;;  %6262 = vrot.lane.b32.xlu0 %v6230_v61, %s8889_s8 }
 0xd21   :  { %v6181_v43 = vpack.c.bf16 %v6173_v46, %v6173_v46  ;;  %v6182_v10 = vpack.c.bf16 %v6174_v26, %v6174_v26  ;;  %6264 = vrot.lane.b32.xlu1 %v6239_v49, %s8889_s8 }
 0xd22   :  { %v8790_v44 = vpop.eup %8789 }
 0xd23   :  { %v6241_v38 = vshrl.u32 %v6181_v43, 16  ;;  %v6244_v31 = vshll.u32 %v6181_v43, 16  ;;  %v6250_v41 = vshrl.u32 %v6182_v10, 16  ;;  %v6253_v18 = vshll.u32 %v6182_v10, 16 }
 0xd24   :  { %v4941_v53 = vadd.f32 1.0, %v8790_v44  ;;  %v8792_v45 = vpop.eup %8791 }
 0xd25   :  { %v6243_v2 = vrot.slane %v6241_v38, 3  ;;  %v6246_v25 = vrot.slane %v6244_v31, 4  ;;  %v6252_v21 = vrot.slane %v6250_v41, 3  ;;  %v6255_v5 = vrot.slane %v6253_v18, 4  ;;  %v8655_v31 = vld [vmem:[%s12329_s16 + $0x20] sm:$0xff]   ;;  %v8656_v41 = vld [vmem:[%s12329_s16 + $0x28] sm:$0xff]  }
 0xd26   :  { %8793 = vrcp.f32 %v4941_v53  ;;  %v4944_v4 = vadd.f32 1.0, %v8792_v45  ;;  %8299 = vmatpush3.bf16.msra.mxu1 %v8655_v31  ;;  %v7571_v18 = vld [vmem:[%s12336_s14 + $0x1] ss:$0 sm:$0xff] }
 0xd27   :  { %v6247_v39 = vor.u32 %v6246_v25, %v6243_v2  ;;  %v6256_v47 = vor.u32 %v6255_v5, %v6252_v21  ;;  %8300 = vmatprep.subr.bf16.mxu1 %v12386_v13  ;;  %v7573_v25 = vld [vmem:[%s12337_s15 + $0x1] ss:$0 sm:$0xff] }
 0xd28   :  { %8795 = vrcp.f32 %v4944_v4 }
 0xd29   :  { %v6257_v54 = vsel %vm200_vm5, %v6238_v8, %v6256_v47  ;;  %v6248_v23 = vsel %vm200_vm5, %v6229_v63, %v6247_v39 }
 0xd2a   :  { %6268 = vrot.lane.b32.xlu1 %v6257_v54, %s8889_s8  ;;  %6266 = vrot.lane.b32.xlu0 %v6248_v23, %s8889_s8 }
 0xd2b   :  { %8301 = vmatpush3.bf16.msra.mxu1 %v8656_v41 }
 0xd2c   :  { %8330 = vmatprep.subr.bf16.mxu1 %v12386_v13 }
 0xd30   :  { %v11867_v27 = vpop.eup %8793 }
 0xd32   :  { %v11876_v24 = vpop.eup %8795 }
 0xd5e   :  { %v5438_v55 = vpop.permute.xlu1 %5437  ;;  %v5436_v62 = vpop.permute.xlu0 %5435 }
 0xd5f   :  { %v5459_v9 = vsel %vm3129_vm12, %v5436_v62, %v5438_v55 }
 0xd60   :  { %v5471_v11 = vsub.f32 %v12399_v48, %v5459_v9 }
 0xd66   :  { %v5442_v20 = vpop.permute.xlu1 %5441  ;;  %v5440_v30 = vpop.permute.xlu0 %5439 }
 0xd67   :  { %v5460_v37 = vsel %vm3129_vm12, %v5440_v30, %v5442_v20 }
 0xd68   :  { %v5472_v14 = vsub.f32 %v12400_v16, %v5460_v37 }
 0xd6a   :  { %v5477_v57 = vpack.c.bf16 %v5472_v14, %v5471_v11 }
 0xd6c   :  { %8287 = vmatmul.mubr.msk.bf16.vlgmr.msra.gmra.mrb[48].mxu0 %vm2748_vm9, %v5477_v57 }
 0xd6d   :  { %8315 = vmatpush3.bf16.msra.mxu0 %v8653_v6  ;;  %8290 = vmatprep.mubr.msk.bf16.mxu0 %vm8885_vm3, %v12386_v13 }
 0xd6e   :  { %8316 = vmatprep.subr.bf16.mxu0 %v12386_v13 }
 0xd71   :  { %8317 = vmatpush3.bf16.msra.mxu0 %v8654_v0 }
 0xd72   :  { %8346 = vmatprep.subr.bf16.mxu0 %v12386_v13  ;;  %v5446_v42 = vpop.permute.xlu1 %5445  ;;  %v5444_v15 = vpop.permute.xlu0 %5443 }
 0xd73   :  { %v5461_v34 = vsel %vm3129_vm12, %v5444_v15, %v5446_v42 }
 0xd74   :  { %v5473_v32 = vsub.f32 %v11867_v27, %v5461_v34 }
 0xd77   :  { %v5450_v58 = vpop.permute.xlu1 %5449  ;;  %v5448_v52 = vpop.permute.xlu0 %5447 }
 0xd78   :  { %v5462_v1 = vsel %vm3129_vm12, %v5448_v52, %v5450_v58 }
 0xd79   :  { %v5474_v3 = vsub.f32 %v12401_v40, %v5462_v1 }
 0xd7b   :  { %v5478_v33 = vpack.c.bf16 %v5474_v3, %v5473_v32 }
 0xd7d   :  { %8291 = vmatmul.mubr.msk.bf16.gmra.mrb[52].mxu0 %vm2748_vm9, %v5478_v33 }
 0xd7e   :  { %v5454_v29 = vpop.permute.xlu1 %5453  ;;  %v5452_v36 = vpop.permute.xlu0 %5451  ;;  %8294 = vmatprep.mubr.msk.bf16.mxu0 %vm8885_vm3, %v12386_v13 }
 0xd7f   :  { %v5463_v35 = vsel %vm3129_vm12, %v5452_v36, %v5454_v29 }
 0xd80   :  { %v5475_v50 = vsub.f32 %v12402_v51, %v5463_v35 }
 0xd82   :  { %v5458_v56 = vpop.permute.xlu1 %5457 }
 0xd83   :  { %v5456_v28 = vpop.permute.xlu0 %5455 }
 0xd84   :  { %v5464_v12 = vsel %vm3129_vm12, %v5456_v28, %v5458_v56 }
 0xd85   :  { %v5476_v59 = vsub.f32 %v11876_v24, %v5464_v12 }
 0xd87   :  { %v5479_v60 = vpack.c.bf16 %v5476_v59, %v5475_v50  ;;  %v7593_v50 = vld [vmem:[%s12333_s11 + $0x2] ss:$0 sm:$0xff] }
 0xd89   :  { %8295 = vmatmul.mubr.msk.bf16.gmra.mrb[56].mxu0 %vm2748_vm9, %v5479_v60  ;;  %v6261_v63 = vpop.permute.xlu1 %6260  ;;  %v6259_v8 = vpop.permute.xlu0 %6258 }
 0xd8a   :  { %8318 = vmatprep.mubr.msk.bf16.mxu0 %vm8885_vm3, %v12386_v13  ;;  %v6270_v46 = vsel %vm3129_vm12, %v6259_v8, %v6261_v63  ;;  %v7595_v8 = vld [vmem:[%s12334_s12 + $0x2] ss:$0 sm:$0xff] }
 0xd91   :  { %8319 = vmatmul.mubr.msk.bf16.vlgmr.msra.gmra.mrb[60].mxu0 %vm2748_vm9, %v6270_v46 }
 0xd92   :  { %8322 = vmatprep.mubr.msk.bf16.mxu0 %vm8885_vm3, %v12386_v13  ;;  %v6263_v61 = vpop.permute.xlu0 %6262 }
 0xd93   :  { %v6265_v26 = vpop.permute.xlu1 %6264 }
 0xd94   :  { %v6271_v49 = vsel %vm3129_vm12, %v6263_v61, %v6265_v26 }
 0xd99   :  { %8323 = vmatmul.mubr.msk.bf16.gmra.mrb[64].mxu0 %vm2748_vm9, %v6271_v49 }
 0xd9a   :  { %8326 = vmatprep.mubr.msk.bf16.mxu0 %vm8885_vm3, %v12386_v13 }
 0xd9c   :  { %v6269_v43 = vpop.permute.xlu1 %6268  ;;  %v6267_v10 = vpop.permute.xlu0 %6266 }
 0xd9d   :  { %v6272_v38 = vsel %vm3129_vm12, %v6267_v10, %v6269_v43 }
 0xda1   :  { %8327 = vmatmul.mubr.msk.bf16.gmra.mrb[68].mxu0 %vm2748_vm9, %v6272_v38 }
 0xda2   :  { %8350 = vmatprep.mubr.msk.bf16.mxu0 %vm8885_vm3, %v12386_v13 }
 0xe3f   :  { %v5540_v2 = vpop.f32.mrb[48].mxu0 }
 0xe40   :  { %v5571_v21 = vmul.f32 %v7571_v18, %v5540_v2  ;;  %v8288_v5 = vpop.f32.mrb[49].mxu0 }
 0xe41   :  { %v5543_v39 = vpop.f32.mrb[50].mxu0 }
 0xe42   :  { %v5585_v47 = vadd.f32 %v7573_v25, %v5571_v21  ;;  %v5572_v54 = vmul.f32 %v7571_v18, %v5543_v39  ;;  %v8289_v23 = vpop.f32.mrb[51].mxu0 }
 0xe44   :  { %v5591_v7 = vsub.f32 0.0, %v5585_v47  ;;  %v5586_v17 = vadd.f32 %v7573_v25, %v5572_v54 }
 0xe46   :  { %v5597_v19 = vmul.f32 1.442695, %v5591_v7  ;;  %v5592_v55 = vsub.f32 0.0, %v5586_v17 }
 0xe48   :  { %8797 = vpow2.f32 %v5597_v19  ;;  %v5599_v62 = vmul.f32 1.442695, %v5592_v55 }
 0xe4a   :  { %8799 = vpow2.f32 %v5599_v62 }
 0xe50   :  { %v5548_v9 = vpop.f32.mrb[52].mxu0 }
 0xe51   :  { %v5573_v30 = vmul.f32 %v7571_v18, %v5548_v9  ;;  %v8292_v37 = vpop.f32.mrb[53].mxu0 }
 0xe52   :  { %v8798_v22 = vpop.eup %8797  ;;  %v5551_v14 = vpop.f32.mrb[54].mxu0 }
 0xe53   :  { %v5609_v20 = vadd.f32 1.0, %v8798_v22  ;;  %v5587_v6 = vadd.f32 %v7573_v25, %v5573_v30  ;;  %v5574_v57 = vmul.f32 %v7571_v18, %v5551_v14  ;;  %v8293_v53 = vpop.f32.mrb[55].mxu0 }
 0xe54   :  { %v8800_v11 = vpop.eup %8799 }
 0xe55   :  { %8801 = vrcp.f32 %v5609_v20  ;;  %v5610_v44 = vadd.f32 1.0, %v8800_v11  ;;  %v5593_v0 = vsub.f32 0.0, %v5587_v6  ;;  %v5588_v45 = vadd.f32 %v7573_v25, %v5574_v57 }
 0xe57   :  { %8803 = vrcp.f32 %v5610_v44  ;;  %v5601_v42 = vmul.f32 1.442695, %v5593_v0  ;;  %v5594_v15 = vsub.f32 0.0, %v5588_v45 }
 0xe59   :  { %8805 = vpow2.f32 %v5601_v42  ;;  %v5603_v4 = vmul.f32 1.442695, %v5594_v15 }
 0xe5b   :  { %8807 = vpow2.f32 %v5603_v4 }
 0xe5c   :  { %v5556_v34 = vpop.f32.mrb[56].mxu0 }
 0xe5d   :  { %v5575_v58 = vmul.f32 %v7571_v18, %v5556_v34  ;;  %v8296_v52 = vpop.f32.mrb[57].mxu0 }
 0xe5e   :  { %v5559_v1 = vpop.f32.mrb[58].mxu0 }
 0xe5f   :  { %v8802_v32 = vpop.eup %8801  ;;  %v5589_v3 = vadd.f32 %v7573_v25, %v5575_v58  ;;  %v5576_v33 = vmul.f32 %v7571_v18, %v5559_v1  ;;  %v8297_v29 = vpop.f32.mrb[59].mxu0 }
 0xe60   :  { %v5633_v28 = vadd.f32 %v8802_v32, %v12399_v48 }
 0xe61   :  { %v8804_v36 = vpop.eup %8803  ;;  %v5595_v35 = vsub.f32 0.0, %v5589_v3  ;;  %v5590_v56 = vadd.f32 %v7573_v25, %v5576_v33 }
 0xe62   :  { %v5634_v12 = vadd.f32 %v8804_v36, %v12400_v16 }
 0xe63   :  { %v5605_v59 = vmul.f32 1.442695, %v5595_v35  ;;  %v5596_v60 = vsub.f32 0.0, %v5590_v56  ;;  %v8806_v26 = vpop.eup %8805 }
 0xe64   :  { %v6328_v63 = vpop.f32.mrb[60].mxu0  ;;  %v5639_v46 = vpack.c.bf16 %v5634_v12, %v5633_v28  ;;  %v5611_v48 = vadd.f32 1.0, %v8806_v26  ;;  %v11955_v26 = vld [vmem:[#allocation5 + $0x38] sm:$0xff] }
 0xe65   :  { %8809 = vpow2.f32 %v5605_v59  ;;  %v5607_v61 = vmul.f32 1.442695, %v5596_v60  ;;  %v6359_v49 = vmul.f32 %v7593_v50, %v6328_v63  ;;  %v8320_v43 = vpop.f32.mrb[61].mxu0  ;;  %v8808_v16 = vpop.eup %8807 }
 0xe66   :  { %v6331_v10 = vpop.f32.mrb[62].mxu0  ;;  %8303 = vmatmul.mubr.msk.bf16.vlgmr.msra.gmra.mrb[52].mxu1 %vm2748_vm9, %v5639_v46  ;;  %v5612_v18 = vadd.f32 1.0, %v8808_v16  ;;  %v11967_v43 = vld [vmem:[#allocation5 + $0x68] sm:$0xff]  ;;  %v11977_v16 = vld [vmem:[#allocation5 + $0x78] sm:$0x1] }
 0xe67   :  { %8811 = vpow2.f32 %v5607_v61  ;;  %v6373_v38 = vadd.f32 %v7595_v8, %v6359_v49  ;;  %v6360_v31 = vmul.f32 %v7593_v50, %v6331_v10  ;;  %v8321_v41 = vpop.f32.mrb[63].mxu0  ;;  %8306 = vmatprep.mubr.msk.bf16.mxu1 %vm8885_vm3, %v12386_v13 }
 0xe68   :  { %8813 = vrcp.f32 %v5611_v48 }
 0xe69   :  { %v6379_v2 = vsub.f32 0.0, %v6373_v38  ;;  %v6374_v25 = vadd.f32 %v7595_v8, %v6360_v31  ;;  %8815 = vrcp.f32 %v5612_v18  ;;  %v11983_v38 = vld [vmem:[#allocation5 + $0x10] sm:$0xff]  ;;  %v11987_v31 = vld [vmem:[#allocation5 + $0x20] sm:$0xff] }
 0xe6a   :  { %v6498_v18 = vrot.slane %v11983_v38, 1 }
 0xe6b   :  { %v6385_v21 = vmul.f32 1.442695, %v6379_v2  ;;  %v6380_v5 = vsub.f32 0.0, %v6374_v25  ;;  %v6500_v25 = vrot.slane %v11987_v31, 1 }
 0xe6c   :  { %v6336_v39 = vpop.f32.mrb[64].mxu0 }
 0xe6d   :  { %8817 = vpow2.f32 %v6385_v21  ;;  %v6387_v47 = vmul.f32 1.442695, %v6380_v5  ;;  %v6361_v54 = vmul.f32 %v7593_v50, %v6336_v39  ;;  %v8324_v23 = vpop.f32.mrb[65].mxu0  ;;  %v11996_v21 = vld [vmem:[#allocation5 + $0x30] sm:$0xff]  ;;  %v6506_v5 = vrot.slane %v11955_v26, 1 }
 0xe6e   :  { %v6339_v7 = vpop.f32.mrb[66].mxu0 }
 0xe6f   :  { %v8810_v17 = vpop.eup %8809  ;;  %8819 = vpow2.f32 %v6387_v47  ;;  %v11921_v19 = vadd.f32 %v7595_v8, %v6361_v54  ;;  %v6362_v55 = vmul.f32 %v7593_v50, %v6339_v7  ;;  %v8325_v62 = vpop.f32.mrb[67].mxu0  ;;  %v6501_v47 = vsel %vm2904_vm10, %v6498_v18, %v6500_v25 }
 0xe70   :  { %v5613_v22 = vadd.f32 1.0, %v8810_v17  ;;  %v6504_v54 = vrot.slane %v11996_v21, 1 }
 0xe71   :  { %v8812_v9 = vpop.eup %8811  ;;  %v6376_v20 = vadd.f32 %v7595_v8, %v6362_v55  ;;  %v12009_v55 = vld [vmem:[#allocation5 + $0x40] sm:$0xff] }
 0xe72   :  { %v8814_v30 = vpop.eup %8813  ;;  %8821 = vrcp.f32 %v5613_v22  ;;  %v5614_v37 = vadd.f32 1.0, %v8812_v9  ;;  %v6505_v7 = vsel %vm2904_vm10, %v6500_v25, %v6504_v54  ;;  %v6508_v22 = vrot.slane %v12009_v55, 1  ;;  %v12015_v9 = vld [vmem:[#allocation5 + $0x50] sm:$0xff] }
 0xe73   :  { %v6382_v11 = vsub.f32 0.0, %v6376_v20  ;;  %v8816_v14 = vpop.eup %8815  ;;  %v5635_v0 = vadd.f32 %v8814_v30, %v11867_v27 }
 0xe74   :  { %8823 = vrcp.f32 %v5614_v37  ;;  %v6344_v44 = vpop.f32.mrb[68].mxu0  ;;  %v5636_v45 = vadd.f32 %v8816_v14, %v12401_v40  ;;  %v6509_v30 = vsel %vm2904_vm10, %v6504_v54, %v6508_v22  ;;  %v6512_v37 = vrot.slane %v12015_v9, 1 }
 0xe75   :  { %v6391_v6 = vmul.f32 1.442695, %v6382_v11  ;;  %v6363_v57 = vmul.f32 %v7593_v50, %v6344_v44  ;;  %v8328_v53 = vpop.f32.mrb[69].mxu0  ;;  %v6435_v44 = vld [vmem:[#allocation5 + $0x10] sm:$0xfe] }
 0xe76   :  { %v6347_v42 = vpop.f32.mrb[70].mxu0  ;;  %v5640_v58 = vpack.c.bf16 %v5636_v45, %v5635_v0  ;;  %v6513_v14 = vsel %vm2904_vm10, %v6508_v22, %v6512_v37 }
 0xe77   :  { %v8818_v15 = vpop.eup %8817  ;;  %8825 = vpow2.f32 %v6391_v6  ;;  %v6377_v4 = vadd.f32 %v7595_v8, %v6363_v57  ;;  %v6364_v34 = vmul.f32 %v7593_v50, %v6347_v42  ;;  %v8329_v52 = vpop.f32.mrb[71].mxu0 }
 0xe78   :  { %v6397_v1 = vadd.f32 1.0, %v8818_v15  ;;  %8307 = vmatmul.mubr.msk.bf16.gmra.mrb[56].mxu1 %vm2748_vm9, %v5640_v58 }
 0xe79   :  { %v8820_v32 = vpop.eup %8819  ;;  %v6383_v3 = vsub.f32 0.0, %v6377_v4  ;;  %v11925_v33 = vadd.f32 %v7595_v8, %v6364_v34  ;;  %8310 = vmatprep.mubr.msk.bf16.mxu1 %vm8885_vm3, %v12386_v13 }
 0xe7a   :  { %8827 = vrcp.f32 %v6397_v1  ;;  %v6398_v29 = vadd.f32 1.0, %v8820_v32 }
 0xe7b   :  { %v6393_v27 = vmul.f32 1.442695, %v6383_v3 }
 0xe7c   :  { %v8822_v40 = vpop.eup %8821  ;;  %8829 = vrcp.f32 %v6398_v29 }
 0xe7d   :  { %8831 = vpow2.f32 %v6393_v27  ;;  %v5637_v35 = vadd.f32 %v8822_v40, %v12402_v51 }
 0xe7e   :  { %v8824_v36 = vpop.eup %8823 }
 0xe7f   :  { %v5638_v56 = vadd.f32 %v8824_v36, %v11876_v24 }
 0xe81   :  { %v8826_v28 = vpop.eup %8825  ;;  %v5641_v12 = vpack.c.bf16 %v5638_v56, %v5637_v35 }
 0xe82   :  { %v6400_v50 = vadd.f32 1.0, %v8826_v28 }
 0xe83   :  { %8311 = vmatmul.mubr.msk.bf16.gmra.mrb[60].mxu1 %vm2748_vm9, %v5641_v12 }
 0xe84   :  { %v11933_v59 = vpop.eup %8827  ;;  %8833 = vrcp.f32 %v6400_v50  ;;  %8334 = vmatprep.mubr.msk.bf16.mxu1 %vm8885_vm3, %v12386_v13 }
 0xe85   :  { %6415 = vst.msk [vmem:[#allocation5 + $0x18] sm:$0xff] %vm2748_vm9, %v11933_v59 }
 0xe86   :  { %v11939_v60 = vpop.eup %8829 }
 0xe87   :  { %v8832_v63 = vpop.eup %8831  ;;  %6416 = vst.msk [vmem:[#allocation5 + $0x28] sm:$0xff] %vm2748_vm9, %v11939_v60 }
 0xe88   :  { %v6401_v24 = vadd.f32 1.0, %v8832_v63 }
 0xe8a   :  { %8835 = vrcp.f32 %v6401_v24  ;;  %v6445_v24 = vld [vmem:[#allocation5 + $0x60] sm:$0xff] }
 0xe8c   :  { %v11943_v51 = vld [vmem:[#allocation5 + $0x18] sm:$0xfe] }
 0xe8d   :  { %6580 = vrot.lane.b32.xlu0 %v11943_v51, %s8888_s1  ;;  %v11975_v10 = vld [vmem:[#allocation5 + $0x18] sm:$0xff] }
 0xe8e   :  { %v11947_v8 = vpop.eup %8833  ;;  %v11949_v46 = vld [vmem:[#allocation5 + $0x28] sm:$0xff]  ;;  %v6499_v41 = vrot.slane %v11975_v10, 1 }
 0xe8f   :  { %6417 = vst.msk [vmem:[#allocation5 + $0x48] sm:$0xff] %vm2748_vm9, %v11947_v8  ;;  %6582 = vrot.lane.b32.xlu1 %v11949_v46, %s8888_s1  ;;  %v6502_v2 = vrot.slane %v11949_v46, 1 }
 0xe91   :  { %6584 = vrot.lane.b32.xlu0 %v11955_v26, %s8888_s1  ;;  %v6503_v39 = vsel %vm2904_vm10, %v6499_v41, %v6502_v2  ;;  %v6507_v23 = vsel %vm2904_vm10, %v6502_v2, %v6506_v5 }
 0xe94   :  { %v11959_v61 = vpop.eup %8835 }
 0xe95   :  { %6418 = vst.msk [vmem:[#allocation5 + $0x58] sm:$0xff] %vm2748_vm9, %v11959_v61 }
 0xe96   :  { %v11963_v49 = vld [vmem:[#allocation5 + $0x48] sm:$0xff] }
 0xe97   :  { %6586 = vrot.lane.b32.xlu1 %v11963_v49, %s8888_s1  ;;  %v6510_v17 = vrot.slane %v11963_v49, 1 }
 0xe99   :  { %v6511_v62 = vsel %vm2904_vm10, %v6506_v5, %v6510_v17 }
 0xe9b   :  { %6590 = vrot.lane.b32.xlu1 %v11967_v43, %s8888_s1 }
 0xe9c   :  { %v11971_v48 = vld [vmem:[#allocation5 + $0x58] sm:$0xff] }
 0xe9d   :  { %6588 = vrot.lane.b32.xlu0 %v11971_v48, %s8888_s1  ;;  %v6514_v20 = vrot.slane %v11971_v48, 1 }
 0xe9f   :  { %6458 = vrot.lane.b32.xlu1 %v11975_v10, %s8888_s1  ;;  %v6515_v11 = vsel %vm2904_vm10, %v6510_v17, %v6514_v20 }
 0xea1   :  { %6592 = vrot.lane.b32.xlu0 %v11977_v16, %s8888_s1 }
 0xea3   :  { %6462 = vrot.lane.b32.xlu1 %v11955_v26, %s8888_s1 }
 0xea5   :  { %6460 = vrot.lane.b32.xlu0 %v11949_v46, %s8888_s1 }
 0xea7   :  { %6522 = vrot.lane.b32.xlu1 %v6499_v41, %s8886_s27 }
 0xea9   :  { %6520 = vrot.lane.b32.xlu0 %v6498_v18, %s8886_s27 }
 0xeab   :  { %6526 = vrot.lane.b32.xlu1 %v6503_v39, %s8886_s27 }
 0xead   :  { %6524 = vrot.lane.b32.xlu0 %v6501_v47, %s8886_s27 }
 0xeaf   :  { %6530 = vrot.lane.b32.xlu1 %v6507_v23, %s8886_s27 }
 0xeb1   :  { %6528 = vrot.lane.b32.xlu0 %v6505_v7, %s8886_s27  ;;  %v6447_v7 = vld [vmem:[#allocation5 + $0x70] sm:$0x1] }
 0xeb3   :  { %6534 = vrot.lane.b32.xlu1 %v6511_v62, %s8886_s27 }
 0xeb5   :  { %6464 = vrot.lane.b32.xlu0 %v11963_v49, %s8888_s1 }
 0xeb7   :  { %6466 = vrot.lane.b32.xlu1 %v11971_v48, %s8888_s1 }
 0xeb9   :  { %6532 = vrot.lane.b32.xlu0 %v6509_v30, %s8886_s27 }
 0xebb   :  { %6538 = vrot.lane.b32.xlu1 %v6515_v11, %s8886_s27 }
 0xebd   :  { %6536 = vrot.lane.b32.xlu0 %v6513_v14, %s8886_s27 }
 0xec1   :  { %6569 = vrot.lane.b32.xlu0 %v11967_v43, %s8888_s1 }
 0xeff   :  { %v6581_v6 = vpop.permute.xlu0 %6580 }
 0xf00   :  { %v6601_v57 = vadd.f32 %v6581_v6, %v6435_v44  ;;  %v6602_v53 = vadd.f32 %v6581_v6, %v11943_v51 }
 0xf01   :  { %v6583_v0 = vpop.permute.xlu1 %6582 }
 0xf02   :  { %v6603_v45 = vadd.f32 %v6583_v0, %v11987_v31  ;;  %v6604_v42 = vadd.f32 %v6583_v0, %v11949_v46  ;;  %v6671_v15 = vrot.slane %v6601_v57, 1  ;;  %v6674_v4 = vrot.slane %v6602_v53, 1 }
 0xf03   :  { %v6585_v34 = vpop.permute.xlu0 %6584 }
 0xf04   :  { %v6672_v58 = vrot.slane %v6603_v45, 1  ;;  %v6675_v52 = vrot.slane %v6604_v42, 1  ;;  %v6605_v1 = vadd.f32 %v6585_v34, %v11996_v21  ;;  %v6606_v32 = vadd.f32 %v6585_v34, %v11955_v26 }
 0xf06   :  { %v6677_v3 = vrot.slane %v6605_v1, 1  ;;  %v6679_v29 = vrot.slane %v6606_v32, 1  ;;  %v6673_v27 = vsel %vm2904_vm10, %v6671_v15, %v6672_v58  ;;  %v6676_v40 = vsel %vm2904_vm10, %v6674_v4, %v6675_v52 }
 0xf07   :  { %6697 = vrot.lane.b32.xlu0 %v6673_v27, %s8889_s8  ;;  %6699 = vrot.lane.b32.xlu1 %v6676_v40, %s8889_s8  ;;  %v6518_v1 = vrot.slane %v11967_v43, 1 }
 0xf08   :  { %v6678_v28 = vsel %vm2904_vm10, %v6672_v58, %v6677_v3  ;;  %v6680_v12 = vsel %vm2904_vm10, %v6675_v52, %v6679_v29  ;;  %v6516_v58 = vrot.slane %v6445_v24, 1 }
 0xf09   :  { %v6587_v36 = vpop.permute.xlu1 %6586 }
 0xf0a   :  { %v6607_v35 = vadd.f32 %v6587_v36, %v12009_v55  ;;  %v6608_v56 = vadd.f32 %v6587_v36, %v11963_v49  ;;  %v6517_v27 = vsel %vm2904_vm10, %v6512_v37, %v6516_v58  ;;  %v6519_v36 = vsel %vm2904_vm10, %v6514_v20, %v6518_v1 }
 0xf0b   :  { %6701 = vrot.lane.b32.xlu0 %v6678_v28, %s8889_s8  ;;  %6703 = vrot.lane.b32.xlu1 %v6680_v12, %s8889_s8  ;;  %v12085_v28 = vld [vmem:[#allocation5 + $0x8] sm:$0x80] }
 0xf0c   :  { %v6681_v50 = vrot.slane %v6607_v35, 1  ;;  %v6683_v63 = vrot.slane %v6608_v56, 1 }
 0xf0d   :  { %v6591_v41 = vpop.permute.xlu1 %6590 }
 0xf0e   :  { %v6682_v18 = vsel %vm2904_vm10, %v6677_v3, %v6681_v50  ;;  %v6684_v2 = vsel %vm2904_vm10, %v6679_v29, %v6683_v63  ;;  %v6611_v25 = vadd.f32 %v6591_v41, %v6445_v24  ;;  %v6612_v5 = vadd.f32 %v6591_v41, %v11967_v43 }
 0xf0f   :  { %6705 = vrot.lane.b32.xlu0 %v6682_v18, %s8889_s8  ;;  %v6589_v39 = vpop.permute.xlu0 %6588  ;;  %6707 = vrot.lane.b32.xlu1 %v6684_v2, %s8889_s8 }
 0xf10   :  { %v6609_v47 = vadd.f32 %v6589_v39, %v12015_v9  ;;  %v6610_v54 = vadd.f32 %v6589_v39, %v11971_v48  ;;  %v6689_v22 = vrot.slane %v6611_v25, 1  ;;  %v6691_v30 = vrot.slane %v6612_v5, 1 }
 0xf11   :  { %v12057_v23 = vpop.permute.xlu1 %6458  ;;  %v6792_v25 = vrot.slane %v11949_v46, 2  ;;  %v6791_v39 = vrot.slane %v11943_v51, 2 }
 0xf12   :  { %v6685_v17 = vrot.slane %v6609_v47, 1  ;;  %v6687_v62 = vrot.slane %v6610_v54, 1  ;;  %v6794_v47 = vrot.slane %v11955_v26, 2 }
 0xf13   :  { %v6593_v11 = vpop.permute.xlu0 %6592 }
 0xf14   :  { %v6613_v14 = vadd.f32 %v6593_v11, %v6447_v7  ;;  %v6614_v44 = vadd.f32 %v6593_v11, %v11977_v16  ;;  %v6686_v6 = vsel %vm2904_vm10, %v6681_v50, %v6685_v17  ;;  %v6688_v57 = vsel %vm2904_vm10, %v6683_v63, %v6687_v62 }
 0xf15   :  { %v12062_v53 = vpop.permute.xlu1 %6462  ;;  %6709 = vrot.lane.b32.xlu0 %v6686_v6, %s8889_s8  ;;  %6711 = vrot.lane.b32.xlu1 %v6688_v57, %s8889_s8  ;;  %v6690_v15 = vsel %vm2904_vm10, %v6685_v17, %v6689_v22  ;;  %v6692_v4 = vsel %vm2904_vm10, %v6687_v62, %v6691_v30  ;;  %v6793_v7 = vsel %vm3200_vm11, %v6791_v39, %v6792_v25  ;;  %v5627_v6 = vld [vmem:[#allocation6] sm:$0xff] }
 0xf16   :  { %v6693_v45 = vrot.slane %v6613_v14, 1  ;;  %v6695_v42 = vrot.slane %v6614_v44, 1  ;;  %v6795_v51 = vsel %vm3200_vm11, %v6792_v25, %v6794_v47 }
 0xf17   :  { %v12066_v0 = vpop.permute.xlu0 %6460 }
 0xf18   :  { %v6696_v32 = vsel %vm2904_vm10, %v6691_v30, %v6695_v42  ;;  %v6694_v3 = vsel %vm2904_vm10, %v6689_v22, %v6693_v45  ;;  %v6796_v30 = vrot.slane %v11963_v49, 2 }
 0xf19   :  { %v6523_v34 = vpop.permute.xlu1 %6522  ;;  %6713 = vrot.lane.b32.xlu0 %v6690_v15, %s8889_s8  ;;  %6715 = vrot.lane.b32.xlu1 %v6692_v4, %s8889_s8  ;;  %v5628_v15 = vld [vmem:[#allocation6 + $0x8] sm:$0xff] }
 0xf1a   :  { %v6797_v44 = vsel %vm3200_vm11, %v6794_v47, %v6796_v30 }
 0xf1b   :  { %v6521_v52 = vpop.permute.xlu0 %6520 }
 0xf1c   :  { %v6548_v12 = vsel %vm366_vm6, %v6521_v52, %v6523_v34  ;;  %v5629_v52 = vld [vmem:[#allocation6 + $0x10] sm:$0xff] }
 0xf1d   :  { %v6527_v29 = vpop.permute.xlu1 %6526  ;;  %6719 = vrot.lane.b32.xlu0 %v6696_v32, %s8889_s8  ;;  %6717 = vrot.lane.b32.xlu1 %v6694_v3, %s8889_s8  ;;  %v6562_v37 = vadd.f32 %v6548_v12, %v12085_v28 }
 0xf1f   :  { %v6525_v40 = vpop.permute.xlu0 %6524 }
 0xf20   :  { %v6549_v20 = vsel %vm366_vm6, %v6525_v40, %v6527_v29  ;;  %v5630_v29 = vld [vmem:[#allocation6 + $0x18] sm:$0xff] }
 0xf21   :  { %v6531_v35 = vpop.permute.xlu1 %6530  ;;  %6542 = vrot.lane.b32.xlu0 %v6519_v36, %s8886_s27  ;;  %6540 = vrot.lane.b32.xlu1 %v6517_v27, %s8886_s27  ;;  %v6563_v41 = vadd.f32 %v6549_v20, %v11975_v10 }
 0xf23   :  { %v6529_v56 = vpop.permute.xlu0 %6528 }
 0xf24   :  { %v6550_v24 = vsel %vm366_vm6, %v6529_v56, %v6531_v35  ;;  %v5631_v35 = vld [vmem:[#allocation6 + $0x20] sm:$0xff] }
 0xf25   :  { %6546 = vrot.lane.b32.xlu0 %v6518_v1, %s8886_s27  ;;  %6544 = vrot.lane.b32.xlu1 %v6516_v58, %s8886_s27  ;;  %v6535_v50 = vpop.permute.xlu1 %6534  ;;  %v6564_v18 = vadd.f32 %v6550_v24, %v11949_v46 }
 0xf27   :  { %v12091_v63 = vpop.permute.xlu0 %6464 }
 0xf29   :  { %6622 = vrot.lane.b32.xlu0 %v6562_v37, %s8887_s20  ;;  %6456 = vrot.lane.b32.xlu1 %v12085_v28, %s8888_s1  ;;  %v12101_v5 = vpop.permute.xlu1 %6466 }
 0xf2b   :  { %v6533_v2 = vpop.permute.xlu0 %6532 }
 0xf2c   :  { %v6551_v54 = vsel %vm366_vm6, %v6533_v2, %v6535_v50  ;;  %v5632_v50 = vld [vmem:[#allocation6 + $0x28] sm:$0xff]  ;;  %v12131_v2 = vadd.f32 %v12057_v23, %v11975_v10  ;;  %v12144_v10 = vadd.f32 %v12062_v53, %v11955_v26 }
 0xf2d   :  { %6626 = vrot.lane.b32.xlu0 %v6564_v18, %s8887_s20  ;;  %6624 = vrot.lane.b32.xlu1 %v6563_v41, %s8887_s20  ;;  %v6565_v62 = vadd.f32 %v6551_v54, %v11955_v26  ;;  %v6539_v22 = vpop.permute.xlu1 %6538 }
 0xf2f   :  { %v6537_v17 = vpop.permute.xlu0 %6536 }
 0xf30   :  { %v6552_v11 = vsel %vm366_vm6, %v6537_v17, %v6539_v22 }
 0xf31   :  { %6804 = vrot.lane.b32.xlu0 %v6791_v39, %s8887_s20  ;;  %6806 = vrot.lane.b32.xlu1 %v6793_v7, %s8887_s20  ;;  %v6566_v14 = vadd.f32 %v6552_v11, %v11963_v49  ;;  %v12137_v7 = vadd.f32 %v12066_v0, %v11949_v46  ;;  %v6798_v46 = vrot.slane %v11971_v48, 2 }
 0xf33   :  { %v6570_v18 = vpop.permute.xlu0 %6569 }
 0xf35   :  { %6808 = vrot.lane.b32.xlu0 %v6795_v51, %s8887_s20  ;;  %6628 = vrot.lane.b32.xlu1 %v6565_v62, %s8887_s20 }
 0xf39   :  { %6810 = vrot.lane.b32.xlu1 %v6797_v44, %s8887_s20  ;;  %6630 = vrot.lane.b32.xlu0 %v6566_v14, %s8887_s20  ;;  %v5702_v57 = vpop.f32.mrb[52].mxu1 }
 0xf3a   :  { %v5725_v45 = vadd.f32 %v5702_v57, %v5627_v6  ;;  %v8304_v42 = vpop.f32.mrb[53].mxu1 }
 0xf3b   :  { %v5705_v4 = vpop.f32.mrb[54].mxu1 }
 0xf3c   :  { %5731 = vst.msk [vmem:[#allocation6] sm:$0xff] %vm135_vm2, %v5725_v45  ;;  %v5726_v34 = vadd.f32 %v5705_v4, %v5628_v15  ;;  %v8305_v58 = vpop.f32.mrb[55].mxu1  ;;  %v12153_v4 = vadd.f32 %v12091_v63, %v11963_v49 }
 0xf3d   :  { %v6799_v58 = vsel %vm3200_vm11, %v6796_v30, %v6798_v46 }
 0xf3e   :  { %5732 = vst.msk [vmem:[#allocation6 + $0x8] sm:$0xff] %vm135_vm2, %v5726_v34 }
 0xf4b   :  { %v5710_v1 = vpop.f32.mrb[56].mxu1 }
 0xf4c   :  { %v5727_v32 = vadd.f32 %v5710_v1, %v5629_v52  ;;  %v8308_v3 = vpop.f32.mrb[57].mxu1 }
 0xf4d   :  { %v5713_v27 = vpop.f32.mrb[58].mxu1  ;;  %v12163_v3 = vld [vmem:[#allocation5 + $0x68] sm:$0x7f] }
 0xf4e   :  { %5733 = vst.msk [vmem:[#allocation6 + $0x10] sm:$0xff] %vm135_vm2, %v5727_v32  ;;  %v5728_v40 = vadd.f32 %v5713_v27, %v5630_v29  ;;  %v8309_v36 = vpop.f32.mrb[59].mxu1  ;;  %v12167_v29 = vadd.f32 %v12101_v5, %v11971_v48 }
 0xf50   :  { %5734 = vst.msk [vmem:[#allocation6 + $0x18] sm:$0xff] %vm135_vm2, %v5728_v40 }
 0xf56   :  { %v5718_v56 = vpop.f32.mrb[60].mxu1 }
 0xf57   :  { %v5729_v12 = vadd.f32 %v5718_v56, %v5631_v35  ;;  %v8312_v37 = vpop.f32.mrb[61].mxu1 }
 0xf58   :  { %v5721_v20 = vpop.f32.mrb[62].mxu1 }
 0xf59   :  { %5735 = vst.msk [vmem:[#allocation6 + $0x20] sm:$0xff] %vm135_vm2, %v5729_v12  ;;  %v5730_v24 = vadd.f32 %v5721_v20, %v5632_v50  ;;  %v8313_v41 = vpop.f32.mrb[63].mxu1  ;;  %v6572_v50 = vadd.f32 %v6570_v18, %v11967_v43 }
 0xf5b   :  { %5736 = vst.msk [vmem:[#allocation6 + $0x28] sm:$0xff] %vm135_vm2, %v5730_v24 }
 0xf79   :  { %v6698_v25 = vpop.permute.xlu0 %6697  ;;  %v6700_v39 = vpop.permute.xlu1 %6699 }
 0xf7a   :  { %v6721_v47 = vsel %vm3129_vm12, %v6698_v25, %v6700_v39 }
 0xf7b   :  { %v6733_v54 = vadd.f32 %v6721_v47, %v12131_v2 }
 0xf7d   :  { %v6745_v17 = vrot.slane %v6733_v54, 1  ;;  %v6702_v62 = vpop.permute.xlu0 %6701  ;;  %v6704_v22 = vpop.permute.xlu1 %6703 }
 0xf7e   :  { %v6722_v11 = vsel %vm3129_vm12, %v6702_v62, %v6704_v22 }
 0xf7f   :  { %v6734_v51 = vadd.f32 %v6722_v11, %v12137_v7  ;;  %6756 = vrot.lane.b32.xlu1 %v6745_v17, %s8888_s1 }
 0xf81   :  { %v6746_v14 = vrot.slane %v6734_v51, 1  ;;  %v6706_v44 = vpop.permute.xlu0 %6705  ;;  %v6708_v6 = vpop.permute.xlu1 %6707  ;;  %v6800_v51 = vrot.slane %v11967_v43, 2 }
 0xf82   :  { %v6723_v57 = vsel %vm3129_vm12, %v6706_v44, %v6708_v6  ;;  %v6802_v44 = vrot.slane %v11977_v16, 2 }
 0xf83   :  { %v6735_v45 = vadd.f32 %v6723_v57, %v12144_v10  ;;  %v6747_v42 = vsel %vm2904_vm10, %v6745_v17, %v6746_v14  ;;  %v6801_v6 = vsel %vm3200_vm11, %v6798_v46, %v6800_v51 }
 0xf84   :  { %6758 = vrot.lane.b32.xlu0 %v6747_v42, %s8888_s1  ;;  %v6803_v43 = vsel %vm3200_vm11, %v6800_v51, %v6802_v44 }
 0xf85   :  { %v6748_v15 = vrot.slane %v6735_v45, 1 }
 0xf87   :  { %v6710_v26 = vpop.permute.xlu0 %6709  ;;  %v6712_v34 = vpop.permute.xlu1 %6711  ;;  %v6749_v52 = vsel %vm2904_vm10, %v6746_v14, %v6748_v15 }
 0xf88   :  { %v6724_v1 = vsel %vm3129_vm12, %v6710_v26, %v6712_v34  ;;  %6812 = vrot.lane.b32.xlu0 %v6799_v58, %s8887_s20  ;;  %6760 = vrot.lane.b32.xlu1 %v6749_v52, %s8888_s1  ;;  %v6419_v58 = vld [vmem:[#allocation5] sm:$0x80] }
 0xf89   :  { %v6736_v32 = vadd.f32 %v6724_v1, %v12153_v4 }
 0xf8b   :  { %v6750_v27 = vrot.slane %v6736_v32, 1  ;;  %v6714_v49 = vpop.permute.xlu0 %6713  ;;  %v6716_v40 = vpop.permute.xlu1 %6715 }
 0xf8c   :  { %v6725_v30 = vsel %vm3129_vm12, %v6714_v49, %v6716_v40  ;;  %6468 = vrot.lane.b32.xlu1 %v12163_v3, %s8888_s1 }
 0xf8d   :  { %v6737_v36 = vadd.f32 %v6725_v30, %v12167_v29  ;;  %v6751_v35 = vsel %vm2904_vm10, %v6748_v15, %v6750_v27 }
 0xf8f   :  { %v6752_v56 = vrot.slane %v6737_v36, 1  ;;  %v6720_v12 = vpop.permute.xlu0 %6719  ;;  %v6718_v37 = vpop.permute.xlu1 %6717 }
 0xf90   :  { %v6726_v20 = vsel %vm3129_vm12, %v6718_v37, %v6720_v12  ;;  %6762 = vrot.lane.b32.xlu1 %v6751_v35, %s8888_s1 }
 0xf91   :  { %v6753_v24 = vsel %vm2904_vm10, %v6750_v27, %v6752_v56  ;;  %v6738_v41 = vadd.f32 %v6726_v20, %v6572_v50 }
 0xf92   :  { %6764 = vrot.lane.b32.xlu0 %v6753_v24, %s8888_s1 }
 0xf93   :  { %v6543_v25 = vpop.permute.xlu0 %6542  ;;  %v6541_v39 = vpop.permute.xlu1 %6540  ;;  %v6754_v17 = vrot.slane %v6738_v41, 1 }
 0xf94   :  { %v6553_v47 = vsel %vm366_vm6, %v6541_v39, %v6543_v25 }
 0xf95   :  { %v6567_v54 = vadd.f32 %v6553_v47, %v11971_v48  ;;  %v6755_v14 = vsel %vm2904_vm10, %v6752_v56, %v6754_v17  ;;  %v8657_v48 = vld [vmem:[%s12335_s13 + $0x20] sm:$0xff]   ;;  %v6479_v56 = vadd.f32 %v12057_v23, %v11983_v38  ;;  %v8658_v38 = vld [vmem:[%s12335_s13 + $0x28] sm:$0xff]  }
 0xf96   :  { %8331 = vmatpush3.bf16.msra.mxu1 %v8657_v48 }
 0xf97   :  { %v6547_v62 = vpop.permute.xlu0 %6546  ;;  %6632 = vrot.lane.b32.xlu0 %v6567_v54, %s8887_s20  ;;  %v6545_v18 = vpop.permute.xlu1 %6544  ;;  %8332 = vmatprep.subr.bf16.mxu1 %v12386_v13 }
 0xf98   :  { %v6554_v22 = vsel %vm366_vm6, %v6545_v18, %v6547_v62 }
 0xf99   :  { %v6568_v11 = vadd.f32 %v6554_v22, %v12163_v3 }
 0xf9a   :  { %8333 = vmatpush3.bf16.msra.mxu1 %v8658_v38 }
 0xf9b   :  { %6766 = vrot.lane.b32.xlu0 %v6755_v14, %s8888_s1  ;;  %6634 = vrot.lane.b32.xlu1 %v6568_v11, %s8887_s20  ;;  %v6457_v57 = vpop.permute.xlu1 %6456  ;;  %v6623_v45 = vpop.permute.xlu0 %6622 }
 0xf9c   :  { %v6477_v46 = vadd.f32 %v6457_v57, %v6419_v58  ;;  %v6478_v52 = vadd.f32 %v6457_v57, %v12085_v28  ;;  %v6481_v28 = vadd.f32 %v12066_v0, %v11987_v31 }
 0xf9e   :  { %v6643_v27 = vadd.f32 %v6623_v45, %v6477_v46  ;;  %v6644_v49 = vadd.f32 %v6623_v45, %v6478_v52 }
 0xf9f   :  { %6814 = vrot.lane.b32.xlu0 %v6801_v6, %s8887_s20  ;;  %6768 = vrot.lane.b32.xlu1 %v6754_v17, %s8888_s1  ;;  %v6625_v16 = vpop.permute.xlu1 %6624  ;;  %v6627_v42 = vpop.permute.xlu0 %6626 }
 0xfa0   :  { %v6645_v12 = vadd.f32 %v6625_v16, %v6479_v56  ;;  %v6646_v37 = vadd.f32 %v6625_v16, %v12131_v2  ;;  %v6647_v39 = vadd.f32 %v6627_v42, %v6481_v28  ;;  %v6648_v47 = vadd.f32 %v6627_v42, %v12137_v7 }
 0xfa1   :  { %v6485_v16 = vadd.f32 %v12091_v63, %v12009_v55 }
 0xfa3   :  { %6816 = vrot.lane.b32.xlu1 %v6803_v43, %s8887_s20  ;;  %v6807_v15 = vpop.permute.xlu1 %6806  ;;  %v6805_v26 = vpop.permute.xlu0 %6804  ;;  %v6483_v43 = vadd.f32 %v12062_v53, %v11996_v21 }
 0xfa7   :  { %v6629_v34 = vpop.permute.xlu1 %6628  ;;  %v6809_v1 = vpop.permute.xlu0 %6808 }
 0xfa8   :  { %v6649_v58 = vadd.f32 %v6629_v34, %v6483_v43  ;;  %v6650_v46 = vadd.f32 %v6629_v34, %v12144_v10 }
 0xfab   :  { %v6811_v32 = vpop.permute.xlu1 %6810  ;;  %v6631_v30 = vpop.permute.xlu0 %6630 }
 0xfac   :  { %v6651_v21 = vadd.f32 %v6631_v30, %v6485_v16  ;;  %v6652_v53 = vadd.f32 %v6631_v30, %v12153_v4 }
 0xff1   :  { %v6757_v40 = vpop.permute.xlu1 %6756 }
 0xff2   :  { %v6777_v36 = vadd.f32 %v6757_v40, %v6643_v27  ;;  %v6778_v35 = vadd.f32 %v6757_v40, %v6644_v49 }
 0xff4   :  { %v6825_v50 = vadd.f32 %v6805_v26, %v6777_v36  ;;  %v6826_v20 = vadd.f32 %v6805_v26, %v6778_v35 }
 0xff6   :  { %v6759_v24 = vpop.permute.xlu0 %6758  ;;  %v6839_v23 = vmul.f32 0.11111111, %v6825_v50  ;;  %v6840_v62 = vmul.f32 0.11111111, %v6826_v20 }
 0xff7   :  { %v6779_v41 = vadd.f32 %v6759_v24, %v6645_v12  ;;  %v6780_v25 = vadd.f32 %v6759_v24, %v6646_v37 }
 0xff8   :  { %v6867_v48 = vrot.slane %v6839_v23, 7  ;;  %v6870_v7 = vrot.slane %v6840_v62, 7 }
 0xff9   :  { %v6827_v54 = vadd.f32 %v6807_v15, %v6779_v41  ;;  %v6828_v17 = vadd.f32 %v6807_v15, %v6780_v25 }
 0xffa   :  { %v6761_v2 = vpop.permute.xlu1 %6760  ;;  %v6813_v42 = vpop.permute.xlu0 %6812 }
 0xffb   :  { %v6841_v18 = vmul.f32 0.11111111, %v6827_v54  ;;  %v6842_v22 = vmul.f32 0.11111111, %v6828_v17  ;;  %v6781_v11 = vadd.f32 %v6761_v2, %v6647_v39  ;;  %v6782_v51 = vadd.f32 %v6761_v2, %v6648_v47  ;;  %v6431_v17 = vld [vmem:[#allocation5 + $0x60] sm:$0x7f] }
 0xffc   :  { %v6487_v54 = vadd.f32 %v12101_v5, %v12015_v9 }
 0xffd   :  { %v6868_v31 = vrot.slane %v6841_v18, 7  ;;  %v6871_v0 = vrot.slane %v6842_v22, 7  ;;  %v6829_v14 = vadd.f32 %v6809_v1, %v6781_v11  ;;  %v6830_v44 = vadd.f32 %v6809_v1, %v6782_v51 }
 0xffe   :  { %v6469_v6 = vpop.permute.xlu1 %6468 }
 0xfff   :  { %v6843_v57 = vmul.f32 0.11111111, %v6829_v14  ;;  %v6844_v45 = vmul.f32 0.11111111, %v6830_v44  ;;  %v6872_v15 = vsel %vm3953_vm13, %v6870_v7, %v6871_v0  ;;  %v6869_v26 = vsel %vm3953_vm13, %v6867_v48, %v6868_v31 }
0x1000   :  { %6895 = vrot.lane.b32.xlu1 %v6872_v15, %s8889_s8  ;;  %6893 = vrot.lane.b32.xlu0 %v6869_v26, %s8889_s8  ;;  %v6489_v11 = vadd.f32 %v6469_v6, %v6431_v17  ;;  %v6490_v51 = vadd.f32 %v6469_v6, %v12163_v3 }
0x1001   :  { %v6873_v52 = vrot.slane %v6843_v57, 7  ;;  %v6875_v1 = vrot.slane %v6844_v45, 7 }
0x1002   :  { %v6763_v27 = vpop.permute.xlu1 %6762 }
0x1003   :  { %v6783_v49 = vadd.f32 %v6763_v27, %v6649_v58  ;;  %v6784_v55 = vadd.f32 %v6763_v27, %v6650_v46  ;;  %v6876_v63 = vsel %vm3953_vm13, %v6871_v0, %v6875_v1  ;;  %v6874_v40 = vsel %vm3953_vm13, %v6868_v31, %v6873_v52 }
0x1004   :  { %v6765_v36 = vpop.permute.xlu0 %6764  ;;  %6899 = vrot.lane.b32.xlu1 %v6876_v63, %s8889_s8  ;;  %6897 = vrot.lane.b32.xlu0 %v6874_v40, %s8889_s8  ;;  %v6384_v63 = vsub.f32 0.0, %v11925_v33 }
0x1005   :  { %v6831_v35 = vadd.f32 %v6811_v32, %v6783_v49  ;;  %v6832_v56 = vadd.f32 %v6811_v32, %v6784_v55  ;;  %v6785_v10 = vadd.f32 %v6765_v36, %v6651_v21  ;;  %v6786_v34 = vadd.f32 %v6765_v36, %v6652_v53 }
0x1006   :  { %v6381_v49 = vsub.f32 0.0, %v11921_v19  ;;  %v6395_v40 = vmul.f32 1.442695, %v6384_v63 }
0x1007   :  { %v6845_v12 = vmul.f32 0.11111111, %v6831_v35  ;;  %v6846_v37 = vmul.f32 0.11111111, %v6832_v56  ;;  %v6833_v50 = vadd.f32 %v6813_v42, %v6785_v10  ;;  %v6834_v4 = vadd.f32 %v6813_v42, %v6786_v34 }
0x1008   :  { %v6389_v55 = vmul.f32 1.442695, %v6381_v49 }
0x1009   :  { %v6877_v30 = vrot.slane %v6845_v12, 7  ;;  %v6879_v20 = vrot.slane %v6846_v37, 7  ;;  %v6847_v24 = vmul.f32 0.11111111, %v6833_v50  ;;  %v6848_v28 = vmul.f32 0.11111111, %v6834_v4  ;;  %v6633_v41 = vpop.permute.xlu0 %6632 }
0x100a   :  { %v6653_v18 = vadd.f32 %v6633_v41, %v6487_v54  ;;  %v6654_v22 = vadd.f32 %v6633_v41, %v12167_v29  ;;  %8837 = vpow2.f32 %v6389_v55 }
0x100b   :  { %v6881_v25 = vrot.slane %v6847_v24, 7  ;;  %v6883_v39 = vrot.slane %v6848_v28, 7  ;;  %v6880_v47 = vsel %vm3953_vm13, %v6875_v1, %v6879_v20  ;;  %v6878_v32 = vsel %vm3953_vm13, %v6873_v52, %v6877_v30 }
0x100c   :  { %6903 = vrot.lane.b32.xlu1 %v6880_v47, %s8889_s8  ;;  %6901 = vrot.lane.b32.xlu0 %v6878_v32, %s8889_s8  ;;  %8839 = vpow2.f32 %v6395_v40 }
0x100d   :  { %v6767_v38 = vpop.permute.xlu0 %6766  ;;  %v6635_v23 = vpop.permute.xlu1 %6634  ;;  %v6884_v62 = vsel %vm3953_vm13, %v6879_v20, %v6883_v39  ;;  %v6882_v2 = vsel %vm3953_vm13, %v6877_v30, %v6881_v25 }
0x100e   :  { %v6787_v31 = vadd.f32 %v6767_v38, %v6653_v18  ;;  %v6788_v0 = vadd.f32 %v6767_v38, %v6654_v22  ;;  %v6655_v14 = vadd.f32 %v6635_v23, %v6489_v11  ;;  %v6656_v44 = vadd.f32 %v6635_v23, %v6490_v51 }
0x1010   :  { %6907 = vrot.lane.b32.xlu1 %v6884_v62, %s8889_s8  ;;  %6905 = vrot.lane.b32.xlu0 %v6882_v2, %s8889_s8 }
0x1011   :  { %v6815_v9 = vpop.permute.xlu0 %6814  ;;  %v6769_v5 = vpop.permute.xlu1 %6768 }
0x1012   :  { %v6835_v48 = vadd.f32 %v6815_v9, %v6787_v31  ;;  %v6836_v7 = vadd.f32 %v6815_v9, %v6788_v0  ;;  %v6789_v45 = vadd.f32 %v6769_v5, %v6655_v14  ;;  %v6790_v16 = vadd.f32 %v6769_v5, %v6656_v44  ;;  %v8659_v5 = vld [vmem:[%s12329_s16 + $0x30] sm:$0xff]   ;;  %v8660_v14 = vld [vmem:[%s12329_s16 + $0x38] sm:$0xff]   ;;  %v7606_v44 = vld [vmem:[%s12336_s14 + $0x2] ss:$0 sm:$0xff] }
0x1013   :  { %8347 = vmatpush3.bf16.msra.mxu0 %v8659_v5 }
0x1014   :  { %v6849_v43 = vmul.f32 0.11111111, %v6835_v48  ;;  %v6850_v57 = vmul.f32 0.11111111, %v6836_v7  ;;  %v8838_v36 = vpop.eup %8837  ;;  %8348 = vmatprep.subr.bf16.mxu0 %v12386_v13  ;;  %v7608_v7 = vld [vmem:[%s12337_s15 + $0x2] ss:$0 sm:$0xff] }
0x1015   :  { %v6817_v29 = vpop.permute.xlu1 %6816  ;;  %v6399_v10 = vadd.f32 1.0, %v8838_v36 }
0x1016   :  { %v6885_v42 = vrot.slane %v6849_v43, 7  ;;  %v6887_v15 = vrot.slane %v6850_v57, 7  ;;  %v6837_v3 = vadd.f32 %v6817_v29, %v6789_v45  ;;  %v6838_v6 = vadd.f32 %v6817_v29, %v6790_v16  ;;  %v8840_v24 = vpop.eup %8839 }
0x1017   :  { %8841 = vrcp.f32 %v6399_v10  ;;  %v6402_v41 = vadd.f32 1.0, %v8840_v24  ;;  %8349 = vmatpush3.bf16.msra.mxu0 %v8660_v14 }
0x1018   :  { %v6851_v26 = vmul.f32 0.11111111, %v6837_v3  ;;  %v6852_v58 = vmul.f32 0.11111111, %v6838_v6  ;;  %v6888_v46 = vsel %vm3953_vm13, %v6883_v39, %v6887_v15  ;;  %v6886_v52 = vsel %vm3953_vm13, %v6881_v25, %v6885_v42 }
0x1019   :  { %6911 = vrot.lane.b32.xlu1 %v6888_v46, %s8889_s8  ;;  %6909 = vrot.lane.b32.xlu0 %v6886_v52, %s8889_s8  ;;  %8843 = vrcp.f32 %v6402_v41 }
0x101a   :  { %v6889_v1 = vrot.slane %v6851_v26, 7  ;;  %v6891_v21 = vrot.slane %v6852_v58, 7 }
0x101c   :  { %v6892_v53 = vsel %vm3953_vm13, %v6887_v15, %v6891_v21  ;;  %v6890_v27 = vsel %vm3953_vm13, %v6885_v42, %v6889_v1 }
0x101d   :  { %6915 = vrot.lane.b32.xlu1 %v6892_v53, %s8889_s8  ;;  %6913 = vrot.lane.b32.xlu0 %v6890_v27, %s8889_s8 }
0x1021   :  { %v12252_v47 = vpop.eup %8841 }
0x1023   :  { %v12261_v11 = vpop.eup %8843 }
0x1072   :  { %v6894_v35 = vpop.permute.xlu0 %6893  ;;  %v6896_v56 = vpop.permute.xlu1 %6895 }
0x1073   :  { %v6917_v34 = vsel %vm3129_vm12, %v6894_v35, %v6896_v56 }
0x1074   :  { %v6929_v4 = vsub.f32 %v11933_v59, %v6917_v34 }
0x1076   :  { %v6900_v12 = vpop.permute.xlu1 %6899  ;;  %v6898_v37 = vpop.permute.xlu0 %6897 }
0x1077   :  { %v6918_v50 = vsel %vm3129_vm12, %v6898_v37, %v6900_v12 }
0x1078   :  { %v6930_v19 = vsub.f32 %v11939_v60, %v6918_v50 }
0x107a   :  { %v6935_v30 = vpack.c.bf16 %v6930_v19, %v6929_v4 }
0x107c   :  { %8335 = vmatmul.mubr.msk.bf16.vlgmr.msra.gmra.mrb[64].mxu1 %vm2748_vm9, %v6935_v30 }
0x107d   :  { %8338 = vmatprep.mubr.msk.bf16.mxu1 %vm8885_vm3, %v12386_v13 }
0x107e   :  { %v6902_v33 = vpop.permute.xlu0 %6901  ;;  %v6904_v20 = vpop.permute.xlu1 %6903 }
0x107f   :  { %v6919_v28 = vsel %vm3129_vm12, %v6902_v33, %v6904_v20 }
0x1080   :  { %v6931_v54 = vsub.f32 %v12252_v47, %v6919_v28 }
0x1082   :  { %v6906_v25 = vpop.permute.xlu0 %6905  ;;  %v6908_v39 = vpop.permute.xlu1 %6907 }
0x1083   :  { %v6920_v32 = vsel %vm3129_vm12, %v6906_v25, %v6908_v39 }
0x1084   :  { %v6932_v17 = vsub.f32 %v11947_v8, %v6920_v32 }
0x1086   :  { %v6936_v38 = vpack.c.bf16 %v6932_v17, %v6931_v54 }
0x1088   :  { %8339 = vmatmul.mubr.msk.bf16.gmra.mrb[68].mxu1 %vm2748_vm9, %v6936_v38 }
0x1089   :  { %8342 = vmatprep.mubr.msk.bf16.mxu1 %vm8885_vm3, %v12386_v13 }
0x108b   :  { %v6910_v23 = vpop.permute.xlu0 %6909  ;;  %v6912_v62 = vpop.permute.xlu1 %6911 }
0x108c   :  { %v6921_v2 = vsel %vm3129_vm12, %v6910_v23, %v6912_v62 }
0x108d   :  { %v6933_v31 = vsub.f32 %v11959_v61, %v6921_v2 }
0x108f   :  { %v6914_v18 = vpop.permute.xlu0 %6913  ;;  %v6916_v22 = vpop.permute.xlu1 %6915 }
0x1090   :  { %v6922_v51 = vsel %vm3129_vm12, %v6914_v18, %v6916_v22 }
0x1091   :  { %v6934_v0 = vsub.f32 %v12261_v11, %v6922_v51 }
0x1093   :  { %v6937_v9 = vpack.c.bf16 %v6934_v0, %v6933_v31 }
0x1095   :  { %8343 = vmatmul.mubr.msk.bf16.gmra.mrb[72].mxu1 %vm2748_vm9, %v6937_v9 }
0x114f   :  { %v6998_v48 = vpop.f32.mrb[64].mxu1 }
0x1150   :  { %v7029_v43 = vmul.f32 %v7606_v44, %v6998_v48  ;;  %v8336_v57 = vpop.f32.mrb[65].mxu1 }
0x1151   :  { %v7001_v45 = vpop.f32.mrb[66].mxu1 }
0x1152   :  { %v7043_v16 = vadd.f32 %v7608_v7, %v7029_v43  ;;  %v7030_v29 = vmul.f32 %v7606_v44, %v7001_v45  ;;  %v8337_v42 = vpop.f32.mrb[67].mxu1 }
0x1153   :  { %v7086_v42 = vld [vmem:[#allocation6 + $0x8] sm:$0xff] }
0x1154   :  { %v7049_v15 = vsub.f32 0.0, %v7043_v16  ;;  %v7044_v3 = vadd.f32 %v7608_v7, %v7030_v29 }
0x1156   :  { %v7055_v6 = vmul.f32 1.442695, %v7049_v15  ;;  %v7050_v26 = vsub.f32 0.0, %v7044_v3 }
0x1158   :  { %8845 = vpow2.f32 %v7055_v6  ;;  %v7057_v58 = vmul.f32 1.442695, %v7050_v26  ;;  %v7087_v26 = vld [vmem:[#allocation6 + $0x10] sm:$0xff] }
0x115a   :  { %8847 = vpow2.f32 %v7057_v58 }
0x115b   :  { %v7006_v46 = vpop.f32.mrb[68].mxu1 }
0x115c   :  { %v7031_v52 = vmul.f32 %v7606_v44, %v7006_v46  ;;  %v8340_v1 = vpop.f32.mrb[69].mxu1 }
0x115d   :  { %v7009_v21 = vpop.f32.mrb[70].mxu1 }
0x115e   :  { %v7045_v53 = vadd.f32 %v7608_v7, %v7031_v52  ;;  %v7032_v27 = vmul.f32 %v7606_v44, %v7009_v21  ;;  %v8341_v49 = vpop.f32.mrb[71].mxu1 }
0x1160   :  { %v7051_v55 = vsub.f32 0.0, %v7045_v53  ;;  %v7046_v63 = vadd.f32 %v7608_v7, %v7032_v27  ;;  %v7088_v53 = vld [vmem:[#allocation6 + $0x18] sm:$0xff] }
0x1162   :  { %v7059_v40 = vmul.f32 1.442695, %v7051_v55  ;;  %v7052_v36 = vsub.f32 0.0, %v7046_v63  ;;  %v8846_v35 = vpop.eup %8845 }
0x1163   :  { %v7067_v10 = vadd.f32 1.0, %v8846_v35 }
0x1164   :  { %8849 = vpow2.f32 %v7059_v40  ;;  %v7061_v56 = vmul.f32 1.442695, %v7052_v36  ;;  %v8848_v34 = vpop.eup %8847 }
0x1165   :  { %v7068_v12 = vadd.f32 1.0, %v8848_v34 }
0x1166   :  { %8851 = vpow2.f32 %v7061_v56 }
0x1167   :  { %8853 = vrcp.f32 %v7067_v10 }
0x1168   :  { %v7014_v37 = vpop.f32.mrb[72].mxu1  ;;  %8855 = vrcp.f32 %v7068_v12 }
0x1169   :  { %v7033_v50 = vmul.f32 %v7606_v44, %v7014_v37  ;;  %v8344_v4 = vpop.f32.mrb[73].mxu1 }
0x116a   :  { %v7017_v19 = vpop.f32.mrb[74].mxu1 }
0x116b   :  { %v7047_v30 = vadd.f32 %v7608_v7, %v7033_v50  ;;  %v7034_v33 = vmul.f32 %v7606_v44, %v7017_v19  ;;  %v8345_v20 = vpop.f32.mrb[75].mxu1  ;;  %v7089_v50 = vld [vmem:[#allocation6 + $0x20] sm:$0xff] }
0x116c   :  { %v7090_v20 = vld [vmem:[#allocation6 + $0x28] sm:$0xff] }
0x116d   :  { %v7053_v24 = vsub.f32 0.0, %v7047_v30  ;;  %v7048_v28 = vadd.f32 %v7608_v7, %v7034_v33 }
0x116e   :  { %v8850_v41 = vpop.eup %8849 }
0x116f   :  { %v7069_v25 = vadd.f32 1.0, %v8850_v41  ;;  %v7063_v39 = vmul.f32 1.442695, %v7053_v24  ;;  %v7054_v32 = vsub.f32 0.0, %v7048_v28 }
0x1170   :  { %v8852_v54 = vpop.eup %8851 }
0x1171   :  { %v8854_v17 = vpop.eup %8853  ;;  %8857 = vrcp.f32 %v7069_v25  ;;  %v7070_v38 = vadd.f32 1.0, %v8852_v54  ;;  %v7065_v23 = vmul.f32 1.442695, %v7054_v32 }
0x1172   :  { %8859 = vpow2.f32 %v7063_v39  ;;  %v8856_v62 = vpop.eup %8855  ;;  %v7091_v2 = vadd.f32 %v8854_v17, %v11933_v59 }
0x1173   :  { %8861 = vrcp.f32 %v7070_v38  ;;  %v7092_v18 = vadd.f32 %v8856_v62, %v11939_v60 }
0x1174   :  { %8863 = vpow2.f32 %v7065_v23 }
0x1175   :  { %v7097_v22 = vpack.c.bf16 %v7092_v18, %v7091_v2 }
0x1177   :  { %8351 = vmatmul.mubr.msk.bf16.vlgmr.msra.gmra.mrb[72].mxu0 %vm2748_vm9, %v7097_v22 }
0x1178   :  { %8354 = vmatprep.mubr.msk.bf16.mxu0 %vm8885_vm3, %v12386_v13 }
0x117b   :  { %v8858_v51 = vpop.eup %8857 }
0x117c   :  { %v8860_v31 = vpop.eup %8859  ;;  %v7093_v14 = vadd.f32 %v8858_v51, %v12252_v47  ;;  %v7085_v47 = vld [vmem:[#allocation6] sm:$0xff] }
0x117d   :  { %v8862_v0 = vpop.eup %8861  ;;  %v7071_v9 = vadd.f32 1.0, %v8860_v31 }
0x117e   :  { %v8864_v5 = vpop.eup %8863  ;;  %v7094_v44 = vadd.f32 %v8862_v0, %v11947_v8 }
0x117f   :  { %8865 = vrcp.f32 %v7071_v9  ;;  %v7072_v59 = vadd.f32 1.0, %v8864_v5 }
0x1180   :  { %v7098_v48 = vpack.c.bf16 %v7094_v44, %v7093_v14 }
0x1181   :  { %8867 = vrcp.f32 %v7072_v59 }
0x1182   :  { %8355 = vmatmul.mubr.msk.bf16.gmra.mrb[76].mxu0 %vm2748_vm9, %v7098_v48 }
0x1183   :  { %8358 = vmatprep.mubr.msk.bf16.mxu0 %vm8885_vm3, %v12386_v13  ;;  %v7618_v13 = vld [vmem:[%s12338_s17] ss:$0 sm:$0xff] }
0x1189   :  { %v8866_v60 = vpop.eup %8865 }
0x118a   :  { %v7095_v43 = vadd.f32 %v8866_v60, %v11959_v61 }
0x118b   :  { %v8868_v7 = vpop.eup %8867 }
0x118c   :  { %v7096_v57 = vadd.f32 %v8868_v7, %v12261_v11  ;;  %v7619_v11 = vld [vmem:[%s12339_s18] ss:$0 sm:$0xff] }
0x118e   :  { %v7099_v45 = vpack.c.bf16 %v7096_v57, %v7095_v43 }
0x1190   :  { %8359 = vmatmul.mubr.msk.bf16.gmra.mrb[80].mxu0 %vm2748_vm9, %v7099_v45 }
0x124a   :  { %v7160_v8 = vpop.f32.mrb[72].mxu0 }
0x124b   :  { %v7183_v16 = vadd.f32 %v7160_v8, %v7085_v47  ;;  %v8352_v29 = vpop.f32.mrb[73].mxu0 }
0x124c   :  { %v7163_v15 = vpop.f32.mrb[74].mxu0 }
0x124d   :  { %7189 = vst.msk [vmem:[#allocation6] sm:$0xff] %vm135_vm2, %v7183_v16  ;;  %v7184_v3 = vadd.f32 %v7163_v15, %v7086_v42  ;;  %v8353_v6 = vpop.f32.mrb[75].mxu0 }
0x124f   :  { %7190 = vst.msk [vmem:[#allocation6 + $0x8] sm:$0xff] %vm135_vm2, %v7184_v3 }
0x1254   :  { %v7195_v61 = vld [vmem:[#allocation6] sm:$0xff] }
0x1255   :  { %v7168_v58 = vpop.f32.mrb[76].mxu0  ;;  %v7206_v46 = vmul.f32 %v7618_v13, %v7195_v61 }
0x1256   :  { %v7185_v52 = vadd.f32 %v7168_v58, %v7087_v26  ;;  %v8356_v1 = vpop.f32.mrb[77].mxu0  ;;  %v7196_v21 = vld [vmem:[#allocation6 + $0x8] sm:$0xff] }
0x1257   :  { %v7171_v27 = vpop.f32.mrb[78].mxu0  ;;  %v7217_v49 = vadd.f32 %v7619_v11, %v7206_v46  ;;  %v7207_v55 = vmul.f32 %v7618_v13, %v7196_v21 }
0x1258   :  { %7191 = vst.msk [vmem:[#allocation6 + $0x10] sm:$0xff] %vm135_vm2, %v7185_v52  ;;  %v7186_v63 = vadd.f32 %v7171_v27, %v7088_v53  ;;  %v8357_v40 = vpop.f32.mrb[79].mxu0 }
0x1259   :  { %v7221_v36 = vmax.f32 %v7217_v49, 0.0  ;;  %v7218_v35 = vadd.f32 %v7619_v11, %v7207_v55 }
0x125a   :  { %7192 = vst.msk [vmem:[#allocation6 + $0x18] sm:$0xff] %vm135_vm2, %v7186_v63 }
0x125b   :  { %v7626_v56 = vpack.c.bf16 %v7221_v36, %v7221_v36  ;;  %v7222_v10 = vmax.f32 %v7218_v35, 0.0 }
0x125d   :  { %7234 = vst.msk [vmem:[%s12340_s19] sm:$0xf] %vm7233_vm14, %v7626_v56  ;;  %v7627_v34 = vpack.c.bf16 %v7222_v10, %v7222_v10 }
0x125f   :  { %7235 = vst.msk [vmem:[%s12340_s19 + $0x4] sm:$0xf] %vm7233_vm14, %v7627_v34 }
0x1261   :  { %v7197_v12 = vld [vmem:[#allocation6 + $0x18] sm:$0xff] }
0x1262   :  { %v7208_v37 = vmul.f32 %v7618_v13, %v7197_v12 }
0x1263   :  { %v7176_v4 = vpop.f32.mrb[80].mxu0 }
0x1264   :  { %v7219_v19 = vadd.f32 %v7619_v11, %v7208_v37  ;;  %v7187_v30 = vadd.f32 %v7176_v4, %v7089_v50  ;;  %v8360_v33 = vpop.f32.mrb[81].mxu0 }
0x1265   :  { %v7179_v24 = vpop.f32.mrb[82].mxu0 }
0x1266   :  { %v7223_v28 = vmax.f32 %v7219_v19, 0.0  ;;  %7193 = vst.msk [vmem:[#allocation6 + $0x20] sm:$0xff] %vm135_vm2, %v7187_v30  ;;  %v7188_v41 = vadd.f32 %v7179_v24, %v7090_v20  ;;  %v8361_v25 = vpop.f32.mrb[83].mxu0 }
0x1268   :  { %v7628_v39 = vpack.c.bf16 %v7223_v28, %v7223_v28  ;;  %7194 = vst.msk [vmem:[#allocation6 + $0x28] sm:$0xff] %vm135_vm2, %v7188_v41 }
0x126a   :  { %7624 = vst.msk [vmem:[%s12340_s19 + $0x8] sm:$0xf] %vm7233_vm14, %v7628_v39 }
0x126d   :  { %v7198_v32 = vld [vmem:[#allocation6 + $0x20] sm:$0xff] }
0x126e   :  { %v7209_v54 = vmul.f32 %v7618_v13, %v7198_v32 }
0x1270   :  { %v7220_v17 = vadd.f32 %v7619_v11, %v7209_v54 }
0x1272   :  { %v7224_v38 = vmax.f32 %v7220_v17, 0.0 }
0x1274   :  { %v7629_v23 = vpack.c.bf16 %v7224_v38, %v7224_v38 }
0x1276   :  { %7625 = vst.msk [vmem:[%s12340_s19 + $0xc] sm:$0xf] %vm7233_vm14, %v7629_v23 }

</bundles_post_ra>
